<compile_context>
chip_gen: v7x
topology: tpu7x:2x2x1
jax: 0.10.0
libtpu: 0.0.40
codegen_flags: <defaults>
</compile_context>

<pallas_src>
import functools
import math
from typing import NamedTuple

import jax
import jax.numpy as jnp
from jax.experimental import pallas as pl
from jax.experimental.pallas import tpu as pltpu

LANE = 128


def _round_up(x, m):
    return ((x + m - 1) // m) * m


class Dims(NamedTuple):
    E: int    # true feature dim
    Ep: int   # padded feature dim (multiple of 128)
    V: int    # true vocab size
    Vp: int   # padded vocab size (multiple of 128)
    L: int    # GRU decoder layers
    Lg: int   # graph-conv layers


# ----------------------------------------------------------------------------
# Fused Pallas kernel: encoder + GRU decoder + vocab projection
# ----------------------------------------------------------------------------
def graph_seq_kernel(node_ref, src_ref, wn_ref, wt_ref, afw_ref, abw_ref,
                     gws_ref, gwf_ref, gwb_ref, gb_ref, pool_ref,
                     wi_ref, bi_ref,
                     w_ih_ref, w_hh_ref, b_ih_ref, b_hh_ref,
                     wout_ref, bout_ref,
                     logits_ref, hseq_scr,
                     *, n_gconv, num_layers, hidden, seq_len, batch):
    """Whole GraphSeq forward in one grid step.

    Encoder:  h = node_emb @ W_node
              repeat Lg times: h = relu(h@Ws + (A_fw@h)@Wf + (A_bw@h)@Wb + b)
              graph_emb = pool @ h                (mean pooling per graph)
              ctx       = tanh(graph_emb @ W_init + b_init)
    Tokens:   gi0 = (src_emb @ W_tok) @ W_ih(layer0) + b_ih(layer0)   (all T*B rows)
    Decoder:  multi-layer GRU over T steps (hidden carried as values),
              final-layer hidden written to VMEM scratch, then ONE
              (T*B, Ep) @ (Ep, Vp) vocab matmul.
    """
    f32 = jnp.float32
    E = hidden
    B = batch
    T = seq_len

    # ---- graph encoder ----
    h = jnp.dot(node_ref[...], wn_ref[...], preferred_element_type=f32)
    # TODO(synk): for large node counts, tile adjacency over row blocks instead
    # of loading both full (N,N) matrices (v7x 64 MiB VMEM concern).
    for l in range(n_gconv):
        m_fw = jnp.dot(afw_ref[...], h, preferred_element_type=f32)
        m_bw = jnp.dot(abw_ref[...], h, preferred_element_type=f32)
        h = jnp.maximum(
            jnp.dot(h, gws_ref[l], preferred_element_type=f32)
            + jnp.dot(m_fw, gwf_ref[l], preferred_element_type=f32)
            + jnp.dot(m_bw, gwb_ref[l], preferred_element_type=f32)
            + gb_ref[l],
            0.0)
    g = jnp.dot(pool_ref[...], h, preferred_element_type=f32)            # (G, Ep)
    ctx = jnp.tanh(
        jnp.dot(g, wi_ref[...], preferred_element_type=f32) + bi_ref[...])  # (B, Ep)

    # ---- token path: layer-0 input gates for all T*B rows in one matmul ----
    x_tok = jnp.dot(src_ref[...], wt_ref[...], preferred_element_type=f32)  # (T*B, Ep)
    gi0_all = (jnp.dot(x_tok, w_ih_ref[0], preferred_element_type=f32)
               + b_ih_ref[0])                                            # (T*B, 3Ep)

    # ---- GRU decoder: hidden state carried as register values over time ----
    # TODO(synk): time loop is statically unrolled (fine for prototype-scale T);
    # for long sequences move time onto a grid axis with a chunked block.
    hs = [ctx for _ in range(num_layers)]
    for t in range(T):
        x = None
        for l in range(num_layers):
            hprev = hs[l]
            if l == 0:
                gi = gi0_all[t * B:(t + 1) * B, :]      # precomputed x@W_ih0 + b_ih0
            else:
                gi = (jnp.dot(x, w_ih_ref[l], preferred_element_type=f32)
                      + b_ih_ref[l])
            gh = (jnp.dot(hprev, w_hh_ref[l], preferred_element_type=f32)
                  + b_hh_ref[l])
            # E is a multiple of 128, so these slices are lane-tile aligned.
            r = jax.nn.sigmoid(gi[:, 0:E] + gh[:, 0:E])
            z = jax.nn.sigmoid(gi[:, E:2 * E] + gh[:, E:2 * E])
            n = jnp.tanh(gi[:, 2 * E:3 * E] + r * gh[:, 2 * E:3 * E])
            h_new = (1.0 - z) * n + z * hprev
            hs[l] = h_new
            x = h_new
            # TODO(synk): inter-layer rnn_dropout skipped (eval-mode semantics).
        hseq_scr[t * B:(t + 1) * B, :] = x

    # ---- fused vocab projection: ONE (T*B,Ep)@(Ep,Vp) MXU matmul ----
    logits_ref[...] = (
        jnp.dot(hseq_scr[...], wout_ref[...], preferred_element_type=f32)
        + bout_ref[...]).astype(logits_ref.dtype)


def graph_seq_pallas(node_emb, src_emb, a_fw, a_bw, pool, params, dims, T, B):
    """Runs the whole forward (minus gathers / adjacency glue) as one kernel.
    Returns padded logits with time-major rows: (T*B, Vp)."""
    N, Ep = node_emb.shape
    TB = T * B
    G = pool.shape[0]
    Lg, L, Vp = dims.Lg, dims.L, dims.Vp
    kernel = functools.partial(graph_seq_kernel, n_gconv=Lg, num_layers=L,
                               hidden=Ep, seq_len=T, batch=B)
    return pl.pallas_call(
        kernel,
        out_shape=jax.ShapeDtypeStruct((TB, Vp), jnp.float32),
        grid_spec=pltpu.PrefetchScalarGridSpec(
            num_scalar_prefetch=0,
            grid=(1,),
            in_specs=[
                pl.BlockSpec((N, Ep), lambda i: (0, 0)),             # node emb
                pl.BlockSpec((TB, Ep), lambda i: (0, 0)),            # src emb (time-major)
                pl.BlockSpec((Ep, Ep), lambda i: (0, 0)),            # to_node
                pl.BlockSpec((Ep, Ep), lambda i: (0, 0)),            # to_token
                pl.BlockSpec((N, N), lambda i: (0, 0)),              # A_fw
                pl.BlockSpec((N, N), lambda i: (0, 0)),              # A_bw
                pl.BlockSpec((Lg, Ep, Ep), lambda i: (0, 0, 0)),     # gconv Ws
                pl.BlockSpec((Lg, Ep, Ep), lambda i: (0, 0, 0)),     # gconv Wf
                pl.BlockSpec((Lg, Ep, Ep), lambda i: (0, 0, 0)),     # gconv Wb
                pl.BlockSpec((Lg, 1, Ep), lambda i: (0, 0, 0)),      # gconv b
                pl.BlockSpec((G, N), lambda i: (0, 0)),              # pool (mean)
                pl.BlockSpec((Ep, Ep), lambda i: (0, 0)),            # init W
                pl.BlockSpec((1, Ep), lambda i: (0, 0)),             # init b
                pl.BlockSpec((L, Ep, 3 * Ep), lambda i: (0, 0, 0)),  # W_ih (layers)
                pl.BlockSpec((L, Ep, 3 * Ep), lambda i: (0, 0, 0)),  # W_hh
                pl.BlockSpec((L, 1, 3 * Ep), lambda i: (0, 0, 0)),   # b_ih
                pl.BlockSpec((L, 1, 3 * Ep), lambda i: (0, 0, 0)),   # b_hh
                pl.BlockSpec((Ep, Vp), lambda i: (0, 0)),            # out W
                pl.BlockSpec((1, Vp), lambda i: (0, 0)),             # out b
            ],
            out_specs=pl.BlockSpec((TB, Vp), lambda i: (0, 0)),
            scratch_shapes=[pltpu.VMEM((TB, Ep), jnp.float32)],      # final-layer hidden seq
        ),
        compiler_params=pltpu.CompilerParams(dimension_semantics=("arbitrary",)),
    )(node_emb, src_emb, params["to_node_wT"], params["to_token_wT"],
      a_fw, a_bw, params["gconv_ws"], params["gconv_wf"], params["gconv_wb"],
      params["gconv_b"], pool, params["init_wT"], params["init_b"],
      params["gru_w_ih_t"], params["gru_w_hh_t"],
      params["gru_b_ih"], params["gru_b_hh"],
      params["out_wT"], params["out_b"])


# ----------------------------------------------------------------------------
# Parameter init (deterministic, xavier-normal style), zero-padded to lanes
# ----------------------------------------------------------------------------
def xavier(key, fan_out, fan_in):
    std = math.sqrt(2.0 / (fan_in + fan_out))
    return std * jax.random.normal(key, (fan_out, fan_in), jnp.float32)


def pad_to(a, shape):
    out = jnp.zeros(shape, a.dtype)
    return out.at[tuple(slice(0, s) for s in a.shape)].set(a)


def init_params(key, emb_dim, vocab_size, pad_idx, graph_conv_layers,
                rnn_decoder_layers):
    E, V, L, Lg = emb_dim, vocab_size, rnn_decoder_layers, graph_conv_layers
    Ep = _round_up(E, LANE)
    Vp = _round_up(V, LANE)
    dims = Dims(E=E, Ep=Ep, V=V, Vp=Vp, L=L, Lg=Lg)

    keys = iter(jax.random.split(key, 8 + 3 * Lg + 6 * L))
    p = {}
    # TODO(synk): weights kept f32 for exact parity with the f32 reference;
    # storing them bf16 would halve weight DMA bytes at scaled shapes.
    emb = xavier(next(keys), V, E).at[pad_idx].set(0.0)       # padding_idx row = 0
    p["emb"] = pad_to(emb, (V, Ep))
    p["to_node_wT"] = pad_to(xavier(next(keys), E, E).T, (Ep, Ep))
    p["to_token_wT"] = pad_to(xavier(next(keys), E, E).T, (Ep, Ep))

    gws, gwf, gwb, gb = [], [], [], []
    for _ in range(Lg):
        gws.append(pad_to(xavier(next(keys), E, E).T, (Ep, Ep)))
        gwf.append(pad_to(xavier(next(keys), E, E).T, (Ep, Ep)))
        gwb.append(pad_to(xavier(next(keys), E, E).T, (Ep, Ep)))
        gb.append(jnp.zeros((1, Ep), jnp.float32))
    p["gconv_ws"] = jnp.stack(gws)                             # (Lg, Ep, Ep)
    p["gconv_wf"] = jnp.stack(gwf)
    p["gconv_wb"] = jnp.stack(gwb)
    p["gconv_b"] = jnp.stack(gb)                               # (Lg, 1, Ep)

    p["init_wT"] = pad_to(xavier(next(keys), E, E).T, (Ep, Ep))
    p["init_b"] = jnp.zeros((1, Ep), jnp.float32)

    w_ih, w_hh, b_ih, b_hh = [], [], [], []
    for _ in range(L):
        # pad each gate block separately so gate g occupies cols [g*Ep, g*Ep+E)
        gates_ih = [pad_to(xavier(next(keys), E, E), (Ep, Ep)) for _ in range(3)]
        gates_hh = [pad_to(xavier(next(keys), E, E), (Ep, Ep)) for _ in range(3)]
        w_ih.append(jnp.concatenate(gates_ih, axis=0).T)       # (Ep, 3Ep)
        w_hh.append(jnp.concatenate(gates_hh, axis=0).T)
        b_ih.append(jnp.zeros((1, 3 * Ep), jnp.float32))
        b_hh.append(jnp.zeros((1, 3 * Ep), jnp.float32))
    p["gru_w_ih_t"] = jnp.stack(w_ih)                          # (L, Ep, 3Ep)
    p["gru_w_hh_t"] = jnp.stack(w_hh)
    p["gru_b_ih"] = jnp.stack(b_ih)                            # (L, 1, 3Ep)
    p["gru_b_hh"] = jnp.stack(b_hh)

    p["out_wT"] = pad_to(xavier(next(keys), V, E).T, (Ep, Vp))  # (Ep, Vp)
    p["out_b"] = jnp.zeros((1, Vp), jnp.float32)
    return p, dims


# ----------------------------------------------------------------------------
# Forward pass (glue in XLA, all hot math in ONE fused Pallas kernel)
# ----------------------------------------------------------------------------
def edges_to_adj(edge_idx, num_nodes):
    # message flows src -> dst ; row-normalized (mean aggregation)
    src, dst = edge_idx[0], edge_idx[1]
    adj = jnp.zeros((num_nodes, num_nodes), jnp.float32).at[dst, src].add(1.0)
    deg = jnp.clip(adj.sum(axis=1, keepdims=True), 1.0)
    return adj / deg


@functools.partial(jax.jit, static_argnames=("num_graphs", "dims"))
def graph_seq_forward(params, node_idx, src_idx, fw_edge_idx, bw_edge_idx,
                      batch, *, num_graphs, dims):
    V, Vp = dims.V, dims.Vp
    emb_w = params["emb"]                                                # (V, Ep)

    # --- embedding gathers (XLA) ---
    node_emb = jnp.take(emb_w, node_idx, axis=0)                         # (N, Ep)
    B, T = src_idx.shape
    # transpose the tiny (B,T) index array so gathered rows are time-major;
    # avoids transposing any full (T,B,E) activation tensor later.
    src_emb = jnp.take(emb_w, src_idx.T.reshape(-1), axis=0)             # (T*B, Ep)

    # --- adjacency + mean-pool matrices ---
    N = node_emb.shape[0]
    a_fw = edges_to_adj(fw_edge_idx, N)
    a_bw = edges_to_adj(bw_edge_idx, N)
    one_hot = jax.nn.one_hot(batch, num_graphs, dtype=jnp.float32)       # (N, G)
    counts = jnp.clip(one_hot.sum(axis=0), 1.0)
    pool = (one_hot / counts).T                                          # (G, N)

    # --- single fused Pallas kernel: encoder + GRU + vocab projection ---
    logits_pad = graph_seq_pallas(node_emb, src_emb, a_fw, a_bw, pool,
                                  params, dims, T, B)                    # (T*B, Vp)

    # back to (B, T, V): small final transpose + slice off lane padding
    return logits_pad.reshape(T, B, Vp).transpose(1, 0, 2)[:, :, :V]


# ----------------------------------------------------------------------------
if __name__ == "__main__":
    emb_dim = 32
    vocab_size = 50
    pad_idx = 0
    graph_conv_layers = 2
    rnn_decoder_layers = 2
    B = 2              # number of graphs == decoder batch
    T = 8              # target sequence length
    nodes_per_graph = 8
    N = B * nodes_per_graph

    key = jax.random.PRNGKey(0)
    k_params, k_nodes, k_src = jax.random.split(key, 3)

    params, dims = init_params(k_params, emb_dim, vocab_size, pad_idx,
                               graph_conv_layers, rnn_decoder_layers)

    node_idx = jax.random.randint(k_nodes, (N,), 1, vocab_size, dtype=jnp.int32)
    src_idx = jax.random.randint(k_src, (B, T), 1, vocab_size, dtype=jnp.int32)

    # deterministic chain edges within each graph; bw = reversed fw
    src_nodes, dst_nodes = [], []
    for g in range(B):
        base = g * nodes_per_graph
        for i in range(nodes_per_graph - 1):
            src_nodes.append(base + i)
            dst_nodes.append(base + i + 1)
    fw_edge_idx = jnp.array([src_nodes, dst_nodes], dtype=jnp.int32)
    bw_edge_idx = jnp.array([dst_nodes, src_nodes], dtype=jnp.int32)
    batch = jnp.repeat(jnp.arange(B, dtype=jnp.int32), nodes_per_graph)

    out = graph_seq_forward(params, node_idx, src_idx, fw_edge_idx, bw_edge_idx,
                            batch, num_graphs=B, dims=dims)
    out = jax.block_until_ready(out)
    assert out.shape == (B, T, vocab_size)
    assert bool(jnp.all(jnp.isfinite(out)))
    print("KERNEL_OK")
</pallas_src>

<mosaic_0001>
module attributes {stable_mosaic.version = 11 : i64} {
  func.func @graph_seq_kernel(%arg0: i32, %arg1: memref<16x128xf32, #tpu.memory_space<vmem>>, %arg2: memref<16x128xf32, #tpu.memory_space<vmem>>, %arg3: memref<128x128xf32, #tpu.memory_space<vmem>>, %arg4: memref<128x128xf32, #tpu.memory_space<vmem>>, %arg5: memref<16x16xf32, #tpu.memory_space<vmem>>, %arg6: memref<16x16xf32, #tpu.memory_space<vmem>>, %arg7: memref<2x128x128xf32, #tpu.memory_space<vmem>>, %arg8: memref<2x128x128xf32, #tpu.memory_space<vmem>>, %arg9: memref<2x128x128xf32, #tpu.memory_space<vmem>>, %arg10: memref<2x1x128xf32, #tpu.memory_space<vmem>>, %arg11: memref<2x16xf32, #tpu.memory_space<vmem>>, %arg12: memref<128x128xf32, #tpu.memory_space<vmem>>, %arg13: memref<1x128xf32, #tpu.memory_space<vmem>>, %arg14: memref<2x128x384xf32, #tpu.memory_space<vmem>>, %arg15: memref<2x128x384xf32, #tpu.memory_space<vmem>>, %arg16: memref<2x1x384xf32, #tpu.memory_space<vmem>>, %arg17: memref<2x1x384xf32, #tpu.memory_space<vmem>>, %arg18: memref<128x128xf32, #tpu.memory_space<vmem>>, %arg19: memref<1x128xf32, #tpu.memory_space<vmem>>, %arg20: memref<16x128xf32, #tpu.memory_space<vmem>>, %arg21: memref<16x128xf32, #tpu.memory_space<vmem>>) attributes {dimension_semantics = [#tpu.dimension_semantics<arbitrary>], iteration_bounds = array<i64: 1>, scalar_prefetch = 0 : i64, scratch_operands = 1 : i64, tpu.core_type = #tpu.core_type<tc>, window_params = [{pipeline_mode = #tpu.pipeline_mode<synchronous>, transform_indices = @transform_0, window_bounds = array<i64: 16, 128>}, {pipeline_mode = #tpu.pipeline_mode<synchronous>, transform_indices = @transform_1, window_bounds = array<i64: 16, 128>}, {pipeline_mode = #tpu.pipeline_mode<synchronous>, transform_indices = @transform_2, window_bounds = array<i64: 128, 128>}, {pipeline_mode = #tpu.pipeline_mode<synchronous>, transform_indices = @transform_3, window_bounds = array<i64: 128, 128>}, {pipeline_mode = #tpu.pipeline_mode<synchronous>, transform_indices = @transform_4, window_bounds = array<i64: 16, 16>}, {pipeline_mode = #tpu.pipeline_mode<synchronous>, transform_indices = @transform_5, window_bounds = array<i64: 16, 16>}, {pipeline_mode = #tpu.pipeline_mode<synchronous>, transform_indices = @transform_6, window_bounds = array<i64: 2, 128, 128>}, {pipeline_mode = #tpu.pipeline_mode<synchronous>, transform_indices = @transform_7, window_bounds = array<i64: 2, 128, 128>}, {pipeline_mode = #tpu.pipeline_mode<synchronous>, transform_indices = @transform_8, window_bounds = array<i64: 2, 128, 128>}, {pipeline_mode = #tpu.pipeline_mode<synchronous>, transform_indices = @transform_9, window_bounds = array<i64: 2, 1, 128>}, {pipeline_mode = #tpu.pipeline_mode<synchronous>, transform_indices = @transform_10, window_bounds = array<i64: 2, 16>}, {pipeline_mode = #tpu.pipeline_mode<synchronous>, transform_indices = @transform_11, window_bounds = array<i64: 128, 128>}, {pipeline_mode = #tpu.pipeline_mode<synchronous>, transform_indices = @transform_12, window_bounds = array<i64: 1, 128>}, {pipeline_mode = #tpu.pipeline_mode<synchronous>, transform_indices = @transform_13, window_bounds = array<i64: 2, 128, 384>}, {pipeline_mode = #tpu.pipeline_mode<synchronous>, transform_indices = @transform_14, window_bounds = array<i64: 2, 128, 384>}, {pipeline_mode = #tpu.pipeline_mode<synchronous>, transform_indices = @transform_15, window_bounds = array<i64: 2, 1, 384>}, {pipeline_mode = #tpu.pipeline_mode<synchronous>, transform_indices = @transform_16, window_bounds = array<i64: 2, 1, 384>}, {pipeline_mode = #tpu.pipeline_mode<synchronous>, transform_indices = @transform_17, window_bounds = array<i64: 128, 128>}, {pipeline_mode = #tpu.pipeline_mode<synchronous>, transform_indices = @transform_18, window_bounds = array<i64: 1, 128>}, {pipeline_mode = #tpu.pipeline_mode<synchronous>, transform_indices = @transform_19, window_bounds = array<i64: 16, 128>}]} {
    %c0 = arith.constant 0 : index
    %c0_0 = arith.constant 0 : index
    %0 = vector.load %arg1[%c0, %c0_0] : memref<16x128xf32, #tpu.memory_space<vmem>>, vector<16x128xf32>
    %c0_1 = arith.constant 0 : index
    %c0_2 = arith.constant 0 : index
    %1 = vector.load %arg3[%c0_1, %c0_2] : memref<128x128xf32, #tpu.memory_space<vmem>>, vector<128x128xf32>
    %cst = arith.constant dense<0.000000e+00> : vector<16x128xf32>
    %2 = tpu.matmul %0, %1, %cst {dimension_numbers = #tpu.dot_dimension_numbers<[1], [0], [0], [1], [0, 0, 1, 1], [], []>} : vector<16x128xf32>, vector<128x128xf32>, vector<16x128xf32> -> vector<16x128xf32>
    %c0_3 = arith.constant 0 : index
    %c0_4 = arith.constant 0 : index
    %3 = vector.load %arg5[%c0_3, %c0_4] : memref<16x16xf32, #tpu.memory_space<vmem>>, vector<16x16xf32>
    %cst_5 = arith.constant dense<0.000000e+00> : vector<16x128xf32>
    %4 = tpu.matmul %3, %2, %cst_5 {dimension_numbers = #tpu.dot_dimension_numbers<[1], [0], [0], [1], [0, 0, 1, 1], [], []>} : vector<16x16xf32>, vector<16x128xf32>, vector<16x128xf32> -> vector<16x128xf32>
    %c0_6 = arith.constant 0 : index
    %c0_7 = arith.constant 0 : index
    %5 = vector.load %arg6[%c0_6, %c0_7] : memref<16x16xf32, #tpu.memory_space<vmem>>, vector<16x16xf32>
    %cst_8 = arith.constant dense<0.000000e+00> : vector<16x128xf32>
    %6 = tpu.matmul %5, %2, %cst_8 {dimension_numbers = #tpu.dot_dimension_numbers<[1], [0], [0], [1], [0, 0, 1, 1], [], []>} : vector<16x16xf32>, vector<16x128xf32>, vector<16x128xf32> -> vector<16x128xf32>
    %c0_9 = arith.constant 0 : index
    %c0_10 = arith.constant 0 : index
    %c0_11 = arith.constant 0 : index
    %7 = vector.load %arg7[%c0_9, %c0_10, %c0_11] : memref<2x128x128xf32, #tpu.memory_space<vmem>>, vector<1x128x128xf32>
    %8 = vector.shape_cast %7 : vector<1x128x128xf32> to vector<128x128xf32>
    %cst_12 = arith.constant dense<0.000000e+00> : vector<16x128xf32>
    %9 = tpu.matmul %2, %8, %cst_12 {dimension_numbers = #tpu.dot_dimension_numbers<[1], [0], [0], [1], [0, 0, 1, 1], [], []>} : vector<16x128xf32>, vector<128x128xf32>, vector<16x128xf32> -> vector<16x128xf32>
    %c0_13 = arith.constant 0 : index
    %c0_14 = arith.constant 0 : index
    %c0_15 = arith.constant 0 : index
    %10 = vector.load %arg8[%c0_13, %c0_14, %c0_15] : memref<2x128x128xf32, #tpu.memory_space<vmem>>, vector<1x128x128xf32>
    %11 = vector.shape_cast %10 : vector<1x128x128xf32> to vector<128x128xf32>
    %cst_16 = arith.constant dense<0.000000e+00> : vector<16x128xf32>
    %12 = tpu.matmul %4, %11, %cst_16 {dimension_numbers = #tpu.dot_dimension_numbers<[1], [0], [0], [1], [0, 0, 1, 1], [], []>} : vector<16x128xf32>, vector<128x128xf32>, vector<16x128xf32> -> vector<16x128xf32>
    %13 = arith.addf %9, %12 : vector<16x128xf32>
    %c0_17 = arith.constant 0 : index
    %c0_18 = arith.constant 0 : index
    %c0_19 = arith.constant 0 : index
    %14 = vector.load %arg9[%c0_17, %c0_18, %c0_19] : memref<2x128x128xf32, #tpu.memory_space<vmem>>, vector<1x128x128xf32>
    %15 = vector.shape_cast %14 : vector<1x128x128xf32> to vector<128x128xf32>
    %cst_20 = arith.constant dense<0.000000e+00> : vector<16x128xf32>
    %16 = tpu.matmul %6, %15, %cst_20 {dimension_numbers = #tpu.dot_dimension_numbers<[1], [0], [0], [1], [0, 0, 1, 1], [], []>} : vector<16x128xf32>, vector<128x128xf32>, vector<16x128xf32> -> vector<16x128xf32>
    %17 = arith.addf %13, %16 : vector<16x128xf32>
    %c0_21 = arith.constant 0 : index
    %c0_22 = arith.constant 0 : index
    %c0_23 = arith.constant 0 : index
    %18 = vector.load %arg10[%c0_21, %c0_22, %c0_23] : memref<2x1x128xf32, #tpu.memory_space<vmem>>, vector<1x1x128xf32>
    %19 = vector.shape_cast %18 : vector<1x1x128xf32> to vector<1x128xf32>
    %20 = vector.broadcast %19 : vector<1x128xf32> to vector<16x128xf32>
    %21 = arith.addf %17, %20 : vector<16x128xf32>
    %cst_24 = arith.constant 0.000000e+00 : f32
    %22 = vector.broadcast %cst_24 : f32 to vector<16x128xf32>
    %23 = arith.maximumf %21, %22 : vector<16x128xf32>
    %c0_25 = arith.constant 0 : index
    %c0_26 = arith.constant 0 : index
    %24 = vector.load %arg5[%c0_25, %c0_26] : memref<16x16xf32, #tpu.memory_space<vmem>>, vector<16x16xf32>
    %cst_27 = arith.constant dense<0.000000e+00> : vector<16x128xf32>
    %25 = tpu.matmul %24, %23, %cst_27 {dimension_numbers = #tpu.dot_dimension_numbers<[1], [0], [0], [1], [0, 0, 1, 1], [], []>} : vector<16x16xf32>, vector<16x128xf32>, vector<16x128xf32> -> vector<16x128xf32>
    %c0_28 = arith.constant 0 : index
    %c0_29 = arith.constant 0 : index
    %26 = vector.load %arg6[%c0_28, %c0_29] : memref<16x16xf32, #tpu.memory_space<vmem>>, vector<16x16xf32>
    %cst_30 = arith.constant dense<0.000000e+00> : vector<16x128xf32>
    %27 = tpu.matmul %26, %23, %cst_30 {dimension_numbers = #tpu.dot_dimension_numbers<[1], [0], [0], [1], [0, 0, 1, 1], [], []>} : vector<16x16xf32>, vector<16x128xf32>, vector<16x128xf32> -> vector<16x128xf32>
    %c1 = arith.constant 1 : index
    %c0_31 = arith.constant 0 : index
    %c0_32 = arith.constant 0 : index
    %28 = vector.load %arg7[%c1, %c0_31, %c0_32] : memref<2x128x128xf32, #tpu.memory_space<vmem>>, vector<1x128x128xf32>
    %29 = vector.shape_cast %28 : vector<1x128x128xf32> to vector<128x128xf32>
    %cst_33 = arith.constant dense<0.000000e+00> : vector<16x128xf32>
    %30 = tpu.matmul %23, %29, %cst_33 {dimension_numbers = #tpu.dot_dimension_numbers<[1], [0], [0], [1], [0, 0, 1, 1], [], []>} : vector<16x128xf32>, vector<128x128xf32>, vector<16x128xf32> -> vector<16x128xf32>
    %c1_34 = arith.constant 1 : index
    %c0_35 = arith.constant 0 : index
    %c0_36 = arith.constant 0 : index
    %31 = vector.load %arg8[%c1_34, %c0_35, %c0_36] : memref<2x128x128xf32, #tpu.memory_space<vmem>>, vector<1x128x128xf32>
    %32 = vector.shape_cast %31 : vector<1x128x128xf32> to vector<128x128xf32>
    %cst_37 = arith.constant dense<0.000000e+00> : vector<16x128xf32>
    %33 = tpu.matmul %25, %32, %cst_37 {dimension_numbers = #tpu.dot_dimension_numbers<[1], [0], [0], [1], [0, 0, 1, 1], [], []>} : vector<16x128xf32>, vector<128x128xf32>, vector<16x128xf32> -> vector<16x128xf32>
    %34 = arith.addf %30, %33 : vector<16x128xf32>
    %c1_38 = arith.constant 1 : index
    %c0_39 = arith.constant 0 : index
    %c0_40 = arith.constant 0 : index
    %35 = vector.load %arg9[%c1_38, %c0_39, %c0_40] : memref<2x128x128xf32, #tpu.memory_space<vmem>>, vector<1x128x128xf32>
    %36 = vector.shape_cast %35 : vector<1x128x128xf32> to vector<128x128xf32>
    %cst_41 = arith.constant dense<0.000000e+00> : vector<16x128xf32>
    %37 = tpu.matmul %27, %36, %cst_41 {dimension_numbers = #tpu.dot_dimension_numbers<[1], [0], [0], [1], [0, 0, 1, 1], [], []>} : vector<16x128xf32>, vector<128x128xf32>, vector<16x128xf32> -> vector<16x128xf32>
    %38 = arith.addf %34, %37 : vector<16x128xf32>
    %c1_42 = arith.constant 1 : index
    %c0_43 = arith.constant 0 : index
    %c0_44 = arith.constant 0 : index
    %39 = vector.load %arg10[%c1_42, %c0_43, %c0_44] : memref<2x1x128xf32, #tpu.memory_space<vmem>>, vector<1x1x128xf32>
    %40 = vector.shape_cast %39 : vector<1x1x128xf32> to vector<1x128xf32>
    %41 = vector.broadcast %40 : vector<1x128xf32> to vector<16x128xf32>
    %42 = arith.addf %38, %41 : vector<16x128xf32>
    %cst_45 = arith.constant 0.000000e+00 : f32
    %43 = vector.broadcast %cst_45 : f32 to vector<16x128xf32>
    %44 = arith.maximumf %42, %43 : vector<16x128xf32>
    %c0_46 = arith.constant 0 : index
    %c0_47 = arith.constant 0 : index
    %45 = vector.load %arg11[%c0_46, %c0_47] : memref<2x16xf32, #tpu.memory_space<vmem>>, vector<2x16xf32>
    %cst_48 = arith.constant dense<0.000000e+00> : vector<2x128xf32>
    %46 = tpu.matmul %45, %44, %cst_48 {dimension_numbers = #tpu.dot_dimension_numbers<[1], [0], [0], [1], [0, 0, 1, 1], [], []>} : vector<2x16xf32>, vector<16x128xf32>, vector<2x128xf32> -> vector<2x128xf32>
    %c0_49 = arith.constant 0 : index
    %c0_50 = arith.constant 0 : index
    %47 = vector.load %arg12[%c0_49, %c0_50] : memref<128x128xf32, #tpu.memory_space<vmem>>, vector<128x128xf32>
    %cst_51 = arith.constant dense<0.000000e+00> : vector<2x128xf32>
    %48 = tpu.matmul %46, %47, %cst_51 {dimension_numbers = #tpu.dot_dimension_numbers<[1], [0], [0], [1], [0, 0, 1, 1], [], []>} : vector<2x128xf32>, vector<128x128xf32>, vector<2x128xf32> -> vector<2x128xf32>
    %c0_52 = arith.constant 0 : index
    %c0_53 = arith.constant 0 : index
    %49 = vector.load %arg13[%c0_52, %c0_53] : memref<1x128xf32, #tpu.memory_space<vmem>>, vector<1x128xf32>
    %50 = vector.broadcast %49 : vector<1x128xf32> to vector<2x128xf32>
    %51 = arith.addf %48, %50 : vector<2x128xf32>
    %52 = math.tanh %51 : vector<2x128xf32>
    %c0_54 = arith.constant 0 : index
    %c0_55 = arith.constant 0 : index
    %53 = vector.load %arg2[%c0_54, %c0_55] : memref<16x128xf32, #tpu.memory_space<vmem>>, vector<16x128xf32>
    %c0_56 = arith.constant 0 : index
    %c0_57 = arith.constant 0 : index
    %54 = vector.load %arg4[%c0_56, %c0_57] : memref<128x128xf32, #tpu.memory_space<vmem>>, vector<128x128xf32>
    %cst_58 = arith.constant dense<0.000000e+00> : vector<16x128xf32>
    %55 = tpu.matmul %53, %54, %cst_58 {dimension_numbers = #tpu.dot_dimension_numbers<[1], [0], [0], [1], [0, 0, 1, 1], [], []>} : vector<16x128xf32>, vector<128x128xf32>, vector<16x128xf32> -> vector<16x128xf32>
    %c0_59 = arith.constant 0 : index
    %c0_60 = arith.constant 0 : index
    %c0_61 = arith.constant 0 : index
    %56 = vector.load %arg14[%c0_59, %c0_60, %c0_61] : memref<2x128x384xf32, #tpu.memory_space<vmem>>, vector<1x128x384xf32>
    %57 = vector.shape_cast %56 : vector<1x128x384xf32> to vector<128x384xf32>
    %cst_62 = arith.constant dense<0.000000e+00> : vector<16x384xf32>
    %58 = tpu.matmul %55, %57, %cst_62 {dimension_numbers = #tpu.dot_dimension_numbers<[1], [0], [0], [1], [0, 0, 1, 1], [], []>} : vector<16x128xf32>, vector<128x384xf32>, vector<16x384xf32> -> vector<16x384xf32>
    %c0_63 = arith.constant 0 : index
    %c0_64 = arith.constant 0 : index
    %c0_65 = arith.constant 0 : index
    %59 = vector.load %arg16[%c0_63, %c0_64, %c0_65] : memref<2x1x384xf32, #tpu.memory_space<vmem>>, vector<1x1x384xf32>
    %60 = vector.shape_cast %59 : vector<1x1x384xf32> to vector<1x384xf32>
    %61 = vector.broadcast %60 : vector<1x384xf32> to vector<16x384xf32>
    %62 = arith.addf %58, %61 : vector<16x384xf32>
    %63 = vector.extract_strided_slice %62 {offsets = [0, 0], sizes = [2, 384], strides = [1, 1]} : vector<16x384xf32> to vector<2x384xf32>
    %c0_66 = arith.constant 0 : index
    %c0_67 = arith.constant 0 : index
    %c0_68 = arith.constant 0 : index
    %64 = vector.load %arg15[%c0_66, %c0_67, %c0_68] : memref<2x128x384xf32, #tpu.memory_space<vmem>>, vector<1x128x384xf32>
    %65 = vector.shape_cast %64 : vector<1x128x384xf32> to vector<128x384xf32>
    %cst_69 = arith.constant dense<0.000000e+00> : vector<2x384xf32>
    %66 = tpu.matmul %52, %65, %cst_69 {dimension_numbers = #tpu.dot_dimension_numbers<[1], [0], [0], [1], [0, 0, 1, 1], [], []>} : vector<2x128xf32>, vector<128x384xf32>, vector<2x384xf32> -> vector<2x384xf32>
    %c0_70 = arith.constant 0 : index
    %c0_71 = arith.constant 0 : index
    %c0_72 = arith.constant 0 : index
    %67 = vector.load %arg17[%c0_70, %c0_71, %c0_72] : memref<2x1x384xf32, #tpu.memory_space<vmem>>, vector<1x1x384xf32>
    %68 = vector.shape_cast %67 : vector<1x1x384xf32> to vector<1x384xf32>
    %69 = vector.broadcast %68 : vector<1x384xf32> to vector<2x384xf32>
    %70 = arith.addf %66, %69 : vector<2x384xf32>
    %71 = vector.extract_strided_slice %63 {offsets = [0, 0], sizes = [2, 128], strides = [1, 1]} : vector<2x384xf32> to vector<2x128xf32>
    %72 = vector.extract_strided_slice %70 {offsets = [0, 0], sizes = [2, 128], strides = [1, 1]} : vector<2x384xf32> to vector<2x128xf32>
    %73 = arith.addf %71, %72 : vector<2x128xf32>
    %74 = arith.negf %73 : vector<2x128xf32>
    %75 = math.exp %74 : vector<2x128xf32>
    %cst_73 = arith.constant 1.000000e+00 : f32
    %76 = vector.broadcast %cst_73 : f32 to vector<2x128xf32>
    %77 = arith.addf %76, %75 : vector<2x128xf32>
    %78 = arith.divf %76, %77 : vector<2x128xf32>
    %79 = vector.extract_strided_slice %63 {offsets = [0, 128], sizes = [2, 128], strides = [1, 1]} : vector<2x384xf32> to vector<2x128xf32>
    %80 = vector.extract_strided_slice %70 {offsets = [0, 128], sizes = [2, 128], strides = [1, 1]} : vector<2x384xf32> to vector<2x128xf32>
    %81 = arith.addf %79, %80 : vector<2x128xf32>
    %82 = arith.negf %81 : vector<2x128xf32>
    %83 = math.exp %82 : vector<2x128xf32>
    %cst_74 = arith.constant 1.000000e+00 : f32
    %84 = vector.broadcast %cst_74 : f32 to vector<2x128xf32>
    %85 = arith.addf %84, %83 : vector<2x128xf32>
    %86 = arith.divf %84, %85 : vector<2x128xf32>
    %87 = vector.extract_strided_slice %63 {offsets = [0, 256], sizes = [2, 128], strides = [1, 1]} : vector<2x384xf32> to vector<2x128xf32>
    %88 = vector.extract_strided_slice %70 {offsets = [0, 256], sizes = [2, 128], strides = [1, 1]} : vector<2x384xf32> to vector<2x128xf32>
    %89 = arith.mulf %78, %88 : vector<2x128xf32>
    %90 = arith.addf %87, %89 : vector<2x128xf32>
    %91 = math.tanh %90 : vector<2x128xf32>
    %cst_75 = arith.constant 1.000000e+00 : f32
    %92 = vector.broadcast %cst_75 : f32 to vector<2x128xf32>
    %93 = arith.subf %92, %86 : vector<2x128xf32>
    %94 = arith.mulf %93, %91 : vector<2x128xf32>
    %95 = arith.mulf %86, %52 : vector<2x128xf32>
    %96 = arith.addf %94, %95 : vector<2x128xf32>
    %c1_76 = arith.constant 1 : index
    %c0_77 = arith.constant 0 : index
    %c0_78 = arith.constant 0 : index
    %97 = vector.load %arg14[%c1_76, %c0_77, %c0_78] : memref<2x128x384xf32, #tpu.memory_space<vmem>>, vector<1x128x384xf32>
    %98 = vector.shape_cast %97 : vector<1x128x384xf32> to vector<128x384xf32>
    %cst_79 = arith.constant dense<0.000000e+00> : vector<2x384xf32>
    %99 = tpu.matmul %96, %98, %cst_79 {dimension_numbers = #tpu.dot_dimension_numbers<[1], [0], [0], [1], [0, 0, 1, 1], [], []>} : vector<2x128xf32>, vector<128x384xf32>, vector<2x384xf32> -> vector<2x384xf32>
    %c1_80 = arith.constant 1 : index
    %c0_81 = arith.constant 0 : index
    %c0_82 = arith.constant 0 : index
    %100 = vector.load %arg16[%c1_80, %c0_81, %c0_82] : memref<2x1x384xf32, #tpu.memory_space<vmem>>, vector<1x1x384xf32>
    %101 = vector.shape_cast %100 : vector<1x1x384xf32> to vector<1x384xf32>
    %102 = vector.broadcast %101 : vector<1x384xf32> to vector<2x384xf32>
    %103 = arith.addf %99, %102 : vector<2x384xf32>
    %c1_83 = arith.constant 1 : index
    %c0_84 = arith.constant 0 : index
    %c0_85 = arith.constant 0 : index
    %104 = vector.load %arg15[%c1_83, %c0_84, %c0_85] : memref<2x128x384xf32, #tpu.memory_space<vmem>>, vector<1x128x384xf32>
    %105 = vector.shape_cast %104 : vector<1x128x384xf32> to vector<128x384xf32>
    %cst_86 = arith.constant dense<0.000000e+00> : vector<2x384xf32>
    %106 = tpu.matmul %52, %105, %cst_86 {dimension_numbers = #tpu.dot_dimension_numbers<[1], [0], [0], [1], [0, 0, 1, 1], [], []>} : vector<2x128xf32>, vector<128x384xf32>, vector<2x384xf32> -> vector<2x384xf32>
    %c1_87 = arith.constant 1 : index
    %c0_88 = arith.constant 0 : index
    %c0_89 = arith.constant 0 : index
    %107 = vector.load %arg17[%c1_87, %c0_88, %c0_89] : memref<2x1x384xf32, #tpu.memory_space<vmem>>, vector<1x1x384xf32>
    %108 = vector.shape_cast %107 : vector<1x1x384xf32> to vector<1x384xf32>
    %109 = vector.broadcast %108 : vector<1x384xf32> to vector<2x384xf32>
    %110 = arith.addf %106, %109 : vector<2x384xf32>
    %111 = vector.extract_strided_slice %103 {offsets = [0, 0], sizes = [2, 128], strides = [1, 1]} : vector<2x384xf32> to vector<2x128xf32>
    %112 = vector.extract_strided_slice %110 {offsets = [0, 0], sizes = [2, 128], strides = [1, 1]} : vector<2x384xf32> to vector<2x128xf32>
    %113 = arith.addf %111, %112 : vector<2x128xf32>
    %114 = arith.negf %113 : vector<2x128xf32>
    %115 = math.exp %114 : vector<2x128xf32>
    %cst_90 = arith.constant 1.000000e+00 : f32
    %116 = vector.broadcast %cst_90 : f32 to vector<2x128xf32>
    %117 = arith.addf %116, %115 : vector<2x128xf32>
    %118 = arith.divf %116, %117 : vector<2x128xf32>
    %119 = vector.extract_strided_slice %103 {offsets = [0, 128], sizes = [2, 128], strides = [1, 1]} : vector<2x384xf32> to vector<2x128xf32>
    %120 = vector.extract_strided_slice %110 {offsets = [0, 128], sizes = [2, 128], strides = [1, 1]} : vector<2x384xf32> to vector<2x128xf32>
    %121 = arith.addf %119, %120 : vector<2x128xf32>
    %122 = arith.negf %121 : vector<2x128xf32>
    %123 = math.exp %122 : vector<2x128xf32>
    %cst_91 = arith.constant 1.000000e+00 : f32
    %124 = vector.broadcast %cst_91 : f32 to vector<2x128xf32>
    %125 = arith.addf %124, %123 : vector<2x128xf32>
    %126 = arith.divf %124, %125 : vector<2x128xf32>
    %127 = vector.extract_strided_slice %103 {offsets = [0, 256], sizes = [2, 128], strides = [1, 1]} : vector<2x384xf32> to vector<2x128xf32>
    %128 = vector.extract_strided_slice %110 {offsets = [0, 256], sizes = [2, 128], strides = [1, 1]} : vector<2x384xf32> to vector<2x128xf32>
    %129 = arith.mulf %118, %128 : vector<2x128xf32>
    %130 = arith.addf %127, %129 : vector<2x128xf32>
    %131 = math.tanh %130 : vector<2x128xf32>
    %cst_92 = arith.constant 1.000000e+00 : f32
    %132 = vector.broadcast %cst_92 : f32 to vector<2x128xf32>
    %133 = arith.subf %132, %126 : vector<2x128xf32>
    %134 = arith.mulf %133, %131 : vector<2x128xf32>
    %135 = arith.mulf %126, %52 : vector<2x128xf32>
    %136 = arith.addf %134, %135 : vector<2x128xf32>
    %c0_93 = arith.constant 0 : index
    %c0_94 = arith.constant 0 : index
    %137 = vector.load %arg21[%c0_93, %c0_94] : memref<16x128xf32, #tpu.memory_space<vmem>>, vector<2x128xf32>
    tpu.vector_store %arg21[%c0_93, %c0_94], %136 {strides = array<i32>} : memref<16x128xf32, #tpu.memory_space<vmem>>, vector<2x128xf32>,
    %138 = vector.extract_strided_slice %62 {offsets = [2, 0], sizes = [2, 384], strides = [1, 1]} : vector<16x384xf32> to vector<2x384xf32>
    %c0_95 = arith.constant 0 : index
    %c0_96 = arith.constant 0 : index
    %c0_97 = arith.constant 0 : index
    %139 = vector.load %arg15[%c0_95, %c0_96, %c0_97] : memref<2x128x384xf32, #tpu.memory_space<vmem>>, vector<1x128x384xf32>
    %140 = vector.shape_cast %139 : vector<1x128x384xf32> to vector<128x384xf32>
    %cst_98 = arith.constant dense<0.000000e+00> : vector<2x384xf32>
    %141 = tpu.matmul %96, %140, %cst_98 {dimension_numbers = #tpu.dot_dimension_numbers<[1], [0], [0], [1], [0, 0, 1, 1], [], []>} : vector<2x128xf32>, vector<128x384xf32>, vector<2x384xf32> -> vector<2x384xf32>
    %c0_99 = arith.constant 0 : index
    %c0_100 = arith.constant 0 : index
    %c0_101 = arith.constant 0 : index
    %142 = vector.load %arg17[%c0_99, %c0_100, %c0_101] : memref<2x1x384xf32, #tpu.memory_space<vmem>>, vector<1x1x384xf32>
    %143 = vector.shape_cast %142 : vector<1x1x384xf32> to vector<1x384xf32>
    %144 = vector.broadcast %143 : vector<1x384xf32> to vector<2x384xf32>
    %145 = arith.addf %141, %144 : vector<2x384xf32>
    %146 = vector.extract_strided_slice %138 {offsets = [0, 0], sizes = [2, 128], strides = [1, 1]} : vector<2x384xf32> to vector<2x128xf32>
    %147 = vector.extract_strided_slice %145 {offsets = [0, 0], sizes = [2, 128], strides = [1, 1]} : vector<2x384xf32> to vector<2x128xf32>
    %148 = arith.addf %146, %147 : vector<2x128xf32>
    %149 = arith.negf %148 : vector<2x128xf32>
    %150 = math.exp %149 : vector<2x128xf32>
    %cst_102 = arith.constant 1.000000e+00 : f32
    %151 = vector.broadcast %cst_102 : f32 to vector<2x128xf32>
    %152 = arith.addf %151, %150 : vector<2x128xf32>
    %153 = arith.divf %151, %152 : vector<2x128xf32>
    %154 = vector.extract_strided_slice %138 {offsets = [0, 128], sizes = [2, 128], strides = [1, 1]} : vector<2x384xf32> to vector<2x128xf32>
    %155 = vector.extract_strided_slice %145 {offsets = [0, 128], sizes = [2, 128], strides = [1, 1]} : vector<2x384xf32> to vector<2x128xf32>
    %156 = arith.addf %154, %155 : vector<2x128xf32>
    %157 = arith.negf %156 : vector<2x128xf32>
    %158 = math.exp %157 : vector<2x128xf32>
    %cst_103 = arith.constant 1.000000e+00 : f32
    %159 = vector.broadcast %cst_103 : f32 to vector<2x128xf32>
    %160 = arith.addf %159, %158 : vector<2x128xf32>
    %161 = arith.divf %159, %160 : vector<2x128xf32>
    %162 = vector.extract_strided_slice %138 {offsets = [0, 256], sizes = [2, 128], strides = [1, 1]} : vector<2x384xf32> to vector<2x128xf32>
    %163 = vector.extract_strided_slice %145 {offsets = [0, 256], sizes = [2, 128], strides = [1, 1]} : vector<2x384xf32> to vector<2x128xf32>
    %164 = arith.mulf %153, %163 : vector<2x128xf32>
    %165 = arith.addf %162, %164 : vector<2x128xf32>
    %166 = math.tanh %165 : vector<2x128xf32>
    %cst_104 = arith.constant 1.000000e+00 : f32
    %167 = vector.broadcast %cst_104 : f32 to vector<2x128xf32>
    %168 = arith.subf %167, %161 : vector<2x128xf32>
    %169 = arith.mulf %168, %166 : vector<2x128xf32>
    %170 = arith.mulf %161, %96 : vector<2x128xf32>
    %171 = arith.addf %169, %170 : vector<2x128xf32>
    %c1_105 = arith.constant 1 : index
    %c0_106 = arith.constant 0 : index
    %c0_107 = arith.constant 0 : index
    %172 = vector.load %arg14[%c1_105, %c0_106, %c0_107] : memref<2x128x384xf32, #tpu.memory_space<vmem>>, vector<1x128x384xf32>
    %173 = vector.shape_cast %172 : vector<1x128x384xf32> to vector<128x384xf32>
    %cst_108 = arith.constant dense<0.000000e+00> : vector<2x384xf32>
    %174 = tpu.matmul %171, %173, %cst_108 {dimension_numbers = #tpu.dot_dimension_numbers<[1], [0], [0], [1], [0, 0, 1, 1], [], []>} : vector<2x128xf32>, vector<128x384xf32>, vector<2x384xf32> -> vector<2x384xf32>
    %c1_109 = arith.constant 1 : index
    %c0_110 = arith.constant 0 : index
    %c0_111 = arith.constant 0 : index
    %175 = vector.load %arg16[%c1_109, %c0_110, %c0_111] : memref<2x1x384xf32, #tpu.memory_space<vmem>>, vector<1x1x384xf32>
    %176 = vector.shape_cast %175 : vector<1x1x384xf32> to vector<1x384xf32>
    %177 = vector.broadcast %176 : vector<1x384xf32> to vector<2x384xf32>
    %178 = arith.addf %174, %177 : vector<2x384xf32>
    %c1_112 = arith.constant 1 : index
    %c0_113 = arith.constant 0 : index
    %c0_114 = arith.constant 0 : index
    %179 = vector.load %arg15[%c1_112, %c0_113, %c0_114] : memref<2x128x384xf32, #tpu.memory_space<vmem>>, vector<1x128x384xf32>
    %180 = vector.shape_cast %179 : vector<1x128x384xf32> to vector<128x384xf32>
    %cst_115 = arith.constant dense<0.000000e+00> : vector<2x384xf32>
    %181 = tpu.matmul %136, %180, %cst_115 {dimension_numbers = #tpu.dot_dimension_numbers<[1], [0], [0], [1], [0, 0, 1, 1], [], []>} : vector<2x128xf32>, vector<128x384xf32>, vector<2x384xf32> -> vector<2x384xf32>
    %c1_116 = arith.constant 1 : index
    %c0_117 = arith.constant 0 : index
    %c0_118 = arith.constant 0 : index
    %182 = vector.load %arg17[%c1_116, %c0_117, %c0_118] : memref<2x1x384xf32, #tpu.memory_space<vmem>>, vector<1x1x384xf32>
    %183 = vector.shape_cast %182 : vector<1x1x384xf32> to vector<1x384xf32>
    %184 = vector.broadcast %183 : vector<1x384xf32> to vector<2x384xf32>
    %185 = arith.addf %181, %184 : vector<2x384xf32>
    %186 = vector.extract_strided_slice %178 {offsets = [0, 0], sizes = [2, 128], strides = [1, 1]} : vector<2x384xf32> to vector<2x128xf32>
    %187 = vector.extract_strided_slice %185 {offsets = [0, 0], sizes = [2, 128], strides = [1, 1]} : vector<2x384xf32> to vector<2x128xf32>
    %188 = arith.addf %186, %187 : vector<2x128xf32>
    %189 = arith.negf %188 : vector<2x128xf32>
    %190 = math.exp %189 : vector<2x128xf32>
    %cst_119 = arith.constant 1.000000e+00 : f32
    %191 = vector.broadcast %cst_119 : f32 to vector<2x128xf32>
    %192 = arith.addf %191, %190 : vector<2x128xf32>
    %193 = arith.divf %191, %192 : vector<2x128xf32>
    %194 = vector.extract_strided_slice %178 {offsets = [0, 128], sizes = [2, 128], strides = [1, 1]} : vector<2x384xf32> to vector<2x128xf32>
    %195 = vector.extract_strided_slice %185 {offsets = [0, 128], sizes = [2, 128], strides = [1, 1]} : vector<2x384xf32> to vector<2x128xf32>
    %196 = arith.addf %194, %195 : vector<2x128xf32>
    %197 = arith.negf %196 : vector<2x128xf32>
    %198 = math.exp %197 : vector<2x128xf32>
    %cst_120 = arith.constant 1.000000e+00 : f32
    %199 = vector.broadcast %cst_120 : f32 to vector<2x128xf32>
    %200 = arith.addf %199, %198 : vector<2x128xf32>
    %201 = arith.divf %199, %200 : vector<2x128xf32>
    %202 = vector.extract_strided_slice %178 {offsets = [0, 256], sizes = [2, 128], strides = [1, 1]} : vector<2x384xf32> to vector<2x128xf32>
    %203 = vector.extract_strided_slice %185 {offsets = [0, 256], sizes = [2, 128], strides = [1, 1]} : vector<2x384xf32> to vector<2x128xf32>
    %204 = arith.mulf %193, %203 : vector<2x128xf32>
    %205 = arith.addf %202, %204 : vector<2x128xf32>
    %206 = math.tanh %205 : vector<2x128xf32>
    %cst_121 = arith.constant 1.000000e+00 : f32
    %207 = vector.broadcast %cst_121 : f32 to vector<2x128xf32>
    %208 = arith.subf %207, %201 : vector<2x128xf32>
    %209 = arith.mulf %208, %206 : vector<2x128xf32>
    %210 = arith.mulf %201, %136 : vector<2x128xf32>
    %211 = arith.addf %209, %210 : vector<2x128xf32>
    %c2 = arith.constant 2 : index
    %c0_122 = arith.constant 0 : index
    %212 = vector.load %arg21[%c2, %c0_122] : memref<16x128xf32, #tpu.memory_space<vmem>>, vector<2x128xf32>
    tpu.vector_store %arg21[%c2, %c0_122], %211 {strides = array<i32>} : memref<16x128xf32, #tpu.memory_space<vmem>>, vector<2x128xf32>,
    %213 = vector.extract_strided_slice %62 {offsets = [4, 0], sizes = [2, 384], strides = [1, 1]} : vector<16x384xf32> to vector<2x384xf32>
    %c0_123 = arith.constant 0 : index
    %c0_124 = arith.constant 0 : index
    %c0_125 = arith.constant 0 : index
    %214 = vector.load %arg15[%c0_123, %c0_124, %c0_125] : memref<2x128x384xf32, #tpu.memory_space<vmem>>, vector<1x128x384xf32>
    %215 = vector.shape_cast %214 : vector<1x128x384xf32> to vector<128x384xf32>
    %cst_126 = arith.constant dense<0.000000e+00> : vector<2x384xf32>
    %216 = tpu.matmul %171, %215, %cst_126 {dimension_numbers = #tpu.dot_dimension_numbers<[1], [0], [0], [1], [0, 0, 1, 1], [], []>} : vector<2x128xf32>, vector<128x384xf32>, vector<2x384xf32> -> vector<2x384xf32>
    %c0_127 = arith.constant 0 : index
    %c0_128 = arith.constant 0 : index
    %c0_129 = arith.constant 0 : index
    %217 = vector.load %arg17[%c0_127, %c0_128, %c0_129] : memref<2x1x384xf32, #tpu.memory_space<vmem>>, vector<1x1x384xf32>
    %218 = vector.shape_cast %217 : vector<1x1x384xf32> to vector<1x384xf32>
    %219 = vector.broadcast %218 : vector<1x384xf32> to vector<2x384xf32>
    %220 = arith.addf %216, %219 : vector<2x384xf32>
    %221 = vector.extract_strided_slice %213 {offsets = [0, 0], sizes = [2, 128], strides = [1, 1]} : vector<2x384xf32> to vector<2x128xf32>
    %222 = vector.extract_strided_slice %220 {offsets = [0, 0], sizes = [2, 128], strides = [1, 1]} : vector<2x384xf32> to vector<2x128xf32>
    %223 = arith.addf %221, %222 : vector<2x128xf32>
    %224 = arith.negf %223 : vector<2x128xf32>
    %225 = math.exp %224 : vector<2x128xf32>
    %cst_130 = arith.constant 1.000000e+00 : f32
    %226 = vector.broadcast %cst_130 : f32 to vector<2x128xf32>
    %227 = arith.addf %226, %225 : vector<2x128xf32>
    %228 = arith.divf %226, %227 : vector<2x128xf32>
    %229 = vector.extract_strided_slice %213 {offsets = [0, 128], sizes = [2, 128], strides = [1, 1]} : vector<2x384xf32> to vector<2x128xf32>
    %230 = vector.extract_strided_slice %220 {offsets = [0, 128], sizes = [2, 128], strides = [1, 1]} : vector<2x384xf32> to vector<2x128xf32>
    %231 = arith.addf %229, %230 : vector<2x128xf32>
    %232 = arith.negf %231 : vector<2x128xf32>
    %233 = math.exp %232 : vector<2x128xf32>
    %cst_131 = arith.constant 1.000000e+00 : f32
    %234 = vector.broadcast %cst_131 : f32 to vector<2x128xf32>
    %235 = arith.addf %234, %233 : vector<2x128xf32>
    %236 = arith.divf %234, %235 : vector<2x128xf32>
    %237 = vector.extract_strided_slice %213 {offsets = [0, 256], sizes = [2, 128], strides = [1, 1]} : vector<2x384xf32> to vector<2x128xf32>
    %238 = vector.extract_strided_slice %220 {offsets = [0, 256], sizes = [2, 128], strides = [1, 1]} : vector<2x384xf32> to vector<2x128xf32>
    %239 = arith.mulf %228, %238 : vector<2x128xf32>
    %240 = arith.addf %237, %239 : vector<2x128xf32>
    %241 = math.tanh %240 : vector<2x128xf32>
    %cst_132 = arith.constant 1.000000e+00 : f32
    %242 = vector.broadcast %cst_132 : f32 to vector<2x128xf32>
    %243 = arith.subf %242, %236 : vector<2x128xf32>
    %244 = arith.mulf %243, %241 : vector<2x128xf32>
    %245 = arith.mulf %236, %171 : vector<2x128xf32>
    %246 = arith.addf %244, %245 : vector<2x128xf32>
    %c1_133 = arith.constant 1 : index
    %c0_134 = arith.constant 0 : index
    %c0_135 = arith.constant 0 : index
    %247 = vector.load %arg14[%c1_133, %c0_134, %c0_135] : memref<2x128x384xf32, #tpu.memory_space<vmem>>, vector<1x128x384xf32>
    %248 = vector.shape_cast %247 : vector<1x128x384xf32> to vector<128x384xf32>
    %cst_136 = arith.constant dense<0.000000e+00> : vector<2x384xf32>
    %249 = tpu.matmul %246, %248, %cst_136 {dimension_numbers = #tpu.dot_dimension_numbers<[1], [0], [0], [1], [0, 0, 1, 1], [], []>} : vector<2x128xf32>, vector<128x384xf32>, vector<2x384xf32> -> vector<2x384xf32>
    %c1_137 = arith.constant 1 : index
    %c0_138 = arith.constant 0 : index
    %c0_139 = arith.constant 0 : index
    %250 = vector.load %arg16[%c1_137, %c0_138, %c0_139] : memref<2x1x384xf32, #tpu.memory_space<vmem>>, vector<1x1x384xf32>
    %251 = vector.shape_cast %250 : vector<1x1x384xf32> to vector<1x384xf32>
    %252 = vector.broadcast %251 : vector<1x384xf32> to vector<2x384xf32>
    %253 = arith.addf %249, %252 : vector<2x384xf32>
    %c1_140 = arith.constant 1 : index
    %c0_141 = arith.constant 0 : index
    %c0_142 = arith.constant 0 : index
    %254 = vector.load %arg15[%c1_140, %c0_141, %c0_142] : memref<2x128x384xf32, #tpu.memory_space<vmem>>, vector<1x128x384xf32>
    %255 = vector.shape_cast %254 : vector<1x128x384xf32> to vector<128x384xf32>
    %cst_143 = arith.constant dense<0.000000e+00> : vector<2x384xf32>
    %256 = tpu.matmul %211, %255, %cst_143 {dimension_numbers = #tpu.dot_dimension_numbers<[1], [0], [0], [1], [0, 0, 1, 1], [], []>} : vector<2x128xf32>, vector<128x384xf32>, vector<2x384xf32> -> vector<2x384xf32>
    %c1_144 = arith.constant 1 : index
    %c0_145 = arith.constant 0 : index
    %c0_146 = arith.constant 0 : index
    %257 = vector.load %arg17[%c1_144, %c0_145, %c0_146] : memref<2x1x384xf32, #tpu.memory_space<vmem>>, vector<1x1x384xf32>
    %258 = vector.shape_cast %257 : vector<1x1x384xf32> to vector<1x384xf32>
    %259 = vector.broadcast %258 : vector<1x384xf32> to vector<2x384xf32>
    %260 = arith.addf %256, %259 : vector<2x384xf32>
    %261 = vector.extract_strided_slice %253 {offsets = [0, 0], sizes = [2, 128], strides = [1, 1]} : vector<2x384xf32> to vector<2x128xf32>
    %262 = vector.extract_strided_slice %260 {offsets = [0, 0], sizes = [2, 128], strides = [1, 1]} : vector<2x384xf32> to vector<2x128xf32>
    %263 = arith.addf %261, %262 : vector<2x128xf32>
    %264 = arith.negf %263 : vector<2x128xf32>
    %265 = math.exp %264 : vector<2x128xf32>
    %cst_147 = arith.constant 1.000000e+00 : f32
    %266 = vector.broadcast %cst_147 : f32 to vector<2x128xf32>
    %267 = arith.addf %266, %265 : vector<2x128xf32>
    %268 = arith.divf %266, %267 : vector<2x128xf32>
    %269 = vector.extract_strided_slice %253 {offsets = [0, 128], sizes = [2, 128], strides = [1, 1]} : vector<2x384xf32> to vector<2x128xf32>
    %270 = vector.extract_strided_slice %260 {offsets = [0, 128], sizes = [2, 128], strides = [1, 1]} : vector<2x384xf32> to vector<2x128xf32>
    %271 = arith.addf %269, %270 : vector<2x128xf32>
    %272 = arith.negf %271 : vector<2x128xf32>
    %273 = math.exp %272 : vector<2x128xf32>
    %cst_148 = arith.constant 1.000000e+00 : f32
    %274 = vector.broadcast %cst_148 : f32 to vector<2x128xf32>
    %275 = arith.addf %274, %273 : vector<2x128xf32>
    %276 = arith.divf %274, %275 : vector<2x128xf32>
    %277 = vector.extract_strided_slice %253 {offsets = [0, 256], sizes = [2, 128], strides = [1, 1]} : vector<2x384xf32> to vector<2x128xf32>
    %278 = vector.extract_strided_slice %260 {offsets = [0, 256], sizes = [2, 128], strides = [1, 1]} : vector<2x384xf32> to vector<2x128xf32>
    %279 = arith.mulf %268, %278 : vector<2x128xf32>
    %280 = arith.addf %277, %279 : vector<2x128xf32>
    %281 = math.tanh %280 : vector<2x128xf32>
    %cst_149 = arith.constant 1.000000e+00 : f32
    %282 = vector.broadcast %cst_149 : f32 to vector<2x128xf32>
    %283 = arith.subf %282, %276 : vector<2x128xf32>
    %284 = arith.mulf %283, %281 : vector<2x128xf32>
    %285 = arith.mulf %276, %211 : vector<2x128xf32>
    %286 = arith.addf %284, %285 : vector<2x128xf32>
    %c4 = arith.constant 4 : index
    %c0_150 = arith.constant 0 : index
    %287 = vector.load %arg21[%c4, %c0_150] : memref<16x128xf32, #tpu.memory_space<vmem>>, vector<2x128xf32>
    tpu.vector_store %arg21[%c4, %c0_150], %286 {strides = array<i32>} : memref<16x128xf32, #tpu.memory_space<vmem>>, vector<2x128xf32>,
    %288 = vector.extract_strided_slice %62 {offsets = [6, 0], sizes = [2, 384], strides = [1, 1]} : vector<16x384xf32> to vector<2x384xf32>
    %c0_151 = arith.constant 0 : index
    %c0_152 = arith.constant 0 : index
    %c0_153 = arith.constant 0 : index
    %289 = vector.load %arg15[%c0_151, %c0_152, %c0_153] : memref<2x128x384xf32, #tpu.memory_space<vmem>>, vector<1x128x384xf32>
    %290 = vector.shape_cast %289 : vector<1x128x384xf32> to vector<128x384xf32>
    %cst_154 = arith.constant dense<0.000000e+00> : vector<2x384xf32>
    %291 = tpu.matmul %246, %290, %cst_154 {dimension_numbers = #tpu.dot_dimension_numbers<[1], [0], [0], [1], [0, 0, 1, 1], [], []>} : vector<2x128xf32>, vector<128x384xf32>, vector<2x384xf32> -> vector<2x384xf32>
    %c0_155 = arith.constant 0 : index
    %c0_156 = arith.constant 0 : index
    %c0_157 = arith.constant 0 : index
    %292 = vector.load %arg17[%c0_155, %c0_156, %c0_157] : memref<2x1x384xf32, #tpu.memory_space<vmem>>, vector<1x1x384xf32>
    %293 = vector.shape_cast %292 : vector<1x1x384xf32> to vector<1x384xf32>
    %294 = vector.broadcast %293 : vector<1x384xf32> to vector<2x384xf32>
    %295 = arith.addf %291, %294 : vector<2x384xf32>
    %296 = vector.extract_strided_slice %288 {offsets = [0, 0], sizes = [2, 128], strides = [1, 1]} : vector<2x384xf32> to vector<2x128xf32>
    %297 = vector.extract_strided_slice %295 {offsets = [0, 0], sizes = [2, 128], strides = [1, 1]} : vector<2x384xf32> to vector<2x128xf32>
    %298 = arith.addf %296, %297 : vector<2x128xf32>
    %299 = arith.negf %298 : vector<2x128xf32>
    %300 = math.exp %299 : vector<2x128xf32>
    %cst_158 = arith.constant 1.000000e+00 : f32
    %301 = vector.broadcast %cst_158 : f32 to vector<2x128xf32>
    %302 = arith.addf %301, %300 : vector<2x128xf32>
    %303 = arith.divf %301, %302 : vector<2x128xf32>
    %304 = vector.extract_strided_slice %288 {offsets = [0, 128], sizes = [2, 128], strides = [1, 1]} : vector<2x384xf32> to vector<2x128xf32>
    %305 = vector.extract_strided_slice %295 {offsets = [0, 128], sizes = [2, 128], strides = [1, 1]} : vector<2x384xf32> to vector<2x128xf32>
    %306 = arith.addf %304, %305 : vector<2x128xf32>
    %307 = arith.negf %306 : vector<2x128xf32>
    %308 = math.exp %307 : vector<2x128xf32>
    %cst_159 = arith.constant 1.000000e+00 : f32
    %309 = vector.broadcast %cst_159 : f32 to vector<2x128xf32>
    %310 = arith.addf %309, %308 : vector<2x128xf32>
    %311 = arith.divf %309, %310 : vector<2x128xf32>
    %312 = vector.extract_strided_slice %288 {offsets = [0, 256], sizes = [2, 128], strides = [1, 1]} : vector<2x384xf32> to vector<2x128xf32>
    %313 = vector.extract_strided_slice %295 {offsets = [0, 256], sizes = [2, 128], strides = [1, 1]} : vector<2x384xf32> to vector<2x128xf32>
    %314 = arith.mulf %303, %313 : vector<2x128xf32>
    %315 = arith.addf %312, %314 : vector<2x128xf32>
    %316 = math.tanh %315 : vector<2x128xf32>
    %cst_160 = arith.constant 1.000000e+00 : f32
    %317 = vector.broadcast %cst_160 : f32 to vector<2x128xf32>
    %318 = arith.subf %317, %311 : vector<2x128xf32>
    %319 = arith.mulf %318, %316 : vector<2x128xf32>
    %320 = arith.mulf %311, %246 : vector<2x128xf32>
    %321 = arith.addf %319, %320 : vector<2x128xf32>
    %c1_161 = arith.constant 1 : index
    %c0_162 = arith.constant 0 : index
    %c0_163 = arith.constant 0 : index
    %322 = vector.load %arg14[%c1_161, %c0_162, %c0_163] : memref<2x128x384xf32, #tpu.memory_space<vmem>>, vector<1x128x384xf32>
    %323 = vector.shape_cast %322 : vector<1x128x384xf32> to vector<128x384xf32>
    %cst_164 = arith.constant dense<0.000000e+00> : vector<2x384xf32>
    %324 = tpu.matmul %321, %323, %cst_164 {dimension_numbers = #tpu.dot_dimension_numbers<[1], [0], [0], [1], [0, 0, 1, 1], [], []>} : vector<2x128xf32>, vector<128x384xf32>, vector<2x384xf32> -> vector<2x384xf32>
    %c1_165 = arith.constant 1 : index
    %c0_166 = arith.constant 0 : index
    %c0_167 = arith.constant 0 : index
    %325 = vector.load %arg16[%c1_165, %c0_166, %c0_167] : memref<2x1x384xf32, #tpu.memory_space<vmem>>, vector<1x1x384xf32>
    %326 = vector.shape_cast %325 : vector<1x1x384xf32> to vector<1x384xf32>
    %327 = vector.broadcast %326 : vector<1x384xf32> to vector<2x384xf32>
    %328 = arith.addf %324, %327 : vector<2x384xf32>
    %c1_168 = arith.constant 1 : index
    %c0_169 = arith.constant 0 : index
    %c0_170 = arith.constant 0 : index
    %329 = vector.load %arg15[%c1_168, %c0_169, %c0_170] : memref<2x128x384xf32, #tpu.memory_space<vmem>>, vector<1x128x384xf32>
    %330 = vector.shape_cast %329 : vector<1x128x384xf32> to vector<128x384xf32>
    %cst_171 = arith.constant dense<0.000000e+00> : vector<2x384xf32>
    %331 = tpu.matmul %286, %330, %cst_171 {dimension_numbers = #tpu.dot_dimension_numbers<[1], [0], [0], [1], [0, 0, 1, 1], [], []>} : vector<2x128xf32>, vector<128x384xf32>, vector<2x384xf32> -> vector<2x384xf32>
    %c1_172 = arith.constant 1 : index
    %c0_173 = arith.constant 0 : index
    %c0_174 = arith.constant 0 : index
    %332 = vector.load %arg17[%c1_172, %c0_173, %c0_174] : memref<2x1x384xf32, #tpu.memory_space<vmem>>, vector<1x1x384xf32>
    %333 = vector.shape_cast %332 : vector<1x1x384xf32> to vector<1x384xf32>
    %334 = vector.broadcast %333 : vector<1x384xf32> to vector<2x384xf32>
    %335 = arith.addf %331, %334 : vector<2x384xf32>
    %336 = vector.extract_strided_slice %328 {offsets = [0, 0], sizes = [2, 128], strides = [1, 1]} : vector<2x384xf32> to vector<2x128xf32>
    %337 = vector.extract_strided_slice %335 {offsets = [0, 0], sizes = [2, 128], strides = [1, 1]} : vector<2x384xf32> to vector<2x128xf32>
    %338 = arith.addf %336, %337 : vector<2x128xf32>
    %339 = arith.negf %338 : vector<2x128xf32>
    %340 = math.exp %339 : vector<2x128xf32>
    %cst_175 = arith.constant 1.000000e+00 : f32
    %341 = vector.broadcast %cst_175 : f32 to vector<2x128xf32>
    %342 = arith.addf %341, %340 : vector<2x128xf32>
    %343 = arith.divf %341, %342 : vector<2x128xf32>
    %344 = vector.extract_strided_slice %328 {offsets = [0, 128], sizes = [2, 128], strides = [1, 1]} : vector<2x384xf32> to vector<2x128xf32>
    %345 = vector.extract_strided_slice %335 {offsets = [0, 128], sizes = [2, 128], strides = [1, 1]} : vector<2x384xf32> to vector<2x128xf32>
    %346 = arith.addf %344, %345 : vector<2x128xf32>
    %347 = arith.negf %346 : vector<2x128xf32>
    %348 = math.exp %347 : vector<2x128xf32>
    %cst_176 = arith.constant 1.000000e+00 : f32
    %349 = vector.broadcast %cst_176 : f32 to vector<2x128xf32>
    %350 = arith.addf %349, %348 : vector<2x128xf32>
    %351 = arith.divf %349, %350 : vector<2x128xf32>
    %352 = vector.extract_strided_slice %328 {offsets = [0, 256], sizes = [2, 128], strides = [1, 1]} : vector<2x384xf32> to vector<2x128xf32>
    %353 = vector.extract_strided_slice %335 {offsets = [0, 256], sizes = [2, 128], strides = [1, 1]} : vector<2x384xf32> to vector<2x128xf32>
    %354 = arith.mulf %343, %353 : vector<2x128xf32>
    %355 = arith.addf %352, %354 : vector<2x128xf32>
    %356 = math.tanh %355 : vector<2x128xf32>
    %cst_177 = arith.constant 1.000000e+00 : f32
    %357 = vector.broadcast %cst_177 : f32 to vector<2x128xf32>
    %358 = arith.subf %357, %351 : vector<2x128xf32>
    %359 = arith.mulf %358, %356 : vector<2x128xf32>
    %360 = arith.mulf %351, %286 : vector<2x128xf32>
    %361 = arith.addf %359, %360 : vector<2x128xf32>
    %c6 = arith.constant 6 : index
    %c0_178 = arith.constant 0 : index
    %362 = vector.load %arg21[%c6, %c0_178] : memref<16x128xf32, #tpu.memory_space<vmem>>, vector<2x128xf32>
    tpu.vector_store %arg21[%c6, %c0_178], %361 {strides = array<i32>} : memref<16x128xf32, #tpu.memory_space<vmem>>, vector<2x128xf32>,
    %363 = vector.extract_strided_slice %62 {offsets = [8, 0], sizes = [2, 384], strides = [1, 1]} : vector<16x384xf32> to vector<2x384xf32>
    %c0_179 = arith.constant 0 : index
    %c0_180 = arith.constant 0 : index
    %c0_181 = arith.constant 0 : index
    %364 = vector.load %arg15[%c0_179, %c0_180, %c0_181] : memref<2x128x384xf32, #tpu.memory_space<vmem>>, vector<1x128x384xf32>
    %365 = vector.shape_cast %364 : vector<1x128x384xf32> to vector<128x384xf32>
    %cst_182 = arith.constant dense<0.000000e+00> : vector<2x384xf32>
    %366 = tpu.matmul %321, %365, %cst_182 {dimension_numbers = #tpu.dot_dimension_numbers<[1], [0], [0], [1], [0, 0, 1, 1], [], []>} : vector<2x128xf32>, vector<128x384xf32>, vector<2x384xf32> -> vector<2x384xf32>
    %c0_183 = arith.constant 0 : index
    %c0_184 = arith.constant 0 : index
    %c0_185 = arith.constant 0 : index
    %367 = vector.load %arg17[%c0_183, %c0_184, %c0_185] : memref<2x1x384xf32, #tpu.memory_space<vmem>>, vector<1x1x384xf32>
    %368 = vector.shape_cast %367 : vector<1x1x384xf32> to vector<1x384xf32>
    %369 = vector.broadcast %368 : vector<1x384xf32> to vector<2x384xf32>
    %370 = arith.addf %366, %369 : vector<2x384xf32>
    %371 = vector.extract_strided_slice %363 {offsets = [0, 0], sizes = [2, 128], strides = [1, 1]} : vector<2x384xf32> to vector<2x128xf32>
    %372 = vector.extract_strided_slice %370 {offsets = [0, 0], sizes = [2, 128], strides = [1, 1]} : vector<2x384xf32> to vector<2x128xf32>
    %373 = arith.addf %371, %372 : vector<2x128xf32>
    %374 = arith.negf %373 : vector<2x128xf32>
    %375 = math.exp %374 : vector<2x128xf32>
    %cst_186 = arith.constant 1.000000e+00 : f32
    %376 = vector.broadcast %cst_186 : f32 to vector<2x128xf32>
    %377 = arith.addf %376, %375 : vector<2x128xf32>
    %378 = arith.divf %376, %377 : vector<2x128xf32>
    %379 = vector.extract_strided_slice %363 {offsets = [0, 128], sizes = [2, 128], strides = [1, 1]} : vector<2x384xf32> to vector<2x128xf32>
    %380 = vector.extract_strided_slice %370 {offsets = [0, 128], sizes = [2, 128], strides = [1, 1]} : vector<2x384xf32> to vector<2x128xf32>
    %381 = arith.addf %379, %380 : vector<2x128xf32>
    %382 = arith.negf %381 : vector<2x128xf32>
    %383 = math.exp %382 : vector<2x128xf32>
    %cst_187 = arith.constant 1.000000e+00 : f32
    %384 = vector.broadcast %cst_187 : f32 to vector<2x128xf32>
    %385 = arith.addf %384, %383 : vector<2x128xf32>
    %386 = arith.divf %384, %385 : vector<2x128xf32>
    %387 = vector.extract_strided_slice %363 {offsets = [0, 256], sizes = [2, 128], strides = [1, 1]} : vector<2x384xf32> to vector<2x128xf32>
    %388 = vector.extract_strided_slice %370 {offsets = [0, 256], sizes = [2, 128], strides = [1, 1]} : vector<2x384xf32> to vector<2x128xf32>
    %389 = arith.mulf %378, %388 : vector<2x128xf32>
    %390 = arith.addf %387, %389 : vector<2x128xf32>
    %391 = math.tanh %390 : vector<2x128xf32>
    %cst_188 = arith.constant 1.000000e+00 : f32
    %392 = vector.broadcast %cst_188 : f32 to vector<2x128xf32>
    %393 = arith.subf %392, %386 : vector<2x128xf32>
    %394 = arith.mulf %393, %391 : vector<2x128xf32>
    %395 = arith.mulf %386, %321 : vector<2x128xf32>
    %396 = arith.addf %394, %395 : vector<2x128xf32>
    %c1_189 = arith.constant 1 : index
    %c0_190 = arith.constant 0 : index
    %c0_191 = arith.constant 0 : index
    %397 = vector.load %arg14[%c1_189, %c0_190, %c0_191] : memref<2x128x384xf32, #tpu.memory_space<vmem>>, vector<1x128x384xf32>
    %398 = vector.shape_cast %397 : vector<1x128x384xf32> to vector<128x384xf32>
    %cst_192 = arith.constant dense<0.000000e+00> : vector<2x384xf32>
    %399 = tpu.matmul %396, %398, %cst_192 {dimension_numbers = #tpu.dot_dimension_numbers<[1], [0], [0], [1], [0, 0, 1, 1], [], []>} : vector<2x128xf32>, vector<128x384xf32>, vector<2x384xf32> -> vector<2x384xf32>
    %c1_193 = arith.constant 1 : index
    %c0_194 = arith.constant 0 : index
    %c0_195 = arith.constant 0 : index
    %400 = vector.load %arg16[%c1_193, %c0_194, %c0_195] : memref<2x1x384xf32, #tpu.memory_space<vmem>>, vector<1x1x384xf32>
    %401 = vector.shape_cast %400 : vector<1x1x384xf32> to vector<1x384xf32>
    %402 = vector.broadcast %401 : vector<1x384xf32> to vector<2x384xf32>
    %403 = arith.addf %399, %402 : vector<2x384xf32>
    %c1_196 = arith.constant 1 : index
    %c0_197 = arith.constant 0 : index
    %c0_198 = arith.constant 0 : index
    %404 = vector.load %arg15[%c1_196, %c0_197, %c0_198] : memref<2x128x384xf32, #tpu.memory_space<vmem>>, vector<1x128x384xf32>
    %405 = vector.shape_cast %404 : vector<1x128x384xf32> to vector<128x384xf32>
    %cst_199 = arith.constant dense<0.000000e+00> : vector<2x384xf32>
    %406 = tpu.matmul %361, %405, %cst_199 {dimension_numbers = #tpu.dot_dimension_numbers<[1], [0], [0], [1], [0, 0, 1, 1], [], []>} : vector<2x128xf32>, vector<128x384xf32>, vector<2x384xf32> -> vector<2x384xf32>
    %c1_200 = arith.constant 1 : index
    %c0_201 = arith.constant 0 : index
    %c0_202 = arith.constant 0 : index
    %407 = vector.load %arg17[%c1_200, %c0_201, %c0_202] : memref<2x1x384xf32, #tpu.memory_space<vmem>>, vector<1x1x384xf32>
    %408 = vector.shape_cast %407 : vector<1x1x384xf32> to vector<1x384xf32>
    %409 = vector.broadcast %408 : vector<1x384xf32> to vector<2x384xf32>
    %410 = arith.addf %406, %409 : vector<2x384xf32>
    %411 = vector.extract_strided_slice %403 {offsets = [0, 0], sizes = [2, 128], strides = [1, 1]} : vector<2x384xf32> to vector<2x128xf32>
    %412 = vector.extract_strided_slice %410 {offsets = [0, 0], sizes = [2, 128], strides = [1, 1]} : vector<2x384xf32> to vector<2x128xf32>
    %413 = arith.addf %411, %412 : vector<2x128xf32>
    %414 = arith.negf %413 : vector<2x128xf32>
    %415 = math.exp %414 : vector<2x128xf32>
    %cst_203 = arith.constant 1.000000e+00 : f32
    %416 = vector.broadcast %cst_203 : f32 to vector<2x128xf32>
    %417 = arith.addf %416, %415 : vector<2x128xf32>
    %418 = arith.divf %416, %417 : vector<2x128xf32>
    %419 = vector.extract_strided_slice %403 {offsets = [0, 128], sizes = [2, 128], strides = [1, 1]} : vector<2x384xf32> to vector<2x128xf32>
    %420 = vector.extract_strided_slice %410 {offsets = [0, 128], sizes = [2, 128], strides = [1, 1]} : vector<2x384xf32> to vector<2x128xf32>
    %421 = arith.addf %419, %420 : vector<2x128xf32>
    %422 = arith.negf %421 : vector<2x128xf32>
    %423 = math.exp %422 : vector<2x128xf32>
    %cst_204 = arith.constant 1.000000e+00 : f32
    %424 = vector.broadcast %cst_204 : f32 to vector<2x128xf32>
    %425 = arith.addf %424, %423 : vector<2x128xf32>
    %426 = arith.divf %424, %425 : vector<2x128xf32>
    %427 = vector.extract_strided_slice %403 {offsets = [0, 256], sizes = [2, 128], strides = [1, 1]} : vector<2x384xf32> to vector<2x128xf32>
    %428 = vector.extract_strided_slice %410 {offsets = [0, 256], sizes = [2, 128], strides = [1, 1]} : vector<2x384xf32> to vector<2x128xf32>
    %429 = arith.mulf %418, %428 : vector<2x128xf32>
    %430 = arith.addf %427, %429 : vector<2x128xf32>
    %431 = math.tanh %430 : vector<2x128xf32>
    %cst_205 = arith.constant 1.000000e+00 : f32
    %432 = vector.broadcast %cst_205 : f32 to vector<2x128xf32>
    %433 = arith.subf %432, %426 : vector<2x128xf32>
    %434 = arith.mulf %433, %431 : vector<2x128xf32>
    %435 = arith.mulf %426, %361 : vector<2x128xf32>
    %436 = arith.addf %434, %435 : vector<2x128xf32>
    %c8 = arith.constant 8 : index
    %c0_206 = arith.constant 0 : index
    %437 = vector.load %arg21[%c8, %c0_206] : memref<16x128xf32, #tpu.memory_space<vmem>>, vector<2x128xf32>
    tpu.vector_store %arg21[%c8, %c0_206], %436 {strides = array<i32>} : memref<16x128xf32, #tpu.memory_space<vmem>>, vector<2x128xf32>,
    %438 = vector.extract_strided_slice %62 {offsets = [10, 0], sizes = [2, 384], strides = [1, 1]} : vector<16x384xf32> to vector<2x384xf32>
    %c0_207 = arith.constant 0 : index
    %c0_208 = arith.constant 0 : index
    %c0_209 = arith.constant 0 : index
    %439 = vector.load %arg15[%c0_207, %c0_208, %c0_209] : memref<2x128x384xf32, #tpu.memory_space<vmem>>, vector<1x128x384xf32>
    %440 = vector.shape_cast %439 : vector<1x128x384xf32> to vector<128x384xf32>
    %cst_210 = arith.constant dense<0.000000e+00> : vector<2x384xf32>
    %441 = tpu.matmul %396, %440, %cst_210 {dimension_numbers = #tpu.dot_dimension_numbers<[1], [0], [0], [1], [0, 0, 1, 1], [], []>} : vector<2x128xf32>, vector<128x384xf32>, vector<2x384xf32> -> vector<2x384xf32>
    %c0_211 = arith.constant 0 : index
    %c0_212 = arith.constant 0 : index
    %c0_213 = arith.constant 0 : index
    %442 = vector.load %arg17[%c0_211, %c0_212, %c0_213] : memref<2x1x384xf32, #tpu.memory_space<vmem>>, vector<1x1x384xf32>
    %443 = vector.shape_cast %442 : vector<1x1x384xf32> to vector<1x384xf32>
    %444 = vector.broadcast %443 : vector<1x384xf32> to vector<2x384xf32>
    %445 = arith.addf %441, %444 : vector<2x384xf32>
    %446 = vector.extract_strided_slice %438 {offsets = [0, 0], sizes = [2, 128], strides = [1, 1]} : vector<2x384xf32> to vector<2x128xf32>
    %447 = vector.extract_strided_slice %445 {offsets = [0, 0], sizes = [2, 128], strides = [1, 1]} : vector<2x384xf32> to vector<2x128xf32>
    %448 = arith.addf %446, %447 : vector<2x128xf32>
    %449 = arith.negf %448 : vector<2x128xf32>
    %450 = math.exp %449 : vector<2x128xf32>
    %cst_214 = arith.constant 1.000000e+00 : f32
    %451 = vector.broadcast %cst_214 : f32 to vector<2x128xf32>
    %452 = arith.addf %451, %450 : vector<2x128xf32>
    %453 = arith.divf %451, %452 : vector<2x128xf32>
    %454 = vector.extract_strided_slice %438 {offsets = [0, 128], sizes = [2, 128], strides = [1, 1]} : vector<2x384xf32> to vector<2x128xf32>
    %455 = vector.extract_strided_slice %445 {offsets = [0, 128], sizes = [2, 128], strides = [1, 1]} : vector<2x384xf32> to vector<2x128xf32>
    %456 = arith.addf %454, %455 : vector<2x128xf32>
    %457 = arith.negf %456 : vector<2x128xf32>
    %458 = math.exp %457 : vector<2x128xf32>
    %cst_215 = arith.constant 1.000000e+00 : f32
    %459 = vector.broadcast %cst_215 : f32 to vector<2x128xf32>
    %460 = arith.addf %459, %458 : vector<2x128xf32>
    %461 = arith.divf %459, %460 : vector<2x128xf32>
    %462 = vector.extract_strided_slice %438 {offsets = [0, 256], sizes = [2, 128], strides = [1, 1]} : vector<2x384xf32> to vector<2x128xf32>
    %463 = vector.extract_strided_slice %445 {offsets = [0, 256], sizes = [2, 128], strides = [1, 1]} : vector<2x384xf32> to vector<2x128xf32>
    %464 = arith.mulf %453, %463 : vector<2x128xf32>
    %465 = arith.addf %462, %464 : vector<2x128xf32>
    %466 = math.tanh %465 : vector<2x128xf32>
    %cst_216 = arith.constant 1.000000e+00 : f32
    %467 = vector.broadcast %cst_216 : f32 to vector<2x128xf32>
    %468 = arith.subf %467, %461 : vector<2x128xf32>
    %469 = arith.mulf %468, %466 : vector<2x128xf32>
    %470 = arith.mulf %461, %396 : vector<2x128xf32>
    %471 = arith.addf %469, %470 : vector<2x128xf32>
    %c1_217 = arith.constant 1 : index
    %c0_218 = arith.constant 0 : index
    %c0_219 = arith.constant 0 : index
    %472 = vector.load %arg14[%c1_217, %c0_218, %c0_219] : memref<2x128x384xf32, #tpu.memory_space<vmem>>, vector<1x128x384xf32>
    %473 = vector.shape_cast %472 : vector<1x128x384xf32> to vector<128x384xf32>
    %cst_220 = arith.constant dense<0.000000e+00> : vector<2x384xf32>
    %474 = tpu.matmul %471, %473, %cst_220 {dimension_numbers = #tpu.dot_dimension_numbers<[1], [0], [0], [1], [0, 0, 1, 1], [], []>} : vector<2x128xf32>, vector<128x384xf32>, vector<2x384xf32> -> vector<2x384xf32>
    %c1_221 = arith.constant 1 : index
    %c0_222 = arith.constant 0 : index
    %c0_223 = arith.constant 0 : index
    %475 = vector.load %arg16[%c1_221, %c0_222, %c0_223] : memref<2x1x384xf32, #tpu.memory_space<vmem>>, vector<1x1x384xf32>
    %476 = vector.shape_cast %475 : vector<1x1x384xf32> to vector<1x384xf32>
    %477 = vector.broadcast %476 : vector<1x384xf32> to vector<2x384xf32>
    %478 = arith.addf %474, %477 : vector<2x384xf32>
    %c1_224 = arith.constant 1 : index
    %c0_225 = arith.constant 0 : index
    %c0_226 = arith.constant 0 : index
    %479 = vector.load %arg15[%c1_224, %c0_225, %c0_226] : memref<2x128x384xf32, #tpu.memory_space<vmem>>, vector<1x128x384xf32>
    %480 = vector.shape_cast %479 : vector<1x128x384xf32> to vector<128x384xf32>
    %cst_227 = arith.constant dense<0.000000e+00> : vector<2x384xf32>
    %481 = tpu.matmul %436, %480, %cst_227 {dimension_numbers = #tpu.dot_dimension_numbers<[1], [0], [0], [1], [0, 0, 1, 1], [], []>} : vector<2x128xf32>, vector<128x384xf32>, vector<2x384xf32> -> vector<2x384xf32>
    %c1_228 = arith.constant 1 : index
    %c0_229 = arith.constant 0 : index
    %c0_230 = arith.constant 0 : index
    %482 = vector.load %arg17[%c1_228, %c0_229, %c0_230] : memref<2x1x384xf32, #tpu.memory_space<vmem>>, vector<1x1x384xf32>
    %483 = vector.shape_cast %482 : vector<1x1x384xf32> to vector<1x384xf32>
    %484 = vector.broadcast %483 : vector<1x384xf32> to vector<2x384xf32>
    %485 = arith.addf %481, %484 : vector<2x384xf32>
    %486 = vector.extract_strided_slice %478 {offsets = [0, 0], sizes = [2, 128], strides = [1, 1]} : vector<2x384xf32> to vector<2x128xf32>
    %487 = vector.extract_strided_slice %485 {offsets = [0, 0], sizes = [2, 128], strides = [1, 1]} : vector<2x384xf32> to vector<2x128xf32>
    %488 = arith.addf %486, %487 : vector<2x128xf32>
    %489 = arith.negf %488 : vector<2x128xf32>
    %490 = math.exp %489 : vector<2x128xf32>
    %cst_231 = arith.constant 1.000000e+00 : f32
    %491 = vector.broadcast %cst_231 : f32 to vector<2x128xf32>
    %492 = arith.addf %491, %490 : vector<2x128xf32>
    %493 = arith.divf %491, %492 : vector<2x128xf32>
    %494 = vector.extract_strided_slice %478 {offsets = [0, 128], sizes = [2, 128], strides = [1, 1]} : vector<2x384xf32> to vector<2x128xf32>
    %495 = vector.extract_strided_slice %485 {offsets = [0, 128], sizes = [2, 128], strides = [1, 1]} : vector<2x384xf32> to vector<2x128xf32>
    %496 = arith.addf %494, %495 : vector<2x128xf32>
    %497 = arith.negf %496 : vector<2x128xf32>
    %498 = math.exp %497 : vector<2x128xf32>
    %cst_232 = arith.constant 1.000000e+00 : f32
    %499 = vector.broadcast %cst_232 : f32 to vector<2x128xf32>
    %500 = arith.addf %499, %498 : vector<2x128xf32>
    %501 = arith.divf %499, %500 : vector<2x128xf32>
    %502 = vector.extract_strided_slice %478 {offsets = [0, 256], sizes = [2, 128], strides = [1, 1]} : vector<2x384xf32> to vector<2x128xf32>
    %503 = vector.extract_strided_slice %485 {offsets = [0, 256], sizes = [2, 128], strides = [1, 1]} : vector<2x384xf32> to vector<2x128xf32>
    %504 = arith.mulf %493, %503 : vector<2x128xf32>
    %505 = arith.addf %502, %504 : vector<2x128xf32>
    %506 = math.tanh %505 : vector<2x128xf32>
    %cst_233 = arith.constant 1.000000e+00 : f32
    %507 = vector.broadcast %cst_233 : f32 to vector<2x128xf32>
    %508 = arith.subf %507, %501 : vector<2x128xf32>
    %509 = arith.mulf %508, %506 : vector<2x128xf32>
    %510 = arith.mulf %501, %436 : vector<2x128xf32>
    %511 = arith.addf %509, %510 : vector<2x128xf32>
    %c10 = arith.constant 10 : index
    %c0_234 = arith.constant 0 : index
    %512 = vector.load %arg21[%c10, %c0_234] : memref<16x128xf32, #tpu.memory_space<vmem>>, vector<2x128xf32>
    tpu.vector_store %arg21[%c10, %c0_234], %511 {strides = array<i32>} : memref<16x128xf32, #tpu.memory_space<vmem>>, vector<2x128xf32>,
    %513 = vector.extract_strided_slice %62 {offsets = [12, 0], sizes = [2, 384], strides = [1, 1]} : vector<16x384xf32> to vector<2x384xf32>
    %c0_235 = arith.constant 0 : index
    %c0_236 = arith.constant 0 : index
    %c0_237 = arith.constant 0 : index
    %514 = vector.load %arg15[%c0_235, %c0_236, %c0_237] : memref<2x128x384xf32, #tpu.memory_space<vmem>>, vector<1x128x384xf32>
    %515 = vector.shape_cast %514 : vector<1x128x384xf32> to vector<128x384xf32>
    %cst_238 = arith.constant dense<0.000000e+00> : vector<2x384xf32>
    %516 = tpu.matmul %471, %515, %cst_238 {dimension_numbers = #tpu.dot_dimension_numbers<[1], [0], [0], [1], [0, 0, 1, 1], [], []>} : vector<2x128xf32>, vector<128x384xf32>, vector<2x384xf32> -> vector<2x384xf32>
    %c0_239 = arith.constant 0 : index
    %c0_240 = arith.constant 0 : index
    %c0_241 = arith.constant 0 : index
    %517 = vector.load %arg17[%c0_239, %c0_240, %c0_241] : memref<2x1x384xf32, #tpu.memory_space<vmem>>, vector<1x1x384xf32>
    %518 = vector.shape_cast %517 : vector<1x1x384xf32> to vector<1x384xf32>
    %519 = vector.broadcast %518 : vector<1x384xf32> to vector<2x384xf32>
    %520 = arith.addf %516, %519 : vector<2x384xf32>
    %521 = vector.extract_strided_slice %513 {offsets = [0, 0], sizes = [2, 128], strides = [1, 1]} : vector<2x384xf32> to vector<2x128xf32>
    %522 = vector.extract_strided_slice %520 {offsets = [0, 0], sizes = [2, 128], strides = [1, 1]} : vector<2x384xf32> to vector<2x128xf32>
    %523 = arith.addf %521, %522 : vector<2x128xf32>
    %524 = arith.negf %523 : vector<2x128xf32>
    %525 = math.exp %524 : vector<2x128xf32>
    %cst_242 = arith.constant 1.000000e+00 : f32
    %526 = vector.broadcast %cst_242 : f32 to vector<2x128xf32>
    %527 = arith.addf %526, %525 : vector<2x128xf32>
    %528 = arith.divf %526, %527 : vector<2x128xf32>
    %529 = vector.extract_strided_slice %513 {offsets = [0, 128], sizes = [2, 128], strides = [1, 1]} : vector<2x384xf32> to vector<2x128xf32>
    %530 = vector.extract_strided_slice %520 {offsets = [0, 128], sizes = [2, 128], strides = [1, 1]} : vector<2x384xf32> to vector<2x128xf32>
    %531 = arith.addf %529, %530 : vector<2x128xf32>
    %532 = arith.negf %531 : vector<2x128xf32>
    %533 = math.exp %532 : vector<2x128xf32>
    %cst_243 = arith.constant 1.000000e+00 : f32
    %534 = vector.broadcast %cst_243 : f32 to vector<2x128xf32>
    %535 = arith.addf %534, %533 : vector<2x128xf32>
    %536 = arith.divf %534, %535 : vector<2x128xf32>
    %537 = vector.extract_strided_slice %513 {offsets = [0, 256], sizes = [2, 128], strides = [1, 1]} : vector<2x384xf32> to vector<2x128xf32>
    %538 = vector.extract_strided_slice %520 {offsets = [0, 256], sizes = [2, 128], strides = [1, 1]} : vector<2x384xf32> to vector<2x128xf32>
    %539 = arith.mulf %528, %538 : vector<2x128xf32>
    %540 = arith.addf %537, %539 : vector<2x128xf32>
    %541 = math.tanh %540 : vector<2x128xf32>
    %cst_244 = arith.constant 1.000000e+00 : f32
    %542 = vector.broadcast %cst_244 : f32 to vector<2x128xf32>
    %543 = arith.subf %542, %536 : vector<2x128xf32>
    %544 = arith.mulf %543, %541 : vector<2x128xf32>
    %545 = arith.mulf %536, %471 : vector<2x128xf32>
    %546 = arith.addf %544, %545 : vector<2x128xf32>
    %c1_245 = arith.constant 1 : index
    %c0_246 = arith.constant 0 : index
    %c0_247 = arith.constant 0 : index
    %547 = vector.load %arg14[%c1_245, %c0_246, %c0_247] : memref<2x128x384xf32, #tpu.memory_space<vmem>>, vector<1x128x384xf32>
    %548 = vector.shape_cast %547 : vector<1x128x384xf32> to vector<128x384xf32>
    %cst_248 = arith.constant dense<0.000000e+00> : vector<2x384xf32>
    %549 = tpu.matmul %546, %548, %cst_248 {dimension_numbers = #tpu.dot_dimension_numbers<[1], [0], [0], [1], [0, 0, 1, 1], [], []>} : vector<2x128xf32>, vector<128x384xf32>, vector<2x384xf32> -> vector<2x384xf32>
    %c1_249 = arith.constant 1 : index
    %c0_250 = arith.constant 0 : index
    %c0_251 = arith.constant 0 : index
    %550 = vector.load %arg16[%c1_249, %c0_250, %c0_251] : memref<2x1x384xf32, #tpu.memory_space<vmem>>, vector<1x1x384xf32>
    %551 = vector.shape_cast %550 : vector<1x1x384xf32> to vector<1x384xf32>
    %552 = vector.broadcast %551 : vector<1x384xf32> to vector<2x384xf32>
    %553 = arith.addf %549, %552 : vector<2x384xf32>
    %c1_252 = arith.constant 1 : index
    %c0_253 = arith.constant 0 : index
    %c0_254 = arith.constant 0 : index
    %554 = vector.load %arg15[%c1_252, %c0_253, %c0_254] : memref<2x128x384xf32, #tpu.memory_space<vmem>>, vector<1x128x384xf32>
    %555 = vector.shape_cast %554 : vector<1x128x384xf32> to vector<128x384xf32>
    %cst_255 = arith.constant dense<0.000000e+00> : vector<2x384xf32>
    %556 = tpu.matmul %511, %555, %cst_255 {dimension_numbers = #tpu.dot_dimension_numbers<[1], [0], [0], [1], [0, 0, 1, 1], [], []>} : vector<2x128xf32>, vector<128x384xf32>, vector<2x384xf32> -> vector<2x384xf32>
    %c1_256 = arith.constant 1 : index
    %c0_257 = arith.constant 0 : index
    %c0_258 = arith.constant 0 : index
    %557 = vector.load %arg17[%c1_256, %c0_257, %c0_258] : memref<2x1x384xf32, #tpu.memory_space<vmem>>, vector<1x1x384xf32>
    %558 = vector.shape_cast %557 : vector<1x1x384xf32> to vector<1x384xf32>
    %559 = vector.broadcast %558 : vector<1x384xf32> to vector<2x384xf32>
    %560 = arith.addf %556, %559 : vector<2x384xf32>
    %561 = vector.extract_strided_slice %553 {offsets = [0, 0], sizes = [2, 128], strides = [1, 1]} : vector<2x384xf32> to vector<2x128xf32>
    %562 = vector.extract_strided_slice %560 {offsets = [0, 0], sizes = [2, 128], strides = [1, 1]} : vector<2x384xf32> to vector<2x128xf32>
    %563 = arith.addf %561, %562 : vector<2x128xf32>
    %564 = arith.negf %563 : vector<2x128xf32>
    %565 = math.exp %564 : vector<2x128xf32>
    %cst_259 = arith.constant 1.000000e+00 : f32
    %566 = vector.broadcast %cst_259 : f32 to vector<2x128xf32>
    %567 = arith.addf %566, %565 : vector<2x128xf32>
    %568 = arith.divf %566, %567 : vector<2x128xf32>
    %569 = vector.extract_strided_slice %553 {offsets = [0, 128], sizes = [2, 128], strides = [1, 1]} : vector<2x384xf32> to vector<2x128xf32>
    %570 = vector.extract_strided_slice %560 {offsets = [0, 128], sizes = [2, 128], strides = [1, 1]} : vector<2x384xf32> to vector<2x128xf32>
    %571 = arith.addf %569, %570 : vector<2x128xf32>
    %572 = arith.negf %571 : vector<2x128xf32>
    %573 = math.exp %572 : vector<2x128xf32>
    %cst_260 = arith.constant 1.000000e+00 : f32
    %574 = vector.broadcast %cst_260 : f32 to vector<2x128xf32>
    %575 = arith.addf %574, %573 : vector<2x128xf32>
    %576 = arith.divf %574, %575 : vector<2x128xf32>
    %577 = vector.extract_strided_slice %553 {offsets = [0, 256], sizes = [2, 128], strides = [1, 1]} : vector<2x384xf32> to vector<2x128xf32>
    %578 = vector.extract_strided_slice %560 {offsets = [0, 256], sizes = [2, 128], strides = [1, 1]} : vector<2x384xf32> to vector<2x128xf32>
    %579 = arith.mulf %568, %578 : vector<2x128xf32>
    %580 = arith.addf %577, %579 : vector<2x128xf32>
    %581 = math.tanh %580 : vector<2x128xf32>
    %cst_261 = arith.constant 1.000000e+00 : f32
    %582 = vector.broadcast %cst_261 : f32 to vector<2x128xf32>
    %583 = arith.subf %582, %576 : vector<2x128xf32>
    %584 = arith.mulf %583, %581 : vector<2x128xf32>
    %585 = arith.mulf %576, %511 : vector<2x128xf32>
    %586 = arith.addf %584, %585 : vector<2x128xf32>
    %c12 = arith.constant 12 : index
    %c0_262 = arith.constant 0 : index
    %587 = vector.load %arg21[%c12, %c0_262] : memref<16x128xf32, #tpu.memory_space<vmem>>, vector<2x128xf32>
    tpu.vector_store %arg21[%c12, %c0_262], %586 {strides = array<i32>} : memref<16x128xf32, #tpu.memory_space<vmem>>, vector<2x128xf32>,
    %588 = vector.extract_strided_slice %62 {offsets = [14, 0], sizes = [2, 384], strides = [1, 1]} : vector<16x384xf32> to vector<2x384xf32>
    %c0_263 = arith.constant 0 : index
    %c0_264 = arith.constant 0 : index
    %c0_265 = arith.constant 0 : index
    %589 = vector.load %arg15[%c0_263, %c0_264, %c0_265] : memref<2x128x384xf32, #tpu.memory_space<vmem>>, vector<1x128x384xf32>
    %590 = vector.shape_cast %589 : vector<1x128x384xf32> to vector<128x384xf32>
    %cst_266 = arith.constant dense<0.000000e+00> : vector<2x384xf32>
    %591 = tpu.matmul %546, %590, %cst_266 {dimension_numbers = #tpu.dot_dimension_numbers<[1], [0], [0], [1], [0, 0, 1, 1], [], []>} : vector<2x128xf32>, vector<128x384xf32>, vector<2x384xf32> -> vector<2x384xf32>
    %c0_267 = arith.constant 0 : index
    %c0_268 = arith.constant 0 : index
    %c0_269 = arith.constant 0 : index
    %592 = vector.load %arg17[%c0_267, %c0_268, %c0_269] : memref<2x1x384xf32, #tpu.memory_space<vmem>>, vector<1x1x384xf32>
    %593 = vector.shape_cast %592 : vector<1x1x384xf32> to vector<1x384xf32>
    %594 = vector.broadcast %593 : vector<1x384xf32> to vector<2x384xf32>
    %595 = arith.addf %591, %594 : vector<2x384xf32>
    %596 = vector.extract_strided_slice %588 {offsets = [0, 0], sizes = [2, 128], strides = [1, 1]} : vector<2x384xf32> to vector<2x128xf32>
    %597 = vector.extract_strided_slice %595 {offsets = [0, 0], sizes = [2, 128], strides = [1, 1]} : vector<2x384xf32> to vector<2x128xf32>
    %598 = arith.addf %596, %597 : vector<2x128xf32>
    %599 = arith.negf %598 : vector<2x128xf32>
    %600 = math.exp %599 : vector<2x128xf32>
    %cst_270 = arith.constant 1.000000e+00 : f32
    %601 = vector.broadcast %cst_270 : f32 to vector<2x128xf32>
    %602 = arith.addf %601, %600 : vector<2x128xf32>
    %603 = arith.divf %601, %602 : vector<2x128xf32>
    %604 = vector.extract_strided_slice %588 {offsets = [0, 128], sizes = [2, 128], strides = [1, 1]} : vector<2x384xf32> to vector<2x128xf32>
    %605 = vector.extract_strided_slice %595 {offsets = [0, 128], sizes = [2, 128], strides = [1, 1]} : vector<2x384xf32> to vector<2x128xf32>
    %606 = arith.addf %604, %605 : vector<2x128xf32>
    %607 = arith.negf %606 : vector<2x128xf32>
    %608 = math.exp %607 : vector<2x128xf32>
    %cst_271 = arith.constant 1.000000e+00 : f32
    %609 = vector.broadcast %cst_271 : f32 to vector<2x128xf32>
    %610 = arith.addf %609, %608 : vector<2x128xf32>
    %611 = arith.divf %609, %610 : vector<2x128xf32>
    %612 = vector.extract_strided_slice %588 {offsets = [0, 256], sizes = [2, 128], strides = [1, 1]} : vector<2x384xf32> to vector<2x128xf32>
    %613 = vector.extract_strided_slice %595 {offsets = [0, 256], sizes = [2, 128], strides = [1, 1]} : vector<2x384xf32> to vector<2x128xf32>
    %614 = arith.mulf %603, %613 : vector<2x128xf32>
    %615 = arith.addf %612, %614 : vector<2x128xf32>
    %616 = math.tanh %615 : vector<2x128xf32>
    %cst_272 = arith.constant 1.000000e+00 : f32
    %617 = vector.broadcast %cst_272 : f32 to vector<2x128xf32>
    %618 = arith.subf %617, %611 : vector<2x128xf32>
    %619 = arith.mulf %618, %616 : vector<2x128xf32>
    %620 = arith.mulf %611, %546 : vector<2x128xf32>
    %621 = arith.addf %619, %620 : vector<2x128xf32>
    %c1_273 = arith.constant 1 : index
    %c0_274 = arith.constant 0 : index
    %c0_275 = arith.constant 0 : index
    %622 = vector.load %arg14[%c1_273, %c0_274, %c0_275] : memref<2x128x384xf32, #tpu.memory_space<vmem>>, vector<1x128x384xf32>
    %623 = vector.shape_cast %622 : vector<1x128x384xf32> to vector<128x384xf32>
    %cst_276 = arith.constant dense<0.000000e+00> : vector<2x384xf32>
    %624 = tpu.matmul %621, %623, %cst_276 {dimension_numbers = #tpu.dot_dimension_numbers<[1], [0], [0], [1], [0, 0, 1, 1], [], []>} : vector<2x128xf32>, vector<128x384xf32>, vector<2x384xf32> -> vector<2x384xf32>
    %c1_277 = arith.constant 1 : index
    %c0_278 = arith.constant 0 : index
    %c0_279 = arith.constant 0 : index
    %625 = vector.load %arg16[%c1_277, %c0_278, %c0_279] : memref<2x1x384xf32, #tpu.memory_space<vmem>>, vector<1x1x384xf32>
    %626 = vector.shape_cast %625 : vector<1x1x384xf32> to vector<1x384xf32>
    %627 = vector.broadcast %626 : vector<1x384xf32> to vector<2x384xf32>
    %628 = arith.addf %624, %627 : vector<2x384xf32>
    %c1_280 = arith.constant 1 : index
    %c0_281 = arith.constant 0 : index
    %c0_282 = arith.constant 0 : index
    %629 = vector.load %arg15[%c1_280, %c0_281, %c0_282] : memref<2x128x384xf32, #tpu.memory_space<vmem>>, vector<1x128x384xf32>
    %630 = vector.shape_cast %629 : vector<1x128x384xf32> to vector<128x384xf32>
    %cst_283 = arith.constant dense<0.000000e+00> : vector<2x384xf32>
    %631 = tpu.matmul %586, %630, %cst_283 {dimension_numbers = #tpu.dot_dimension_numbers<[1], [0], [0], [1], [0, 0, 1, 1], [], []>} : vector<2x128xf32>, vector<128x384xf32>, vector<2x384xf32> -> vector<2x384xf32>
    %c1_284 = arith.constant 1 : index
    %c0_285 = arith.constant 0 : index
    %c0_286 = arith.constant 0 : index
    %632 = vector.load %arg17[%c1_284, %c0_285, %c0_286] : memref<2x1x384xf32, #tpu.memory_space<vmem>>, vector<1x1x384xf32>
    %633 = vector.shape_cast %632 : vector<1x1x384xf32> to vector<1x384xf32>
    %634 = vector.broadcast %633 : vector<1x384xf32> to vector<2x384xf32>
    %635 = arith.addf %631, %634 : vector<2x384xf32>
    %636 = vector.extract_strided_slice %628 {offsets = [0, 0], sizes = [2, 128], strides = [1, 1]} : vector<2x384xf32> to vector<2x128xf32>
    %637 = vector.extract_strided_slice %635 {offsets = [0, 0], sizes = [2, 128], strides = [1, 1]} : vector<2x384xf32> to vector<2x128xf32>
    %638 = arith.addf %636, %637 : vector<2x128xf32>
    %639 = arith.negf %638 : vector<2x128xf32>
    %640 = math.exp %639 : vector<2x128xf32>
    %cst_287 = arith.constant 1.000000e+00 : f32
    %641 = vector.broadcast %cst_287 : f32 to vector<2x128xf32>
    %642 = arith.addf %641, %640 : vector<2x128xf32>
    %643 = arith.divf %641, %642 : vector<2x128xf32>
    %644 = vector.extract_strided_slice %628 {offsets = [0, 128], sizes = [2, 128], strides = [1, 1]} : vector<2x384xf32> to vector<2x128xf32>
    %645 = vector.extract_strided_slice %635 {offsets = [0, 128], sizes = [2, 128], strides = [1, 1]} : vector<2x384xf32> to vector<2x128xf32>
    %646 = arith.addf %644, %645 : vector<2x128xf32>
    %647 = arith.negf %646 : vector<2x128xf32>
    %648 = math.exp %647 : vector<2x128xf32>
    %cst_288 = arith.constant 1.000000e+00 : f32
    %649 = vector.broadcast %cst_288 : f32 to vector<2x128xf32>
    %650 = arith.addf %649, %648 : vector<2x128xf32>
    %651 = arith.divf %649, %650 : vector<2x128xf32>
    %652 = vector.extract_strided_slice %628 {offsets = [0, 256], sizes = [2, 128], strides = [1, 1]} : vector<2x384xf32> to vector<2x128xf32>
    %653 = vector.extract_strided_slice %635 {offsets = [0, 256], sizes = [2, 128], strides = [1, 1]} : vector<2x384xf32> to vector<2x128xf32>
    %654 = arith.mulf %643, %653 : vector<2x128xf32>
    %655 = arith.addf %652, %654 : vector<2x128xf32>
    %656 = math.tanh %655 : vector<2x128xf32>
    %cst_289 = arith.constant 1.000000e+00 : f32
    %657 = vector.broadcast %cst_289 : f32 to vector<2x128xf32>
    %658 = arith.subf %657, %651 : vector<2x128xf32>
    %659 = arith.mulf %658, %656 : vector<2x128xf32>
    %660 = arith.mulf %651, %586 : vector<2x128xf32>
    %661 = arith.addf %659, %660 : vector<2x128xf32>
    %c14 = arith.constant 14 : index
    %c0_290 = arith.constant 0 : index
    %662 = vector.load %arg21[%c14, %c0_290] : memref<16x128xf32, #tpu.memory_space<vmem>>, vector<2x128xf32>
    tpu.vector_store %arg21[%c14, %c0_290], %661 {strides = array<i32>} : memref<16x128xf32, #tpu.memory_space<vmem>>, vector<2x128xf32>,
    %c0_291 = arith.constant 0 : index
    %c0_292 = arith.constant 0 : index
    %663 = vector.load %arg21[%c0_291, %c0_292] : memref<16x128xf32, #tpu.memory_space<vmem>>, vector<16x128xf32>
    %c0_293 = arith.constant 0 : index
    %c0_294 = arith.constant 0 : index
    %664 = vector.load %arg18[%c0_293, %c0_294] : memref<128x128xf32, #tpu.memory_space<vmem>>, vector<128x128xf32>
    %cst_295 = arith.constant dense<0.000000e+00> : vector<16x128xf32>
    %665 = tpu.matmul %663, %664, %cst_295 {dimension_numbers = #tpu.dot_dimension_numbers<[1], [0], [0], [1], [0, 0, 1, 1], [], []>} : vector<16x128xf32>, vector<128x128xf32>, vector<16x128xf32> -> vector<16x128xf32>
    %c0_296 = arith.constant 0 : index
    %c0_297 = arith.constant 0 : index
    %666 = vector.load %arg19[%c0_296, %c0_297] : memref<1x128xf32, #tpu.memory_space<vmem>>, vector<1x128xf32>
    %667 = vector.broadcast %666 : vector<1x128xf32> to vector<16x128xf32>
    %668 = arith.addf %665, %667 : vector<16x128xf32>
    %c0_298 = arith.constant 0 : index
    %c0_299 = arith.constant 0 : index
    %669 = vector.load %arg20[%c0_298, %c0_299] : memref<16x128xf32, #tpu.memory_space<vmem>>, vector<16x128xf32>
    tpu.vector_store %arg20[%c0_298, %c0_299], %668 {strides = array<i32>} : memref<16x128xf32, #tpu.memory_space<vmem>>, vector<16x128xf32>,
    return
  }
  func.func @transform_0(%arg0: i32) -> (i32, i32) {
    %c0_i32 = arith.constant 0 : i32
    %c0_i32_0 = arith.constant 0 : i32
    %c0_i32_1 = arith.constant 0 : i32
    return %c0_i32, %c0_i32_0 : i32, i32
  }
  func.func @transform_1(%arg0: i32) -> (i32, i32) {
    %c0_i32 = arith.constant 0 : i32
    %c0_i32_0 = arith.constant 0 : i32
    %c0_i32_1 = arith.constant 0 : i32
    return %c0_i32, %c0_i32_0 : i32, i32
  }
  func.func @transform_2(%arg0: i32) -> (i32, i32) {
    %c0_i32 = arith.constant 0 : i32
    %c0_i32_0 = arith.constant 0 : i32
    %c0_i32_1 = arith.constant 0 : i32
    return %c0_i32, %c0_i32_0 : i32, i32
  }
  func.func @transform_3(%arg0: i32) -> (i32, i32) {
    %c0_i32 = arith.constant 0 : i32
    %c0_i32_0 = arith.constant 0 : i32
    %c0_i32_1 = arith.constant 0 : i32
    return %c0_i32, %c0_i32_0 : i32, i32
  }
  func.func @transform_4(%arg0: i32) -> (i32, i32) {
    %c0_i32 = arith.constant 0 : i32
    %c0_i32_0 = arith.constant 0 : i32
    %c0_i32_1 = arith.constant 0 : i32
    return %c0_i32, %c0_i32_0 : i32, i32
  }
  func.func @transform_5(%arg0: i32) -> (i32, i32) {
    %c0_i32 = arith.constant 0 : i32
    %c0_i32_0 = arith.constant 0 : i32
    %c0_i32_1 = arith.constant 0 : i32
    return %c0_i32, %c0_i32_0 : i32, i32
  }
  func.func @transform_6(%arg0: i32) -> (i32, i32, i32) {
    %c0_i32 = arith.constant 0 : i32
    %c0_i32_0 = arith.constant 0 : i32
    %c0_i32_1 = arith.constant 0 : i32
    %c0_i32_2 = arith.constant 0 : i32
    return %c0_i32, %c0_i32_0, %c0_i32_1 : i32, i32, i32
  }
  func.func @transform_7(%arg0: i32) -> (i32, i32, i32) {
    %c0_i32 = arith.constant 0 : i32
    %c0_i32_0 = arith.constant 0 : i32
    %c0_i32_1 = arith.constant 0 : i32
    %c0_i32_2 = arith.constant 0 : i32
    return %c0_i32, %c0_i32_0, %c0_i32_1 : i32, i32, i32
  }
  func.func @transform_8(%arg0: i32) -> (i32, i32, i32) {
    %c0_i32 = arith.constant 0 : i32
    %c0_i32_0 = arith.constant 0 : i32
    %c0_i32_1 = arith.constant 0 : i32
    %c0_i32_2 = arith.constant 0 : i32
    return %c0_i32, %c0_i32_0, %c0_i32_1 : i32, i32, i32
  }
  func.func @transform_9(%arg0: i32) -> (i32, i32, i32) {
    %c0_i32 = arith.constant 0 : i32
    %c0_i32_0 = arith.constant 0 : i32
    %c0_i32_1 = arith.constant 0 : i32
    %c0_i32_2 = arith.constant 0 : i32
    return %c0_i32, %c0_i32_0, %c0_i32_1 : i32, i32, i32
  }
  func.func @transform_10(%arg0: i32) -> (i32, i32) {
    %c0_i32 = arith.constant 0 : i32
    %c0_i32_0 = arith.constant 0 : i32
    %c0_i32_1 = arith.constant 0 : i32
    return %c0_i32, %c0_i32_0 : i32, i32
  }
  func.func @transform_11(%arg0: i32) -> (i32, i32) {
    %c0_i32 = arith.constant 0 : i32
    %c0_i32_0 = arith.constant 0 : i32
    %c0_i32_1 = arith.constant 0 : i32
    return %c0_i32, %c0_i32_0 : i32, i32
  }
  func.func @transform_12(%arg0: i32) -> (i32, i32) {
    %c0_i32 = arith.constant 0 : i32
    %c0_i32_0 = arith.constant 0 : i32
    %c0_i32_1 = arith.constant 0 : i32
    return %c0_i32, %c0_i32_0 : i32, i32
  }
  func.func @transform_13(%arg0: i32) -> (i32, i32, i32) {
    %c0_i32 = arith.constant 0 : i32
    %c0_i32_0 = arith.constant 0 : i32
    %c0_i32_1 = arith.constant 0 : i32
    %c0_i32_2 = arith.constant 0 : i32
    return %c0_i32, %c0_i32_0, %c0_i32_1 : i32, i32, i32
  }
  func.func @transform_14(%arg0: i32) -> (i32, i32, i32) {
    %c0_i32 = arith.constant 0 : i32
    %c0_i32_0 = arith.constant 0 : i32
    %c0_i32_1 = arith.constant 0 : i32
    %c0_i32_2 = arith.constant 0 : i32
    return %c0_i32, %c0_i32_0, %c0_i32_1 : i32, i32, i32
  }
  func.func @transform_15(%arg0: i32) -> (i32, i32, i32) {
    %c0_i32 = arith.constant 0 : i32
    %c0_i32_0 = arith.constant 0 : i32
    %c0_i32_1 = arith.constant 0 : i32
    %c0_i32_2 = arith.constant 0 : i32
    return %c0_i32, %c0_i32_0, %c0_i32_1 : i32, i32, i32
  }
  func.func @transform_16(%arg0: i32) -> (i32, i32, i32) {
    %c0_i32 = arith.constant 0 : i32
    %c0_i32_0 = arith.constant 0 : i32
    %c0_i32_1 = arith.constant 0 : i32
    %c0_i32_2 = arith.constant 0 : i32
    return %c0_i32, %c0_i32_0, %c0_i32_1 : i32, i32, i32
  }
  func.func @transform_17(%arg0: i32) -> (i32, i32) {
    %c0_i32 = arith.constant 0 : i32
    %c0_i32_0 = arith.constant 0 : i32
    %c0_i32_1 = arith.constant 0 : i32
    return %c0_i32, %c0_i32_0 : i32, i32
  }
  func.func @transform_18(%arg0: i32) -> (i32, i32) {
    %c0_i32 = arith.constant 0 : i32
    %c0_i32_0 = arith.constant 0 : i32
    %c0_i32_1 = arith.constant 0 : i32
    return %c0_i32, %c0_i32_0 : i32, i32
  }
  func.func @transform_19(%arg0: i32) -> (i32, i32) {
    %c0_i32 = arith.constant 0 : i32
    %c0_i32_0 = arith.constant 0 : i32
    %c0_i32_1 = arith.constant 0 : i32
    return %c0_i32, %c0_i32_0 : i32, i32
  }
}

</mosaic_0001>

<bundles_post_ra>
// kernel: graph_seq_forward.1
= control target key start
LH: loop header
LB: loop body
LE: loop exit
PB: predicated region body
PF: predicated region fallthrough
CT: control target
= control target key end

     0   :  { %vm157_vm0 = vcmask 130048   ;;  %vm11733_vm1 = vmmov 0   ;;  %s16040_s2 = inlined_call_operand.vmem [shape: f32[128,128], index: 2, kind: input, shape index: {}]   ;;  %s16041_s0 = inlined_call_operand.vmem [shape: f32[16,128], index: 0, kind: input, shape index: {}]   ;;  %s16042_s4 = inlined_call_operand.vmem [shape: f32[16,16], index: 4, kind: input, shape index: {}]   ;;  %s16043_s7 = inlined_call_operand.vmem [shape: f32[2,128,128], index: 7, kind: input, shape index: {}]   ;;  %s16044_s5 = inlined_call_operand.vmem [shape: f32[16,16], index: 5, kind: input, shape index: {}]   ;;  %s16045_s6 = inlined_call_operand.vmem [shape: f32[2,128,128], index: 6, kind: input, shape index: {}]   ;;  %s16046_s8 = inlined_call_operand.vmem [shape: f32[2,128,128], index: 8, kind: input, shape index: {}]   ;;  %s16047_s9 = inlined_call_operand.vmem [shape: f32[2,1,128], index: 9, kind: input, shape index: {}]   ;;  %s16048_s3 = inlined_call_operand.vmem [shape: f32[128,128], index: 3, kind: input, shape index: {}]   ;;  %s16049_s1 = inlined_call_operand.vmem [shape: f32[16,128], index: 1, kind: input, shape index: {}]   ;;  %s16050_s11 = inlined_call_operand.vmem [shape: f32[128,128], index: 11, kind: input, shape index: {}]   ;;  %s16051_s10 = inlined_call_operand.vmem [shape: f32[2,16], index: 10, kind: input, shape index: {}]   ;;  %s16052_s13 = inlined_call_operand.vmem [shape: f32[2,128,384], index: 13, kind: input, shape index: {}]   ;;  %s16053_s14 = inlined_call_operand.vmem [shape: f32[2,128,384], index: 14, kind: input, shape index: {}]   ;;  %s16054_s15 = inlined_call_operand.vmem [shape: f32[2,1,384], index: 15, kind: input, shape index: {}]   ;;  %s16055_s12 = inlined_call_operand.vmem [shape: f32[1,128], index: 12, kind: input, shape index: {}]   ;;  %s16056_s16 = inlined_call_operand.vmem [shape: f32[2,1,384], index: 16, kind: input, shape index: {}]   ;;  %s16057_s17 = inlined_call_operand.vmem [shape: f32[128,128], index: 17, kind: input, shape index: {}]   ;;  %s16058_s18 = inlined_call_operand.vmem [shape: f32[1,128], index: 18, kind: input, shape index: {}]   ;;  %s16059_s19 = inlined_call_operand.vmem [shape: f32[16,128], index: 19, kind: output, shape index: {}]  }
   0x1   :  { %16171 = sst [smem:[#allocation31_spill]] %s16040_s2  ;;  %v11914_v33 = vld [vmem:[%s16044_s5] sm:$0xff]  ;;  %v11927_v37 = vld [vmem:[%s16044_s5 + $0x8] sm:$0xff]  ;;  %v324_v60 = vld [vmem:[%s16045_s6 + $0x10] sm:$0xff] }
   0x2   :  { %16172 = sst [smem:[#allocation32_spill]] %s16041_s0  ;;  %s16175_s20 = sld [smem:[#allocation31_spill]]  ;;  %v322_v57 = vld [vmem:[%s16045_s6] sm:$0xff]  ;;  %v323_v58 = vld [vmem:[%s16045_s6 + $0x8] sm:$0xff]  ;;  %v325_v61 = vld [vmem:[%s16045_s6 + $0x18] sm:$0xff] }
   0x3   :  { %16173 = sst [smem:[#allocation33_spill]] %s16042_s4  ;;  %s16176_s2 = sld [smem:[#allocation32_spill]]  ;;  %v9844_v59 = vpack.c.bf16 %v323_v58, %v322_v57 }
   0x4   :  { %16174 = sst [smem:[#allocation34_spill]] %s16043_s7  ;;  %s16177_s28 = sld [smem:[#allocation33_spill]] }
   0x8   :  { %v64_v0 = vld [vmem:[%s16175_s20] sm:$0xff]  ;;  %v65_v1 = vld [vmem:[%s16175_s20 + $0x8] sm:$0xff]  ;;  %v66_v2 = vld [vmem:[%s16175_s20 + $0x10] sm:$0xff] }
   0x9   :  { %v9772_v3 = vpack.c.bf16 %v65_v1, %v64_v0  ;;  %v67_v4 = vld [vmem:[%s16175_s20 + $0x18] sm:$0xff]  ;;  %v68_v6 = vld [vmem:[%s16175_s20 + $0x20] sm:$0xff]  ;;  %v69_v7 = vld [vmem:[%s16175_s20 + $0x28] sm:$0xff]  ;;  %v9848_v0 = vpack.c.bf16 %v325_v61, %v324_v60 }
   0xa   :  { %v9776_v5 = vpack.c.bf16 %v67_v4, %v66_v2  ;;  %v9780_v8 = vpack.c.bf16 %v69_v7, %v68_v6  ;;  %v62_v9 = vld [vmem:[%s16176_s2] sm:$0xff]  ;;  %v70_v10 = vld [vmem:[%s16175_s20 + $0x30] sm:$0xff]  ;;  %v71_v11 = vld [vmem:[%s16175_s20 + $0x38] sm:$0xff] }
   0xb   :  { %9773 = vmatprep.subr.bf16.mxu0 %v9772_v3  ;;  %8544 = vmatprep.mubr.f32.mxu0 %v62_v9  ;;  %v9784_v12 = vpack.c.bf16 %v71_v11, %v70_v10  ;;  %v72_v13 = vld [vmem:[%s16175_s20 + $0x40] sm:$0xff]  ;;  %v73_v14 = vld [vmem:[%s16175_s20 + $0x48] sm:$0xff]  ;;  %v74_v16 = vld [vmem:[%s16175_s20 + $0x50] sm:$0xff] }
   0xc   :  { %9775 = vmatpush3.bf16.msra.mxu0 %v9772_v3  ;;  %v9788_v15 = vpack.c.bf16 %v73_v14, %v72_v13  ;;  %v75_v17 = vld [vmem:[%s16175_s20 + $0x58] sm:$0xff]  ;;  %v76_v19 = vld [vmem:[%s16175_s20 + $0x60] sm:$0xff]  ;;  %v77_v20 = vld [vmem:[%s16175_s20 + $0x68] sm:$0xff] }
   0xd   :  { %9777 = vmatprep.subr.bf16.mxu0 %v9776_v5  ;;  %v9792_v18 = vpack.c.bf16 %v75_v17, %v74_v16  ;;  %v9796_v21 = vpack.c.bf16 %v77_v20, %v76_v19  ;;  %v78_v22 = vld [vmem:[%s16175_s20 + $0x70] sm:$0xff]  ;;  %v79_v23 = vld [vmem:[%s16175_s20 + $0x78] sm:$0xff]  ;;  %v63_v25 = vld [vmem:[%s16176_s2 + $0x8] sm:$0xff]  ;;  %s16178_s2 = sld [smem:[#allocation34_spill]] }
   0xe   :  { %v9800_v24 = vpack.c.bf16 %v79_v23, %v78_v22  ;;  %v155_v26 = vld [vmem:[%s16177_s28] sm:$0xff]  ;;  %v11909_v32 = vld [vmem:[%s16177_s28 + $0x8] sm:$0xff]  ;;  %v328_v6 = vld [vmem:[%s16045_s6 + $0x30] sm:$0xff] }
   0xf   :  { %8551 = vmatprep.mubr.msk.f32.mxu1 %vm157_vm0, %v155_v26  ;;  %v326_v1 = vld [vmem:[%s16045_s6 + $0x20] sm:$0xff]  ;;  %v327_v2 = vld [vmem:[%s16045_s6 + $0x28] sm:$0xff]  ;;  %v329_v7 = vld [vmem:[%s16045_s6 + $0x38] sm:$0xff] }
  0x10   :  { %9779 = vmatpush3.bf16.msra.mxu0 %v9776_v5  ;;  %v9852_v4 = vpack.c.bf16 %v327_v2, %v326_v1  ;;  %v330_v9 = vld [vmem:[%s16045_s6 + $0x40] sm:$0xff]  ;;  %v331_v10 = vld [vmem:[%s16045_s6 + $0x48] sm:$0xff]  ;;  %v333_v13 = vld [vmem:[%s16045_s6 + $0x58] sm:$0xff] }
  0x11   :  { %9781 = vmatprep.subr.bf16.mxu0 %v9780_v8  ;;  %v9860_v11 = vpack.c.bf16 %v331_v10, %v330_v9  ;;  %v335_v16 = vld [vmem:[%s16045_s6 + $0x68] sm:$0xff]  ;;  %v337_v19 = vld [vmem:[%s16045_s6 + $0x78] sm:$0xff] }
  0x12   :  { %v505_v22 = vld [vmem:[%s16046_s8 + $0x8] sm:$0xff] }
  0x13   :  { %v338_v30 = vld [vmem:[%s16178_s2] sm:$0xff]  ;;  %v339_v31 = vld [vmem:[%s16178_s2 + $0x8] sm:$0xff]  ;;  %v340_v35 = vld [vmem:[%s16178_s2 + $0x10] sm:$0xff] }
  0x14   :  { %9783 = vmatpush3.bf16.msra.mxu0 %v9780_v8  ;;  %v9812_v34 = vpack.c.bf16 %v339_v31, %v338_v30  ;;  %v341_v36 = vld [vmem:[%s16178_s2 + $0x18] sm:$0xff]  ;;  %v342_v39 = vld [vmem:[%s16178_s2 + $0x20] sm:$0xff]  ;;  %v343_v40 = vld [vmem:[%s16178_s2 + $0x28] sm:$0xff]  ;;  %v9856_v8 = vpack.c.bf16 %v329_v7, %v328_v6 }
  0x15   :  { %9785 = vmatprep.subr.bf16.mxu0 %v9784_v12  ;;  %v9816_v38 = vpack.c.bf16 %v341_v36, %v340_v35  ;;  %v9820_v41 = vpack.c.bf16 %v343_v40, %v342_v39  ;;  %v344_v42 = vld [vmem:[%s16178_s2 + $0x30] sm:$0xff]  ;;  %v345_v43 = vld [vmem:[%s16178_s2 + $0x38] sm:$0xff]  ;;  %v346_v45 = vld [vmem:[%s16178_s2 + $0x40] sm:$0xff] }
  0x16   :  { %v9824_v44 = vpack.c.bf16 %v345_v43, %v344_v42  ;;  %v347_v46 = vld [vmem:[%s16178_s2 + $0x48] sm:$0xff]  ;;  %v348_v48 = vld [vmem:[%s16178_s2 + $0x50] sm:$0xff]  ;;  %v349_v49 = vld [vmem:[%s16178_s2 + $0x58] sm:$0xff] }
  0x17   :  { %v9828_v47 = vpack.c.bf16 %v347_v46, %v346_v45  ;;  %v9832_v50 = vpack.c.bf16 %v349_v49, %v348_v48  ;;  %v350_v51 = vld [vmem:[%s16178_s2 + $0x60] sm:$0xff]  ;;  %v351_v52 = vld [vmem:[%s16178_s2 + $0x68] sm:$0xff]  ;;  %v352_v54 = vld [vmem:[%s16178_s2 + $0x70] sm:$0xff] }
  0x18   :  { %9787 = vmatpush3.bf16.msra.mxu0 %v9784_v12  ;;  %v9836_v53 = vpack.c.bf16 %v351_v52, %v350_v51  ;;  %v353_v55 = vld [vmem:[%s16178_s2 + $0x78] sm:$0xff]  ;;  %v332_v12 = vld [vmem:[%s16045_s6 + $0x50] sm:$0xff]  ;;  %v512_v36 = vld [vmem:[%s16046_s8 + $0x40] sm:$0xff] }
  0x19   :  { %9789 = vmatprep.subr.bf16.mxu0 %v9788_v15  ;;  %v9840_v56 = vpack.c.bf16 %v353_v55, %v352_v54  ;;  %v9864_v14 = vpack.c.bf16 %v333_v13, %v332_v12  ;;  %v510_v31 = vld [vmem:[%s16046_s8 + $0x30] sm:$0xff]  ;;  %v515_v40 = vld [vmem:[%s16046_s8 + $0x58] sm:$0xff]  ;;  %v516_v42 = vld [vmem:[%s16046_s8 + $0x60] sm:$0xff] }
  0x1a   :  { %v514_v39 = vld [vmem:[%s16046_s8 + $0x50] sm:$0xff]  ;;  %v517_v43 = vld [vmem:[%s16046_s8 + $0x68] sm:$0xff]  ;;  %v519_v46 = vld [vmem:[%s16046_s8 + $0x78] sm:$0xff] }
  0x1b   :  { %v518_v45 = vld [vmem:[%s16046_s8 + $0x70] sm:$0xff]  ;;  %v7014_v48 = vld [vmem:[%s16047_s9] ss:$0 sm:$0xff]  ;;  %v7036_v57 = vld [vmem:[%s16178_s2 + $0x88] sm:$0xff] }
  0x1c   :  { %9791 = vmatpush3.bf16.msra.mxu0 %v9788_v15  ;;  %v334_v15 = vld [vmem:[%s16045_s6 + $0x60] sm:$0xff]  ;;  %v7038_v60 = vld [vmem:[%s16178_s2 + $0x98] sm:$0xff]  ;;  %v7049_v10 = vld [vmem:[%s16178_s2 + $0xf0] sm:$0xff] }
  0x1d   :  { %9793 = vmatprep.subr.bf16.mxu0 %v9792_v18  ;;  %v9868_v17 = vpack.c.bf16 %v335_v16, %v334_v15  ;;  %v7043_v2 = vld [vmem:[%s16178_s2 + $0xc0] sm:$0xff]  ;;  %v7021_v16 = vld [vmem:[%s16045_s6 + $0x90] sm:$0xff] }
  0x1e   :  { %v7047_v7 = vld [vmem:[%s16178_s2 + $0xe0] sm:$0xff] }
  0x1f   :  { %v7019_v13 = vld [vmem:[%s16045_s6 + $0x80] sm:$0xff] }
  0x20   :  { %9795 = vmatpush3.bf16.msra.mxu0 %v9792_v18  ;;  %v336_v18 = vld [vmem:[%s16045_s6 + $0x70] sm:$0xff] }
  0x21   :  { %9797 = vmatprep.subr.bf16.mxu0 %v9796_v21  ;;  %v9872_v20 = vpack.c.bf16 %v337_v19, %v336_v18 }
  0x24   :  { %9799 = vmatpush3.bf16.msra.mxu0 %v9796_v21  ;;  %v504_v21 = vld [vmem:[%s16046_s8] sm:$0xff] }
  0x25   :  { %9801 = vmatprep.subr.bf16.mxu0 %v9800_v24  ;;  %v9876_v23 = vpack.c.bf16 %v505_v22, %v504_v21  ;;  %v7023_v21 = vld [vmem:[%s16045_s6 + $0xa0] sm:$0xff]  ;;  %v7024_v22 = vld [vmem:[%s16045_s6 + $0xa8] sm:$0xff] }
  0x28   :  { %9803 = vmatpush3.bf16.msra.mxu0 %v9800_v24  ;;  %v506_v24 = vld [vmem:[%s16046_s8 + $0x10] sm:$0xff] }
  0x2b   :  { %8545 = vmatmul.mubr.f32.vlgmr.msra.gmra.mrb[0].mxu0 %v63_v25  ;;  %v507_v25 = vld [vmem:[%s16046_s8 + $0x18] sm:$0xff] }
  0x2c   :  { %8670 = vmatprep.mubr.msk.f32.mxu0 %vm157_vm0, %v155_v26  ;;  %v9880_v26 = vpack.c.bf16 %v507_v25, %v506_v24  ;;  %v9956_v24 = vpack.c.bf16 %v7024_v22, %v7023_v21  ;;  %v1230_v22 = vld [vmem:[%s16048_s3 + $0x60] sm:$0xff] }
  0xfe   :  { %v11894_v27 = vpop.f32.mrb[0].mxu0 }
  0xff   :  { %v11896_v28 = vpop.f32.mrb[1].mxu0 }
 0x100   :  { %v9804_v29 = vpack.c.bf16 %v11894_v27, %v11896_v28 }
 0x102   :  { %9805 = vmatprep.subr.bf16.mxu1 %v9804_v29 }
 0x103   :  { %9807 = vmatpush3.bf16.msra.mxu1 %v9804_v29 }
 0x104   :  { %9809 = vmatprep.subr.bf16.mxu1 %v9804_v29 }
 0x106   :  { %8552 = vmatmul.mubr.msk.f32.vlgmr.msra.gmra.mrb[0].mxu1 %vm157_vm0, %v11909_v32 }
 0x107   :  { %9811 = vmatpush3.bf16.msra.mxu1 %v9804_v29  ;;  %8558 = vmatprep.mubr.msk.f32.mxu1 %vm157_vm0, %v11914_v33  ;;  %v509_v29 = vld [vmem:[%s16046_s8 + $0x28] sm:$0xff] }
 0x108   :  { %9813 = vmatprep.subr.bf16.mxu1 %v9812_v34 }
 0x10a   :  { %8559 = vmatmul.mubr.msk.f32.vlgmr.msra.gmra.mrb[2].mxu1 %vm157_vm0, %v11927_v37 }
 0x10b   :  { %9815 = vmatpush3.bf16.msra.mxu1 %v9812_v34  ;;  %v511_v34 = vld [vmem:[%s16046_s8 + $0x38] sm:$0xff] }
 0x10c   :  { %9817 = vmatprep.subr.bf16.mxu1 %v9816_v38  ;;  %v9888_v35 = vpack.c.bf16 %v511_v34, %v510_v31  ;;  %v7028_v31 = vld [vmem:[%s16045_s6 + $0xc8] sm:$0xff] }
 0x10f   :  { %9819 = vmatpush3.bf16.msra.mxu1 %v9816_v38 }
 0x110   :  { %9821 = vmatprep.subr.bf16.mxu1 %v9820_v41 }
 0x113   :  { %9823 = vmatpush3.bf16.msra.mxu1 %v9820_v41  ;;  %v9896_v41 = vpack.c.bf16 %v515_v40, %v514_v39  ;;  %v7032_v39 = vld [vmem:[%s16045_s6 + $0xe8] sm:$0xff] }
 0x114   :  { %9825 = vmatprep.subr.bf16.mxu1 %v9824_v44 }
 0x117   :  { %9827 = vmatpush3.bf16.msra.mxu1 %v9824_v44  ;;  %v9900_v44 = vpack.c.bf16 %v517_v43, %v516_v42  ;;  %v7034_v42 = vld [vmem:[%s16045_s6 + $0xf8] sm:$0xff] }
 0x118   :  { %9829 = vmatprep.subr.bf16.mxu1 %v9828_v47 }
 0x11b   :  { %9831 = vmatpush3.bf16.msra.mxu1 %v9828_v47  ;;  %v9904_v47 = vpack.c.bf16 %v519_v46, %v518_v45  ;;  %v7052_v45 = vld [vmem:[%s16046_s8 + $0x88] sm:$0xff] }
 0x11c   :  { %9833 = vmatprep.subr.bf16.mxu1 %v9832_v50 }
 0x11f   :  { %9835 = vmatpush3.bf16.msra.mxu1 %v9832_v50 }
 0x120   :  { %9837 = vmatprep.subr.bf16.mxu1 %v9836_v53 }
 0x123   :  { %9839 = vmatpush3.bf16.msra.mxu1 %v9836_v53 }
 0x124   :  { %9841 = vmatprep.subr.bf16.mxu1 %v9840_v56 }
 0x127   :  { %9843 = vmatpush3.bf16.msra.mxu1 %v9840_v56  ;;  %v7035_v56 = vld [vmem:[%s16178_s2 + $0x80] sm:$0xff] }
 0x128   :  { %9845 = vmatprep.subr.bf16.mxu1 %v9844_v59  ;;  %v9916_v58 = vpack.c.bf16 %v7036_v57, %v7035_v56  ;;  %v7058_v56 = vld [vmem:[%s16046_s8 + $0xb8] sm:$0xff] }
 0x1d9   :  { %v8553_v62 = vpop.f32.mrb[0].mxu1 }
 0x1da   :  { %v230_v63 = vpop.f32.mrb[1].mxu1 }
 0x1db   :  { %8593 = vmatprep.mubr.f32.mxu1 %v230_v63  ;;  %v7040_v63 = vld [vmem:[%s16178_s2 + $0xa8] sm:$0xff] }
 0x1dc   :  { %8594 = vmatmul.mubr.f32.vlgmr.msra.gmra.mrb[4].mxu1 %v8553_v62  ;;  %v7039_v62 = vld [vmem:[%s16178_s2 + $0xa0] sm:$0xff] }
 0x1dd   :  { %9847 = vmatpush3.bf16.msra.mxu1 %v9844_v59  ;;  %8628 = vmatprep.mubr.f32.mxu1 %v11896_v28  ;;  %v11988_v3 = vpop.f32.mrb[2].mxu1  ;;  %v508_v28 = vld [vmem:[%s16046_s8 + $0x20] sm:$0xff]  ;;  %v7037_v59 = vld [vmem:[%s16178_s2 + $0x90] sm:$0xff] }
 0x1de   :  { %9849 = vmatprep.subr.bf16.mxu1 %v9848_v0  ;;  %v313_v5 = vpop.f32.mrb[3].mxu1  ;;  %v9884_v30 = vpack.c.bf16 %v509_v29, %v508_v28  ;;  %v9920_v61 = vpack.c.bf16 %v7038_v60, %v7037_v59  ;;  %v7026_v28 = vld [vmem:[%s16045_s6 + $0xb8] sm:$0xff]  ;;  %v7061_v59 = vld [vmem:[%s16046_s8 + $0xd0] sm:$0xff] }
 0x1df   :  { %v7062_v60 = vld [vmem:[%s16046_s8 + $0xd8] sm:$0xff] }
 0x1e1   :  { %9851 = vmatpush3.bf16.msra.mxu1 %v9848_v0  ;;  %v7042_v0 = vld [vmem:[%s16178_s2 + $0xb8] sm:$0xff] }
 0x1e2   :  { %9853 = vmatprep.subr.bf16.mxu1 %v9852_v4 }
 0x1e5   :  { %9855 = vmatpush3.bf16.msra.mxu1 %v9852_v4  ;;  %v7045_v4 = vld [vmem:[%s16178_s2 + $0xd0] sm:$0xff] }
 0x1e6   :  { %9857 = vmatprep.subr.bf16.mxu1 %v9856_v8 }
 0x1e9   :  { %9859 = vmatpush3.bf16.msra.mxu1 %v9856_v8  ;;  %v7048_v8 = vld [vmem:[%s16178_s2 + $0xe8] sm:$0xff] }
 0x1ea   :  { %9861 = vmatprep.subr.bf16.mxu1 %v9860_v11  ;;  %v9940_v9 = vpack.c.bf16 %v7048_v8, %v7047_v7  ;;  %v1221_v7 = vld [vmem:[%s16048_s3 + $0x18] sm:$0xff] }
 0x1ed   :  { %9863 = vmatpush3.bf16.msra.mxu1 %v9860_v11  ;;  %v7050_v11 = vld [vmem:[%s16178_s2 + $0xf8] sm:$0xff] }
 0x1ee   :  { %9865 = vmatprep.subr.bf16.mxu1 %v9864_v14  ;;  %v9944_v12 = vpack.c.bf16 %v7050_v11, %v7049_v10  ;;  %v1223_v10 = vld [vmem:[%s16048_s3 + $0x28] sm:$0xff] }
 0x1f1   :  { %9867 = vmatpush3.bf16.msra.mxu1 %v9864_v14  ;;  %v7020_v14 = vld [vmem:[%s16045_s6 + $0x88] sm:$0xff] }
 0x1f2   :  { %9869 = vmatprep.subr.bf16.mxu1 %v9868_v17  ;;  %v9948_v15 = vpack.c.bf16 %v7020_v14, %v7019_v13  ;;  %v1225_v13 = vld [vmem:[%s16048_s3 + $0x38] sm:$0xff]  ;;  %v1216_v14 = vld [vmem:[%s16049_s1] sm:$0xff] }
 0x1f5   :  { %9871 = vmatpush3.bf16.msra.mxu1 %v9868_v17  ;;  %v7022_v17 = vld [vmem:[%s16045_s6 + $0x98] sm:$0xff] }
 0x1f6   :  { %9873 = vmatprep.subr.bf16.mxu1 %v9872_v20 }
 0x1f9   :  { %9875 = vmatpush3.bf16.msra.mxu1 %v9872_v20  ;;  %v9952_v20 = vpack.c.bf16 %v7022_v17, %v7021_v16  ;;  %v1226_v16 = vld [vmem:[%s16048_s3 + $0x40] sm:$0xff]  ;;  %v1227_v17 = vld [vmem:[%s16048_s3 + $0x48] sm:$0xff] }
 0x1fa   :  { %9877 = vmatprep.subr.bf16.mxu1 %v9876_v23 }
 0x1fc   :  { %8629 = vmatmul.mubr.f32.vlgmr.msra.gmra.mrb[4].mxu1 %v11894_v27  ;;  %v513_v27 = vld [vmem:[%s16046_s8 + $0x48] sm:$0xff] }
 0x1fd   :  { %9879 = vmatpush3.bf16.msra.mxu1 %v9876_v23  ;;  %8663 = vmatprep.mubr.f32.mxu1 %v313_v5  ;;  %v9892_v38 = vpack.c.bf16 %v513_v27, %v512_v36  ;;  %v7046_v5 = vld [vmem:[%s16178_s2 + $0xd8] sm:$0xff] }
 0x1fe   :  { %9881 = vmatprep.subr.bf16.mxu1 %v9880_v26  ;;  %v9936_v6 = vpack.c.bf16 %v7046_v5, %v7045_v4  ;;  %v7030_v36 = vld [vmem:[%s16045_s6 + $0xd8] sm:$0xff]  ;;  %v1219_v4 = vld [vmem:[%s16048_s3 + $0x8] sm:$0xff]  ;;  %v1220_v5 = vld [vmem:[%s16048_s3 + $0x10] sm:$0xff] }
 0x1ff   :  { %v10043_v8 = vpack.c.bf16 %v1221_v7, %v1220_v5  ;;  %v1320_v7 = vld [vmem:[%s16052_s13 + $0x58] sm:$0xff] }
 0x201   :  { %9883 = vmatpush3.bf16.msra.mxu1 %v9880_v26  ;;  %v7025_v26 = vld [vmem:[%s16045_s6 + $0xb0] sm:$0xff] }
 0x202   :  { %9885 = vmatprep.subr.bf16.mxu1 %v9884_v30  ;;  %v9960_v29 = vpack.c.bf16 %v7026_v28, %v7025_v26  ;;  %v1233_v26 = vld [vmem:[%s16048_s3 + $0x78] sm:$0xff] }
 0x205   :  { %9887 = vmatpush3.bf16.msra.mxu1 %v9884_v30  ;;  %v7027_v30 = vld [vmem:[%s16045_s6 + $0xc0] sm:$0xff] }
 0x206   :  { %9889 = vmatprep.subr.bf16.mxu1 %v9888_v35  ;;  %v9964_v34 = vpack.c.bf16 %v7028_v31, %v7027_v30  ;;  %v7068_v30 = vld [vmem:[%s16047_s9 + $0x1] ss:$0 sm:$0xff] }
 0x209   :  { %9891 = vmatpush3.bf16.msra.mxu1 %v9888_v35  ;;  %v7029_v35 = vld [vmem:[%s16045_s6 + $0xd0] sm:$0xff] }
 0x20a   :  { %9893 = vmatprep.subr.bf16.mxu1 %v9892_v38  ;;  %v9968_v27 = vpack.c.bf16 %v7030_v36, %v7029_v35 }
 0x20d   :  { %9895 = vmatpush3.bf16.msra.mxu1 %v9892_v38  ;;  %v7031_v38 = vld [vmem:[%s16045_s6 + $0xe0] sm:$0xff] }
 0x20e   :  { %9897 = vmatprep.subr.bf16.mxu1 %v9896_v41  ;;  %v9972_v40 = vpack.c.bf16 %v7032_v39, %v7031_v38  ;;  %v1122_v39 = vld [vmem:[%s16050_s11] sm:$0xff] }
 0x211   :  { %9899 = vmatpush3.bf16.msra.mxu1 %v9896_v41  ;;  %v7033_v41 = vld [vmem:[%s16045_s6 + $0xf0] sm:$0xff] }
 0x212   :  { %9901 = vmatprep.subr.bf16.mxu1 %v9900_v44  ;;  %v9976_v43 = vpack.c.bf16 %v7034_v42, %v7033_v41  ;;  %v1048_v42 = vld [vmem:[%s16051_s10] sm:$0x3] }
 0x215   :  { %9903 = vmatpush3.bf16.msra.mxu1 %v9900_v44  ;;  %v7051_v44 = vld [vmem:[%s16046_s8 + $0x80] sm:$0xff] }
 0x216   :  { %9905 = vmatprep.subr.bf16.mxu1 %v9904_v47  ;;  %v9980_v46 = vpack.c.bf16 %v7052_v45, %v7051_v44  ;;  %v1124_v44 = vld [vmem:[%s16050_s11 + $0x10] sm:$0xff]  ;;  %v1125_v45 = vld [vmem:[%s16050_s11 + $0x18] sm:$0xff] }
 0x219   :  { %9907 = vmatpush3.bf16.msra.mxu1 %v9904_v47  ;;  %v7053_v47 = vld [vmem:[%s16046_s8 + $0x90] sm:$0xff] }
 0x21c   :  { %8664 = vmatmul.mubr.f32.vlgmr.msra.gmra.mrb[4].mxu1 %v11988_v3 }
 0x2ef   :  { %v8665_v49 = vpop.f32.mrb[4].mxu1 }
 0x2f0   :  { %v12073_v50 = vadd.f32 %v8665_v49, %v7014_v48  ;;  %v586_v51 = vpop.f32.mrb[5].mxu1 }
 0x2f1   :  { %v12075_v52 = vadd.f32 %v7014_v48, %v586_v51  ;;  %v7054_v48 = vld [vmem:[%s16046_s8 + $0x98] sm:$0xff]  ;;  %v7055_v51 = vld [vmem:[%s16046_s8 + $0xa0] sm:$0xff] }
 0x2f2   :  { %v607_v53 = vmax.f32 %v12073_v50, 0.0  ;;  %v9984_v49 = vpack.c.bf16 %v7054_v48, %v7053_v47  ;;  %v7059_v50 = vld [vmem:[%s16046_s8 + $0xc0] sm:$0xff]  ;;  %v1127_v48 = vld [vmem:[%s16050_s11 + $0x28] sm:$0xff] }
 0x2f3   :  { %v606_v54 = vmax.f32 %v12075_v52, 0.0  ;;  %v7056_v52 = vld [vmem:[%s16046_s8 + $0xa8] sm:$0xff]  ;;  %v1126_v47 = vld [vmem:[%s16050_s11 + $0x20] sm:$0xff] }
 0x2f5   :  { %v9908_v55 = vpack.c.bf16 %v607_v53, %v606_v54 }
 0x2f7   :  { %9909 = vmatprep.subr.bf16.mxu0 %v9908_v55 }
 0x2f8   :  { %9911 = vmatpush3.bf16.msra.mxu0 %v9908_v55 }
 0x2f9   :  { %9913 = vmatprep.subr.bf16.mxu0 %v9908_v55 }
 0x2fb   :  { %8671 = vmatmul.mubr.msk.f32.vlgmr.msra.gmra.mrb[2].mxu0 %vm157_vm0, %v11909_v32  ;;  %v9924_v32 = vpack.c.bf16 %v7040_v63, %v7039_v62  ;;  %v7063_v62 = vld [vmem:[%s16046_s8 + $0xe0] sm:$0xff]  ;;  %v7064_v63 = vld [vmem:[%s16046_s8 + $0xe8] sm:$0xff] }
 0x2fc   :  { %9915 = vmatpush3.bf16.msra.mxu0 %v9908_v55  ;;  %8677 = vmatprep.mubr.msk.f32.mxu0 %vm157_vm0, %v11914_v33  ;;  %v7041_v33 = vld [vmem:[%s16178_s2 + $0xb0] sm:$0xff] }
 0x2fd   :  { %9917 = vmatprep.subr.bf16.mxu0 %v9916_v58  ;;  %v9928_v1 = vpack.c.bf16 %v7042_v0, %v7041_v33  ;;  %v7057_v55 = vld [vmem:[%s16046_s8 + $0xb0] sm:$0xff]  ;;  %v7066_v0 = vld [vmem:[%s16046_s8 + $0xf8] sm:$0xff] }
 0x2fe   :  { %v9992_v57 = vpack.c.bf16 %v7058_v56, %v7057_v55  ;;  %v7065_v33 = vld [vmem:[%s16046_s8 + $0xf0] sm:$0xff]  ;;  %v1130_v55 = vld [vmem:[%s16050_s11 + $0x40] sm:$0xff]  ;;  %v1131_v56 = vld [vmem:[%s16050_s11 + $0x48] sm:$0xff] }
 0x2ff   :  { %8678 = vmatmul.mubr.msk.f32.vlgmr.msra.gmra.mrb[4].mxu0 %vm157_vm0, %v11927_v37  ;;  %v7044_v37 = vld [vmem:[%s16178_s2 + $0xc8] sm:$0xff] }
 0x300   :  { %9919 = vmatpush3.bf16.msra.mxu0 %v9916_v58  ;;  %v9932_v3 = vpack.c.bf16 %v7044_v37, %v7043_v2  ;;  %v16066_v2 = vmov 0.0|0.0   ;;  %v16064_v37 = vmov 0.0  }
 0x301   :  { %9921 = vmatprep.subr.bf16.mxu0 %v9920_v61  ;;  %10012 = vmatprep.subr.bf16.mxu1 %v16066_v2 }
 0x302   :  { %8789 = vmatprep.mubr.msk.f32.mxu1 %vm11733_vm1, %v16064_v37 }
 0x304   :  { %9923 = vmatpush3.bf16.msra.mxu0 %v9920_v61  ;;  %v10000_v61 = vpack.c.bf16 %v7062_v60, %v7061_v59  ;;  %v1134_v59 = vld [vmem:[%s16050_s11 + $0x60] sm:$0xff]  ;;  %v1135_v60 = vld [vmem:[%s16050_s11 + $0x68] sm:$0xff] }
 0x305   :  { %9925 = vmatprep.subr.bf16.mxu0 %v9924_v32 }
 0x308   :  { %9927 = vmatpush3.bf16.msra.mxu0 %v9924_v32  ;;  %v10004_v32 = vpack.c.bf16 %v7064_v63, %v7063_v62  ;;  %v1136_v62 = vld [vmem:[%s16050_s11 + $0x70] sm:$0xff]  ;;  %v1137_v63 = vld [vmem:[%s16050_s11 + $0x78] sm:$0xff] }
 0x309   :  { %9929 = vmatprep.subr.bf16.mxu0 %v9928_v1 }
 0x30c   :  { %9931 = vmatpush3.bf16.msra.mxu0 %v9928_v1  ;;  %v10008_v1 = vpack.c.bf16 %v7066_v0, %v7065_v33  ;;  %v1310_v33 = vld [vmem:[%s16052_s13 + $0x8] sm:$0xff]  ;;  %v1313_v0 = vld [vmem:[%s16052_s13 + $0x20] sm:$0xff] }
 0x30d   :  { %9933 = vmatprep.subr.bf16.mxu0 %v9932_v3 }
 0x310   :  { %9935 = vmatpush3.bf16.msra.mxu0 %v9932_v3  ;;  %v1218_v3 = vld [vmem:[%s16048_s3] sm:$0xff] }
 0x311   :  { %9937 = vmatprep.subr.bf16.mxu0 %v9936_v6 }
 0x314   :  { %9939 = vmatpush3.bf16.msra.mxu0 %v9936_v6  ;;  %v10039_v6 = vpack.c.bf16 %v1219_v4, %v1218_v3  ;;  %v1311_v3 = vld [vmem:[%s16052_s13 + $0x10] sm:$0xff]  ;;  %v1314_v4 = vld [vmem:[%s16052_s13 + $0x28] sm:$0xff] }
 0x315   :  { %9941 = vmatprep.subr.bf16.mxu0 %v9940_v9  ;;  %v10103_v5 = vpack.c.bf16 %v1314_v4, %v1311_v3  ;;  %v1330_v3 = vld [vmem:[%s16052_s13 + $0xa8] sm:$0xff] }
 0x316   :  { %v1334_v4 = vld [vmem:[%s16052_s13 + $0xc8] sm:$0xff] }
 0x318   :  { %9943 = vmatpush3.bf16.msra.mxu0 %v9940_v9  ;;  %v1222_v9 = vld [vmem:[%s16048_s3 + $0x20] sm:$0xff] }
 0x319   :  { %9945 = vmatprep.subr.bf16.mxu0 %v9944_v12  ;;  %v10047_v11 = vpack.c.bf16 %v1223_v10, %v1222_v9  ;;  %v1323_v9 = vld [vmem:[%s16052_s13 + $0x70] sm:$0xff]  ;;  %v1326_v10 = vld [vmem:[%s16052_s13 + $0x88] sm:$0xff] }
 0x31c   :  { %9947 = vmatpush3.bf16.msra.mxu0 %v9944_v12  ;;  %v1224_v12 = vld [vmem:[%s16048_s3 + $0x30] sm:$0xff] }
 0x31d   :  { %9949 = vmatprep.subr.bf16.mxu0 %v9948_v15 }
 0x3ce   :  { %v8672_v18 = vpop.f32.mrb[2].mxu0 }
 0x3cf   :  { %v674_v19 = vpop.f32.mrb[3].mxu0 }
 0x3d0   :  { %8712 = vmatprep.mubr.f32.mxu0 %v674_v19  ;;  %v1228_v19 = vld [vmem:[%s16048_s3 + $0x50] sm:$0xff] }
 0x3d1   :  { %8713 = vmatmul.mubr.f32.vlgmr.msra.gmra.mrb[6].mxu0 %v8672_v18  ;;  %v10055_v18 = vpack.c.bf16 %v1227_v17, %v1226_v16  ;;  %v1338_v16 = vld [vmem:[%s16052_s13 + $0xe8] sm:$0xff] }
 0x3d2   :  { %9951 = vmatpush3.bf16.msra.mxu0 %v9948_v15  ;;  %8747 = vmatprep.mubr.f32.mxu0 %v606_v54  ;;  %v12153_v23 = vpop.f32.mrb[4].mxu0  ;;  %v9988_v54 = vpack.c.bf16 %v7056_v52, %v7055_v51  ;;  %v10051_v15 = vpack.c.bf16 %v1225_v13, %v1224_v12  ;;  %v1128_v51 = vld [vmem:[%s16050_s11 + $0x30] sm:$0xff]  ;;  %v1129_v52 = vld [vmem:[%s16050_s11 + $0x38] sm:$0xff]  ;;  %v1329_v12 = vld [vmem:[%s16052_s13 + $0xa0] sm:$0xff] }
 0x3d3   :  { %9953 = vmatprep.subr.bf16.mxu0 %v9952_v20  ;;  %v749_v25 = vpop.f32.mrb[5].mxu0  ;;  %v1332_v13 = vld [vmem:[%s16052_s13 + $0xb8] sm:$0xff] }
 0x3d6   :  { %9955 = vmatpush3.bf16.msra.mxu0 %v9952_v20  ;;  %v1229_v20 = vld [vmem:[%s16048_s3 + $0x58] sm:$0xff] }
 0x3d7   :  { %9957 = vmatprep.subr.bf16.mxu0 %v9956_v24  ;;  %v10059_v21 = vpack.c.bf16 %v1229_v20, %v1228_v19  ;;  %v1344_v19 = vld [vmem:[%s16052_s13 + $0x118] sm:$0xff] }
 0x3da   :  { %9959 = vmatpush3.bf16.msra.mxu0 %v9956_v24 }
 0x3db   :  { %9961 = vmatprep.subr.bf16.mxu0 %v9960_v29 }
 0x3de   :  { %9963 = vmatpush3.bf16.msra.mxu0 %v9960_v29  ;;  %v1217_v29 = vld [vmem:[%s16049_s1 + $0x8] sm:$0xff] }
 0x3df   :  { %9965 = vmatprep.subr.bf16.mxu0 %v9964_v34 }
 0x3e2   :  { %9967 = vmatpush3.bf16.msra.mxu0 %v9964_v34 }
 0x3e3   :  { %9969 = vmatprep.subr.bf16.mxu0 %v9968_v27 }
 0x3e6   :  { %9971 = vmatpush3.bf16.msra.mxu0 %v9968_v27 }
 0x3e7   :  { %9973 = vmatprep.subr.bf16.mxu0 %v9972_v40 }
 0x3ea   :  { %9975 = vmatpush3.bf16.msra.mxu0 %v9972_v40  ;;  %v1123_v40 = vld [vmem:[%s16050_s11 + $0x8] sm:$0xff] }
 0x3eb   :  { %9977 = vmatprep.subr.bf16.mxu0 %v9976_v43 }
 0x3ee   :  { %9979 = vmatpush3.bf16.msra.mxu0 %v9976_v43  ;;  %v10016_v43 = vpack.c.bf16 %v1123_v40, %v1122_v39  ;;  %v1543_v39 = vld [vmem:[%s16053_s14 + $0x88] sm:$0xff] }
 0x3ef   :  { %9981 = vmatprep.subr.bf16.mxu0 %v9980_v46 }
 0x3f1   :  { %8748 = vmatmul.mubr.f32.vlgmr.msra.gmra.mrb[6].mxu0 %v607_v53  ;;  %v7060_v53 = vld [vmem:[%s16046_s8 + $0xc8] sm:$0xff] }
 0x3f2   :  { %9983 = vmatpush3.bf16.msra.mxu0 %v9980_v46  ;;  %8782 = vmatprep.mubr.f32.mxu0 %v749_v25  ;;  %v9996_v58 = vpack.c.bf16 %v7060_v53, %v7059_v50  ;;  %v1232_v25 = vld [vmem:[%s16048_s3 + $0x70] sm:$0xff]  ;;  %v10019_v46 = vpack.c.bf16 %v1125_v45, %v1124_v44  ;;  %v1133_v53 = vld [vmem:[%s16050_s11 + $0x58] sm:$0xff]  ;;  %v1555_v45 = vld [vmem:[%s16053_s14 + $0xe8] sm:$0xff] }
 0x3f3   :  { %9985 = vmatprep.subr.bf16.mxu0 %v9984_v49  ;;  %v10067_v28 = vpack.c.bf16 %v1233_v26, %v1232_v25  ;;  %v1132_v50 = vld [vmem:[%s16050_s11 + $0x50] sm:$0xff]  ;;  %v1356_v25 = vld [vmem:[%s16052_s13 + $0x178] sm:$0xff] }
 0x3f4   :  { %v1552_v44 = vld [vmem:[%s16053_s14 + $0xd0] sm:$0xff] }
 0x3f6   :  { %9987 = vmatpush3.bf16.msra.mxu0 %v9984_v49  ;;  %v10022_v49 = vpack.c.bf16 %v1127_v48, %v1126_v47  ;;  %v1309_v47 = vld [vmem:[%s16052_s13] sm:$0xff]  ;;  %v1312_v48 = vld [vmem:[%s16052_s13 + $0x18] sm:$0xff] }
 0x3f7   :  { %9989 = vmatprep.subr.bf16.mxu0 %v9988_v54 }
 0x3fa   :  { %9991 = vmatpush3.bf16.msra.mxu0 %v9988_v54  ;;  %v10025_v54 = vpack.c.bf16 %v1129_v52, %v1128_v51  ;;  %v1319_v51 = vld [vmem:[%s16052_s13 + $0x50] sm:$0xff]  ;;  %v10073_v52 = vpack.c.bf16 %v1312_v48, %v1309_v47 }
 0x3fb   :  { %9993 = vmatprep.subr.bf16.mxu0 %v9992_v57  ;;  %v1532_v48 = vld [vmem:[%s16053_s14 + $0x30] sm:$0xff] }
 0x3fe   :  { %9995 = vmatpush3.bf16.msra.mxu0 %v9992_v57  ;;  %v10028_v57 = vpack.c.bf16 %v1131_v56, %v1130_v55  ;;  %v1315_v55 = vld [vmem:[%s16052_s13 + $0x30] sm:$0xff]  ;;  %v1318_v56 = vld [vmem:[%s16052_s13 + $0x48] sm:$0xff] }
 0x3ff   :  { %9997 = vmatprep.subr.bf16.mxu0 %v9996_v58 }
 0x402   :  { %9999 = vmatpush3.bf16.msra.mxu0 %v9996_v58  ;;  %v10031_v58 = vpack.c.bf16 %v1133_v53, %v1132_v50  ;;  %v1322_v50 = vld [vmem:[%s16052_s13 + $0x68] sm:$0xff]  ;;  %v1325_v53 = vld [vmem:[%s16052_s13 + $0x80] sm:$0xff] }
 0x403   :  { %10001 = vmatprep.subr.bf16.mxu0 %v10000_v61 }
 0x406   :  { %10003 = vmatpush3.bf16.msra.mxu0 %v10000_v61  ;;  %v10034_v61 = vpack.c.bf16 %v1135_v60, %v1134_v59  ;;  %v10077_v59 = vpack.c.bf16 %v1318_v56, %v1315_v55  ;;  %v10079_v60 = vpack.c.bf16 %v1325_v53, %v1322_v50  ;;  %v1538_v56 = vld [vmem:[%s16053_s14 + $0x60] sm:$0xff]  ;;  %v1548_v50 = vld [vmem:[%s16053_s14 + $0xb0] sm:$0xff] }
 0x407   :  { %10005 = vmatprep.subr.bf16.mxu0 %v10004_v32 }
 0x40a   :  { %10007 = vmatpush3.bf16.msra.mxu0 %v10004_v32  ;;  %v10037_v32 = vpack.c.bf16 %v1137_v63, %v1136_v62  ;;  %v1324_v62 = vld [vmem:[%s16052_s13 + $0x78] sm:$0xff] }
 0x40b   :  { %10009 = vmatprep.subr.bf16.mxu0 %v10008_v1  ;;  %v1328_v63 = vld [vmem:[%s16052_s13 + $0x98] sm:$0xff] }
 0x40e   :  { %10011 = vmatpush3.bf16.msra.mxu0 %v10008_v1  ;;  %v10071_v1 = vpack.c.bf16 %v1313_v0, %v1310_v33 }
 0x40f   :  { %10040 = vmatprep.subr.bf16.mxu0 %v10039_v6 }
 0x411   :  { %8783 = vmatmul.mubr.f32.vlgmr.msra.gmra.mrb[6].mxu0 %v12153_v23  ;;  %v1231_v23 = vld [vmem:[%s16048_s3 + $0x68] sm:$0xff] }
 0x412   :  { %10042 = vmatpush3.bf16.msra.mxu0 %v10039_v6  ;;  %8859 = vmatprep.mubr.f32.mxu0 %v1216_v14  ;;  %v10063_v24 = vpack.c.bf16 %v1231_v23, %v1230_v22  ;;  %v1317_v6 = vld [vmem:[%s16052_s13 + $0x40] sm:$0xff]  ;;  %v10115_v14 = vpack.c.bf16 %v1332_v13, %v1329_v12  ;;  %v1350_v22 = vld [vmem:[%s16052_s13 + $0x148] sm:$0xff] }
 0x413   :  { %10044 = vmatprep.subr.bf16.mxu0 %v10043_v8 }
 0x416   :  { %10046 = vmatpush3.bf16.msra.mxu0 %v10043_v8  ;;  %v10107_v8 = vpack.c.bf16 %v1320_v7, %v1317_v6 }
 0x417   :  { %10048 = vmatprep.subr.bf16.mxu0 %v10047_v11 }
 0x41a   :  { %10050 = vmatpush3.bf16.msra.mxu0 %v10047_v11  ;;  %v10111_v11 = vpack.c.bf16 %v1326_v10, %v1323_v9  ;;  %v1336_v9 = vld [vmem:[%s16052_s13 + $0xd8] sm:$0xff] }
 0x41b   :  { %10052 = vmatprep.subr.bf16.mxu0 %v10051_v15  ;;  %v1340_v10 = vld [vmem:[%s16052_s13 + $0xf8] sm:$0xff] }
 0x41e   :  { %10054 = vmatpush3.bf16.msra.mxu0 %v10051_v15  ;;  %v1335_v15 = vld [vmem:[%s16052_s13 + $0xd0] sm:$0xff] }
 0x41f   :  { %10056 = vmatprep.subr.bf16.mxu0 %v10055_v18  ;;  %v10119_v17 = vpack.c.bf16 %v1338_v16, %v1335_v15  ;;  %v1342_v15 = vld [vmem:[%s16052_s13 + $0x108] sm:$0xff] }
 0x420   :  { %v1346_v16 = vld [vmem:[%s16052_s13 + $0x128] sm:$0xff] }
 0x422   :  { %10058 = vmatpush3.bf16.msra.mxu0 %v10055_v18  ;;  %v1341_v18 = vld [vmem:[%s16052_s13 + $0x100] sm:$0xff] }
 0x423   :  { %10060 = vmatprep.subr.bf16.mxu0 %v10059_v21  ;;  %v10123_v20 = vpack.c.bf16 %v1344_v19, %v1341_v18 }
 0x426   :  { %10062 = vmatpush3.bf16.msra.mxu0 %v10059_v21  ;;  %v1347_v21 = vld [vmem:[%s16052_s13 + $0x130] sm:$0xff] }
 0x427   :  { %10064 = vmatprep.subr.bf16.mxu0 %v10063_v24  ;;  %v10127_v23 = vpack.c.bf16 %v1350_v22, %v1347_v21  ;;  %v1348_v21 = vld [vmem:[%s16052_s13 + $0x138] sm:$0xff] }
 0x428   :  { %v1352_v22 = vld [vmem:[%s16052_s13 + $0x158] sm:$0xff] }
 0x42a   :  { %10066 = vmatpush3.bf16.msra.mxu0 %v10063_v24  ;;  %v1353_v24 = vld [vmem:[%s16052_s13 + $0x160] sm:$0xff] }
 0x42b   :  { %10068 = vmatprep.subr.bf16.mxu0 %v10067_v28  ;;  %v10131_v26 = vpack.c.bf16 %v1356_v25, %v1353_v24 }
 0x42e   :  { %10070 = vmatpush3.bf16.msra.mxu0 %v10067_v28 }
 0x42f   :  { %10104 = vmatprep.subr.bf16.mxu0 %v10103_v5 }
 0x431   :  { %8860 = vmatmul.mubr.f32.vlgmr.msra.gmra.mrb[8].mxu0 %v1217_v29 }
 0x432   :  { %10106 = vmatpush3.bf16.msra.mxu0 %v10103_v5  ;;  %v1337_v5 = vld [vmem:[%s16052_s13 + $0xe0] sm:$0xff] }
 0x433   :  { %10108 = vmatprep.subr.bf16.mxu0 %v10107_v8  ;;  %v10087_v7 = vpack.c.bf16 %v1337_v5, %v1334_v4  ;;  %v1556_v5 = vld [vmem:[%s16053_s14 + $0xf0] sm:$0xff] }
 0x436   :  { %10110 = vmatpush3.bf16.msra.mxu0 %v10107_v8  ;;  %v1333_v8 = vld [vmem:[%s16052_s13 + $0xc0] sm:$0xff] }
 0x437   :  { %10112 = vmatprep.subr.bf16.mxu0 %v10111_v11  ;;  %v10089_v12 = vpack.c.bf16 %v1336_v9, %v1333_v8  ;;  %v1561_v9 = vld [vmem:[%s16053_s14 + $0x118] sm:$0xff] }
 0x43a   :  { %10114 = vmatpush3.bf16.msra.mxu0 %v10111_v11  ;;  %v1343_v11 = vld [vmem:[%s16052_s13 + $0x110] sm:$0xff] }
 0x43b   :  { %10116 = vmatprep.subr.bf16.mxu0 %v10115_v14  ;;  %v10091_v13 = vpack.c.bf16 %v1343_v11, %v1340_v10  ;;  %v1563_v11 = vld [vmem:[%s16053_s14 + $0x128] sm:$0xff] }
 0x43e   :  { %10118 = vmatpush3.bf16.msra.mxu0 %v10115_v14  ;;  %v1339_v14 = vld [vmem:[%s16052_s13 + $0xf0] sm:$0xff] }
 0x43f   :  { %10120 = vmatprep.subr.bf16.mxu0 %v10119_v17  ;;  %v10093_v18 = vpack.c.bf16 %v1342_v15, %v1339_v14  ;;  %v1565_v15 = vld [vmem:[%s16053_s14 + $0x138] sm:$0xff] }
 0x442   :  { %10122 = vmatpush3.bf16.msra.mxu0 %v10119_v17  ;;  %v1349_v17 = vld [vmem:[%s16052_s13 + $0x140] sm:$0xff] }
 0x443   :  { %10124 = vmatprep.subr.bf16.mxu0 %v10123_v20  ;;  %v10095_v19 = vpack.c.bf16 %v1349_v17, %v1346_v16  ;;  %v1564_v16 = vld [vmem:[%s16053_s14 + $0x130] sm:$0xff]  ;;  %v1567_v17 = vld [vmem:[%s16053_s14 + $0x148] sm:$0xff] }
 0x446   :  { %10126 = vmatpush3.bf16.msra.mxu0 %v10123_v20  ;;  %v1345_v20 = vld [vmem:[%s16052_s13 + $0x120] sm:$0xff] }
 0x447   :  { %10128 = vmatprep.subr.bf16.mxu0 %v10127_v23  ;;  %v10097_v24 = vpack.c.bf16 %v1348_v21, %v1345_v20  ;;  %v1569_v20 = vld [vmem:[%s16053_s14 + $0x158] sm:$0xff]  ;;  %v1572_v21 = vld [vmem:[%s16053_s14 + $0x170] sm:$0xff] }
 0x44a   :  { %10130 = vmatpush3.bf16.msra.mxu0 %v10127_v23  ;;  %v1355_v23 = vld [vmem:[%s16052_s13 + $0x170] sm:$0xff] }
 0x44b   :  { %10132 = vmatprep.subr.bf16.mxu0 %v10131_v26  ;;  %v10099_v25 = vpack.c.bf16 %v1355_v23, %v1352_v22  ;;  %v1568_v22 = vld [vmem:[%s16053_s14 + $0x150] sm:$0xff]  ;;  %v12718_v23 = vpack.c.bf16 %v1572_v21, %v1569_v20  ;;  %v7080_v20 = vld [vmem:[%s16052_s13 + $0x1b8] sm:$0xff] }
 0x44c   :  { %v7083_v21 = vld [vmem:[%s16052_s13 + $0x1d0] sm:$0xff] }
 0x44e   :  { %10134 = vmatpush3.bf16.msra.mxu0 %v10131_v26  ;;  %v1351_v26 = vld [vmem:[%s16052_s13 + $0x150] sm:$0xff] }
 0x44f   :  { %10167 = vmatprep.subr.bf16.mxu0 %v16066_v2 }
 0x4e4   :  { %v8784_v31 = vpop.f32.mrb[6].mxu0 }
 0x4e5   :  { %v1045_v34 = vadd.f32 %v8784_v31, %v7068_v30  ;;  %v1025_v35 = vpop.f32.mrb[7].mxu0  ;;  %v1531_v31 = vld [vmem:[%s16053_s14 + $0x28] sm:$0xff] }
 0x4e6   :  { %v1044_v36 = vadd.f32 %v7068_v30, %v1025_v35  ;;  %v1528_v30 = vld [vmem:[%s16053_s14 + $0x10] sm:$0xff]  ;;  %v1534_v35 = vld [vmem:[%s16053_s14 + $0x40] sm:$0xff] }
 0x4e7   :  { %v1047_v27 = vmax.f32 %v1045_v34, 0.0  ;;  %v12425_v34 = vpack.c.bf16 %v1531_v31, %v1528_v30  ;;  %v1354_v30 = vld [vmem:[%s16052_s13 + $0x168] sm:$0xff] }
 0x4e8   :  { %v1046_v38 = vmax.f32 %v1044_v36, 0.0  ;;  %v1537_v36 = vld [vmem:[%s16053_s14 + $0x58] sm:$0xff]  ;;  %v1527_v31 = vld [vmem:[%s16053_s14 + $0x8] sm:$0xff] }
 0x4ea   :  { %v10013_v41 = vpack.c.bf16 %v1047_v27, %v1046_v38  ;;  %v12436_v27 = vpack.c.bf16 %v1537_v36, %v1534_v35  ;;  %v1540_v38 = vld [vmem:[%s16053_s14 + $0x70] sm:$0xff]  ;;  %v1530_v35 = vld [vmem:[%s16053_s14 + $0x20] sm:$0xff]  ;;  %v10101_v36 = vpack.c.bf16 %v1354_v30, %v1351_v26  ;;  %v1573_v26 = vld [vmem:[%s16053_s14 + $0x178] sm:$0xff] }
 0x4eb   :  { %v12446_v40 = vpack.c.bf16 %v1543_v39, %v1540_v38  ;;  %v12568_v38 = vpack.c.bf16 %v1530_v35, %v1527_v31  ;;  %v1526_v39 = vld [vmem:[%s16053_s14] sm:$0xff]  ;;  %v1359_v35 = vlaneseq }
 0x4ec   :  { %10014 = vmatpush3.bf16.msra.mxu1 %v10013_v41  ;;  %v1546_v41 = vld [vmem:[%s16053_s14 + $0xa0] sm:$0xff] }
 0x4ed   :  { %10015 = vmatprep.subr.bf16.mxu1 %v16066_v2 }
 0x4ef   :  { %8790 = vmatmul.mubr.msk.f32.vlgmr.msra.gmra.mrb[6].mxu1 %vm157_vm0, %v1048_v42  ;;  %v1549_v42 = vld [vmem:[%s16053_s14 + $0xb8] sm:$0xff] }
 0x4f0   :  { %10017 = vmatpush3.bf16.msra.mxu1 %v10016_v43  ;;  %8824 = vmatprep.mubr.msk.f32.mxu1 %vm11733_vm1, %v16064_v37  ;;  %v12456_v43 = vpack.c.bf16 %v1549_v42, %v1546_v41  ;;  %v1529_v41 = vld [vmem:[%s16053_s14 + $0x18] sm:$0xff] }
 0x4f1   :  { %10018 = vmatprep.subr.bf16.mxu1 %v16066_v2  ;;  %v1533_v42 = vld [vmem:[%s16053_s14 + $0x38] sm:$0xff] }
 0x4f4   :  { %10020 = vmatpush3.bf16.msra.mxu1 %v10019_v46  ;;  %v12466_v46 = vpack.c.bf16 %v1555_v45, %v1552_v44  ;;  %v1536_v44 = vld [vmem:[%s16053_s14 + $0x50] sm:$0xff]  ;;  %v12582_v45 = vpack.c.bf16 %v1529_v41, %v1526_v39  ;;  %v1357_v39 = vld [vmem:[%s16054_s15] sm:$0x7] }
 0x4f5   :  { %10021 = vmatprep.subr.bf16.mxu1 %v16066_v2  ;;  %v12585_v47 = vpack.c.bf16 %v1536_v44, %v1533_v42 }
 0x4f8   :  { %10023 = vmatpush3.bf16.msra.mxu1 %v10022_v49  ;;  %v1316_v49 = vld [vmem:[%s16052_s13 + $0x38] sm:$0xff] }
 0x4f9   :  { %10024 = vmatprep.subr.bf16.mxu1 %v16066_v2 }
 0x4fc   :  { %10026 = vmatpush3.bf16.msra.mxu1 %v10025_v54  ;;  %v10075_v54 = vpack.c.bf16 %v1319_v51, %v1316_v49  ;;  %v1535_v49 = vld [vmem:[%s16053_s14 + $0x48] sm:$0xff] }
 0x4fd   :  { %10027 = vmatprep.subr.bf16.mxu1 %v16066_v2  ;;  %v1539_v51 = vld [vmem:[%s16053_s14 + $0x68] sm:$0xff] }
 0x500   :  { %10029 = vmatpush3.bf16.msra.mxu1 %v10028_v57 }
 0x501   :  { %10030 = vmatprep.subr.bf16.mxu1 %v16066_v2 }
 0x504   :  { %10032 = vmatpush3.bf16.msra.mxu1 %v10031_v58  ;;  %v12412_v28 = vpop.f32.mrb[8].mxu0 }
 0x505   :  { %10033 = vmatprep.subr.bf16.mxu1 %v16066_v2  ;;  %v12414_v29 = vpop.f32.mrb[9].mxu0 }
 0x506   :  { %8894 = vmatprep.mubr.f32.mxu0 %v12414_v29 }
 0x507   :  { %8895 = vmatmul.mubr.f32.vlgmr.msra.gmra.mrb[10].mxu0 %v12412_v28 }
 0x508   :  { %10035 = vmatpush3.bf16.msra.mxu1 %v10034_v61  ;;  %8929 = vmatprep.mubr.msk.f32.mxu0 %vm11733_vm1, %v16064_v37  ;;  %v1321_v61 = vld [vmem:[%s16052_s13 + $0x60] sm:$0xff] }
 0x509   :  { %10036 = vmatprep.subr.bf16.mxu1 %v16066_v2  ;;  %10169 = vmatpush3.bf16.msra.mxu0 %v12425_v34  ;;  %v10081_v33 = vpack.c.bf16 %v1324_v62, %v1321_v61  ;;  %v1554_v61 = vld [vmem:[%s16053_s14 + $0xe0] sm:$0xff] }
 0x50a   :  { %10170 = vmatprep.subr.bf16.mxu0 %v16066_v2 }
 0x50c   :  { %10038 = vmatpush3.bf16.msra.mxu1 %v10037_v32  ;;  %v1331_v32 = vld [vmem:[%s16052_s13 + $0xb0] sm:$0xff] }
 0x50d   :  { %10072 = vmatprep.subr.bf16.mxu1 %v10071_v1  ;;  %10172 = vmatpush3.bf16.msra.mxu0 %v12436_v27  ;;  %v10083_v0 = vpack.c.bf16 %v1331_v32, %v1328_v63  ;;  %v1327_v1 = vld [vmem:[%s16052_s13 + $0x90] sm:$0xff]  ;;  %v1550_v32 = vld [vmem:[%s16053_s14 + $0xc0] sm:$0xff] }
 0x50e   :  { %10173 = vmatprep.subr.bf16.mxu0 %v16066_v2  ;;  %v10085_v6 = vpack.c.bf16 %v1330_v3, %v1327_v1  ;;  %v1557_v1 = vld [vmem:[%s16053_s14 + $0xf8] sm:$0xff]  ;;  %v1560_v3 = vld [vmem:[%s16053_s14 + $0x110] sm:$0xff] }
 0x50f   :  { %v12662_v4 = vpack.c.bf16 %v1560_v3, %v1557_v1 }
 0x511   :  { %10175 = vmatpush3.bf16.msra.mxu0 %v12446_v40 }
 0x512   :  { %10176 = vmatprep.subr.bf16.mxu0 %v16066_v2 }
 0x515   :  { %10178 = vmatpush3.bf16.msra.mxu0 %v12456_v43 }
 0x516   :  { %10179 = vmatprep.subr.bf16.mxu0 %v16066_v2 }
 0x519   :  { %10181 = vmatpush3.bf16.msra.mxu0 %v12466_v46 }
 0x51a   :  { %10182 = vmatprep.subr.bf16.mxu0 %v16066_v2 }
 0x5c2   :  { %v1118_v57 = vpop.f32.mrb[6].mxu1 }
 0x5c3   :  { %v8791_v58 = vpop.f32.mrb[7].mxu1  ;;  %8825 = vmatmul.mubr.f32.vlgmr.msra.gmra.mrb[8].mxu1 %v1118_v57  ;;  %v1541_v57 = vld [vmem:[%s16053_s14 + $0x78] sm:$0xff] }
 0x5c4   :  { %10074 = vmatpush1.bf16.msra.mxu1 %v10073_v52  ;;  %1438 = vmatprep.mubr.f32.mxu1 %v16064_v37  ;;  %v1542_v52 = vld [vmem:[%s16053_s14 + $0x80] sm:$0xff]  ;;  %v12621_v53 = vpack.c.bf16 %v1541_v57, %v1538_v56 }
 0x5c5   :  { %10076 = vmatprep.subr.bf16.mxu1 %v10075_v54  ;;  %v12602_v54 = vpack.c.bf16 %v1535_v49, %v1532_v48  ;;  %v12605_v55 = vpack.c.bf16 %v1542_v52, %v1539_v51  ;;  %v7070_v51 = vld [vmem:[%s16055_s12] ss:$0 sm:$0xff] }
 0x5c8   :  { %10078 = vmatpush1.bf16.msra.mxu1 %v10077_v59  ;;  %v1544_v59 = vld [vmem:[%s16053_s14 + $0x90] sm:$0xff] }
 0x5c9   :  { %10080 = vmatprep.subr.bf16.mxu1 %v10079_v60  ;;  %v1547_v60 = vld [vmem:[%s16053_s14 + $0xa8] sm:$0xff] }
 0x5ca   :  { %v12640_v62 = vpack.c.bf16 %v1547_v60, %v1544_v59 }
 0x5cc   :  { %10082 = vmatpush1.bf16.msra.mxu1 %v10081_v33  ;;  %v1553_v33 = vld [vmem:[%s16053_s14 + $0xd8] sm:$0xff] }
 0x5cd   :  { %10084 = vmatprep.subr.bf16.mxu1 %v10083_v0  ;;  %v12652_v0 = vpack.c.bf16 %v1553_v33, %v1550_v32 }
 0x5d0   :  { %10086 = vmatpush1.bf16.msra.mxu1 %v10085_v6  ;;  %v1559_v6 = vld [vmem:[%s16053_s14 + $0x108] sm:$0xff] }
 0x5d1   :  { %10088 = vmatprep.subr.bf16.mxu1 %v10087_v7  ;;  %v1558_v7 = vld [vmem:[%s16053_s14 + $0x100] sm:$0xff]  ;;  %v12673_v8 = vpack.c.bf16 %v1559_v6, %v1556_v5  ;;  %v7074_v6 = vld [vmem:[%s16052_s13 + $0x188] sm:$0xff] }
 0x5d2   :  { %v12679_v10 = vpack.c.bf16 %v1561_v9, %v1558_v7  ;;  %v7077_v7 = vld [vmem:[%s16052_s13 + $0x1a0] sm:$0xff] }
 0x5d3   :  { %v12789_v9 = vpack.c.bf16 %v7077_v7, %v7074_v6  ;;  %v7090_v6 = vld [vmem:[%s16052_s13 + $0x208] sm:$0xff] }
 0x5d4   :  { %10090 = vmatpush1.bf16.msra.mxu1 %v10089_v12  ;;  %v1566_v12 = vld [vmem:[%s16053_s14 + $0x140] sm:$0xff]  ;;  %10184 = vmatpush3.bf16.msra.mxu0 %v12679_v10 }
 0x5d5   :  { %10092 = vmatprep.subr.bf16.mxu1 %v10091_v13  ;;  %v1562_v13 = vld [vmem:[%s16053_s14 + $0x120] sm:$0xff]  ;;  %v12692_v14 = vpack.c.bf16 %v1566_v12, %v1563_v11  ;;  %10185 = vmatprep.subr.bf16.mxu0 %v16066_v2  ;;  %v7076_v12 = vld [vmem:[%s16052_s13 + $0x198] sm:$0xff] }
 0x5d6   :  { %v7073_v11 = vld [vmem:[%s16052_s13 + $0x180] sm:$0xff] }
 0x5d8   :  { %10094 = vmatpush1.bf16.msra.mxu1 %v10093_v18  ;;  %v12704_v18 = vpack.c.bf16 %v1565_v15, %v1562_v13  ;;  %v7075_v13 = vld [vmem:[%s16052_s13 + $0x190] sm:$0xff]  ;;  %v12800_v15 = vpack.c.bf16 %v7076_v12, %v7073_v11  ;;  %v7092_v11 = vld [vmem:[%s16052_s13 + $0x218] sm:$0xff] }
 0x5d9   :  { %10096 = vmatprep.subr.bf16.mxu1 %v10095_v19  ;;  %v12706_v19 = vpack.c.bf16 %v1567_v17, %v1564_v16  ;;  %v7078_v16 = vld [vmem:[%s16052_s13 + $0x1a8] sm:$0xff]  ;;  %v7095_v12 = vld [vmem:[%s16052_s13 + $0x230] sm:$0xff] }
 0x5da   :  { %v8896_v44 = vpop.f32.mrb[10].mxu0  ;;  %v12806_v17 = vpack.c.bf16 %v7078_v16, %v7075_v13  ;;  %v12872_v13 = vpack.c.bf16 %v7095_v12, %v7092_v11  ;;  %v7091_v16 = vld [vmem:[%s16052_s13 + $0x210] sm:$0xff]  ;;  %v7102_v11 = vld [vmem:[%s16052_s13 + $0x268] sm:$0xff] }
 0x5db   :  { %10187 = vmatpush3.bf16.msra.mxu0 %v12706_v19  ;;  %v12748_v48 = vpop.f32.mrb[11].mxu0 }
 0x5dc   :  { %10098 = vmatpush1.bf16.msra.mxu1 %v10097_v24  ;;  %v1571_v24 = vld [vmem:[%s16053_s14 + $0x168] sm:$0xff]  ;;  %10188 = vmatprep.subr.bf16.mxu0 %v16066_v2 }
 0x5dd   :  { %10100 = vmatprep.subr.bf16.mxu1 %v10099_v25  ;;  %v1570_v25 = vld [vmem:[%s16053_s14 + $0x160] sm:$0xff]  ;;  %v12730_v30 = vpack.c.bf16 %v1571_v24, %v1568_v22  ;;  %v12816_v22 = vpack.c.bf16 %v7083_v21, %v7080_v20  ;;  %v7079_v24 = vld [vmem:[%s16052_s13 + $0x1b0] sm:$0xff]  ;;  %v7094_v20 = vld [vmem:[%s16052_s13 + $0x228] sm:$0xff] }
 0x5de   :  { %v12734_v31 = vpack.c.bf16 %v1573_v26, %v1570_v25  ;;  %v7082_v25 = vld [vmem:[%s16052_s13 + $0x1c8] sm:$0xff]  ;;  %v7081_v26 = vld [vmem:[%s16052_s13 + $0x1c0] sm:$0xff] }
 0x5df   :  { %v7093_v21 = vld [vmem:[%s16052_s13 + $0x220] sm:$0xff] }
 0x5e0   :  { %10102 = vmatpush1.bf16.msra.mxu1 %v10101_v36  ;;  %10190 = vmatpush3.bf16.msra.mxu0 %v12734_v31  ;;  %v1360_v36 = vshrl.u32 %v1359_v35, 7  ;;  %v12828_v35 = vpack.c.bf16 %v7082_v25, %v7079_v24  ;;  %v12884_v24 = vpack.c.bf16 %v7094_v20, %v7091_v16  ;;  %v7096_v25 = vld [vmem:[%s16052_s13 + $0x238] sm:$0xff]  ;;  %v7107_v20 = vld [vmem:[%s16052_s13 + $0x290] sm:$0xff] }
 0x5e1   :  { %10136 = vmatprep.subr.bf16.mxu1 %v12568_v38  ;;  %10223 = vmatprep.subr.bf16.mxu0 %v16066_v2  ;;  %v7104_v16 = vld [vmem:[%s16052_s13 + $0x278] sm:$0xff] }
 0x5e2   :  { %v12743_v41 = vsub.s32 2, %v1360_v36  ;;  %v12765_v59 = vsub.s32 1, %v1360_v36 }
 0x5e3   :  { %1439 = vmatmul.mubr.f32.vlgmr.msra.gmra.mrb[10].mxu1 %v12414_v29  ;;  %v1545_v29 = vld [vmem:[%s16053_s14 + $0x98] sm:$0xff] }
 0x5e4   :  { %1444 = vmatprep.mubr.f32.mxu1 %v16064_v37  ;;  %10138 = vmatpush1.bf16.msra.mxu1 %v12582_v45  ;;  %v12625_v58 = vpack.c.bf16 %v1548_v50, %v1545_v29  ;;  %v12746_v42 = vrot.slane %v1357_v39, %v12743_v41  ;;  %v12763_v50 = vsub.s32 0, %v1360_v36  ;;  %16181 = vst [vmem:[#allocation5_spill] sm:$0xff] %v12765_v59  ;;  %v7084_v36 = vld [vmem:[%s16052_s13 + $0x1d8] sm:$0xff] }
 0x5e5   :  { %10140 = vmatprep.subr.bf16.mxu1 %v12585_v47  ;;  %v12775_v32 = vrot.slane %v1357_v39, %v12765_v59 }
 0x5e6   :  { %v12751_v49 = vadd.f32 %v8896_v44, %v12746_v42  ;;  %16180 = vst [vmem:[#allocation4_spill] sm:$0xff] %v12763_v50  ;;  %v7086_v44 = vld [vmem:[%s16052_s13 + $0x1e8] sm:$0xff] }
 0x5e7   :  { %1445 = vmatmul.mubr.f32.gmra.mrb[12].mxu1 %v12412_v28  ;;  %v1551_v28 = vld [vmem:[%s16053_s14 + $0xc8] sm:$0xff] }
 0x5e8   :  { %10142 = vmatpush1.bf16.msra.mxu1 %v12602_v54  ;;  %1655 = vmatprep.mubr.f32.mxu1 %v16064_v37  ;;  %v12643_v63 = vpack.c.bf16 %v1554_v61, %v1551_v28  ;;  %16179 = vst [vmem:[#allocation3_spill] sm:$0xff] %v12751_v49  ;;  %v12770_v28 = vrot.slane %v1357_v39, %v12763_v50  ;;  %v7118_v49 = vld [vmem:[%s16052_s13 + $0x2e8] sm:$0xff] }
 0x5e9   :  { %10144 = vmatprep.subr.bf16.mxu1 %v12605_v55  ;;  %v12834_v39 = vpack.c.bf16 %v7084_v36, %v7081_v26  ;;  %v12890_v26 = vpack.c.bf16 %v7096_v25, %v7093_v21  ;;  %v7098_v36 = vld [vmem:[%s16052_s13 + $0x248] sm:$0xff]  ;;  %v12928_v21 = vpack.c.bf16 %v7107_v20, %v7104_v16  ;;  %v7103_v25 = vld [vmem:[%s16052_s13 + $0x270] sm:$0xff] }
 0x5eb   :  { %16185 = vst [vmem:[#allocation9_spill] sm:$0xff] %v12928_v21 }
 0x5ec   :  { %10146 = vmatpush1.bf16.msra.mxu1 %v12621_v53 }
 0x5ed   :  { %10148 = vmatprep.subr.bf16.mxu1 %v12625_v58 }
 0x5f0   :  { %10150 = vmatpush1.bf16.msra.mxu1 %v12640_v62 }
 0x5f1   :  { %10152 = vmatprep.subr.bf16.mxu1 %v12643_v63 }
 0x5f4   :  { %10154 = vmatpush1.bf16.msra.mxu1 %v12652_v0 }
 0x5f5   :  { %10156 = vmatprep.subr.bf16.mxu1 %v12662_v4 }
 0x5f8   :  { %10158 = vmatpush1.bf16.msra.mxu1 %v12673_v8 }
 0x5f9   :  { %10160 = vmatprep.subr.bf16.mxu1 %v12692_v14 }
 0x5fc   :  { %10162 = vmatpush1.bf16.msra.mxu1 %v12704_v18 }
 0x5fd   :  { %10164 = vmatprep.subr.bf16.mxu1 %v12718_v23 }
 0x600   :  { %10166 = vmatpush1.bf16.msra.mxu1 %v12730_v30 }
 0x601   :  { %10192 = vmatprep.subr.bf16.mxu1 %v12789_v9 }
 0x696   :  { %v1211_v52 = vpop.f32.mrb[8].mxu1 }
 0x697   :  { %v1212_v56 = vadd.f32 %v7070_v51, %v1211_v52  ;;  %v8826_v57 = vpop.f32.mrb[9].mxu1  ;;  %v7089_v51 = vld [vmem:[%s16052_s13 + $0x200] sm:$0xff] }
 0x698   :  { %v12844_v52 = vpack.c.bf16 %v7089_v51, %v7086_v44  ;;  %v7088_v57 = vld [vmem:[%s16052_s13 + $0x1f8] sm:$0xff]  ;;  %v7101_v44 = vld [vmem:[%s16052_s13 + $0x260] sm:$0xff] }
 0x699   :  { %11570 = vtanh.f32 %v1212_v56  ;;  %v7085_v56 = vld [vmem:[%s16052_s13 + $0x1e0] sm:$0xff]  ;;  %v12900_v51 = vpack.c.bf16 %v7101_v44, %v7098_v36  ;;  %v7106_v36 = vld [vmem:[%s16052_s13 + $0x288] sm:$0xff] }
 0x69a   :  { %v7105_v44 = vld [vmem:[%s16052_s13 + $0x280] sm:$0xff] }
 0x6a3   :  { %v12756_v29 = vpop.eup %11570 }
 0x6a4   :  { %1656 = vmatmul.mubr.f32.vlgmr.msra.gmra.mrb[14].mxu1 %v12756_v29  ;;  %8930 = vmatmul.mubr.f32.vlgmr.msra.gmra.mrb[12].mxu0 %v12756_v29 }
 0x6a5   :  { %1884 = vmatprep.mubr.f32.mxu1 %v16064_v37  ;;  %8964 = vmatprep.mubr.msk.f32.mxu0 %vm11733_vm1, %v16064_v37  ;;  %v7111_v37 = vld [vmem:[%s16052_s13 + $0x2b0] sm:$0xff] }
 0x6a6   :  { %10194 = vmatpush1.bf16.msra.mxu1 %v12800_v15  ;;  %10225 = vmatpush3.bf16.msra.mxu0 %v12806_v17 }
 0x6a7   :  { %10226 = vmatprep.subr.bf16.mxu0 %v16066_v2  ;;  %10196 = vmatprep.subr.bf16.mxu1 %v12816_v22 }
 0x6aa   :  { %10198 = vmatpush1.bf16.msra.mxu1 %v12828_v35  ;;  %10228 = vmatpush3.bf16.msra.mxu0 %v12834_v39 }
 0x6ab   :  { %10229 = vmatprep.subr.bf16.mxu0 %v16066_v2  ;;  %10200 = vmatprep.subr.bf16.mxu1 %v12844_v52 }
 0x6b6   :  { %v12767_v60 = vpop.f32.mrb[10].mxu1 }
 0x6b7   :  { %v12772_v61 = vpop.f32.mrb[11].mxu1 }
 0x6ba   :  { %v1446_v33 = vpop.f32.mrb[12].mxu1 }
 0x6bb   :  { %v12778_v1 = vadd.f32 %v1446_v33, %v12770_v28  ;;  %v1448_v3 = vpop.f32.mrb[13].mxu1  ;;  %v7087_v33 = vld [vmem:[%s16052_s13 + $0x1f0] sm:$0xff] }
 0x6bc   :  { %v12781_v5 = vadd.f32 %v1448_v3, %v12775_v32  ;;  %v12856_v3 = vpack.c.bf16 %v7088_v57, %v7085_v56  ;;  %v12862_v7 = vpack.c.bf16 %v7090_v6, %v7087_v33  ;;  %v7097_v56 = vld [vmem:[%s16052_s13 + $0x240] sm:$0xff]  ;;  %v7100_v57 = vld [vmem:[%s16052_s13 + $0x258] sm:$0xff]  ;;  %v7099_v33 = vld [vmem:[%s16052_s13 + $0x250] sm:$0xff] }
 0x6bd   :  { %16182 = vst [vmem:[#allocation6_spill] sm:$0xff] %v12778_v1  ;;  %v12912_v6 = vpack.c.bf16 %v7100_v57, %v7097_v56  ;;  %v12918_v12 = vpack.c.bf16 %v7102_v11, %v7099_v33  ;;  %v12940_v56 = vpack.c.bf16 %v7106_v36, %v7103_v25  ;;  %v7108_v57 = vld [vmem:[%s16052_s13 + $0x298] sm:$0xff]  ;;  %v7110_v33 = vld [vmem:[%s16052_s13 + $0x2a8] sm:$0xff]  ;;  %v7113_v11 = vld [vmem:[%s16052_s13 + $0x2c0] sm:$0xff]  ;;  %v16192_v1 = vmov 0.0|0.0  }
 0x6be   :  { %16183 = vst [vmem:[#allocation7_spill] sm:$0xff] %v12781_v5  ;;  %10202 = vmatpush1.bf16.msra.mxu1 %v12856_v3  ;;  %10231 = vmatpush3.bf16.msra.mxu0 %v12862_v7  ;;  %v12952_v16 = vpack.c.bf16 %v7108_v57, %v7105_v44  ;;  %v12954_v20 = vpack.c.bf16 %v7113_v11, %v7110_v33  ;;  %v7109_v25 = vld [vmem:[%s16052_s13 + $0x2a0] sm:$0xff]  ;;  %v7112_v36 = vld [vmem:[%s16052_s13 + $0x2b8] sm:$0xff]  ;;  %v7114_v44 = vld [vmem:[%s16052_s13 + $0x2c8] sm:$0xff] }
 0x6bf   :  { %10232 = vmatprep.subr.bf16.mxu0 %v16066_v2  ;;  %10204 = vmatprep.subr.bf16.mxu1 %v12872_v13  ;;  %16184 = vst [vmem:[#allocation8_spill] sm:$0xff] %v12918_v12  ;;  %16186 = vst [vmem:[#allocation10_spill] sm:$0xff] %v12940_v56  ;;  %v7116_v57 = vld [vmem:[%s16052_s13 + $0x2d8] sm:$0xff]  ;;  %v7119_v33 = vld [vmem:[%s16052_s13 + $0x2f0] sm:$0xff]  ;;  %v12979_v11 = vpack.c.bf16 %v7114_v44, %v7111_v37 }
 0x6c0   :  { %16187 = vst [vmem:[#allocation11_spill] sm:$0xff] %v12952_v16  ;;  %16188 = vst [vmem:[#allocation12_spill] sm:$0xff] %v12954_v20  ;;  %v7117_v5 = vld [vmem:[%s16052_s13 + $0x2e0] sm:$0xff]  ;;  %v7120_v37 = vld [vmem:[%s16052_s13 + $0x2f8] sm:$0xff] }
 0x6c1   :  { %16190 = vst [vmem:[#allocation14_spill] sm:$0xff] %v12979_v11  ;;  %v7123_v44 = vld [vmem:[%s16053_s14 + $0x188] sm:$0xff] }
 0x6c2   :  { %10206 = vmatpush1.bf16.msra.mxu1 %v12884_v24  ;;  %10234 = vmatpush3.bf16.msra.mxu0 %v12890_v26 }
 0x6c3   :  { %10235 = vmatprep.subr.bf16.mxu0 %v16066_v2  ;;  %10208 = vmatprep.subr.bf16.mxu1 %v12900_v51 }
 0x6c6   :  { %10210 = vmatpush1.bf16.msra.mxu1 %v12912_v6  ;;  %10237 = vmatpush3.bf16.msra.mxu0 %v12918_v12 }
 0x6c7   :  { %10238 = vmatprep.subr.bf16.mxu0 %v16066_v2  ;;  %10212 = vmatprep.subr.bf16.mxu1 %v12928_v21  ;;  %v12966_v2 = vpack.c.bf16 %v7112_v36, %v7109_v25  ;;  %v12981_v25 = vpack.c.bf16 %v7119_v33, %v7116_v57  ;;  %v7115_v36 = vld [vmem:[%s16052_s13 + $0x2d0] sm:$0xff]  ;;  %v7126_v57 = vld [vmem:[%s16053_s14 + $0x1a0] sm:$0xff] }
 0x6c8   :  { %v13003_v33 = vpack.c.bf16 %v7118_v49, %v7115_v36  ;;  %v1574_v49 = vld [vmem:[%s16056_s16] sm:$0x7] }
 0x6c9   :  { %16189 = vst [vmem:[#allocation13_spill] sm:$0xff] %v12966_v2  ;;  %16191 = vst [vmem:[#allocation15_spill] sm:$0xff] %v12981_v25  ;;  %v1579_v36 = vrot.slane %v1574_v49, %v12763_v50 }
 0x6ca   :  { %10214 = vmatpush1.bf16.msra.mxu1 %v12940_v56  ;;  %10240 = vmatpush3.bf16.msra.mxu0 %v12952_v16  ;;  %16193 = vst [vmem:[#allocation16_spill] sm:$0xff] %v13003_v33  ;;  %v13009_v16 = vpack.c.bf16 %v7126_v57, %v7123_v44  ;;  %v13023_v57 = vadd.f32 %v12767_v60, %v12770_v28 }
 0x6cb   :  { %10216 = vmatprep.subr.bf16.mxu1 %v12954_v20  ;;  %10241 = vmatprep.subr.bf16.mxu0 %v16192_v1  ;;  %v13007_v20 = vpack.c.bf16 %v7120_v37, %v7117_v5  ;;  %v1583_v5 = vrot.slane %v1574_v49, %v12765_v59  ;;  %v1587_v28 = vrot.slane %v1574_v49, %v12743_v41 }
 0x6cc   :  { %16195 = vst [vmem:[#allocation18_spill] sm:$0xff] %v13009_v16 }
 0x6cd   :  { %16194 = vst [vmem:[#allocation17_spill] sm:$0xff] %v13007_v20 }
 0x6ce   :  { %10218 = vmatpush1.bf16.msra.mxu1 %v12966_v2  ;;  %10243 = vmatpush3.bf16.msra.mxu0 %v12979_v11  ;;  %v13028_v2 = vadd.f32 %v12772_v61, %v12775_v32 }
 0x6cf   :  { %10220 = vmatprep.subr.bf16.mxu1 %v12981_v25  ;;  %10244 = vmatprep.subr.bf16.mxu0 %v16192_v1 }
 0x6d2   :  { %10222 = vmatpush1.bf16.msra.mxu1 %v13003_v33  ;;  %10246 = vmatpush3.bf16.msra.mxu0 %v13007_v20 }
 0x6d3   :  { %10248 = vmatprep.subr.bf16.mxu1 %v13009_v16  ;;  %10279 = vmatprep.subr.bf16.mxu0 %v16192_v1 }
 0x777   :  { %v1657_v37 = vpop.f32.mrb[14].mxu1  ;;  %v1728_v44 = vpop.f32.mrb[12].mxu0 }
 0x778   :  { %v1658_v33 = vadd.f32 %v1657_v37, %v1579_v36  ;;  %v1659_v20 = vpop.f32.mrb[15].mxu1  ;;  %v8931_v25 = vpop.f32.mrb[13].mxu0 }
 0x779   :  { %v1660_v16 = vadd.f32 %v1659_v20, %v1583_v5  ;;  %v1729_v20 = vadd.f32 %v1728_v44, %v1587_v28 }
 0x77a   :  { %v1732_v11 = vadd.f32 %v1658_v33, %v13023_v57  ;;  %v13034_v33 = vadd.f32 %v12748_v48, %v12746_v42  ;;  %v7124_v42 = vld [vmem:[%s16053_s14 + $0x190] sm:$0xff]  ;;  %v7127_v48 = vld [vmem:[%s16053_s14 + $0x1a8] sm:$0xff] }
 0x77b   :  { %v1739_v50 = vadd.f32 %v1660_v16, %v13028_v2  ;;  %v7129_v16 = vld [vmem:[%s16053_s14 + $0x1b8] sm:$0xff]  ;;  %v13058_v44 = vpack.c.bf16 %v7127_v48, %v7124_v42 }
 0x77c   :  { %v7071_v56 = vmul.f32 -1.442695, %v1732_v11  ;;  %v7132_v11 = vld [vmem:[%s16053_s14 + $0x1d0] sm:$0xff]  ;;  %v7137_v48 = vld [vmem:[%s16053_s14 + $0x1f8] sm:$0xff] }
 0x77d   :  { %v7072_v59 = vmul.f32 -1.442695, %v1739_v50 }
 0x77e   :  { %11572 = vpow2.f32 %v7071_v56 }
 0x77f   :  { %11574 = vpow2.f32 %v7072_v59  ;;  %v7122_v59 = vld [vmem:[%s16053_s14 + $0x180] sm:$0xff] }
 0x788   :  { %v11573_v21 = vpop.eup %11572 }
 0x789   :  { %v1736_v12 = vadd.f32 1.0, %v11573_v21  ;;  %v11575_v60 = vpop.eup %11574  ;;  %v7125_v21 = vld [vmem:[%s16053_s14 + $0x198] sm:$0xff] }
 0x78a   :  { %v1743_v25 = vadd.f32 1.0, %v11575_v60  ;;  %v13056_v37 = vpack.c.bf16 %v7125_v21, %v7122_v59  ;;  %v7128_v60 = vld [vmem:[%s16053_s14 + $0x1b0] sm:$0xff]  ;;  %v7134_v21 = vld [vmem:[%s16053_s14 + $0x1e0] sm:$0xff] }
 0x78b   :  { %11576 = vrcp.f32 %v1736_v12 }
 0x78c   :  { %11578 = vrcp.f32 %v1743_v25  ;;  %v13065_v25 = vpack.c.bf16 %v7132_v11, %v7129_v16  ;;  %v7139_v16 = vld [vmem:[%s16053_s14 + $0x208] sm:$0xff]  ;;  %v7141_v11 = vld [vmem:[%s16053_s14 + $0x218] sm:$0xff] }
 0x795   :  { %v11577_v36 = vpop.eup %11576 }
 0x796   :  { %v1746_v61 = vmul.f32 %v11577_v36, %v1729_v20  ;;  %v11579_v50 = vpop.eup %11578  ;;  %v7131_v20 = vld [vmem:[%s16053_s14 + $0x1c8] sm:$0xff]  ;;  %v7130_v36 = vld [vmem:[%s16053_s14 + $0x1c0] sm:$0xff] }
 0x797   :  { %v1749_v12 = vsub.f32 1.0, %v11579_v50  ;;  %v1751_v5 = vmul.f32 %v11579_v50, %v12756_v29  ;;  %v7138_v50 = vld [vmem:[%s16053_s14 + $0x200] sm:$0xff]  ;;  %v13086_v59 = vpack.c.bf16 %v7131_v20, %v7128_v60  ;;  %v13117_v60 = vpack.c.bf16 %v7137_v48, %v7134_v21  ;;  %v7145_v21 = vld [vmem:[%s16053_s14 + $0x238] sm:$0xff]  ;;  %v7147_v48 = vld [vmem:[%s16053_s14 + $0x248] sm:$0xff] }
 0x798   :  { %v1747_v32 = vadd.f32 %v1746_v61, %v13034_v33  ;;  %v7133_v61 = vld [vmem:[%s16053_s14 + $0x1d8] sm:$0xff] }
 0x799   :  { %16198 = vst [vmem:[#allocation20_spill] sm:$0xff] %v13117_v60 }
 0x79a   :  { %11580 = vtanh.f32 %v1747_v32  ;;  %v7135_v32 = vld [vmem:[%s16053_s14 + $0x1e8] sm:$0xff] }
 0x79b   :  { %v13095_v42 = vpack.c.bf16 %v7138_v50, %v7135_v32  ;;  %v7143_v32 = vld [vmem:[%s16053_s14 + $0x228] sm:$0xff]  ;;  %v7142_v50 = vld [vmem:[%s16053_s14 + $0x220] sm:$0xff] }
 0x79d   :  { %16196 = vst [vmem:[#allocation19_spill] sm:$0xff] %v13095_v42 }
 0x7a4   :  { %v11581_v56 = vpop.eup %11580 }
 0x7a5   :  { %v1750_v49 = vmul.f32 %v11581_v56, %v1749_v12  ;;  %v13088_v12 = vpack.c.bf16 %v7133_v61, %v7130_v36  ;;  %v7136_v56 = vld [vmem:[%s16053_s14 + $0x1f0] sm:$0xff] }
 0x7a6   :  { %v13119_v20 = vpack.c.bf16 %v7139_v16, %v7136_v56  ;;  %v7140_v36 = vld [vmem:[%s16053_s14 + $0x210] sm:$0xff]  ;;  %v7150_v56 = vld [vmem:[%s16053_s14 + $0x260] sm:$0xff] }
 0x7a7   :  { %v13063_v28 = vadd.f32 %v1751_v5, %v1750_v49  ;;  %v7144_v49 = vld [vmem:[%s16053_s14 + $0x230] sm:$0xff]  ;;  %v16197_v5 = vmov 0.0   ;;  %v13145_v16 = vpack.c.bf16 %v7143_v32, %v7140_v36  ;;  %v7151_v32 = vld [vmem:[%s16053_s14 + $0x268] sm:$0xff] }
 0x7a8   :  { %16199 = vst [vmem:[#allocation21_spill] sm:$0xff] %v13119_v20  ;;  %v13126_v61 = vpack.c.bf16 %v7144_v49, %v7141_v11  ;;  %v13147_v11 = vpack.c.bf16 %v7145_v21, %v7142_v50  ;;  %v7146_v49 = vld [vmem:[%s16053_s14 + $0x240] sm:$0xff]  ;;  %v7148_v36 = vld [vmem:[%s16053_s14 + $0x250] sm:$0xff]  ;;  %v7153_v50 = vld [vmem:[%s16053_s14 + $0x278] sm:$0xff] }
 0x7a9   :  { %1885 = vmatmul.mubr.f32.vlgmr.msra.gmra.mrb[16].mxu1 %v13063_v28  ;;  %8965 = vmatmul.mubr.f32.vlgmr.msra.gmra.mrb[14].mxu0 %v13063_v28  ;;  %16201 = vst [vmem:[#allocation23_spill] sm:$0xff] %v13145_v16  ;;  %v7156_v21 = vld [vmem:[%s16053_s14 + $0x290] sm:$0xff] }
 0x7aa   :  { %10250 = vmatpush1.bf16.msra.mxu1 %v13056_v37  ;;  %10281 = vmatpush3.bf16.msra.mxu0 %v13058_v44  ;;  %16200 = vst [vmem:[#allocation22_spill] sm:$0xff] %v13126_v61  ;;  %16202 = vst [vmem:[#allocation24_spill] sm:$0xff] %v13147_v11 }
 0x7ab   :  { %10252 = vmatprep.subr.bf16.mxu1 %v13065_v25  ;;  %10282 = vmatprep.subr.bf16.mxu0 %v16192_v1 }
 0x7ac   :  { %2092 = vmatprep.mubr.f32.mxu1 %v16197_v5  ;;  %8999 = vmatprep.mubr.msk.f32.mxu0 %vm11733_vm1, %v16197_v5 }
 0x7ae   :  { %10254 = vmatpush1.bf16.msra.mxu1 %v13086_v59  ;;  %10284 = vmatpush3.bf16.msra.mxu0 %v13088_v12 }
 0x7af   :  { %10256 = vmatprep.subr.bf16.mxu1 %v13095_v42  ;;  %10285 = vmatprep.subr.bf16.mxu0 %v16192_v1  ;;  %v13154_v42 = vpack.c.bf16 %v7150_v56, %v7147_v48  ;;  %v13175_v56 = vpack.c.bf16 %v7151_v32, %v7148_v36  ;;  %v7159_v36 = vld [vmem:[%s16053_s14 + $0x2a8] sm:$0xff]  ;;  %v7162_v32 = vld [vmem:[%s16053_s14 + $0x2c0] sm:$0xff] }
 0x7b1   :  { %16203 = vst [vmem:[#allocation25_spill] sm:$0xff] %v13154_v42  ;;  %16205 = vst [vmem:[#allocation27_spill] sm:$0xff] %v13175_v56 }
 0x7b2   :  { %10258 = vmatpush1.bf16.msra.mxu1 %v13117_v60  ;;  %10287 = vmatpush3.bf16.msra.mxu0 %v13119_v20  ;;  %v7149_v60 = vld [vmem:[%s16053_s14 + $0x258] sm:$0xff]  ;;  %v13182_v20 = vpack.c.bf16 %v7156_v21, %v7153_v50 }
 0x7b3   :  { %10260 = vmatprep.subr.bf16.mxu1 %v13126_v61  ;;  %10288 = vmatprep.subr.bf16.mxu0 %v16192_v1  ;;  %v13173_v48 = vpack.c.bf16 %v7149_v60, %v7146_v49  ;;  %v7152_v61 = vld [vmem:[%s16053_s14 + $0x270] sm:$0xff]  ;;  %v7154_v60 = vld [vmem:[%s16053_s14 + $0x280] sm:$0xff]  ;;  %v7157_v49 = vld [vmem:[%s16053_s14 + $0x298] sm:$0xff] }
 0x7b4   :  { %16206 = vst [vmem:[#allocation28_spill] sm:$0xff] %v13182_v20  ;;  %v13203_v21 = vpack.c.bf16 %v7157_v49, %v7154_v60  ;;  %v7165_v60 = vld [vmem:[%s16053_s14 + $0x2d8] sm:$0xff]  ;;  %v7168_v49 = vld [vmem:[%s16053_s14 + $0x2f0] sm:$0xff] }
 0x7b5   :  { %16204 = vst [vmem:[#allocation26_spill] sm:$0xff] %v13173_v48 }
 0x7b6   :  { %10262 = vmatpush1.bf16.msra.mxu1 %v13145_v16  ;;  %10290 = vmatpush3.bf16.msra.mxu0 %v13147_v11  ;;  %v7155_v16 = vld [vmem:[%s16053_s14 + $0x288] sm:$0xff]  ;;  %v13210_v11 = vpack.c.bf16 %v7162_v32, %v7159_v36 }
 0x7b7   :  { %10264 = vmatprep.subr.bf16.mxu1 %v13154_v42  ;;  %10291 = vmatprep.subr.bf16.mxu0 %v16192_v1  ;;  %v13201_v50 = vpack.c.bf16 %v7155_v16, %v7152_v61  ;;  %v7158_v42 = vld [vmem:[%s16053_s14 + $0x2a0] sm:$0xff]  ;;  %v7160_v61 = vld [vmem:[%s16053_s14 + $0x2b0] sm:$0xff]  ;;  %v7163_v16 = vld [vmem:[%s16053_s14 + $0x2c8] sm:$0xff] }
 0x7b8   :  { %v13231_v32 = vpack.c.bf16 %v7163_v16, %v7160_v61 }
 0x7b9   :  { %16207 = vst [vmem:[#allocation29_spill] sm:$0xff] %v13201_v50 }
 0x7ba   :  { %10266 = vmatpush1.bf16.msra.mxu1 %v13173_v48  ;;  %10293 = vmatpush3.bf16.msra.mxu0 %v13175_v56  ;;  %v7161_v48 = vld [vmem:[%s16053_s14 + $0x2b8] sm:$0xff]  ;;  %v13238_v56 = vpack.c.bf16 %v7168_v49, %v7165_v60 }
 0x7bb   :  { %10268 = vmatprep.subr.bf16.mxu1 %v13182_v20  ;;  %10294 = vmatprep.subr.bf16.mxu0 %v16192_v1  ;;  %v13229_v36 = vpack.c.bf16 %v7161_v48, %v7158_v42  ;;  %v7164_v20 = vld [vmem:[%s16053_s14 + $0x2d0] sm:$0xff]  ;;  %v7166_v42 = vld [vmem:[%s16053_s14 + $0x2e0] sm:$0xff]  ;;  %v7169_v48 = vld [vmem:[%s16053_s14 + $0x2f8] sm:$0xff] }
 0x7bc   :  { %v13253_v16 = vpack.c.bf16 %v7169_v48, %v7166_v42 }
 0x7be   :  { %10270 = vmatpush1.bf16.msra.mxu1 %v13201_v50  ;;  %10296 = vmatpush3.bf16.msra.mxu0 %v13203_v21  ;;  %v7167_v50 = vld [vmem:[%s16053_s14 + $0x2e8] sm:$0xff] }
 0x7bf   :  { %10272 = vmatprep.subr.bf16.mxu1 %v13210_v11  ;;  %10297 = vmatprep.subr.bf16.mxu0 %v16192_v1  ;;  %v13251_v61 = vpack.c.bf16 %v7167_v50, %v7164_v20 }
 0x7c2   :  { %10274 = vmatpush1.bf16.msra.mxu1 %v13229_v36  ;;  %10299 = vmatpush3.bf16.msra.mxu0 %v13231_v32 }
 0x7c3   :  { %10276 = vmatprep.subr.bf16.mxu1 %v13238_v56  ;;  %10300 = vmatprep.subr.bf16.mxu0 %v16192_v1 }
 0x7c6   :  { %10278 = vmatpush1.bf16.msra.mxu1 %v13251_v61  ;;  %10302 = vmatpush3.bf16.msra.mxu0 %v13253_v16 }
 0x7c7   :  { %10304 = vmatprep.subr.bf16.mxu1 %v12568_v38  ;;  %10335 = vmatprep.subr.bf16.mxu0 %v16192_v1  ;;  %v16213_v38 = vld [vmem:[#allocation13_spill] sm:$0xff] }
 0x7c9   :  { %2093 = vmatmul.mubr.f32.vlgmr.msra.gmra.mrb[16].mxu1 %v12756_v29  ;;  %9000 = vmatmul.mubr.f32.vlgmr.msra.gmra.mrb[16].mxu0 %v12756_v29 }
 0x7ca   :  { %10306 = vmatpush1.bf16.msra.mxu1 %v12582_v45  ;;  %10337 = vmatpush3.bf16.msra.mxu0 %v12425_v34  ;;  %v16208_v34 = vld [vmem:[#allocation8_spill] sm:$0xff]  ;;  %v16214_v45 = vld [vmem:[#allocation14_spill] sm:$0xff] }
 0x7cb   :  { %10308 = vmatprep.subr.bf16.mxu1 %v12585_v47  ;;  %10338 = vmatprep.subr.bf16.mxu0 %v16192_v1  ;;  %v16215_v47 = vld [vmem:[#allocation15_spill] sm:$0xff] }
 0x7cc   :  { %2320 = vmatprep.mubr.f32.mxu1 %v16197_v5  ;;  %9034 = vmatprep.mubr.msk.f32.mxu0 %vm11733_vm1, %v16197_v5 }
 0x7ce   :  { %10310 = vmatpush1.bf16.msra.mxu1 %v12602_v54  ;;  %10340 = vmatpush3.bf16.msra.mxu0 %v12436_v27  ;;  %v16209_v27 = vld [vmem:[#allocation9_spill] sm:$0xff]  ;;  %v16216_v54 = vld [vmem:[#allocation16_spill] sm:$0xff] }
 0x7cf   :  { %10312 = vmatprep.subr.bf16.mxu1 %v12605_v55  ;;  %10341 = vmatprep.subr.bf16.mxu0 %v16192_v1  ;;  %v16217_v55 = vld [vmem:[#allocation17_spill] sm:$0xff] }
 0x7d2   :  { %10314 = vmatpush1.bf16.msra.mxu1 %v12621_v53  ;;  %10343 = vmatpush3.bf16.msra.mxu0 %v12446_v40  ;;  %v16210_v40 = vld [vmem:[#allocation10_spill] sm:$0xff] }
 0x7d3   :  { %10316 = vmatprep.subr.bf16.mxu1 %v12625_v58  ;;  %10344 = vmatprep.subr.bf16.mxu0 %v16192_v1  ;;  %v16218_v53 = vld [vmem:[#allocation18_spill] sm:$0xff] }
 0x7d6   :  { %10318 = vmatpush1.bf16.msra.mxu1 %v12640_v62  ;;  %10346 = vmatpush3.bf16.msra.mxu0 %v12456_v43  ;;  %v16211_v43 = vld [vmem:[#allocation11_spill] sm:$0xff] }
 0x7d7   :  { %10320 = vmatprep.subr.bf16.mxu1 %v12643_v63  ;;  %10347 = vmatprep.subr.bf16.mxu0 %v16192_v1  ;;  %v7170_v63 = vld [vmem:[%s16056_s16 + $0x3] sm:$0x7] }
 0x7da   :  { %10322 = vmatpush1.bf16.msra.mxu1 %v12652_v0  ;;  %10349 = vmatpush3.bf16.msra.mxu0 %v12466_v46  ;;  %v16212_v46 = vld [vmem:[#allocation12_spill] sm:$0xff]  ;;  %v7121_v0 = vld [vmem:[%s16054_s15 + $0x3] sm:$0x7] }
 0x7db   :  { %10324 = vmatprep.subr.bf16.mxu1 %v12662_v4  ;;  %10350 = vmatprep.subr.bf16.mxu0 %v16192_v1  ;;  %v16219_v4 = vld [vmem:[#allocation4_spill] sm:$0xff] }
 0x7de   :  { %10326 = vmatpush1.bf16.msra.mxu1 %v12673_v8  ;;  %10352 = vmatpush3.bf16.msra.mxu0 %v12679_v10  ;;  %v1808_v8 = vrot.slane %v7121_v0, %v16219_v4  ;;  %v2016_v10 = vrot.slane %v7170_v63, %v16219_v4 }
 0x7df   :  { %10328 = vmatprep.subr.bf16.mxu1 %v12692_v14  ;;  %10353 = vmatprep.subr.bf16.mxu0 %v16192_v1  ;;  %v16220_v14 = vld [vmem:[#allocation5_spill] sm:$0xff] }
 0x7e2   :  { %10330 = vmatpush1.bf16.msra.mxu1 %v12704_v18  ;;  %10355 = vmatpush3.bf16.msra.mxu0 %v12706_v19  ;;  %v1812_v18 = vrot.slane %v7121_v0, %v16220_v14  ;;  %v2020_v19 = vrot.slane %v7170_v63, %v16220_v14 }
 0x7e3   :  { %10332 = vmatprep.subr.bf16.mxu1 %v12718_v23  ;;  %10356 = vmatprep.subr.bf16.mxu0 %v16192_v1  ;;  %v11511_v23 = vadd.f32 %v2016_v10, %v1808_v8 }
 0x7e6   :  { %10334 = vmatpush1.bf16.msra.mxu1 %v12730_v30  ;;  %10358 = vmatpush3.bf16.msra.mxu0 %v12734_v31 }
 0x7e7   :  { %10360 = vmatprep.subr.bf16.mxu1 %v12789_v9  ;;  %10391 = vmatprep.subr.bf16.mxu0 %v16192_v1  ;;  %v11513_v9 = vadd.f32 %v2020_v19, %v1812_v18 }
 0x7e9   :  { %2321 = vmatmul.mubr.f32.vlgmr.msra.gmra.mrb[18].mxu1 %v13063_v28  ;;  %9035 = vmatmul.mubr.f32.vlgmr.msra.gmra.mrb[18].mxu0 %v13063_v28 }
 0x7ea   :  { %10362 = vmatpush1.bf16.msra.mxu1 %v12800_v15  ;;  %10393 = vmatpush3.bf16.msra.mxu0 %v12806_v17 }
 0x7eb   :  { %10364 = vmatprep.subr.bf16.mxu1 %v12816_v22  ;;  %10394 = vmatprep.subr.bf16.mxu0 %v16192_v1 }
 0x7ec   :  { %2562 = vmatprep.mubr.f32.mxu1 %v16197_v5  ;;  %9069 = vmatprep.mubr.msk.f32.mxu0 %vm11733_vm1, %v16197_v5 }
 0x7ee   :  { %10366 = vmatpush1.bf16.msra.mxu1 %v12828_v35  ;;  %10396 = vmatpush3.bf16.msra.mxu0 %v12834_v39 }
 0x7ef   :  { %10368 = vmatprep.subr.bf16.mxu1 %v12844_v52  ;;  %10397 = vmatprep.subr.bf16.mxu0 %v16192_v1 }
 0x7f2   :  { %10370 = vmatpush1.bf16.msra.mxu1 %v12856_v3  ;;  %10399 = vmatpush3.bf16.msra.mxu0 %v12862_v7 }
 0x7f3   :  { %10372 = vmatprep.subr.bf16.mxu1 %v12872_v13  ;;  %10400 = vmatprep.subr.bf16.mxu0 %v16192_v1 }
 0x7f6   :  { %10374 = vmatpush1.bf16.msra.mxu1 %v12884_v24  ;;  %10402 = vmatpush3.bf16.msra.mxu0 %v12890_v26  ;;  %v2024_v24 = vrot.slane %v7170_v63, %v12743_v41  ;;  %v1816_v26 = vrot.slane %v7121_v0, %v12743_v41 }
 0x7f7   :  { %10376 = vmatprep.subr.bf16.mxu1 %v12900_v51  ;;  %10403 = vmatprep.subr.bf16.mxu0 %v16192_v1 }
 0x7fa   :  { %10378 = vmatpush1.bf16.msra.mxu1 %v12912_v6  ;;  %10405 = vmatpush3.bf16.msra.mxu0 %v16208_v34  ;;  %v2239_v6 = vld [vmem:[%s16056_s16] sm:$0x7] }
 0x7fb   :  { %10380 = vmatprep.subr.bf16.mxu1 %v16209_v27  ;;  %10406 = vmatprep.subr.bf16.mxu0 %v16192_v1  ;;  %v2244_v42 = vrot.slane %v2239_v6, %v16219_v4  ;;  %v2248_v48 = vrot.slane %v2239_v6, %v16220_v14 }
 0x7fe   :  { %10382 = vmatpush1.bf16.msra.mxu1 %v16210_v40  ;;  %10408 = vmatpush3.bf16.msra.mxu0 %v16211_v43 }
 0x7ff   :  { %10384 = vmatprep.subr.bf16.mxu1 %v16212_v46  ;;  %10409 = vmatprep.subr.bf16.mxu0 %v16192_v1 }
 0x802   :  { %10386 = vmatpush1.bf16.msra.mxu1 %v16213_v38  ;;  %10411 = vmatpush3.bf16.msra.mxu0 %v16214_v45 }
 0x803   :  { %10388 = vmatprep.subr.bf16.mxu1 %v16215_v47  ;;  %10412 = vmatprep.subr.bf16.mxu0 %v16192_v1 }
 0x806   :  { %10390 = vmatpush1.bf16.msra.mxu1 %v16216_v54  ;;  %10414 = vmatpush3.bf16.msra.mxu0 %v16217_v55 }
 0x807   :  { %10416 = vmatprep.subr.bf16.mxu1 %v16218_v53  ;;  %10447 = vmatprep.subr.bf16.mxu0 %v16192_v1 }
 0x87c   :  { %v1957_v58 = vpop.f32.mrb[14].mxu0 }
 0x87d   :  { %v8966_v62 = vpop.f32.mrb[15].mxu0  ;;  %v1958_v60 = vadd.f32 %v1957_v58, %v1816_v26 }
 0x89c   :  { %v2094_v30 = vpop.f32.mrb[16].mxu1  ;;  %v2165_v31 = vpop.f32.mrb[16].mxu0 }
 0x89d   :  { %v11512_v15 = vadd.f32 %v11511_v23, %v2094_v30  ;;  %v2096_v17 = vpop.f32.mrb[17].mxu1  ;;  %v9001_v22 = vpop.f32.mrb[17].mxu0  ;;  %v2166_v20 = vadd.f32 %v2165_v31, %v2024_v24 }
 0x89e   :  { %v11514_v39 = vadd.f32 %v11513_v9, %v2096_v17 }
 0x89f   :  { %v7171_v35 = vmul.f32 -1.442695, %v11512_v15  ;;  %v2252_v15 = vrot.slane %v2239_v6, %v12743_v41  ;;  %v16225_v6 = vld [vmem:[#allocation23_spill] sm:$0xff] }
 0x8a0   :  { %v7172_v52 = vmul.f32 -1.442695, %v11514_v39  ;;  %v2426_v39 = vrot.slane %v13063_v28, 6  ;;  %v16221_v28 = vld [vmem:[#allocation19_spill] sm:$0xff] }
 0x8a1   :  { %11582 = vpow2.f32 %v7171_v35 }
 0x8a2   :  { %11584 = vpow2.f32 %v7172_v52 }
 0x8ab   :  { %v11583_v3 = vpop.eup %11582 }
 0x8ac   :  { %v2173_v7 = vadd.f32 1.0, %v11583_v3  ;;  %v11585_v13 = vpop.eup %11584 }
 0x8ad   :  { %v2180_v51 = vadd.f32 1.0, %v11585_v13 }
 0x8ae   :  { %11586 = vrcp.f32 %v2173_v7 }
 0x8af   :  { %11588 = vrcp.f32 %v2180_v51 }
 0x8b8   :  { %v11587_v50 = vpop.eup %11586 }
 0x8b9   :  { %v2183_v49 = vmul.f32 %v11587_v50, %v2166_v20  ;;  %v11589_v58 = vpop.eup %11588  ;;  %v16226_v50 = vld [vmem:[#allocation24_spill] sm:$0xff] }
 0x8ba   :  { %v2186_v0 = vsub.f32 1.0, %v11589_v58  ;;  %v2188_v18 = vmul.f32 %v11589_v58, %v12756_v29 }
 0x8bb   :  { %v2184_v34 = vadd.f32 %v2183_v49, %v1958_v60  ;;  %v16227_v60 = vld [vmem:[#allocation25_spill] sm:$0xff]  ;;  %v16230_v49 = vld [vmem:[#allocation28_spill] sm:$0xff] }
 0x8bc   :  { %v2322_v27 = vpop.f32.mrb[18].mxu1  ;;  %v2393_v40 = vpop.f32.mrb[18].mxu0 }
 0x8bd   :  { %11590 = vtanh.f32 %v2184_v34  ;;  %v2323_v43 = vadd.f32 %v2322_v27, %v2244_v42  ;;  %v2324_v46 = vpop.f32.mrb[19].mxu1  ;;  %v9036_v38 = vpop.f32.mrb[19].mxu0  ;;  %v2394_v17 = vadd.f32 %v2393_v40, %v2252_v15  ;;  %v16231_v42 = vld [vmem:[#allocation29_spill] sm:$0xff]  ;;  %v2870_v27 = vld [vmem:[%s16053_s14 + $0x18] sm:$0xff]  ;;  %v2877_v40 = vld [vmem:[%s16053_s14 + $0x50] sm:$0xff] }
 0x8be   :  { %v2325_v45 = vadd.f32 %v2324_v46, %v2248_v48  ;;  %v2868_v48 = vld [vmem:[%s16053_s14 + $0x8] sm:$0xff]  ;;  %v2871_v34 = vld [vmem:[%s16053_s14 + $0x20] sm:$0xff]  ;;  %v2873_v38 = vld [vmem:[%s16053_s14 + $0x30] sm:$0xff] }
 0x8bf   :  { %v2398_v47 = vrot.slane %v2323_v43, 6  ;;  %v2418_v22 = vrot.slane %v2394_v17, 6  ;;  %v2888_v17 = vld [vmem:[%s16053_s14 + $0xa8] sm:$0xff] }
 0x8c0   :  { %v2408_v54 = vrot.slane %v2325_v45, 6 }
 0x8c1   :  { %v2400_v55 = vadd.f32 %v2398_v47, %v13023_v57  ;;  %v2878_v47 = vld [vmem:[%s16053_s14 + $0x58] sm:$0xff] }
 0x8c2   :  { %v2410_v53 = vadd.f32 %v2408_v54, %v13028_v2  ;;  %v2880_v54 = vld [vmem:[%s16053_s14 + $0x68] sm:$0xff] }
 0x8c3   :  { %v7173_v62 = vmul.f32 -1.442695, %v2400_v55  ;;  %v2883_v55 = vld [vmem:[%s16053_s14 + $0x80] sm:$0xff] }
 0x8c4   :  { %v7174_v63 = vmul.f32 -1.442695, %v2410_v53 }
 0x8c5   :  { %11592 = vpow2.f32 %v7173_v62  ;;  %v2879_v62 = vld [vmem:[%s16053_s14 + $0x60] sm:$0xff] }
 0x8c6   :  { %11594 = vpow2.f32 %v7174_v63  ;;  %v13466_v63 = vpack.c.bf16 %v2883_v55, %v2880_v54  ;;  %v2909_v54 = vld [vmem:[%s16053_s14 + $0x150] sm:$0xff] }
 0x8c7   :  { %v11591_v8 = vpop.eup %11590 }
 0x8c8   :  { %v2187_v10 = vmul.f32 %v11591_v8, %v2186_v0  ;;  %v2882_v0 = vld [vmem:[%s16053_s14 + $0x78] sm:$0xff]  ;;  %v2881_v8 = vld [vmem:[%s16053_s14 + $0x70] sm:$0xff] }
 0x8ca   :  { %v13355_v19 = vadd.f32 %v2188_v18, %v2187_v10  ;;  %v2884_v10 = vld [vmem:[%s16053_s14 + $0x88] sm:$0xff]  ;;  %v2886_v18 = vld [vmem:[%s16053_s14 + $0x98] sm:$0xff] }
 0x8cc   :  { %2190 = vst [vmem:[#allocation2] sm:$0x3] %v13355_v19 }
 0x8cf   :  { %v11593_v23 = vpop.eup %11592 }
 0x8d0   :  { %v11595_v30 = vpop.eup %11594  ;;  %v2404_v31 = vadd.f32 1.0, %v11593_v23  ;;  %v2889_v23 = vld [vmem:[%s16053_s14 + $0xb0] sm:$0xff] }
 0x8d1   :  { %v2414_v9 = vadd.f32 1.0, %v11595_v30  ;;  %v13488_v30 = vpack.c.bf16 %v2882_v0, %v2879_v62  ;;  %v13497_v15 = vpack.c.bf16 %v2889_v23, %v2886_v18  ;;  %v2912_v62 = vld [vmem:[%s16053_s14 + $0x168] sm:$0xff]  ;;  %v2911_v0 = vld [vmem:[%s16053_s14 + $0x160] sm:$0xff] }
 0x8d2   :  { %11596 = vrcp.f32 %v2404_v31  ;;  %v13490_v31 = vpack.c.bf16 %v2884_v10, %v2881_v8  ;;  %v2914_v8 = vld [vmem:[%s16053_s14 + $0x178] sm:$0xff]  ;;  %v13622_v10 = vpack.c.bf16 %v2912_v62, %v2909_v54  ;;  %v7278_v23 = vld [vmem:[%s16052_s13 + $0x188] sm:$0xff] }
 0x8d3   :  { %11598 = vrcp.f32 %v2414_v9  ;;  %v2885_v9 = vld [vmem:[%s16053_s14 + $0x90] sm:$0xff]  ;;  %v13624_v18 = vpack.c.bf16 %v2914_v8, %v2911_v0  ;;  %v7296_v62 = vld [vmem:[%s16052_s13 + $0x218] sm:$0xff] }
 0x8d4   :  { %v7299_v0 = vld [vmem:[%s16052_s13 + $0x230] sm:$0xff] }
 0x8d5   :  { %v13725_v8 = vpack.c.bf16 %v7299_v0, %v7296_v62  ;;  %v7310_v0 = vld [vmem:[%s16052_s13 + $0x288] sm:$0xff] }
 0x8d7   :  { %16233 = vst [vmem:[#allocation9_spill] sm:$0xff] %v13725_v8 }
 0x8dc   :  { %v11597_v35 = vpop.eup %11596 }
 0x8dd   :  { %v11599_v52 = vpop.eup %11598  ;;  %v2420_v3 = vmul.f32 %v11597_v35, %v2418_v22  ;;  %v2887_v22 = vld [vmem:[%s16053_s14 + $0xa0] sm:$0xff]  ;;  %v2890_v35 = vld [vmem:[%s16053_s14 + $0xb8] sm:$0xff] }
 0x8de   :  { %v2428_v29 = vmul.f32 %v11599_v52, %v2426_v39  ;;  %v2423_v13 = vsub.f32 1.0, %v11599_v52  ;;  %v2892_v39 = vld [vmem:[%s16053_s14 + $0xc8] sm:$0xff]  ;;  %v2895_v52 = vld [vmem:[%s16053_s14 + $0xe0] sm:$0xff] }
 0x8df   :  { %v2421_v7 = vadd.f32 %v2420_v3, %v13034_v33  ;;  %v13516_v3 = vpack.c.bf16 %v2888_v17, %v2885_v9  ;;  %v7281_v9 = vld [vmem:[%s16052_s13 + $0x1a0] sm:$0xff] }
 0x8e0   :  { %v13642_v17 = vpack.c.bf16 %v7281_v9, %v7278_v23  ;;  %v7295_v23 = vld [vmem:[%s16052_s13 + $0x210] sm:$0xff]  ;;  %v7298_v9 = vld [vmem:[%s16052_s13 + $0x228] sm:$0xff] }
 0x8e1   :  { %11600 = vtanh.f32 %v2421_v7  ;;  %v2891_v7 = vld [vmem:[%s16053_s14 + $0xc0] sm:$0xff] }
 0x8eb   :  { %v11601_v24 = vpop.eup %11600 }
 0x8ec   :  { %v2424_v26 = vmul.f32 %v11601_v24, %v2423_v13  ;;  %v13525_v13 = vpack.c.bf16 %v2895_v52, %v2892_v39  ;;  %v2894_v24 = vld [vmem:[%s16053_s14 + $0xd8] sm:$0xff]  ;;  %v7282_v52 = vld [vmem:[%s16052_s13 + $0x1a8] sm:$0xff] }
 0x8ee   :  { %v13361_v51 = vadd.f32 %v2428_v29, %v2424_v26  ;;  %v13518_v29 = vpack.c.bf16 %v2890_v35, %v2887_v22  ;;  %v2893_v26 = vld [vmem:[%s16053_s14 + $0xd0] sm:$0xff]  ;;  %v7277_v22 = vld [vmem:[%s16052_s13 + $0x180] sm:$0xff] }
 0x8ef   :  { %v7279_v35 = vld [vmem:[%s16052_s13 + $0x190] sm:$0xff] }
 0x8f0   :  { %v13364_v20 = vrot.slane %v13361_v51, 2 }
 0x8f2   :  { %2563 = vmatmul.mubr.f32.vlgmr.msra.gmra.mrb[20].mxu1 %v13364_v20  ;;  %9070 = vmatmul.mubr.f32.vlgmr.msra.gmra.mrb[20].mxu0 %v13364_v20 }
 0x8f3   :  { %10418 = vmatpush1.bf16.msra.mxu1 %v13056_v37  ;;  %10449 = vmatpush3.bf16.msra.mxu0 %v13058_v44  ;;  %v16222_v37 = vld [vmem:[#allocation20_spill] sm:$0xff]  ;;  %v16223_v44 = vld [vmem:[#allocation21_spill] sm:$0xff] }
 0x8f4   :  { %10420 = vmatprep.subr.bf16.mxu1 %v13065_v25  ;;  %10450 = vmatprep.subr.bf16.mxu0 %v16192_v1  ;;  %v16224_v25 = vld [vmem:[#allocation22_spill] sm:$0xff] }
 0x8f5   :  { %2768 = vmatprep.mubr.f32.mxu1 %v16197_v5  ;;  %9104 = vmatprep.mubr.msk.f32.mxu0 %vm11733_vm1, %v16197_v5 }
 0x8f7   :  { %10422 = vmatpush1.bf16.msra.mxu1 %v13086_v59  ;;  %10452 = vmatpush3.bf16.msra.mxu0 %v13088_v12  ;;  %v16228_v59 = vld [vmem:[#allocation26_spill] sm:$0xff]  ;;  %v16229_v12 = vld [vmem:[#allocation27_spill] sm:$0xff] }
 0x8f8   :  { %10424 = vmatprep.subr.bf16.mxu1 %v16221_v28  ;;  %10453 = vmatprep.subr.bf16.mxu0 %v16192_v1  ;;  %v2896_v28 = vld [vmem:[%s16053_s14 + $0xe8] sm:$0xff] }
 0x8fb   :  { %10426 = vmatpush1.bf16.msra.mxu1 %v16222_v37  ;;  %10455 = vmatpush3.bf16.msra.mxu0 %v16223_v44  ;;  %v2898_v37 = vld [vmem:[%s16053_s14 + $0xf8] sm:$0xff]  ;;  %v2901_v44 = vld [vmem:[%s16053_s14 + $0x110] sm:$0xff] }
 0x8fc   :  { %10428 = vmatprep.subr.bf16.mxu1 %v16224_v25  ;;  %10456 = vmatprep.subr.bf16.mxu0 %v16192_v1  ;;  %v13544_v25 = vpack.c.bf16 %v2894_v24, %v2891_v7  ;;  %v13659_v7 = vpack.c.bf16 %v7282_v52, %v7279_v35  ;;  %v7284_v24 = vld [vmem:[%s16052_s13 + $0x1b8] sm:$0xff] }
 0x8fd   :  { %v7300_v35 = vld [vmem:[%s16052_s13 + $0x238] sm:$0xff] }
 0x8ff   :  { %10430 = vmatpush1.bf16.msra.mxu1 %v16225_v6  ;;  %10458 = vmatpush3.bf16.msra.mxu0 %v16226_v50  ;;  %v13546_v6 = vpack.c.bf16 %v2896_v28, %v2893_v26  ;;  %v2897_v50 = vld [vmem:[%s16053_s14 + $0xf0] sm:$0xff] }
 0x900   :  { %10432 = vmatprep.subr.bf16.mxu1 %v16227_v60  ;;  %10459 = vmatprep.subr.bf16.mxu0 %v16192_v1  ;;  %v13553_v60 = vpack.c.bf16 %v2901_v44, %v2898_v37  ;;  %v7287_v26 = vld [vmem:[%s16052_s13 + $0x1d0] sm:$0xff]  ;;  %v7286_v44 = vld [vmem:[%s16052_s13 + $0x1c8] sm:$0xff] }
 0x901   :  { %v13669_v28 = vpack.c.bf16 %v7287_v26, %v7284_v24  ;;  %v7283_v37 = vld [vmem:[%s16052_s13 + $0x1b0] sm:$0xff]  ;;  %v7302_v24 = vld [vmem:[%s16052_s13 + $0x248] sm:$0xff]  ;;  %v7305_v26 = vld [vmem:[%s16052_s13 + $0x260] sm:$0xff] }
 0x903   :  { %10434 = vmatpush1.bf16.msra.mxu1 %v16228_v59  ;;  %10461 = vmatpush3.bf16.msra.mxu0 %v16229_v12  ;;  %v2900_v59 = vld [vmem:[%s16053_s14 + $0x108] sm:$0xff]  ;;  %v2899_v12 = vld [vmem:[%s16053_s14 + $0x100] sm:$0xff] }
 0x904   :  { %10436 = vmatprep.subr.bf16.mxu1 %v16230_v49  ;;  %10462 = vmatprep.subr.bf16.mxu0 %v16192_v1  ;;  %v2902_v49 = vld [vmem:[%s16053_s14 + $0x118] sm:$0xff] }
 0x907   :  { %10438 = vmatpush1.bf16.msra.mxu1 %v16231_v42  ;;  %10464 = vmatpush3.bf16.msra.mxu0 %v13203_v21  ;;  %v2867_v21 = vld [vmem:[%s16053_s14] sm:$0xff]  ;;  %v2904_v42 = vld [vmem:[%s16053_s14 + $0x128] sm:$0xff] }
 0x908   :  { %10440 = vmatprep.subr.bf16.mxu1 %v13210_v11  ;;  %10465 = vmatprep.subr.bf16.mxu0 %v16192_v1  ;;  %v13408_v11 = vpack.c.bf16 %v2871_v34, %v2868_v48  ;;  %v13427_v43 = vpack.c.bf16 %v2870_v27, %v2867_v21  ;;  %v2907_v48 = vld [vmem:[%s16053_s14 + $0x140] sm:$0xff]  ;;  %v13572_v34 = vpack.c.bf16 %v2900_v59, %v2897_v50 }
 0x909   :  { %v13574_v21 = vpack.c.bf16 %v2902_v49, %v2899_v12  ;;  %v2903_v27 = vld [vmem:[%s16053_s14 + $0x120] sm:$0xff]  ;;  %v13681_v59 = vpack.c.bf16 %v7286_v44, %v7283_v37  ;;  %v7288_v12 = vld [vmem:[%s16052_s13 + $0x1d8] sm:$0xff]  ;;  %v13753_v37 = vpack.c.bf16 %v7305_v26, %v7302_v24  ;;  %v7314_v24 = vld [vmem:[%s16052_s13 + $0x2a8] sm:$0xff] }
 0x90a   :  { %v7285_v50 = vld [vmem:[%s16052_s13 + $0x1c0] sm:$0xff] }
 0x90b   :  { %10442 = vmatpush1.bf16.msra.mxu1 %v13229_v36  ;;  %10467 = vmatpush3.bf16.msra.mxu0 %v13231_v32  ;;  %v2869_v36 = vld [vmem:[%s16053_s14 + $0x10] sm:$0xff]  ;;  %v2872_v32 = vld [vmem:[%s16053_s14 + $0x28] sm:$0xff]  ;;  %v13687_v49 = vpack.c.bf16 %v7288_v12, %v7285_v50  ;;  %16236 = vst [vmem:[#allocation12_spill] sm:$0xff] %v13753_v37  ;;  %v7301_v44 = vld [vmem:[%s16052_s13 + $0x240] sm:$0xff] }
 0x90c   :  { %10444 = vmatprep.subr.bf16.mxu1 %v13238_v56  ;;  %10468 = vmatprep.subr.bf16.mxu0 %v16192_v1  ;;  %v2874_v56 = vld [vmem:[%s16053_s14 + $0x38] sm:$0xff]  ;;  %v13429_v46 = vpack.c.bf16 %v2872_v32, %v2869_v36  ;;  %v13581_v36 = vpack.c.bf16 %v2907_v48, %v2904_v42  ;;  %v7290_v42 = vld [vmem:[%s16052_s13 + $0x1e8] sm:$0xff]  ;;  %v7293_v48 = vld [vmem:[%s16052_s13 + $0x200] sm:$0xff] }
 0x90d   :  { %v13436_v45 = vpack.c.bf16 %v2877_v40, %v2874_v56  ;;  %v2906_v32 = vld [vmem:[%s16053_s14 + $0x138] sm:$0xff]  ;;  %v2905_v56 = vld [vmem:[%s16053_s14 + $0x130] sm:$0xff]  ;;  %v2908_v40 = vld [vmem:[%s16053_s14 + $0x148] sm:$0xff] }
 0x90e   :  { %v7304_v50 = vld [vmem:[%s16052_s13 + $0x258] sm:$0xff]  ;;  %v7303_v12 = vld [vmem:[%s16052_s13 + $0x250] sm:$0xff]  ;;  %v7317_v26 = vld [vmem:[%s16052_s13 + $0x2c0] sm:$0xff] }
 0x90f   :  { %10446 = vmatpush1.bf16.msra.mxu1 %v13251_v61  ;;  %10470 = vmatpush3.bf16.msra.mxu0 %v13253_v16  ;;  %v2876_v61 = vld [vmem:[%s16053_s14 + $0x48] sm:$0xff]  ;;  %v2875_v16 = vld [vmem:[%s16053_s14 + $0x40] sm:$0xff] }
 0x910   :  { %10472 = vmatprep.subr.bf16.mxu1 %v13408_v11  ;;  %10503 = vmatprep.subr.bf16.mxu0 %v16192_v1  ;;  %v13457_v53 = vpack.c.bf16 %v2876_v61, %v2873_v38  ;;  %v13459_v58 = vpack.c.bf16 %v2878_v47, %v2875_v16  ;;  %v2910_v38 = vld [vmem:[%s16053_s14 + $0x158] sm:$0xff]  ;;  %v2913_v61 = vld [vmem:[%s16053_s14 + $0x170] sm:$0xff]  ;;  %v13600_v16 = vpack.c.bf16 %v2906_v32, %v2903_v27  ;;  %v7289_v32 = vld [vmem:[%s16052_s13 + $0x1e0] sm:$0xff] }
 0x911   :  { %v13602_v47 = vpack.c.bf16 %v2908_v40, %v2905_v56  ;;  %v13609_v55 = vpack.c.bf16 %v2913_v61, %v2910_v38  ;;  %v13697_v27 = vpack.c.bf16 %v7293_v48, %v7290_v42  ;;  %v7292_v56 = vld [vmem:[%s16052_s13 + $0x1f8] sm:$0xff]  ;;  %v7291_v40 = vld [vmem:[%s16052_s13 + $0x1f0] sm:$0xff]  ;;  %v7294_v61 = vld [vmem:[%s16052_s13 + $0x208] sm:$0xff]  ;;  %v13765_v42 = vpack.c.bf16 %v7304_v50, %v7301_v44 }
 0x912   :  { %2769 = vmatmul.mubr.f32.vlgmr.msra.gmra.mrb[20].mxu1 %v13355_v19  ;;  %9105 = vmatmul.mubr.f32.vlgmr.msra.gmra.mrb[22].mxu0 %v13355_v19  ;;  %v13709_v38 = vpack.c.bf16 %v7292_v56, %v7289_v32  ;;  %v13715_v54 = vpack.c.bf16 %v7294_v61, %v7291_v40  ;;  %v7306_v48 = vld [vmem:[%s16052_s13 + $0x268] sm:$0xff]  ;;  %v7308_v56 = vld [vmem:[%s16052_s13 + $0x278] sm:$0xff]  ;;  %v7311_v40 = vld [vmem:[%s16052_s13 + $0x290] sm:$0xff]  ;;  %v13810_v50 = vpack.c.bf16 %v7317_v26, %v7314_v24 }
 0x913   :  { %10474 = vmatpush1.bf16.msra.mxu1 %v13427_v43  ;;  %10505 = vmatpush3.bf16.msra.mxu0 %v13429_v46  ;;  %16237 = vst [vmem:[#allocation13_spill] sm:$0xff] %v13765_v42  ;;  %v13771_v32 = vpack.c.bf16 %v7306_v48, %v7303_v12  ;;  %v7307_v61 = vld [vmem:[%s16052_s13 + $0x270] sm:$0xff]  ;;  %v13783_v62 = vpack.c.bf16 %v7311_v40, %v7308_v56  ;;  %v7313_v44 = vld [vmem:[%s16052_s13 + $0x2a0] sm:$0xff]  ;;  %v7316_v12 = vld [vmem:[%s16052_s13 + $0x2b8] sm:$0xff] }
 0x914   :  { %10476 = vmatprep.subr.bf16.mxu1 %v13436_v45  ;;  %10506 = vmatprep.subr.bf16.mxu0 %v16192_v1  ;;  %16232 = vst [vmem:[#allocation8_spill] sm:$0xff] %v13715_v54  ;;  %16242 = vst [vmem:[#allocation18_spill] sm:$0xff] %v13810_v50  ;;  %v7315_v48 = vld [vmem:[%s16052_s13 + $0x2b0] sm:$0xff]  ;;  %v7318_v56 = vld [vmem:[%s16052_s13 + $0x2c8] sm:$0xff] }
 0x915   :  { %2996 = vmatprep.mubr.f32.mxu1 %v16197_v5  ;;  %9139 = vmatprep.mubr.msk.f32.mxu0 %vm11733_vm1, %v16197_v5  ;;  %16238 = vst [vmem:[#allocation14_spill] sm:$0xff] %v13771_v32  ;;  %16239 = vst [vmem:[#allocation15_spill] sm:$0xff] %v13783_v62  ;;  %v7320_v40 = vld [vmem:[%s16052_s13 + $0x2d8] sm:$0xff]  ;;  %v7319_v24 = vld [vmem:[%s16052_s13 + $0x2d0] sm:$0xff] }
 0x916   :  { %v7322_v26 = vld [vmem:[%s16052_s13 + $0x2e8] sm:$0xff] }
 0x917   :  { %10478 = vmatpush1.bf16.msra.mxu1 %v13457_v53  ;;  %10508 = vmatpush3.bf16.msra.mxu0 %v13459_v58 }
 0x918   :  { %10480 = vmatprep.subr.bf16.mxu1 %v13466_v63  ;;  %10509 = vmatprep.subr.bf16.mxu0 %v16192_v1 }
 0x91b   :  { %10482 = vmatpush1.bf16.msra.mxu1 %v13488_v30  ;;  %10511 = vmatpush3.bf16.msra.mxu0 %v13490_v31 }
 0x91c   :  { %10484 = vmatprep.subr.bf16.mxu1 %v13497_v15  ;;  %10512 = vmatprep.subr.bf16.mxu0 %v16192_v1 }
 0x91f   :  { %10486 = vmatpush1.bf16.msra.mxu1 %v13516_v3  ;;  %10514 = vmatpush3.bf16.msra.mxu0 %v13518_v29 }
 0x920   :  { %10488 = vmatprep.subr.bf16.mxu1 %v13525_v13  ;;  %10515 = vmatprep.subr.bf16.mxu0 %v16192_v1 }
 0x923   :  { %10490 = vmatpush1.bf16.msra.mxu1 %v13544_v25  ;;  %10517 = vmatpush3.bf16.msra.mxu0 %v13546_v6 }
 0x924   :  { %10492 = vmatprep.subr.bf16.mxu1 %v13553_v60  ;;  %10518 = vmatprep.subr.bf16.mxu0 %v16192_v1 }
 0x927   :  { %10494 = vmatpush1.bf16.msra.mxu1 %v13572_v34  ;;  %10520 = vmatpush3.bf16.msra.mxu0 %v13574_v21 }
 0x928   :  { %10496 = vmatprep.subr.bf16.mxu1 %v13581_v36  ;;  %10521 = vmatprep.subr.bf16.mxu0 %v16192_v1 }
 0x92b   :  { %10498 = vmatpush1.bf16.msra.mxu1 %v13600_v16  ;;  %10523 = vmatpush3.bf16.msra.mxu0 %v13602_v47 }
 0x92c   :  { %10500 = vmatprep.subr.bf16.mxu1 %v13609_v55  ;;  %10524 = vmatprep.subr.bf16.mxu0 %v16192_v1 }
 0x92f   :  { %10502 = vmatpush1.bf16.msra.mxu1 %v13622_v10  ;;  %10526 = vmatpush3.bf16.msra.mxu0 %v13624_v18 }
 0x930   :  { %10559 = vmatprep.subr.bf16.mxu0 %v16192_v1  ;;  %10528 = vmatprep.subr.bf16.mxu1 %v13642_v17 }
 0x932   :  { %2997 = vmatmul.mubr.f32.vlgmr.msra.gmra.mrb[22].mxu1 %v13364_v20  ;;  %9140 = vmatmul.mubr.f32.vlgmr.msra.gmra.mrb[24].mxu0 %v13364_v20  ;;  %v7280_v20 = vld [vmem:[%s16052_s13 + $0x198] sm:$0xff] }
 0x933   :  { %3237 = vmatprep.mubr.f32.mxu1 %v16197_v5  ;;  %9174 = vmatprep.mubr.msk.f32.mxu0 %vm11733_vm1, %v16197_v5  ;;  %v13653_v39 = vpack.c.bf16 %v7280_v20, %v7277_v22  ;;  %v7297_v22 = vld [vmem:[%s16052_s13 + $0x220] sm:$0xff]  ;;  %v13737_v20 = vpack.c.bf16 %v7298_v9, %v7295_v23  ;;  %v7312_v9 = vld [vmem:[%s16052_s13 + $0x298] sm:$0xff] }
 0x934   :  { %10561 = vmatpush3.bf16.msra.mxu0 %v13659_v7  ;;  %v13743_v52 = vpack.c.bf16 %v7300_v35, %v7297_v22  ;;  %v7309_v23 = vld [vmem:[%s16052_s13 + $0x280] sm:$0xff]  ;;  %v13795_v22 = vpack.c.bf16 %v7310_v0, %v7307_v61  ;;  %v7323_v61 = vld [vmem:[%s16052_s13 + $0x2f0] sm:$0xff]  ;;  %v13828_v0 = vpack.c.bf16 %v7316_v12, %v7313_v44  ;;  %v7324_v12 = vld [vmem:[%s16052_s13 + $0x2f8] sm:$0xff] }
 0x935   :  { %10530 = vmatpush1.bf16.msra.mxu1 %v13653_v39  ;;  %10562 = vmatprep.subr.bf16.mxu0 %v16192_v1  ;;  %16234 = vst [vmem:[#allocation10_spill] sm:$0xff] %v13737_v20  ;;  %v13797_v35 = vpack.c.bf16 %v7312_v9, %v7309_v23  ;;  %v13832_v23 = vpack.c.bf16 %v7318_v56, %v7315_v48  ;;  %v7321_v44 = vld [vmem:[%s16052_s13 + $0x2e0] sm:$0xff]  ;;  %v7327_v48 = vld [vmem:[%s16053_s14 + $0x188] sm:$0xff] }
 0x936   :  { %10532 = vmatprep.subr.bf16.mxu1 %v13669_v28  ;;  %16235 = vst [vmem:[#allocation11_spill] sm:$0xff] %v13743_v52  ;;  %16240 = vst [vmem:[#allocation16_spill] sm:$0xff] %v13795_v22  ;;  %v13834_v9 = vpack.c.bf16 %v7323_v61, %v7320_v40  ;;  %v7330_v56 = vld [vmem:[%s16053_s14 + $0x1a0] sm:$0xff]  ;;  %v13856_v40 = vpack.c.bf16 %v7322_v26, %v7319_v24  ;;  %v13860_v61 = vpack.c.bf16 %v7324_v12, %v7321_v44 }
 0x937   :  { %16241 = vst [vmem:[#allocation17_spill] sm:$0xff] %v13797_v35  ;;  %16243 = vst [vmem:[#allocation4_spill] sm:$0xff] %v13828_v0  ;;  %v7223_v44 = vld [vmem:[%s16054_s15 + $0x3] sm:$0x7] }
 0x938   :  { %10564 = vmatpush3.bf16.msra.mxu0 %v13687_v49  ;;  %16244 = vst [vmem:[#allocation5_spill] sm:$0xff] %v13832_v23  ;;  %16245 = vst [vmem:[#allocation19_spill] sm:$0xff] %v13834_v9  ;;  %v2483_v12 = vrot.slane %v7223_v44, %v16219_v4 }
 0x939   :  { %10534 = vmatpush1.bf16.msra.mxu1 %v13681_v59  ;;  %10565 = vmatprep.subr.bf16.mxu0 %v16192_v1  ;;  %16246 = vst [vmem:[#allocation20_spill] sm:$0xff] %v13856_v40  ;;  %16247 = vst [vmem:[#allocation21_spill] sm:$0xff] %v13860_v61 }
 0x93a   :  { %10536 = vmatprep.subr.bf16.mxu1 %v13697_v27 }
 0x93c   :  { %10567 = vmatpush3.bf16.msra.mxu0 %v13715_v54  ;;  %v2491_v54 = vrot.slane %v7223_v44, %v12743_v41 }
 0x93d   :  { %10538 = vmatpush1.bf16.msra.mxu1 %v13709_v38  ;;  %10568 = vmatprep.subr.bf16.mxu0 %v16192_v1 }
 0x93e   :  { %10540 = vmatprep.subr.bf16.mxu1 %v13725_v8 }
 0x940   :  { %10570 = vmatpush3.bf16.msra.mxu0 %v13743_v52 }
 0x941   :  { %10542 = vmatpush1.bf16.msra.mxu1 %v13737_v20  ;;  %10571 = vmatprep.subr.bf16.mxu0 %v16192_v1 }
 0x942   :  { %10544 = vmatprep.subr.bf16.mxu1 %v13753_v37 }
 0x944   :  { %10573 = vmatpush3.bf16.msra.mxu0 %v13771_v32 }
 0x945   :  { %10546 = vmatpush1.bf16.msra.mxu1 %v13765_v42  ;;  %10574 = vmatprep.subr.bf16.mxu0 %v16192_v1 }
 0x946   :  { %10548 = vmatprep.subr.bf16.mxu1 %v13783_v62 }
 0x948   :  { %10576 = vmatpush3.bf16.msra.mxu0 %v13797_v35 }
 0x949   :  { %10550 = vmatpush1.bf16.msra.mxu1 %v13795_v22  ;;  %10577 = vmatprep.subr.bf16.mxu0 %v16192_v1 }
 0x94a   :  { %10552 = vmatprep.subr.bf16.mxu1 %v13810_v50  ;;  %v13862_v50 = vpack.c.bf16 %v7330_v56, %v7327_v48  ;;  %v2487_v56 = vrot.slane %v7223_v44, %v16220_v14 }
 0x94c   :  { %10579 = vmatpush3.bf16.msra.mxu0 %v13832_v23  ;;  %16248 = vst [vmem:[#allocation22_spill] sm:$0xff] %v13862_v50 }
 0x94d   :  { %10554 = vmatpush1.bf16.msra.mxu1 %v13828_v0  ;;  %10580 = vmatprep.subr.bf16.mxu0 %v16192_v1 }
 0x94e   :  { %10556 = vmatprep.subr.bf16.mxu1 %v13834_v9  ;;  %v7272_v9 = vld [vmem:[%s16056_s16 + $0x3] sm:$0x7] }
 0x94f   :  { %v2692_v48 = vrot.slane %v7272_v9, %v16219_v4  ;;  %v2700_v8 = vrot.slane %v7272_v9, %v12743_v41 }
 0x950   :  { %10582 = vmatpush3.bf16.msra.mxu0 %v13860_v61 }
 0x951   :  { %10558 = vmatpush1.bf16.msra.mxu1 %v13856_v40  ;;  %10615 = vmatprep.subr.bf16.mxu0 %v16192_v1  ;;  %v11515_v61 = vadd.f32 %v2692_v48, %v2483_v12 }
 0x952   :  { %10584 = vmatprep.subr.bf16.mxu1 %v13862_v50  ;;  %v2696_v50 = vrot.slane %v7272_v9, %v16220_v14 }
 0x9c5   :  { %v2635_v24 = vpop.f32.mrb[20].mxu0 }
 0x9c6   :  { %v9071_v26 = vpop.f32.mrb[21].mxu0 }
 0x9c7   :  { %v11517_v26 = vadd.f32 %v2696_v50, %v2487_v56  ;;  %v2915_v50 = vld [vmem:[%s16056_s16] sm:$0x7] }
 0x9e5   :  { %v2770_v40 = vpop.f32.mrb[20].mxu1  ;;  %v2841_v23 = vpop.f32.mrb[22].mxu0 }
 0x9e6   :  { %v11516_v0 = vadd.f32 %v11515_v61, %v2770_v40  ;;  %v2772_v35 = vpop.f32.mrb[21].mxu1  ;;  %v9106_v22 = vpop.f32.mrb[23].mxu0  ;;  %v2842_v40 = vadd.f32 %v2841_v23, %v2700_v8 }
 0x9e7   :  { %v11518_v32 = vadd.f32 %v11517_v26, %v2772_v35 }
 0x9e8   :  { %v7273_v62 = vmul.f32 -1.442695, %v11516_v0  ;;  %v2636_v0 = vadd.f32 %v2635_v24, %v2491_v54 }
 0x9e9   :  { %v7274_v42 = vmul.f32 -1.442695, %v11518_v32 }
 0x9ea   :  { %11602 = vpow2.f32 %v7273_v62 }
 0x9eb   :  { %11604 = vpow2.f32 %v7274_v42  ;;  %v2920_v42 = vrot.slane %v2915_v50, %v16219_v4 }
 0x9f4   :  { %v11603_v37 = vpop.eup %11602 }
 0x9f5   :  { %v2849_v52 = vadd.f32 1.0, %v11603_v37  ;;  %v11605_v20 = vpop.eup %11604  ;;  %v2924_v37 = vrot.slane %v2915_v50, %v16220_v14 }
 0x9f6   :  { %v2856_v12 = vadd.f32 1.0, %v11605_v20 }
 0x9f7   :  { %11606 = vrcp.f32 %v2849_v52 }
 0x9f8   :  { %11608 = vrcp.f32 %v2856_v12 }
 0xa01   :  { %v11607_v22 = vpop.eup %11606 }
 0xa02   :  { %v2859_v35 = vmul.f32 %v11607_v22, %v2842_v40  ;;  %v11609_v23 = vpop.eup %11608 }
 0xa03   :  { %v2862_v12 = vsub.f32 1.0, %v11609_v23 }
 0xa04   :  { %v2860_v52 = vadd.f32 %v2859_v35, %v2636_v0  ;;  %v2864_v0 = vmul.f32 %v11609_v23, %v13355_v19 }
 0xa05   :  { %v2998_v32 = vpop.f32.mrb[22].mxu1  ;;  %v3069_v62 = vpop.f32.mrb[24].mxu0 }
 0xa06   :  { %11610 = vtanh.f32 %v2860_v52  ;;  %v2999_v9 = vadd.f32 %v2998_v32, %v2920_v42  ;;  %v3000_v61 = vpop.f32.mrb[23].mxu1  ;;  %v9141_v20 = vpop.f32.mrb[25].mxu0 }
 0xa07   :  { %v3001_v44 = vadd.f32 %v3000_v61, %v2924_v37 }
 0xa08   :  { %v3074_v48 = vrot.slane %v2999_v9, 4  ;;  %v2928_v9 = vrot.slane %v2915_v50, %v12743_v41  ;;  %v7329_v50 = vld [vmem:[%s16053_s14 + $0x198] sm:$0xff] }
 0xa09   :  { %v3084_v56 = vrot.slane %v3001_v44, 4 }
 0xa0a   :  { %v3076_v8 = vadd.f32 %v3074_v48, %v13023_v57  ;;  %v3070_v61 = vadd.f32 %v3069_v62, %v2928_v9  ;;  %v3101_v48 = vrot.slane %v13361_v51, 6  ;;  %v7328_v51 = vld [vmem:[%s16053_s14 + $0x190] sm:$0xff]  ;;  %v7331_v62 = vld [vmem:[%s16053_s14 + $0x1a8] sm:$0xff] }
 0xa0b   :  { %v3086_v54 = vadd.f32 %v3084_v56, %v13028_v2 }
 0xa0c   :  { %v7275_v24 = vmul.f32 -1.442695, %v3076_v8  ;;  %v3094_v20 = vrot.slane %v3070_v61, 4  ;;  %v7335_v61 = vld [vmem:[%s16053_s14 + $0x1c8] sm:$0xff] }
 0xa0d   :  { %v7276_v26 = vmul.f32 -1.442695, %v3086_v54 }
 0xa0e   :  { %11612 = vpow2.f32 %v7275_v24 }
 0xa0f   :  { %11614 = vpow2.f32 %v7276_v26  ;;  %v7326_v26 = vld [vmem:[%s16053_s14 + $0x180] sm:$0xff] }
 0xa10   :  { %v11611_v40 = vpop.eup %11610 }
 0xa11   :  { %v2863_v22 = vmul.f32 %v11611_v40, %v2862_v12  ;;  %v7333_v40 = vld [vmem:[%s16053_s14 + $0x1b8] sm:$0xff] }
 0xa13   :  { %v13889_v35 = vadd.f32 %v2864_v0, %v2863_v22  ;;  %v7336_v22 = vld [vmem:[%s16053_s14 + $0x1d0] sm:$0xff] }
 0xa14   :  { %v13925_v9 = vpack.c.bf16 %v7336_v22, %v7333_v40  ;;  %v7344_v22 = vld [vmem:[%s16053_s14 + $0x210] sm:$0xff] }
 0xa15   :  { %2866 = vst [vmem:[#allocation2 + $0x2] sm:$0x3] %v13889_v35 }
 0xa18   :  { %v11613_v42 = vpop.eup %11612 }
 0xa19   :  { %v11615_v37 = vpop.eup %11614  ;;  %v3080_v52 = vadd.f32 1.0, %v11613_v42  ;;  %v13915_v42 = vpack.c.bf16 %v7329_v50, %v7326_v26  ;;  %v7340_v26 = vld [vmem:[%s16053_s14 + $0x1f0] sm:$0xff]  ;;  %v7345_v50 = vld [vmem:[%s16053_s14 + $0x218] sm:$0xff] }
 0xa1a   :  { %v3090_v32 = vadd.f32 1.0, %v11615_v37  ;;  %v13917_v37 = vpack.c.bf16 %v7331_v62, %v7328_v51  ;;  %v7348_v51 = vld [vmem:[%s16053_s14 + $0x230] sm:$0xff] }
 0xa1b   :  { %11616 = vrcp.f32 %v3080_v52  ;;  %v7332_v52 = vld [vmem:[%s16053_s14 + $0x1b0] sm:$0xff] }
 0xa1c   :  { %11618 = vrcp.f32 %v3090_v32 }
 0xa25   :  { %v11617_v44 = vpop.eup %11616 }
 0xa26   :  { %v11619_v56 = vpop.eup %11618  ;;  %v3096_v8 = vmul.f32 %v11617_v44, %v3094_v20  ;;  %v7334_v20 = vld [vmem:[%s16053_s14 + $0x1c0] sm:$0xff]  ;;  %v7337_v44 = vld [vmem:[%s16053_s14 + $0x1d8] sm:$0xff] }
 0xa27   :  { %v3103_v19 = vmul.f32 %v11619_v56, %v3101_v48  ;;  %v3099_v23 = vsub.f32 1.0, %v11619_v56  ;;  %v7339_v48 = vld [vmem:[%s16053_s14 + $0x1e8] sm:$0xff]  ;;  %v7342_v56 = vld [vmem:[%s16053_s14 + $0x200] sm:$0xff] }
 0xa28   :  { %v3097_v54 = vadd.f32 %v3096_v8, %v13034_v33  ;;  %v13946_v8 = vpack.c.bf16 %v7335_v61, %v7332_v52  ;;  %v13986_v52 = vpack.c.bf16 %v7348_v51, %v7345_v50  ;;  %v7347_v61 = vld [vmem:[%s16053_s14 + $0x228] sm:$0xff]  ;;  %v7353_v50 = vld [vmem:[%s16053_s14 + $0x258] sm:$0xff]  ;;  %v7352_v51 = vld [vmem:[%s16053_s14 + $0x250] sm:$0xff] }
 0xa2a   :  { %11620 = vtanh.f32 %v3097_v54  ;;  %v7338_v54 = vld [vmem:[%s16053_s14 + $0x1e0] sm:$0xff]  ;;  %16249 = vst [vmem:[#allocation23_spill] sm:$0xff] %v13986_v52 }
 0xa34   :  { %v11621_v24 = vpop.eup %11620 }
 0xa35   :  { %v3100_v12 = vmul.f32 %v11621_v24, %v3099_v23  ;;  %v13955_v23 = vpack.c.bf16 %v7342_v56, %v7339_v48  ;;  %v7341_v24 = vld [vmem:[%s16053_s14 + $0x1f8] sm:$0xff]  ;;  %v7351_v48 = vld [vmem:[%s16053_s14 + $0x248] sm:$0xff]  ;;  %v7354_v56 = vld [vmem:[%s16053_s14 + $0x260] sm:$0xff] }
 0xa36   :  { %v13977_v62 = vpack.c.bf16 %v7341_v24, %v7338_v54  ;;  %v14005_v54 = vpack.c.bf16 %v7347_v61, %v7344_v22  ;;  %v7355_v22 = vld [vmem:[%s16053_s14 + $0x268] sm:$0xff]  ;;  %v7357_v61 = vld [vmem:[%s16053_s14 + $0x278] sm:$0xff] }
 0xa37   :  { %v13913_v0 = vadd.f32 %v3103_v19, %v3100_v12  ;;  %v13948_v19 = vpack.c.bf16 %v7337_v44, %v7334_v20  ;;  %v7343_v12 = vld [vmem:[%s16053_s14 + $0x208] sm:$0xff]  ;;  %v7346_v20 = vld [vmem:[%s16053_s14 + $0x220] sm:$0xff]  ;;  %v7349_v44 = vld [vmem:[%s16053_s14 + $0x238] sm:$0xff] }
 0xa38   :  { %v13979_v40 = vpack.c.bf16 %v7343_v12, %v7340_v26  ;;  %16250 = vst [vmem:[#allocation24_spill] sm:$0xff] %v14005_v54  ;;  %v14007_v24 = vpack.c.bf16 %v7349_v44, %v7346_v20  ;;  %v7350_v26 = vld [vmem:[%s16053_s14 + $0x240] sm:$0xff]  ;;  %v14014_v12 = vpack.c.bf16 %v7354_v56, %v7351_v48  ;;  %v7360_v20 = vld [vmem:[%s16053_s14 + $0x290] sm:$0xff]  ;;  %v14035_v48 = vpack.c.bf16 %v7355_v22, %v7352_v51  ;;  %v7363_v51 = vld [vmem:[%s16053_s14 + $0x2a8] sm:$0xff] }
 0xa39   :  { %v13923_v32 = vrot.slane %v13913_v0, 4  ;;  %v14033_v44 = vpack.c.bf16 %v7353_v50, %v7350_v26  ;;  %v7356_v56 = vld [vmem:[%s16053_s14 + $0x270] sm:$0xff]  ;;  %v7358_v26 = vld [vmem:[%s16053_s14 + $0x280] sm:$0xff]  ;;  %v7361_v50 = vld [vmem:[%s16053_s14 + $0x298] sm:$0xff] }
 0xa3a   :  { %16251 = vst [vmem:[#allocation25_spill] sm:$0xff] %v14007_v24  ;;  %16252 = vst [vmem:[#allocation26_spill] sm:$0xff] %v14014_v12  ;;  %v7366_v22 = vld [vmem:[%s16053_s14 + $0x2c0] sm:$0xff] }
 0xa3b   :  { %3238 = vmatmul.mubr.f32.vlgmr.msra.gmra.mrb[24].mxu1 %v13923_v32  ;;  %9175 = vmatmul.mubr.f32.vlgmr.msra.gmra.mrb[26].mxu0 %v13923_v32  ;;  %16253 = vst [vmem:[#allocation27_spill] sm:$0xff] %v14033_v44  ;;  %16254 = vst [vmem:[#allocation28_spill] sm:$0xff] %v14035_v48 }
 0xa3c   :  { %10586 = vmatpush1.bf16.msra.mxu1 %v13915_v42  ;;  %10617 = vmatpush3.bf16.msra.mxu0 %v13917_v37 }
 0xa3d   :  { %10588 = vmatprep.subr.bf16.mxu1 %v13925_v9  ;;  %10618 = vmatprep.subr.bf16.mxu0 %v16192_v1 }
 0xa3e   :  { %3443 = vmatprep.mubr.f32.mxu1 %v16197_v5  ;;  %9209 = vmatprep.mubr.msk.f32.mxu0 %vm11733_vm1, %v16197_v5 }
 0xa40   :  { %10590 = vmatpush1.bf16.msra.mxu1 %v13946_v8  ;;  %10620 = vmatpush3.bf16.msra.mxu0 %v13948_v19 }
 0xa41   :  { %10592 = vmatprep.subr.bf16.mxu1 %v13955_v23  ;;  %10621 = vmatprep.subr.bf16.mxu0 %v16192_v1 }
 0xa44   :  { %10594 = vmatpush1.bf16.msra.mxu1 %v13977_v62  ;;  %10623 = vmatpush3.bf16.msra.mxu0 %v13979_v40 }
 0xa45   :  { %10596 = vmatprep.subr.bf16.mxu1 %v13986_v52  ;;  %10624 = vmatprep.subr.bf16.mxu0 %v16192_v1  ;;  %v14042_v52 = vpack.c.bf16 %v7360_v20, %v7357_v61  ;;  %v14063_v20 = vpack.c.bf16 %v7361_v50, %v7358_v26  ;;  %v7369_v26 = vld [vmem:[%s16053_s14 + $0x2d8] sm:$0xff]  ;;  %v7372_v50 = vld [vmem:[%s16053_s14 + $0x2f0] sm:$0xff] }
 0xa47   :  { %16255 = vst [vmem:[#allocation29_spill] sm:$0xff] %v14042_v52 }
 0xa48   :  { %10598 = vmatpush1.bf16.msra.mxu1 %v14005_v54  ;;  %10626 = vmatpush3.bf16.msra.mxu0 %v14007_v24  ;;  %v7359_v54 = vld [vmem:[%s16053_s14 + $0x288] sm:$0xff]  ;;  %v14070_v24 = vpack.c.bf16 %v7366_v22, %v7363_v51 }
 0xa49   :  { %10600 = vmatprep.subr.bf16.mxu1 %v14014_v12  ;;  %10627 = vmatprep.subr.bf16.mxu0 %v16192_v1  ;;  %v14061_v61 = vpack.c.bf16 %v7359_v54, %v7356_v56  ;;  %v7362_v12 = vld [vmem:[%s16053_s14 + $0x2a0] sm:$0xff]  ;;  %v7364_v54 = vld [vmem:[%s16053_s14 + $0x2b0] sm:$0xff]  ;;  %v7367_v56 = vld [vmem:[%s16053_s14 + $0x2c8] sm:$0xff] }
 0xa4a   :  { %v14091_v22 = vpack.c.bf16 %v7367_v56, %v7364_v54 }
 0xa4b   :  { %16256 = vst [vmem:[#allocation30_spill] sm:$0xff] %v14061_v61 }
 0xa4c   :  { %10602 = vmatpush1.bf16.msra.mxu1 %v14033_v44  ;;  %10629 = vmatpush3.bf16.msra.mxu0 %v14035_v48  ;;  %v7365_v44 = vld [vmem:[%s16053_s14 + $0x2b8] sm:$0xff]  ;;  %v14098_v48 = vpack.c.bf16 %v7372_v50, %v7369_v26 }
 0xa4d   :  { %10604 = vmatprep.subr.bf16.mxu1 %v14042_v52  ;;  %10630 = vmatprep.subr.bf16.mxu0 %v16192_v1  ;;  %v14089_v51 = vpack.c.bf16 %v7365_v44, %v7362_v12  ;;  %v7368_v52 = vld [vmem:[%s16053_s14 + $0x2d0] sm:$0xff]  ;;  %v7370_v12 = vld [vmem:[%s16053_s14 + $0x2e0] sm:$0xff]  ;;  %v7373_v44 = vld [vmem:[%s16053_s14 + $0x2f8] sm:$0xff] }
 0xa4e   :  { %v14113_v56 = vpack.c.bf16 %v7373_v44, %v7370_v12 }
 0xa50   :  { %10606 = vmatpush1.bf16.msra.mxu1 %v14061_v61  ;;  %10632 = vmatpush3.bf16.msra.mxu0 %v14063_v20  ;;  %v7371_v61 = vld [vmem:[%s16053_s14 + $0x2e8] sm:$0xff] }
 0xa51   :  { %10608 = vmatprep.subr.bf16.mxu1 %v14070_v24  ;;  %10633 = vmatprep.subr.bf16.mxu0 %v16192_v1  ;;  %v14111_v54 = vpack.c.bf16 %v7371_v61, %v7368_v52 }
 0xa54   :  { %10610 = vmatpush1.bf16.msra.mxu1 %v14089_v51  ;;  %10635 = vmatpush3.bf16.msra.mxu0 %v14091_v22 }
 0xa55   :  { %10612 = vmatprep.subr.bf16.mxu1 %v14098_v48  ;;  %10636 = vmatprep.subr.bf16.mxu0 %v16192_v1 }
 0xa58   :  { %10614 = vmatpush1.bf16.msra.mxu1 %v14111_v54  ;;  %10638 = vmatpush3.bf16.msra.mxu0 %v14113_v56 }
 0xa59   :  { %10640 = vmatprep.subr.bf16.mxu1 %v13408_v11  ;;  %10671 = vmatprep.subr.bf16.mxu0 %v16192_v1  ;;  %v16257_v11 = vld [vmem:[#allocation8_spill] sm:$0xff] }
 0xa5b   :  { %3444 = vmatmul.mubr.f32.vlgmr.msra.gmra.mrb[24].mxu1 %v13889_v35  ;;  %9210 = vmatmul.mubr.f32.vlgmr.msra.gmra.mrb[28].mxu0 %v13889_v35 }
 0xa5c   :  { %10642 = vmatpush1.bf16.msra.mxu1 %v13427_v43  ;;  %10673 = vmatpush3.bf16.msra.mxu0 %v13429_v46  ;;  %v16258_v43 = vld [vmem:[#allocation9_spill] sm:$0xff]  ;;  %v16259_v46 = vld [vmem:[#allocation10_spill] sm:$0xff] }
 0xa5d   :  { %10644 = vmatprep.subr.bf16.mxu1 %v13436_v45  ;;  %10674 = vmatprep.subr.bf16.mxu0 %v16192_v1  ;;  %v16260_v45 = vld [vmem:[#allocation11_spill] sm:$0xff] }
 0xa5e   :  { %3671 = vmatprep.mubr.f32.mxu1 %v16197_v5  ;;  %9244 = vmatprep.mubr.msk.f32.mxu0 %vm11733_vm1, %v16197_v5 }
 0xa60   :  { %10646 = vmatpush1.bf16.msra.mxu1 %v13457_v53  ;;  %10676 = vmatpush3.bf16.msra.mxu0 %v13459_v58  ;;  %v16261_v53 = vld [vmem:[#allocation12_spill] sm:$0xff]  ;;  %v16262_v58 = vld [vmem:[#allocation13_spill] sm:$0xff] }
 0xa61   :  { %10648 = vmatprep.subr.bf16.mxu1 %v13466_v63  ;;  %10677 = vmatprep.subr.bf16.mxu0 %v16192_v1  ;;  %v16263_v63 = vld [vmem:[#allocation14_spill] sm:$0xff] }
 0xa64   :  { %10650 = vmatpush1.bf16.msra.mxu1 %v13488_v30  ;;  %10679 = vmatpush3.bf16.msra.mxu0 %v13490_v31  ;;  %v16264_v30 = vld [vmem:[#allocation15_spill] sm:$0xff]  ;;  %v16265_v31 = vld [vmem:[#allocation16_spill] sm:$0xff] }
 0xa65   :  { %10652 = vmatprep.subr.bf16.mxu1 %v13497_v15  ;;  %10680 = vmatprep.subr.bf16.mxu0 %v16192_v1  ;;  %v16266_v15 = vld [vmem:[#allocation17_spill] sm:$0xff] }
 0xa68   :  { %10654 = vmatpush1.bf16.msra.mxu1 %v13516_v3  ;;  %10682 = vmatpush3.bf16.msra.mxu0 %v13518_v29  ;;  %v16267_v3 = vld [vmem:[#allocation18_spill] sm:$0xff]  ;;  %v16268_v29 = vld [vmem:[#allocation4_spill] sm:$0xff] }
 0xa69   :  { %10656 = vmatprep.subr.bf16.mxu1 %v13525_v13  ;;  %10683 = vmatprep.subr.bf16.mxu0 %v16192_v1  ;;  %v16269_v13 = vld [vmem:[#allocation5_spill] sm:$0xff] }
 0xa6c   :  { %10658 = vmatpush1.bf16.msra.mxu1 %v13544_v25  ;;  %10685 = vmatpush3.bf16.msra.mxu0 %v13546_v6  ;;  %v16270_v25 = vld [vmem:[#allocation19_spill] sm:$0xff]  ;;  %v16271_v6 = vld [vmem:[#allocation20_spill] sm:$0xff] }
 0xa6d   :  { %10660 = vmatprep.subr.bf16.mxu1 %v13553_v60  ;;  %10686 = vmatprep.subr.bf16.mxu0 %v16192_v1  ;;  %v16272_v60 = vld [vmem:[#allocation21_spill] sm:$0xff] }
 0xa70   :  { %10662 = vmatpush1.bf16.msra.mxu1 %v13572_v34  ;;  %10688 = vmatpush3.bf16.msra.mxu0 %v13574_v21  ;;  %v16273_v34 = vld [vmem:[#allocation22_spill] sm:$0xff] }
 0xa71   :  { %10664 = vmatprep.subr.bf16.mxu1 %v13581_v36  ;;  %10689 = vmatprep.subr.bf16.mxu0 %v16192_v1 }
 0xa74   :  { %10666 = vmatpush1.bf16.msra.mxu1 %v13600_v16  ;;  %10691 = vmatpush3.bf16.msra.mxu0 %v13602_v47  ;;  %v7374_v16 = vld [vmem:[%s16056_s16 + $0x3] sm:$0x7] }
 0xa75   :  { %10668 = vmatprep.subr.bf16.mxu1 %v13609_v55  ;;  %10692 = vmatprep.subr.bf16.mxu0 %v16192_v1  ;;  %v7325_v47 = vld [vmem:[%s16054_s15 + $0x3] sm:$0x7]  ;;  %v3375_v44 = vrot.slane %v7374_v16, %v12743_v41 }
 0xa76   :  { %v3158_v55 = vrot.slane %v7325_v47, %v16219_v4 }
 0xa78   :  { %10670 = vmatpush1.bf16.msra.mxu1 %v13622_v10  ;;  %10694 = vmatpush3.bf16.msra.mxu0 %v13624_v18  ;;  %v3367_v10 = vrot.slane %v7374_v16, %v16219_v4  ;;  %v3162_v18 = vrot.slane %v7325_v47, %v16220_v14 }
 0xa79   :  { %10696 = vmatprep.subr.bf16.mxu1 %v13642_v17  ;;  %10727 = vmatprep.subr.bf16.mxu0 %v16192_v1  ;;  %v3371_v17 = vrot.slane %v7374_v16, %v16220_v14 }
 0xa7b   :  { %3672 = vmatmul.mubr.f32.vlgmr.msra.gmra.mrb[26].mxu1 %v13923_v32  ;;  %9245 = vmatmul.mubr.f32.vlgmr.msra.gmra.mrb[30].mxu0 %v13923_v32 }
 0xa7c   :  { %10698 = vmatpush1.bf16.msra.mxu1 %v13653_v39  ;;  %10729 = vmatpush3.bf16.msra.mxu0 %v13659_v7  ;;  %v11519_v39 = vadd.f32 %v3367_v10, %v3158_v55 }
 0xa7d   :  { %10700 = vmatprep.subr.bf16.mxu1 %v13669_v28  ;;  %10730 = vmatprep.subr.bf16.mxu0 %v16192_v1 }
 0xa7e   :  { %3912 = vmatprep.mubr.f32.mxu1 %v16197_v5  ;;  %9279 = vmatprep.mubr.msk.f32.mxu0 %vm11733_vm1, %v16197_v5 }
 0xa80   :  { %10702 = vmatpush1.bf16.msra.mxu1 %v13681_v59  ;;  %10732 = vmatpush3.bf16.msra.mxu0 %v13687_v49  ;;  %v11521_v59 = vadd.f32 %v3371_v17, %v3162_v18 }
 0xa81   :  { %10704 = vmatprep.subr.bf16.mxu1 %v13697_v27  ;;  %10733 = vmatprep.subr.bf16.mxu0 %v16192_v1 }
 0xa84   :  { %10706 = vmatpush1.bf16.msra.mxu1 %v13709_v38  ;;  %10735 = vmatpush3.bf16.msra.mxu0 %v16257_v11  ;;  %v3166_v11 = vrot.slane %v7325_v47, %v12743_v41 }
 0xa85   :  { %10708 = vmatprep.subr.bf16.mxu1 %v16258_v43  ;;  %10736 = vmatprep.subr.bf16.mxu0 %v16192_v1 }
 0xa88   :  { %10710 = vmatpush1.bf16.msra.mxu1 %v16259_v46  ;;  %10738 = vmatpush3.bf16.msra.mxu0 %v16260_v45  ;;  %v3590_v46 = vld [vmem:[%s16056_s16] sm:$0x7] }
 0xa89   :  { %10712 = vmatprep.subr.bf16.mxu1 %v16261_v53  ;;  %10739 = vmatprep.subr.bf16.mxu0 %v16192_v1 }
 0xa8c   :  { %10714 = vmatpush1.bf16.msra.mxu1 %v16262_v58  ;;  %10741 = vmatpush3.bf16.msra.mxu0 %v16263_v63 }
 0xa8d   :  { %10716 = vmatprep.subr.bf16.mxu1 %v16264_v30  ;;  %10742 = vmatprep.subr.bf16.mxu0 %v16192_v1  ;;  %v3595_v30 = vrot.slane %v3590_v46, %v16219_v4 }
 0xa90   :  { %10718 = vmatpush1.bf16.msra.mxu1 %v16265_v31  ;;  %10744 = vmatpush3.bf16.msra.mxu0 %v16266_v15  ;;  %v3599_v31 = vrot.slane %v3590_v46, %v16220_v14 }
 0xa91   :  { %10720 = vmatprep.subr.bf16.mxu1 %v16267_v3  ;;  %10745 = vmatprep.subr.bf16.mxu0 %v16192_v1 }
 0xa94   :  { %10722 = vmatpush1.bf16.msra.mxu1 %v16268_v29  ;;  %10747 = vmatpush3.bf16.msra.mxu0 %v16269_v13 }
 0xa95   :  { %10724 = vmatprep.subr.bf16.mxu1 %v16270_v25  ;;  %10748 = vmatprep.subr.bf16.mxu0 %v16192_v1 }
 0xa98   :  { %10726 = vmatpush1.bf16.msra.mxu1 %v16271_v6  ;;  %10750 = vmatpush3.bf16.msra.mxu0 %v16272_v60 }
 0xa99   :  { %10752 = vmatprep.subr.bf16.mxu1 %v16273_v34  ;;  %10783 = vmatprep.subr.bf16.mxu0 %v16192_v1 }
 0xb0e   :  { %v3310_v21 = vpop.f32.mrb[26].mxu0 }
 0xb0f   :  { %v9176_v36 = vpop.f32.mrb[27].mxu0  ;;  %v3311_v58 = vadd.f32 %v3310_v21, %v3166_v11 }
 0xb2e   :  { %v3445_v7 = vpop.f32.mrb[24].mxu1  ;;  %v3516_v28 = vpop.f32.mrb[28].mxu0 }
 0xb2f   :  { %v11520_v49 = vadd.f32 %v11519_v39, %v3445_v7  ;;  %v3447_v27 = vpop.f32.mrb[25].mxu1  ;;  %v9211_v38 = vpop.f32.mrb[29].mxu0  ;;  %v3517_v45 = vadd.f32 %v3516_v28, %v3375_v44 }
 0xb30   :  { %v11522_v52 = vadd.f32 %v11521_v59, %v3447_v27 }
 0xb31   :  { %v7375_v32 = vmul.f32 -1.442695, %v11520_v49 }
 0xb32   :  { %v7376_v61 = vmul.f32 -1.442695, %v11522_v52 }
 0xb33   :  { %11622 = vpow2.f32 %v7375_v32 }
 0xb34   :  { %11624 = vpow2.f32 %v7376_v61  ;;  %v3776_v61 = vrot.slane %v13913_v0, 6  ;;  %v16275_v0 = vld [vmem:[#allocation24_spill] sm:$0xff] }
 0xb3d   :  { %v11623_v26 = vpop.eup %11622 }
 0xb3e   :  { %v3524_v50 = vadd.f32 1.0, %v11623_v26  ;;  %v11625_v12 = vpop.eup %11624 }
 0xb3f   :  { %v3531_v43 = vadd.f32 1.0, %v11625_v12 }
 0xb40   :  { %11626 = vrcp.f32 %v3524_v50 }
 0xb41   :  { %11628 = vrcp.f32 %v3531_v43 }
 0xb4a   :  { %v11627_v53 = vpop.eup %11626 }
 0xb4b   :  { %v3534_v63 = vmul.f32 %v11627_v53, %v3517_v45  ;;  %v11629_v47 = vpop.eup %11628 }
 0xb4c   :  { %v3537_v18 = vsub.f32 1.0, %v11629_v47  ;;  %v3539_v7 = vmul.f32 %v11629_v47, %v13889_v35  ;;  %v4236_v47 = vld [vmem:[%s16053_s14 + $0x98] sm:$0xff] }
 0xb4d   :  { %v3535_v15 = vadd.f32 %v3534_v63, %v3311_v58  ;;  %v4227_v58 = vld [vmem:[%s16053_s14 + $0x50] sm:$0xff] }
 0xb4e   :  { %v3673_v3 = vpop.f32.mrb[26].mxu1  ;;  %v3744_v29 = vpop.f32.mrb[30].mxu0 }
 0xb4f   :  { %11630 = vtanh.f32 %v3535_v15  ;;  %v3674_v13 = vadd.f32 %v3673_v3, %v3595_v30  ;;  %v3675_v25 = vpop.f32.mrb[27].mxu1  ;;  %v9246_v6 = vpop.f32.mrb[31].mxu0  ;;  %v4228_v3 = vld [vmem:[%s16053_s14 + $0x58] sm:$0xff] }
 0xb50   :  { %v3676_v60 = vadd.f32 %v3675_v25, %v3599_v31  ;;  %v4223_v31 = vld [vmem:[%s16053_s14 + $0x30] sm:$0xff] }
 0xb51   :  { %v3749_v34 = vrot.slane %v3674_v13, 2  ;;  %v4233_v13 = vld [vmem:[%s16053_s14 + $0x80] sm:$0xff] }
 0xb52   :  { %v3759_v36 = vrot.slane %v3676_v60, 2  ;;  %v4229_v60 = vld [vmem:[%s16053_s14 + $0x60] sm:$0xff] }
 0xb53   :  { %v3751_v16 = vadd.f32 %v3749_v34, %v13023_v57 }
 0xb54   :  { %v3761_v21 = vadd.f32 %v3759_v36, %v13028_v2  ;;  %v3603_v2 = vrot.slane %v3590_v46, %v12743_v41  ;;  %v4220_v46 = vld [vmem:[%s16053_s14 + $0x18] sm:$0xff] }
 0xb55   :  { %v7377_v55 = vmul.f32 -1.442695, %v3751_v16  ;;  %v4232_v36 = vld [vmem:[%s16053_s14 + $0x78] sm:$0xff]  ;;  %v4231_v16 = vld [vmem:[%s16053_s14 + $0x70] sm:$0xff] }
 0xb56   :  { %v7378_v10 = vmul.f32 -1.442695, %v3761_v21  ;;  %v3745_v38 = vadd.f32 %v3744_v29, %v3603_v2  ;;  %v4230_v29 = vld [vmem:[%s16053_s14 + $0x68] sm:$0xff] }
 0xb57   :  { %11632 = vpow2.f32 %v7377_v55  ;;  %v14323_v34 = vpack.c.bf16 %v4233_v13, %v4230_v29  ;;  %v4234_v21 = vld [vmem:[%s16053_s14 + $0x88] sm:$0xff]  ;;  %v4239_v55 = vld [vmem:[%s16053_s14 + $0xb0] sm:$0xff]  ;;  %v4264_v29 = vld [vmem:[%s16053_s14 + $0x178] sm:$0xff] }
 0xb58   :  { %11634 = vpow2.f32 %v7378_v10  ;;  %v3769_v32 = vrot.slane %v3745_v38, 2  ;;  %v14345_v10 = vpack.c.bf16 %v4232_v36, %v4229_v60  ;;  %v7482_v36 = vld [vmem:[%s16052_s13 + $0x188] sm:$0xff] }
 0xb59   :  { %v11631_v17 = vpop.eup %11630 }
 0xb5a   :  { %v3538_v39 = vmul.f32 %v11631_v17, %v3537_v18  ;;  %v14347_v18 = vpack.c.bf16 %v4234_v21, %v4231_v16  ;;  %v4235_v17 = vld [vmem:[%s16053_s14 + $0x90] sm:$0xff]  ;;  %v7485_v16 = vld [vmem:[%s16052_s13 + $0x1a0] sm:$0xff] }
 0xb5b   :  { %v14499_v21 = vpack.c.bf16 %v7485_v16, %v7482_v36  ;;  %v7504_v16 = vld [vmem:[%s16052_s13 + $0x238] sm:$0xff] }
 0xb5c   :  { %v14215_v28 = vadd.f32 %v3539_v7, %v3538_v39  ;;  %v14354_v39 = vpack.c.bf16 %v4239_v55, %v4236_v47  ;;  %v4238_v7 = vld [vmem:[%s16053_s14 + $0xa8] sm:$0xff]  ;;  %v7481_v47 = vld [vmem:[%s16052_s13 + $0x180] sm:$0xff]  ;;  %v7484_v55 = vld [vmem:[%s16052_s13 + $0x198] sm:$0xff] }
 0xb5d   :  { %v14373_v2 = vpack.c.bf16 %v4238_v7, %v4235_v17  ;;  %v7483_v17 = vld [vmem:[%s16052_s13 + $0x190] sm:$0xff]  ;;  %v14510_v7 = vpack.c.bf16 %v7484_v55, %v7481_v47  ;;  %v7506_v55 = vld [vmem:[%s16052_s13 + $0x248] sm:$0xff] }
 0xb5e   :  { %3541 = vst [vmem:[#allocation2 + $0x4] sm:$0x3] %v14215_v28 }
 0xb61   :  { %v11633_v59 = vpop.eup %11632 }
 0xb62   :  { %v11635_v49 = vpop.eup %11634  ;;  %v3755_v27 = vadd.f32 1.0, %v11633_v59  ;;  %v4237_v59 = vld [vmem:[%s16053_s14 + $0xa0] sm:$0xff] }
 0xb63   :  { %v3765_v57 = vadd.f32 1.0, %v11635_v49  ;;  %v4240_v49 = vld [vmem:[%s16053_s14 + $0xb8] sm:$0xff] }
 0xb64   :  { %11636 = vrcp.f32 %v3755_v27  ;;  %v4242_v27 = vld [vmem:[%s16053_s14 + $0xc8] sm:$0xff]  ;;  %v14375_v38 = vpack.c.bf16 %v4240_v49, %v4237_v59 }
 0xb65   :  { %11638 = vrcp.f32 %v3765_v57  ;;  %v4245_v57 = vld [vmem:[%s16053_s14 + $0xe0] sm:$0xff]  ;;  %v7486_v59 = vld [vmem:[%s16052_s13 + $0x1a8] sm:$0xff] }
 0xb66   :  { %v14516_v49 = vpack.c.bf16 %v7486_v59, %v7483_v17  ;;  %v7509_v17 = vld [vmem:[%s16052_s13 + $0x260] sm:$0xff] }
 0xb67   :  { %v14610_v59 = vpack.c.bf16 %v7509_v17, %v7506_v55  ;;  %v7517_v55 = vld [vmem:[%s16052_s13 + $0x2a0] sm:$0xff]  ;;  %v7520_v17 = vld [vmem:[%s16052_s13 + $0x2b8] sm:$0xff] }
 0xb69   :  { %16283 = vst [vmem:[#allocation9_spill] sm:$0xff] %v14610_v59 }
 0xb6e   :  { %v11637_v52 = vpop.eup %11636 }
 0xb6f   :  { %v11639_v26 = vpop.eup %11638  ;;  %v3771_v50 = vmul.f32 %v11637_v52, %v3769_v32  ;;  %v4241_v32 = vld [vmem:[%s16053_s14 + $0xc0] sm:$0xff]  ;;  %v14382_v52 = vpack.c.bf16 %v4245_v57, %v4242_v27  ;;  %v7488_v27 = vld [vmem:[%s16052_s13 + $0x1b8] sm:$0xff]  ;;  %v7491_v57 = vld [vmem:[%s16052_s13 + $0x1d0] sm:$0xff] }
 0xb70   :  { %v3778_v35 = vmul.f32 %v11639_v26, %v3776_v61  ;;  %v3774_v44 = vsub.f32 1.0, %v11639_v26  ;;  %v4244_v61 = vld [vmem:[%s16053_s14 + $0xd8] sm:$0xff]  ;;  %v4243_v26 = vld [vmem:[%s16053_s14 + $0xd0] sm:$0xff] }
 0xb71   :  { %v3772_v12 = vadd.f32 %v3771_v50, %v13034_v33  ;;  %v16274_v33 = vld [vmem:[#allocation23_spill] sm:$0xff]  ;;  %v4246_v50 = vld [vmem:[%s16053_s14 + $0xe8] sm:$0xff] }
 0xb73   :  { %11640 = vtanh.f32 %v3772_v12  ;;  %v4251_v12 = vld [vmem:[%s16053_s14 + $0x110] sm:$0xff] }
 0xb7d   :  { %v11641_v11 = vpop.eup %11640 }
 0xb7e   :  { %v3775_v43 = vmul.f32 %v11641_v11, %v3774_v44  ;;  %v14401_v44 = vpack.c.bf16 %v4244_v61, %v4241_v32  ;;  %v14403_v11 = vpack.c.bf16 %v4246_v50, %v4243_v26  ;;  %v14526_v32 = vpack.c.bf16 %v7491_v57, %v7488_v27  ;;  %v7487_v61 = vld [vmem:[%s16052_s13 + $0x1b0] sm:$0xff]  ;;  %v7490_v26 = vld [vmem:[%s16052_s13 + $0x1c8] sm:$0xff]  ;;  %v7489_v50 = vld [vmem:[%s16052_s13 + $0x1c0] sm:$0xff] }
 0xb7f   :  { %v7505_v27 = vld [vmem:[%s16052_s13 + $0x240] sm:$0xff]  ;;  %v7508_v57 = vld [vmem:[%s16052_s13 + $0x258] sm:$0xff] }
 0xb80   :  { %v3779_v45 = vadd.f32 %v3778_v35, %v3775_v43  ;;  %v4248_v35 = vld [vmem:[%s16053_s14 + $0xf8] sm:$0xff]  ;;  %v4247_v43 = vld [vmem:[%s16053_s14 + $0xf0] sm:$0xff] }
 0xb82   :  { %v14221_v53 = vrot.slane %v3779_v45, 6  ;;  %v14410_v45 = vpack.c.bf16 %v4251_v12, %v4248_v35  ;;  %v14538_v35 = vpack.c.bf16 %v7490_v26, %v7487_v61  ;;  %v7492_v12 = vld [vmem:[%s16052_s13 + $0x1d8] sm:$0xff]  ;;  %v7507_v61 = vld [vmem:[%s16052_s13 + $0x250] sm:$0xff]  ;;  %v14622_v26 = vpack.c.bf16 %v7508_v57, %v7505_v27 }
 0xb83   :  { %v7519_v27 = vld [vmem:[%s16052_s13 + $0x2b0] sm:$0xff]  ;;  %v14676_v57 = vpack.c.bf16 %v7520_v17, %v7517_v55  ;;  %v7534_v55 = vld [vmem:[%s16053_s14 + $0x1a0] sm:$0xff] }
 0xb84   :  { %3913 = vmatmul.mubr.f32.vlgmr.msra.gmra.mrb[28].mxu1 %v14221_v53  ;;  %9280 = vmatmul.mubr.f32.vlgmr.msra.gmra.mrb[32].mxu0 %v14221_v53  ;;  %16284 = vst [vmem:[#allocation10_spill] sm:$0xff] %v14622_v26 }
 0xb85   :  { %10754 = vmatpush1.bf16.msra.mxu1 %v13915_v42  ;;  %10785 = vmatpush3.bf16.msra.mxu0 %v13917_v37  ;;  %v16276_v42 = vld [vmem:[#allocation25_spill] sm:$0xff]  ;;  %v16277_v37 = vld [vmem:[#allocation26_spill] sm:$0xff]  ;;  %16290 = vst [vmem:[#allocation16_spill] sm:$0xff] %v14676_v57 }
 0xb86   :  { %10756 = vmatprep.subr.bf16.mxu1 %v13925_v9  ;;  %10786 = vmatprep.subr.bf16.mxu0 %v16192_v1  ;;  %v16278_v9 = vld [vmem:[#allocation27_spill] sm:$0xff] }
 0xb87   :  { %4118 = vmatprep.mubr.f32.mxu1 %v16197_v5  ;;  %9314 = vmatprep.mubr.msk.f32.mxu0 %vm11733_vm1, %v16197_v5 }
 0xb89   :  { %10758 = vmatpush1.bf16.msra.mxu1 %v13946_v8  ;;  %10788 = vmatpush3.bf16.msra.mxu0 %v13948_v19  ;;  %v16279_v8 = vld [vmem:[#allocation28_spill] sm:$0xff]  ;;  %v16280_v19 = vld [vmem:[#allocation29_spill] sm:$0xff] }
 0xb8a   :  { %10760 = vmatprep.subr.bf16.mxu1 %v13955_v23  ;;  %10789 = vmatprep.subr.bf16.mxu0 %v16192_v1  ;;  %v16281_v23 = vld [vmem:[#allocation30_spill] sm:$0xff] }
 0xb8d   :  { %10762 = vmatpush1.bf16.msra.mxu1 %v13977_v62  ;;  %10791 = vmatpush3.bf16.msra.mxu0 %v13979_v40  ;;  %v4218_v62 = vld [vmem:[%s16053_s14 + $0x8] sm:$0xff]  ;;  %v4221_v40 = vld [vmem:[%s16053_s14 + $0x20] sm:$0xff] }
 0xb8e   :  { %10764 = vmatprep.subr.bf16.mxu1 %v16274_v33  ;;  %10792 = vmatprep.subr.bf16.mxu0 %v16192_v1  ;;  %v4250_v33 = vld [vmem:[%s16053_s14 + $0x108] sm:$0xff] }
 0xb91   :  { %10766 = vmatpush1.bf16.msra.mxu1 %v16275_v0  ;;  %10794 = vmatpush3.bf16.msra.mxu0 %v16276_v42  ;;  %v4249_v0 = vld [vmem:[%s16053_s14 + $0x100] sm:$0xff]  ;;  %v4252_v42 = vld [vmem:[%s16053_s14 + $0x118] sm:$0xff] }
 0xb92   :  { %10768 = vmatprep.subr.bf16.mxu1 %v16277_v37  ;;  %10795 = vmatprep.subr.bf16.mxu0 %v16192_v1  ;;  %v4254_v37 = vld [vmem:[%s16053_s14 + $0x128] sm:$0xff] }
 0xb95   :  { %10770 = vmatpush1.bf16.msra.mxu1 %v16278_v9  ;;  %10797 = vmatpush3.bf16.msra.mxu0 %v16279_v8  ;;  %v4257_v9 = vld [vmem:[%s16053_s14 + $0x140] sm:$0xff]  ;;  %v14429_v8 = vpack.c.bf16 %v4250_v33, %v4247_v43  ;;  %v14544_v43 = vpack.c.bf16 %v7492_v12, %v7489_v50  ;;  %v7494_v33 = vld [vmem:[%s16052_s13 + $0x1e8] sm:$0xff] }
 0xb96   :  { %10772 = vmatprep.subr.bf16.mxu1 %v16280_v19  ;;  %10798 = vmatprep.subr.bf16.mxu0 %v16192_v1  ;;  %v14431_v19 = vpack.c.bf16 %v4252_v42, %v4249_v0  ;;  %v7497_v0 = vld [vmem:[%s16052_s13 + $0x200] sm:$0xff]  ;;  %v7510_v50 = vld [vmem:[%s16052_s13 + $0x268] sm:$0xff] }
 0xb97   :  { %v14554_v42 = vpack.c.bf16 %v7497_v0, %v7494_v33  ;;  %v14628_v12 = vpack.c.bf16 %v7510_v50, %v7507_v61  ;;  %v7512_v33 = vld [vmem:[%s16052_s13 + $0x278] sm:$0xff]  ;;  %v7515_v0 = vld [vmem:[%s16052_s13 + $0x290] sm:$0xff]  ;;  %v7522_v61 = vld [vmem:[%s16052_s13 + $0x2c8] sm:$0xff] }
 0xb98   :  { %v7524_v50 = vld [vmem:[%s16052_s13 + $0x2d8] sm:$0xff] }
 0xb99   :  { %10774 = vmatpush1.bf16.msra.mxu1 %v16281_v23  ;;  %10800 = vmatpush3.bf16.msra.mxu0 %v14063_v20  ;;  %v4217_v20 = vld [vmem:[%s16053_s14] sm:$0xff]  ;;  %16285 = vst [vmem:[#allocation11_spill] sm:$0xff] %v14628_v12 }
 0xb9a   :  { %10776 = vmatprep.subr.bf16.mxu1 %v14070_v24  ;;  %10801 = vmatprep.subr.bf16.mxu0 %v16192_v1  ;;  %v14265_v24 = vpack.c.bf16 %v4221_v40, %v4218_v62  ;;  %v14284_v63 = vpack.c.bf16 %v4220_v46, %v4217_v20  ;;  %v4253_v23 = vld [vmem:[%s16053_s14 + $0x120] sm:$0xff]  ;;  %v14438_v62 = vpack.c.bf16 %v4257_v9, %v4254_v37  ;;  %v4256_v40 = vld [vmem:[%s16053_s14 + $0x138] sm:$0xff]  ;;  %v4255_v20 = vld [vmem:[%s16053_s14 + $0x130] sm:$0xff] }
 0xb9b   :  { %v4258_v46 = vld [vmem:[%s16053_s14 + $0x148] sm:$0xff]  ;;  %v7493_v37 = vld [vmem:[%s16052_s13 + $0x1e0] sm:$0xff]  ;;  %v7496_v9 = vld [vmem:[%s16052_s13 + $0x1f8] sm:$0xff] }
 0xb9d   :  { %10778 = vmatpush1.bf16.msra.mxu1 %v14089_v51  ;;  %10803 = vmatpush3.bf16.msra.mxu0 %v14091_v22  ;;  %v4219_v51 = vld [vmem:[%s16053_s14 + $0x10] sm:$0xff]  ;;  %v4222_v22 = vld [vmem:[%s16053_s14 + $0x28] sm:$0xff] }
 0xb9e   :  { %10780 = vmatprep.subr.bf16.mxu1 %v14098_v48  ;;  %10804 = vmatprep.subr.bf16.mxu0 %v16192_v1  ;;  %v4224_v48 = vld [vmem:[%s16053_s14 + $0x38] sm:$0xff]  ;;  %v14286_v30 = vpack.c.bf16 %v4222_v22, %v4219_v51  ;;  %v4263_v22 = vld [vmem:[%s16053_s14 + $0x170] sm:$0xff] }
 0xb9f   :  { %v14293_v15 = vpack.c.bf16 %v4227_v58, %v4224_v48  ;;  %v4260_v51 = vld [vmem:[%s16053_s14 + $0x158] sm:$0xff]  ;;  %v14457_v48 = vpack.c.bf16 %v4256_v40, %v4253_v23  ;;  %v14459_v58 = vpack.c.bf16 %v4258_v46, %v4255_v20  ;;  %v7495_v23 = vld [vmem:[%s16052_s13 + $0x1f0] sm:$0xff]  ;;  %v14566_v40 = vpack.c.bf16 %v7496_v9, %v7493_v37  ;;  %v7498_v20 = vld [vmem:[%s16052_s13 + $0x208] sm:$0xff] }
 0xba0   :  { %v14572_v46 = vpack.c.bf16 %v7498_v20, %v7495_v23  ;;  %v14638_v37 = vpack.c.bf16 %v7515_v0, %v7512_v33  ;;  %v7511_v9 = vld [vmem:[%s16052_s13 + $0x270] sm:$0xff]  ;;  %v7514_v23 = vld [vmem:[%s16052_s13 + $0x288] sm:$0xff]  ;;  %v7513_v20 = vld [vmem:[%s16052_s13 + $0x280] sm:$0xff]  ;;  %v14689_v0 = vpack.c.bf16 %v7522_v61, %v7519_v27 }
 0xba1   :  { %10782 = vmatpush1.bf16.msra.mxu1 %v14111_v54  ;;  %10806 = vmatpush3.bf16.msra.mxu0 %v14113_v56  ;;  %v4226_v54 = vld [vmem:[%s16053_s14 + $0x48] sm:$0xff]  ;;  %v4225_v56 = vld [vmem:[%s16053_s14 + $0x40] sm:$0xff]  ;;  %v7527_v33 = vld [vmem:[%s16052_s13 + $0x2f0] sm:$0xff] }
 0xba2   :  { %10808 = vmatprep.subr.bf16.mxu1 %v14265_v24  ;;  %10839 = vmatprep.subr.bf16.mxu0 %v16192_v1  ;;  %v14314_v25 = vpack.c.bf16 %v4226_v54, %v4223_v31  ;;  %v14316_v6 = vpack.c.bf16 %v4228_v3, %v4225_v56  ;;  %v4259_v31 = vld [vmem:[%s16053_s14 + $0x150] sm:$0xff]  ;;  %v14466_v54 = vpack.c.bf16 %v4263_v22, %v4260_v51  ;;  %v4262_v56 = vld [vmem:[%s16053_s14 + $0x168] sm:$0xff]  ;;  %v4261_v3 = vld [vmem:[%s16053_s14 + $0x160] sm:$0xff] }
 0xba3   :  { %v14479_v13 = vpack.c.bf16 %v4262_v56, %v4259_v31  ;;  %v14481_v60 = vpack.c.bf16 %v4264_v29, %v4261_v3  ;;  %v7500_v51 = vld [vmem:[%s16052_s13 + $0x218] sm:$0xff]  ;;  %v7503_v22 = vld [vmem:[%s16052_s13 + $0x230] sm:$0xff]  ;;  %v7502_v3 = vld [vmem:[%s16052_s13 + $0x228] sm:$0xff]  ;;  %16286 = vst [vmem:[#allocation12_spill] sm:$0xff] %v14638_v37 }
 0xba4   :  { %4119 = vmatmul.mubr.f32.vlgmr.msra.gmra.mrb[28].mxu1 %v14215_v28  ;;  %9315 = vmatmul.mubr.f32.vlgmr.msra.gmra.mrb[34].mxu0 %v14215_v28  ;;  %v14582_v31 = vpack.c.bf16 %v7503_v22, %v7500_v51  ;;  %v7499_v56 = vld [vmem:[%s16052_s13 + $0x210] sm:$0xff]  ;;  %v7501_v29 = vld [vmem:[%s16052_s13 + $0x220] sm:$0xff]  ;;  %v14650_v51 = vpack.c.bf16 %v7514_v23, %v7511_v9  ;;  %v7516_v22 = vld [vmem:[%s16052_s13 + $0x298] sm:$0xff]  ;;  %16291 = vst [vmem:[#allocation17_spill] sm:$0xff] %v14689_v0 }
 0xba5   :  { %10810 = vmatpush1.bf16.msra.mxu1 %v14284_v63  ;;  %10841 = vmatpush3.bf16.msra.mxu0 %v14286_v30  ;;  %v14594_v36 = vpack.c.bf16 %v7502_v3, %v7499_v56  ;;  %v14600_v47 = vpack.c.bf16 %v7504_v16, %v7501_v29  ;;  %v7518_v56 = vld [vmem:[%s16052_s13 + $0x2a8] sm:$0xff]  ;;  %v7521_v3 = vld [vmem:[%s16052_s13 + $0x2c0] sm:$0xff]  ;;  %v14662_v29 = vpack.c.bf16 %v7516_v22, %v7513_v20  ;;  %v7523_v23 = vld [vmem:[%s16052_s13 + $0x2d0] sm:$0xff] }
 0xba6   :  { %10812 = vmatprep.subr.bf16.mxu1 %v14293_v15  ;;  %10842 = vmatprep.subr.bf16.mxu0 %v16192_v1  ;;  %16287 = vst [vmem:[#allocation13_spill] sm:$0xff] %v14650_v51  ;;  %v14664_v16 = vpack.c.bf16 %v7521_v3, %v7518_v56  ;;  %v14691_v9 = vpack.c.bf16 %v7527_v33, %v7524_v50  ;;  %v7526_v20 = vld [vmem:[%s16052_s13 + $0x2e8] sm:$0xff]  ;;  %v7525_v22 = vld [vmem:[%s16052_s13 + $0x2e0] sm:$0xff]  ;;  %v7528_v56 = vld [vmem:[%s16052_s13 + $0x2f8] sm:$0xff] }
 0xba7   :  { %4346 = vmatprep.mubr.f32.mxu1 %v16197_v5  ;;  %9349 = vmatprep.mubr.msk.f32.mxu0 %vm11733_vm1, %v16197_v5  ;;  %16282 = vst [vmem:[#allocation8_spill] sm:$0xff] %v14600_v47  ;;  %16288 = vst [vmem:[#allocation14_spill] sm:$0xff] %v14662_v29  ;;  %v7531_v3 = vld [vmem:[%s16053_s14 + $0x188] sm:$0xff]  ;;  %v14713_v17 = vpack.c.bf16 %v7526_v20, %v7523_v23  ;;  %v14717_v27 = vpack.c.bf16 %v7528_v56, %v7525_v22  ;;  %v7476_v23 = vld [vmem:[%s16056_s16 + $0x3] sm:$0x7] }
 0xba8   :  { %16289 = vst [vmem:[#allocation15_spill] sm:$0xff] %v14664_v16  ;;  %16292 = vst [vmem:[#allocation18_spill] sm:$0xff] %v14691_v9  ;;  %v14719_v61 = vpack.c.bf16 %v7534_v55, %v7531_v3  ;;  %v7427_v20 = vld [vmem:[%s16054_s15 + $0x3] sm:$0x7]  ;;  %v4042_v56 = vrot.slane %v7476_v23, %v16219_v4  ;;  %v4046_v55 = vrot.slane %v7476_v23, %v16220_v14 }
 0xba9   :  { %10814 = vmatpush1.bf16.msra.mxu1 %v14314_v25  ;;  %10844 = vmatpush3.bf16.msra.mxu0 %v14316_v6  ;;  %16293 = vst [vmem:[#allocation4_spill] sm:$0xff] %v14713_v17  ;;  %16294 = vst [vmem:[#allocation5_spill] sm:$0xff] %v14717_v27  ;;  %v3833_v22 = vrot.slane %v7427_v20, %v16219_v4  ;;  %v3837_v3 = vrot.slane %v7427_v20, %v16220_v14 }
 0xbaa   :  { %10816 = vmatprep.subr.bf16.mxu1 %v14323_v34  ;;  %10845 = vmatprep.subr.bf16.mxu0 %v16192_v1  ;;  %16295 = vst [vmem:[#allocation19_spill] sm:$0xff] %v14719_v61 }
 0xbad   :  { %10818 = vmatpush1.bf16.msra.mxu1 %v14345_v10  ;;  %10847 = vmatpush3.bf16.msra.mxu0 %v14347_v18 }
 0xbae   :  { %10820 = vmatprep.subr.bf16.mxu1 %v14354_v39  ;;  %10848 = vmatprep.subr.bf16.mxu0 %v16192_v1 }
 0xbb1   :  { %10822 = vmatpush1.bf16.msra.mxu1 %v14373_v2  ;;  %10850 = vmatpush3.bf16.msra.mxu0 %v14375_v38 }
 0xbb2   :  { %10824 = vmatprep.subr.bf16.mxu1 %v14382_v52  ;;  %10851 = vmatprep.subr.bf16.mxu0 %v16192_v1 }
 0xbb5   :  { %10826 = vmatpush1.bf16.msra.mxu1 %v14401_v44  ;;  %10853 = vmatpush3.bf16.msra.mxu0 %v14403_v11 }
 0xbb6   :  { %10828 = vmatprep.subr.bf16.mxu1 %v14410_v45  ;;  %10854 = vmatprep.subr.bf16.mxu0 %v16192_v1 }
 0xbb9   :  { %10830 = vmatpush1.bf16.msra.mxu1 %v14429_v8  ;;  %10856 = vmatpush3.bf16.msra.mxu0 %v14431_v19 }
 0xbba   :  { %10832 = vmatprep.subr.bf16.mxu1 %v14438_v62  ;;  %10857 = vmatprep.subr.bf16.mxu0 %v16192_v1 }
 0xbbd   :  { %10834 = vmatpush1.bf16.msra.mxu1 %v14457_v48  ;;  %10859 = vmatpush3.bf16.msra.mxu0 %v14459_v58 }
 0xbbe   :  { %10836 = vmatprep.subr.bf16.mxu1 %v14466_v54  ;;  %10860 = vmatprep.subr.bf16.mxu0 %v16192_v1 }
 0xbc1   :  { %10838 = vmatpush1.bf16.msra.mxu1 %v14479_v13  ;;  %10862 = vmatpush3.bf16.msra.mxu0 %v14481_v60 }
 0xbc2   :  { %10895 = vmatprep.subr.bf16.mxu0 %v16192_v1  ;;  %10864 = vmatprep.subr.bf16.mxu1 %v14499_v21 }
 0xbc4   :  { %4347 = vmatmul.mubr.f32.vlgmr.msra.gmra.mrb[30].mxu1 %v14221_v53  ;;  %9350 = vmatmul.mubr.f32.vlgmr.msra.gmra.mrb[36].mxu0 %v14221_v53 }
 0xbc5   :  { %4573 = vmatprep.mubr.f32.mxu1 %v16197_v5  ;;  %9384 = vmatprep.mubr.msk.f32.mxu0 %vm11733_vm1, %v16197_v5 }
 0xbc6   :  { %10866 = vmatpush1.bf16.msra.mxu1 %v14510_v7  ;;  %10897 = vmatpush3.bf16.msra.mxu0 %v14516_v49 }
 0xbc7   :  { %10898 = vmatprep.subr.bf16.mxu0 %v16192_v1  ;;  %10868 = vmatprep.subr.bf16.mxu1 %v14526_v32 }
 0xbca   :  { %10870 = vmatpush1.bf16.msra.mxu1 %v14538_v35  ;;  %10900 = vmatpush3.bf16.msra.mxu0 %v14544_v43 }
 0xbcb   :  { %10901 = vmatprep.subr.bf16.mxu0 %v16192_v1  ;;  %10872 = vmatprep.subr.bf16.mxu1 %v14554_v42 }
 0xbce   :  { %10874 = vmatpush1.bf16.msra.mxu1 %v14566_v40  ;;  %10903 = vmatpush3.bf16.msra.mxu0 %v14572_v46 }
 0xbcf   :  { %10904 = vmatprep.subr.bf16.mxu0 %v16192_v1  ;;  %10876 = vmatprep.subr.bf16.mxu1 %v14582_v31 }
 0xbd2   :  { %10878 = vmatpush1.bf16.msra.mxu1 %v14594_v36  ;;  %10906 = vmatpush3.bf16.msra.mxu0 %v14600_v47  ;;  %v3841_v47 = vrot.slane %v7427_v20, %v12743_v41 }
 0xbd3   :  { %10907 = vmatprep.subr.bf16.mxu0 %v16192_v1  ;;  %10880 = vmatprep.subr.bf16.mxu1 %v14610_v59  ;;  %v4050_v59 = vrot.slane %v7476_v23, %v12743_v41 }
 0xbd6   :  { %10882 = vmatpush1.bf16.msra.mxu1 %v14622_v26  ;;  %10909 = vmatpush3.bf16.msra.mxu0 %v14628_v12 }
 0xbd7   :  { %10910 = vmatprep.subr.bf16.mxu0 %v16192_v1  ;;  %10884 = vmatprep.subr.bf16.mxu1 %v14638_v37 }
 0xbda   :  { %10886 = vmatpush1.bf16.msra.mxu1 %v14650_v51  ;;  %10912 = vmatpush3.bf16.msra.mxu0 %v14662_v29 }
 0xbdb   :  { %10888 = vmatprep.subr.bf16.mxu1 %v14664_v16  ;;  %10913 = vmatprep.subr.bf16.mxu0 %v16192_v1 }
 0xbde   :  { %10890 = vmatpush1.bf16.msra.mxu1 %v14676_v57  ;;  %10915 = vmatpush3.bf16.msra.mxu0 %v14689_v0 }
 0xbdf   :  { %10892 = vmatprep.subr.bf16.mxu1 %v14691_v9  ;;  %10916 = vmatprep.subr.bf16.mxu0 %v16192_v1 }
 0xbe2   :  { %10894 = vmatpush1.bf16.msra.mxu1 %v14713_v17  ;;  %10918 = vmatpush3.bf16.msra.mxu0 %v14717_v27 }
 0xbe3   :  { %10920 = vmatprep.subr.bf16.mxu1 %v14719_v61  ;;  %10951 = vmatprep.subr.bf16.mxu0 %v16192_v1  ;;  %v11523_v61 = vadd.f32 %v4042_v56, %v3833_v22 }
 0xc57   :  { %v3985_v50 = vpop.f32.mrb[32].mxu0 }
 0xc58   :  { %v9281_v33 = vpop.f32.mrb[33].mxu0 }
 0xc59   :  { %v11525_v33 = vadd.f32 %v4046_v55, %v3837_v3  ;;  %v16296_v3 = vld [vmem:[#allocation6_spill] sm:$0xff] }
 0xc77   :  { %v4120_v27 = vpop.f32.mrb[28].mxu1  ;;  %v4191_v17 = vpop.f32.mrb[34].mxu0 }
 0xc78   :  { %v11524_v9 = vadd.f32 %v11523_v61, %v4120_v27  ;;  %v4122_v0 = vpop.f32.mrb[29].mxu1  ;;  %v9316_v57 = vpop.f32.mrb[35].mxu0  ;;  %v4265_v27 = vld [vmem:[%s16056_s16] sm:$0x7]  ;;  %v4192_v61 = vadd.f32 %v4191_v17, %v4050_v59  ;;  %v16297_v59 = vld [vmem:[#allocation7_spill] sm:$0xff] }
 0xc79   :  { %v11526_v29 = vadd.f32 %v11525_v33, %v4122_v0 }
 0xc7a   :  { %v7477_v16 = vmul.f32 -1.442695, %v11524_v9  ;;  %v3986_v9 = vadd.f32 %v3985_v50, %v3841_v47 }
 0xc7b   :  { %v7478_v51 = vmul.f32 -1.442695, %v11526_v29 }
 0xc7c   :  { %11642 = vpow2.f32 %v7477_v16 }
 0xc7d   :  { %11644 = vpow2.f32 %v7478_v51  ;;  %v4270_v51 = vrot.slane %v4265_v27, %v16219_v4 }
 0xc86   :  { %v11643_v37 = vpop.eup %11642 }
 0xc87   :  { %v4199_v12 = vadd.f32 1.0, %v11643_v37  ;;  %v11645_v26 = vpop.eup %11644  ;;  %v4274_v37 = vrot.slane %v4265_v27, %v16220_v14 }
 0xc88   :  { %v4206_v22 = vadd.f32 1.0, %v11645_v26 }
 0xc89   :  { %11646 = vrcp.f32 %v4199_v12 }
 0xc8a   :  { %11648 = vrcp.f32 %v4206_v22 }
 0xc93   :  { %v11647_v57 = vpop.eup %11646 }
 0xc94   :  { %v4209_v0 = vmul.f32 %v11647_v57, %v4192_v61  ;;  %v11649_v47 = vpop.eup %11648 }
 0xc95   :  { %v4212_v22 = vsub.f32 1.0, %v11649_v47 }
 0xc96   :  { %v4210_v12 = vadd.f32 %v4209_v0, %v3986_v9  ;;  %v4214_v9 = vmul.f32 %v11649_v47, %v14215_v28 }
 0xc97   :  { %v4348_v29 = vpop.f32.mrb[30].mxu1  ;;  %v4419_v16 = vpop.f32.mrb[36].mxu0 }
 0xc98   :  { %11650 = vtanh.f32 %v4210_v12  ;;  %v4349_v23 = vadd.f32 %v4348_v29, %v4270_v51  ;;  %v4350_v20 = vpop.f32.mrb[31].mxu1  ;;  %v9351_v26 = vpop.f32.mrb[37].mxu0  ;;  %v4278_v29 = vrot.slane %v4265_v27, %v12743_v41  ;;  %v7532_v27 = vld [vmem:[%s16053_s14 + $0x190] sm:$0xff] }
 0xc99   :  { %v4351_v56 = vadd.f32 %v4350_v20, %v4274_v37 }
 0xc9a   :  { %v4423_v55 = vadd.f32 %v4349_v23, %v16296_v3  ;;  %v4420_v20 = vadd.f32 %v4419_v16, %v4278_v29  ;;  %v7535_v16 = vld [vmem:[%s16053_s14 + $0x1a8] sm:$0xff]  ;;  %v7536_v29 = vld [vmem:[%s16053_s14 + $0x1b0] sm:$0xff] }
 0xc9b   :  { %v4430_v17 = vadd.f32 %v4351_v56, %v16297_v59 }
 0xc9c   :  { %v7479_v33 = vmul.f32 -1.442695, %v4423_v55  ;;  %v16298_v55 = vld [vmem:[#allocation3_spill] sm:$0xff] }
 0xc9d   :  { %v7480_v50 = vmul.f32 -1.442695, %v4430_v17  ;;  %v7530_v17 = vld [vmem:[%s16053_s14 + $0x180] sm:$0xff] }
 0xc9e   :  { %11652 = vpow2.f32 %v7479_v33 }
 0xc9f   :  { %11654 = vpow2.f32 %v7480_v50  ;;  %v7533_v50 = vld [vmem:[%s16053_s14 + $0x198] sm:$0xff] }
 0xca2   :  { %v11651_v61 = vpop.eup %11650 }
 0xca3   :  { %v4213_v57 = vmul.f32 %v11651_v61, %v4212_v22  ;;  %v7537_v61 = vld [vmem:[%s16053_s14 + $0x1b8] sm:$0xff] }
 0xca5   :  { %v14746_v0 = vadd.f32 %v4214_v9, %v4213_v57  ;;  %v7540_v57 = vld [vmem:[%s16053_s14 + $0x1d0] sm:$0xff] }
 0xca7   :  { %4216 = vst [vmem:[#allocation2 + $0x6] sm:$0x3] %v14746_v0 }
 0xca8   :  { %v11653_v51 = vpop.eup %11652 }
 0xca9   :  { %v4427_v37 = vadd.f32 1.0, %v11653_v51  ;;  %v11655_v12 = vpop.eup %11654 }
 0xcaa   :  { %v4434_v23 = vadd.f32 1.0, %v11655_v12  ;;  %v14772_v12 = vpack.c.bf16 %v7535_v16, %v7532_v27  ;;  %v7545_v16 = vld [vmem:[%s16053_s14 + $0x1f8] sm:$0xff] }
 0xcab   :  { %11656 = vrcp.f32 %v4427_v37  ;;  %v14770_v37 = vpack.c.bf16 %v7533_v50, %v7530_v17  ;;  %v7542_v50 = vld [vmem:[%s16053_s14 + $0x1e0] sm:$0xff] }
 0xcac   :  { %11658 = vrcp.f32 %v4434_v23 }
 0xcb5   :  { %v11657_v26 = vpop.eup %11656 }
 0xcb6   :  { %v4437_v56 = vmul.f32 %v11657_v26, %v4420_v20  ;;  %v11659_v28 = vpop.eup %11658  ;;  %v14779_v20 = vpack.c.bf16 %v7540_v57, %v7537_v61  ;;  %v7539_v26 = vld [vmem:[%s16053_s14 + $0x1c8] sm:$0xff]  ;;  %v7549_v57 = vld [vmem:[%s16053_s14 + $0x218] sm:$0xff] }
 0xcb7   :  { %v4440_v47 = vsub.f32 1.0, %v11659_v28  ;;  %v4442_v51 = vmul.f32 %v11659_v28, %v14221_v53  ;;  %v7538_v53 = vld [vmem:[%s16053_s14 + $0x1c0] sm:$0xff]  ;;  %v14800_v17 = vpack.c.bf16 %v7539_v26, %v7536_v29  ;;  %v7547_v61 = vld [vmem:[%s16053_s14 + $0x208] sm:$0xff]  ;;  %v7548_v26 = vld [vmem:[%s16053_s14 + $0x210] sm:$0xff] }
 0xcb8   :  { %v4438_v33 = vadd.f32 %v4437_v56, %v16298_v55  ;;  %v7541_v56 = vld [vmem:[%s16053_s14 + $0x1d8] sm:$0xff]  ;;  %v7546_v28 = vld [vmem:[%s16053_s14 + $0x200] sm:$0xff] }
 0xcba   :  { %11660 = vtanh.f32 %v4438_v33  ;;  %v7543_v33 = vld [vmem:[%s16053_s14 + $0x1e8] sm:$0xff] }
 0xcbb   :  { %v14809_v27 = vpack.c.bf16 %v7546_v28, %v7543_v33  ;;  %v7550_v33 = vld [vmem:[%s16053_s14 + $0x220] sm:$0xff]  ;;  %v7553_v28 = vld [vmem:[%s16053_s14 + $0x238] sm:$0xff] }
 0xcc4   :  { %v11661_v22 = vpop.eup %11660 }
 0xcc5   :  { %v4441_v9 = vmul.f32 %v11661_v22, %v4440_v47  ;;  %v14802_v47 = vpack.c.bf16 %v7541_v56, %v7538_v53  ;;  %v7544_v22 = vld [vmem:[%s16053_s14 + $0x1f0] sm:$0xff]  ;;  %v7551_v56 = vld [vmem:[%s16053_s14 + $0x228] sm:$0xff] }
 0xcc6   :  { %v14833_v29 = vpack.c.bf16 %v7547_v61, %v7544_v22  ;;  %v14859_v22 = vpack.c.bf16 %v7551_v56, %v7548_v26  ;;  %v14861_v61 = vpack.c.bf16 %v7553_v28, %v7550_v33  ;;  %v7556_v26 = vld [vmem:[%s16053_s14 + $0x250] sm:$0xff]  ;;  %v7559_v56 = vld [vmem:[%s16053_s14 + $0x268] sm:$0xff]  ;;  %v7561_v33 = vld [vmem:[%s16053_s14 + $0x278] sm:$0xff] }
 0xcc7   :  { %v14777_v23 = vadd.f32 %v4442_v51, %v4441_v9  ;;  %v7552_v9 = vld [vmem:[%s16053_s14 + $0x230] sm:$0xff]  ;;  %v14831_v51 = vpack.c.bf16 %v7545_v16, %v7542_v50  ;;  %v7555_v50 = vld [vmem:[%s16053_s14 + $0x248] sm:$0xff]  ;;  %v7558_v16 = vld [vmem:[%s16053_s14 + $0x260] sm:$0xff] }
 0xcc8   :  { %16300 = vst [vmem:[#allocation21_spill] sm:$0xff] %v14833_v29  ;;  %v14840_v53 = vpack.c.bf16 %v7552_v9, %v7549_v57  ;;  %16302 = vst [vmem:[#allocation23_spill] sm:$0xff] %v14859_v22  ;;  %v7554_v57 = vld [vmem:[%s16053_s14 + $0x240] sm:$0xff]  ;;  %v14868_v9 = vpack.c.bf16 %v7558_v16, %v7555_v50  ;;  %v7564_v28 = vld [vmem:[%s16053_s14 + $0x290] sm:$0xff]  ;;  %v14889_v16 = vpack.c.bf16 %v7559_v56, %v7556_v26 }
 0xcc9   :  { %4574 = vmatmul.mubr.f32.vlgmr.msra.gmra.mrb[32].mxu1 %v14777_v23  ;;  %9385 = vmatmul.mubr.f32.vlgmr.msra.gmra.mrb[38].mxu0 %v14777_v23  ;;  %16299 = vst [vmem:[#allocation20_spill] sm:$0xff] %v14831_v51  ;;  %16303 = vst [vmem:[#allocation24_spill] sm:$0xff] %v14861_v61  ;;  %v7567_v26 = vld [vmem:[%s16053_s14 + $0x2a8] sm:$0xff]  ;;  %v7570_v56 = vld [vmem:[%s16053_s14 + $0x2c0] sm:$0xff] }
 0xcca   :  { %10922 = vmatpush1.bf16.msra.mxu1 %v14770_v37  ;;  %10953 = vmatpush3.bf16.msra.mxu0 %v14772_v12  ;;  %16301 = vst [vmem:[#allocation22_spill] sm:$0xff] %v14840_v53  ;;  %16304 = vst [vmem:[#allocation25_spill] sm:$0xff] %v14868_v9 }
 0xccb   :  { %10924 = vmatprep.subr.bf16.mxu1 %v14779_v20  ;;  %10954 = vmatprep.subr.bf16.mxu0 %v16192_v1  ;;  %16306 = vst [vmem:[#allocation27_spill] sm:$0xff] %v14889_v16 }
 0xccc   :  { %4779 = vmatprep.mubr.f32.mxu1 %v16197_v5  ;;  %9419 = vmatprep.mubr.msk.f32.mxu0 %vm11733_vm1, %v16197_v5 }
 0xcce   :  { %10926 = vmatpush1.bf16.msra.mxu1 %v14800_v17  ;;  %10956 = vmatpush3.bf16.msra.mxu0 %v14802_v47 }
 0xccf   :  { %10928 = vmatprep.subr.bf16.mxu1 %v14809_v27  ;;  %10957 = vmatprep.subr.bf16.mxu0 %v16192_v1 }
 0xcd2   :  { %10930 = vmatpush1.bf16.msra.mxu1 %v14831_v51  ;;  %10959 = vmatpush3.bf16.msra.mxu0 %v14833_v29  ;;  %v7557_v51 = vld [vmem:[%s16053_s14 + $0x258] sm:$0xff]  ;;  %v14896_v29 = vpack.c.bf16 %v7564_v28, %v7561_v33 }
 0xcd3   :  { %10932 = vmatprep.subr.bf16.mxu1 %v14840_v53  ;;  %10960 = vmatprep.subr.bf16.mxu0 %v16192_v1  ;;  %v14887_v50 = vpack.c.bf16 %v7557_v51, %v7554_v57  ;;  %v7560_v53 = vld [vmem:[%s16053_s14 + $0x270] sm:$0xff]  ;;  %v7562_v51 = vld [vmem:[%s16053_s14 + $0x280] sm:$0xff]  ;;  %v7565_v57 = vld [vmem:[%s16053_s14 + $0x298] sm:$0xff] }
 0xcd4   :  { %16307 = vst [vmem:[#allocation28_spill] sm:$0xff] %v14896_v29  ;;  %v14917_v28 = vpack.c.bf16 %v7565_v57, %v7562_v51  ;;  %v7573_v51 = vld [vmem:[%s16053_s14 + $0x2d8] sm:$0xff]  ;;  %v7576_v57 = vld [vmem:[%s16053_s14 + $0x2f0] sm:$0xff] }
 0xcd5   :  { %16305 = vst [vmem:[#allocation26_spill] sm:$0xff] %v14887_v50 }
 0xcd6   :  { %10934 = vmatpush1.bf16.msra.mxu1 %v14859_v22  ;;  %10962 = vmatpush3.bf16.msra.mxu0 %v14861_v61  ;;  %v7563_v22 = vld [vmem:[%s16053_s14 + $0x288] sm:$0xff]  ;;  %v14924_v61 = vpack.c.bf16 %v7570_v56, %v7567_v26 }
 0xcd7   :  { %10936 = vmatprep.subr.bf16.mxu1 %v14868_v9  ;;  %10963 = vmatprep.subr.bf16.mxu0 %v16192_v1  ;;  %v14915_v33 = vpack.c.bf16 %v7563_v22, %v7560_v53  ;;  %v7566_v9 = vld [vmem:[%s16053_s14 + $0x2a0] sm:$0xff]  ;;  %v7568_v53 = vld [vmem:[%s16053_s14 + $0x2b0] sm:$0xff]  ;;  %v7571_v22 = vld [vmem:[%s16053_s14 + $0x2c8] sm:$0xff] }
 0xcd8   :  { %v14945_v56 = vpack.c.bf16 %v7571_v22, %v7568_v53 }
 0xcd9   :  { %16308 = vst [vmem:[#allocation29_spill] sm:$0xff] %v14915_v33 }
 0xcda   :  { %10938 = vmatpush1.bf16.msra.mxu1 %v14887_v50  ;;  %10965 = vmatpush3.bf16.msra.mxu0 %v14889_v16  ;;  %v7569_v50 = vld [vmem:[%s16053_s14 + $0x2b8] sm:$0xff]  ;;  %v14952_v16 = vpack.c.bf16 %v7576_v57, %v7573_v51  ;;  %v4926_v57 = vld [vmem:[%s16056_s16] sm:$0x7] }
 0xcdb   :  { %10940 = vmatprep.subr.bf16.mxu1 %v14896_v29  ;;  %10966 = vmatprep.subr.bf16.mxu0 %v16192_v1  ;;  %v14943_v26 = vpack.c.bf16 %v7569_v50, %v7566_v9  ;;  %v7572_v29 = vld [vmem:[%s16053_s14 + $0x2d0] sm:$0xff]  ;;  %v7574_v9 = vld [vmem:[%s16053_s14 + $0x2e0] sm:$0xff]  ;;  %v7577_v50 = vld [vmem:[%s16053_s14 + $0x2f8] sm:$0xff] }
 0xcdc   :  { %v14967_v22 = vpack.c.bf16 %v7577_v50, %v7574_v9 }
 0xcde   :  { %10942 = vmatpush1.bf16.msra.mxu1 %v14915_v33  ;;  %10968 = vmatpush3.bf16.msra.mxu0 %v14917_v28  ;;  %v7575_v33 = vld [vmem:[%s16053_s14 + $0x2e8] sm:$0xff] }
 0xcdf   :  { %10944 = vmatprep.subr.bf16.mxu1 %v14924_v61  ;;  %10969 = vmatprep.subr.bf16.mxu0 %v16192_v1  ;;  %v14965_v53 = vpack.c.bf16 %v7575_v33, %v7572_v29 }
 0xce2   :  { %10946 = vmatpush1.bf16.msra.mxu1 %v14943_v26  ;;  %10971 = vmatpush3.bf16.msra.mxu0 %v14945_v56 }
 0xce3   :  { %10948 = vmatprep.subr.bf16.mxu1 %v14952_v16  ;;  %10972 = vmatprep.subr.bf16.mxu0 %v16192_v1 }
 0xce6   :  { %10950 = vmatpush1.bf16.msra.mxu1 %v14965_v53  ;;  %10974 = vmatpush3.bf16.msra.mxu0 %v14967_v22 }
 0xce7   :  { %10976 = vmatprep.subr.bf16.mxu1 %v14265_v24  ;;  %11007 = vmatprep.subr.bf16.mxu0 %v16192_v1  ;;  %v16309_v24 = vld [vmem:[#allocation8_spill] sm:$0xff] }
 0xce9   :  { %4780 = vmatmul.mubr.f32.vlgmr.msra.gmra.mrb[32].mxu1 %v14746_v0  ;;  %9420 = vmatmul.mubr.f32.vlgmr.msra.gmra.mrb[40].mxu0 %v14746_v0 }
 0xcea   :  { %10978 = vmatpush1.bf16.msra.mxu1 %v14284_v63  ;;  %11009 = vmatpush3.bf16.msra.mxu0 %v14286_v30  ;;  %v16310_v63 = vld [vmem:[#allocation9_spill] sm:$0xff]  ;;  %v16311_v30 = vld [vmem:[#allocation10_spill] sm:$0xff] }
 0xceb   :  { %10980 = vmatprep.subr.bf16.mxu1 %v14293_v15  ;;  %11010 = vmatprep.subr.bf16.mxu0 %v16192_v1  ;;  %v16312_v15 = vld [vmem:[#allocation11_spill] sm:$0xff] }
 0xcec   :  { %5007 = vmatprep.mubr.f32.mxu1 %v16197_v5  ;;  %9454 = vmatprep.mubr.msk.f32.mxu0 %vm11733_vm1, %v16197_v5 }
 0xcee   :  { %10982 = vmatpush1.bf16.msra.mxu1 %v14314_v25  ;;  %11012 = vmatpush3.bf16.msra.mxu0 %v14316_v6  ;;  %v16313_v25 = vld [vmem:[#allocation12_spill] sm:$0xff]  ;;  %v16314_v6 = vld [vmem:[#allocation13_spill] sm:$0xff] }
 0xcef   :  { %10984 = vmatprep.subr.bf16.mxu1 %v14323_v34  ;;  %11013 = vmatprep.subr.bf16.mxu0 %v16192_v1  ;;  %v16315_v34 = vld [vmem:[#allocation14_spill] sm:$0xff] }
 0xcf2   :  { %10986 = vmatpush1.bf16.msra.mxu1 %v14345_v10  ;;  %11015 = vmatpush3.bf16.msra.mxu0 %v14347_v18  ;;  %v16316_v10 = vld [vmem:[#allocation15_spill] sm:$0xff]  ;;  %v16317_v18 = vld [vmem:[#allocation16_spill] sm:$0xff] }
 0xcf3   :  { %10988 = vmatprep.subr.bf16.mxu1 %v14354_v39  ;;  %11016 = vmatprep.subr.bf16.mxu0 %v16192_v1  ;;  %v16318_v39 = vld [vmem:[#allocation17_spill] sm:$0xff] }
 0xcf6   :  { %10990 = vmatpush1.bf16.msra.mxu1 %v14373_v2  ;;  %11018 = vmatpush3.bf16.msra.mxu0 %v14375_v38  ;;  %v16319_v2 = vld [vmem:[#allocation18_spill] sm:$0xff]  ;;  %v16320_v38 = vld [vmem:[#allocation4_spill] sm:$0xff] }
 0xcf7   :  { %10992 = vmatprep.subr.bf16.mxu1 %v14382_v52  ;;  %11019 = vmatprep.subr.bf16.mxu0 %v16192_v1  ;;  %v16321_v52 = vld [vmem:[#allocation5_spill] sm:$0xff] }
 0xcfa   :  { %10994 = vmatpush1.bf16.msra.mxu1 %v14401_v44  ;;  %11021 = vmatpush3.bf16.msra.mxu0 %v14403_v11  ;;  %v16322_v44 = vld [vmem:[#allocation19_spill] sm:$0xff] }
 0xcfb   :  { %10996 = vmatprep.subr.bf16.mxu1 %v14410_v45  ;;  %11022 = vmatprep.subr.bf16.mxu0 %v16192_v1 }
 0xcfe   :  { %10998 = vmatpush1.bf16.msra.mxu1 %v14429_v8  ;;  %11024 = vmatpush3.bf16.msra.mxu0 %v14431_v19  ;;  %v7578_v8 = vld [vmem:[%s16056_s16 + $0x3] sm:$0x7] }
 0xcff   :  { %11000 = vmatprep.subr.bf16.mxu1 %v14438_v62  ;;  %11025 = vmatprep.subr.bf16.mxu0 %v16192_v1  ;;  %v7529_v19 = vld [vmem:[%s16054_s15 + $0x3] sm:$0x7]  ;;  %v4711_v29 = vrot.slane %v7578_v8, %v12743_v41 }
 0xd00   :  { %v4497_v62 = vrot.slane %v7529_v19, %v16219_v4  ;;  %v4505_v33 = vrot.slane %v7529_v19, %v12743_v41 }
 0xd02   :  { %11002 = vmatpush1.bf16.msra.mxu1 %v14457_v48  ;;  %11027 = vmatpush3.bf16.msra.mxu0 %v14459_v58  ;;  %v4703_v48 = vrot.slane %v7578_v8, %v16219_v4  ;;  %v4501_v58 = vrot.slane %v7529_v19, %v16220_v14 }
 0xd03   :  { %11004 = vmatprep.subr.bf16.mxu1 %v14466_v54  ;;  %11028 = vmatprep.subr.bf16.mxu0 %v16192_v1  ;;  %v4707_v54 = vrot.slane %v7578_v8, %v16220_v14 }
 0xd06   :  { %11006 = vmatpush1.bf16.msra.mxu1 %v14479_v13  ;;  %11030 = vmatpush3.bf16.msra.mxu0 %v14481_v60  ;;  %v11527_v13 = vadd.f32 %v4703_v48, %v4497_v62 }
 0xd07   :  { %11032 = vmatprep.subr.bf16.mxu1 %v14499_v21  ;;  %11063 = vmatprep.subr.bf16.mxu0 %v16192_v1 }
 0xd09   :  { %5008 = vmatmul.mubr.f32.vlgmr.msra.gmra.mrb[34].mxu1 %v14777_v23  ;;  %9455 = vmatmul.mubr.f32.vlgmr.msra.gmra.mrb[42].mxu0 %v14777_v23 }
 0xd0a   :  { %11034 = vmatpush1.bf16.msra.mxu1 %v14510_v7  ;;  %11065 = vmatpush3.bf16.msra.mxu0 %v14516_v49  ;;  %v11529_v7 = vadd.f32 %v4707_v54, %v4501_v58 }
 0xd0b   :  { %11036 = vmatprep.subr.bf16.mxu1 %v14526_v32  ;;  %11066 = vmatprep.subr.bf16.mxu0 %v16192_v1 }
 0xd0c   :  { %5249 = vmatprep.mubr.f32.mxu1 %v16197_v5  ;;  %9489 = vmatprep.mubr.msk.f32.mxu0 %vm11733_vm1, %v16197_v5 }
 0xd0e   :  { %11038 = vmatpush1.bf16.msra.mxu1 %v14538_v35  ;;  %11068 = vmatpush3.bf16.msra.mxu0 %v14544_v43 }
 0xd0f   :  { %11040 = vmatprep.subr.bf16.mxu1 %v14554_v42  ;;  %11069 = vmatprep.subr.bf16.mxu0 %v16192_v1 }
 0xd12   :  { %11042 = vmatpush1.bf16.msra.mxu1 %v14566_v40  ;;  %11071 = vmatpush3.bf16.msra.mxu0 %v14572_v46 }
 0xd13   :  { %11044 = vmatprep.subr.bf16.mxu1 %v14582_v31  ;;  %11072 = vmatprep.subr.bf16.mxu0 %v16192_v1 }
 0xd16   :  { %11046 = vmatpush1.bf16.msra.mxu1 %v14594_v36  ;;  %11074 = vmatpush3.bf16.msra.mxu0 %v16309_v24 }
 0xd17   :  { %11048 = vmatprep.subr.bf16.mxu1 %v16310_v63  ;;  %11075 = vmatprep.subr.bf16.mxu0 %v16192_v1 }
 0xd1a   :  { %11050 = vmatpush1.bf16.msra.mxu1 %v16311_v30  ;;  %11077 = vmatpush3.bf16.msra.mxu0 %v16312_v15  ;;  %v4931_v30 = vrot.slane %v4926_v57, %v16219_v4  ;;  %v4935_v15 = vrot.slane %v4926_v57, %v16220_v14 }
 0xd1b   :  { %11052 = vmatprep.subr.bf16.mxu1 %v16313_v25  ;;  %11078 = vmatprep.subr.bf16.mxu0 %v16192_v1 }
 0xd1e   :  { %11054 = vmatpush1.bf16.msra.mxu1 %v16314_v6  ;;  %11080 = vmatpush3.bf16.msra.mxu0 %v16315_v34 }
 0xd1f   :  { %11056 = vmatprep.subr.bf16.mxu1 %v16316_v10  ;;  %11081 = vmatprep.subr.bf16.mxu0 %v16192_v1 }
 0xd22   :  { %11058 = vmatpush1.bf16.msra.mxu1 %v16317_v18  ;;  %11083 = vmatpush3.bf16.msra.mxu0 %v16318_v39 }
 0xd23   :  { %11060 = vmatprep.subr.bf16.mxu1 %v16319_v2  ;;  %11084 = vmatprep.subr.bf16.mxu0 %v16192_v1 }
 0xd26   :  { %11062 = vmatpush1.bf16.msra.mxu1 %v16320_v38  ;;  %11086 = vmatpush3.bf16.msra.mxu0 %v16321_v52 }
 0xd27   :  { %11088 = vmatprep.subr.bf16.mxu1 %v16322_v44  ;;  %11119 = vmatprep.subr.bf16.mxu0 %v16192_v1 }
 0xd9c   :  { %v4646_v11 = vpop.f32.mrb[38].mxu0 }
 0xd9d   :  { %v9386_v45 = vpop.f32.mrb[39].mxu0  ;;  %v4647_v24 = vadd.f32 %v4646_v11, %v4505_v33 }
 0xdbc   :  { %v4781_v60 = vpop.f32.mrb[32].mxu1  ;;  %v4852_v21 = vpop.f32.mrb[40].mxu0 }
 0xdbd   :  { %v11528_v49 = vadd.f32 %v11527_v13, %v4781_v60  ;;  %v4783_v32 = vpop.f32.mrb[33].mxu1  ;;  %v9421_v35 = vpop.f32.mrb[41].mxu0  ;;  %v4853_v9 = vadd.f32 %v4852_v21, %v4711_v29 }
 0xdbe   :  { %v11530_v42 = vadd.f32 %v11529_v7, %v4783_v32  ;;  %v4939_v32 = vrot.slane %v4926_v57, %v12743_v41  ;;  %v16327_v57 = vld [vmem:[#allocation24_spill] sm:$0xff] }
 0xdbf   :  { %v7579_v43 = vmul.f32 -1.442695, %v11528_v49 }
 0xdc0   :  { %v7580_v40 = vmul.f32 -1.442695, %v11530_v42 }
 0xdc1   :  { %11662 = vpow2.f32 %v7579_v43 }
 0xdc2   :  { %11664 = vpow2.f32 %v7580_v40  ;;  %v5113_v40 = vrot.slane %v14777_v23, 6  ;;  %v16325_v23 = vld [vmem:[#allocation22_spill] sm:$0xff] }
 0xdcb   :  { %v11663_v46 = vpop.eup %11662 }
 0xdcc   :  { %v4860_v31 = vadd.f32 1.0, %v11663_v46  ;;  %v11665_v36 = vpop.eup %11664 }
 0xdcd   :  { %v4867_v51 = vadd.f32 1.0, %v11665_v36 }
 0xdce   :  { %11666 = vrcp.f32 %v4860_v31 }
 0xdcf   :  { %11668 = vrcp.f32 %v4867_v51 }
 0xdd8   :  { %v11667_v50 = vpop.eup %11666 }
 0xdd9   :  { %v4870_v63 = vmul.f32 %v11667_v50, %v4853_v9  ;;  %v11669_v45 = vpop.eup %11668 }
 0xdda   :  { %v4873_v62 = vsub.f32 1.0, %v11669_v45  ;;  %v4875_v54 = vmul.f32 %v11669_v45, %v14746_v0  ;;  %v5566_v45 = vld [vmem:[%s16053_s14 + $0x60] sm:$0xff] }
 0xddb   :  { %v4871_v25 = vadd.f32 %v4870_v63, %v4647_v24  ;;  %v16328_v24 = vld [vmem:[#allocation25_spill] sm:$0xff] }
 0xddc   :  { %v5009_v6 = vpop.f32.mrb[34].mxu1  ;;  %v5080_v34 = vpop.f32.mrb[42].mxu0  ;;  %v16332_v63 = vld [vmem:[#allocation29_spill] sm:$0xff] }
 0xddd   :  { %11670 = vtanh.f32 %v4871_v25  ;;  %v5010_v10 = vadd.f32 %v5009_v6, %v4931_v30  ;;  %v5011_v18 = vpop.f32.mrb[35].mxu1  ;;  %v9456_v39 = vpop.f32.mrb[43].mxu0  ;;  %v5081_v35 = vadd.f32 %v5080_v34, %v4939_v32  ;;  %v5555_v30 = vld [vmem:[%s16053_s14 + $0x8] sm:$0xff]  ;;  %v5557_v25 = vld [vmem:[%s16053_s14 + $0x18] sm:$0xff]  ;;  %v5564_v6 = vld [vmem:[%s16053_s14 + $0x50] sm:$0xff] }
 0xdde   :  { %v5012_v2 = vadd.f32 %v5011_v18, %v4935_v15  ;;  %v5558_v15 = vld [vmem:[%s16053_s14 + $0x20] sm:$0xff]  ;;  %v5560_v18 = vld [vmem:[%s16053_s14 + $0x30] sm:$0xff]  ;;  %v5575_v32 = vld [vmem:[%s16053_s14 + $0xa8] sm:$0xff] }
 0xddf   :  { %v5085_v38 = vrot.slane %v5010_v10, 6  ;;  %v5105_v43 = vrot.slane %v5081_v35, 6  ;;  %v5574_v35 = vld [vmem:[%s16053_s14 + $0xa0] sm:$0xff] }
 0xde0   :  { %v5095_v52 = vrot.slane %v5012_v2, 6  ;;  %v5565_v2 = vld [vmem:[%s16053_s14 + $0x58] sm:$0xff] }
 0xde1   :  { %v5087_v44 = vadd.f32 %v5085_v38, %v16296_v3  ;;  %v5567_v38 = vld [vmem:[%s16053_s14 + $0x68] sm:$0xff] }
 0xde2   :  { %v5097_v11 = vadd.f32 %v5095_v52, %v16297_v59  ;;  %v5570_v52 = vld [vmem:[%s16053_s14 + $0x80] sm:$0xff] }
 0xde3   :  { %v7581_v8 = vmul.f32 -1.442695, %v5087_v44 }
 0xde4   :  { %v7582_v19 = vmul.f32 -1.442695, %v5097_v11 }
 0xde5   :  { %11672 = vpow2.f32 %v7581_v8  ;;  %v15180_v8 = vpack.c.bf16 %v5570_v52, %v5567_v38  ;;  %v5596_v38 = vld [vmem:[%s16053_s14 + $0x150] sm:$0xff] }
 0xde6   :  { %11674 = vpow2.f32 %v7582_v19  ;;  %v5569_v19 = vld [vmem:[%s16053_s14 + $0x78] sm:$0xff] }
 0xde7   :  { %v11671_v48 = vpop.eup %11670 }
 0xde8   :  { %v4874_v58 = vmul.f32 %v11671_v48, %v4873_v62  ;;  %v5568_v62 = vld [vmem:[%s16053_s14 + $0x70] sm:$0xff]  ;;  %v5571_v48 = vld [vmem:[%s16053_s14 + $0x88] sm:$0xff] }
 0xdea   :  { %v15069_v13 = vadd.f32 %v4875_v54, %v4874_v58  ;;  %v5573_v58 = vld [vmem:[%s16053_s14 + $0x98] sm:$0xff]  ;;  %v5576_v54 = vld [vmem:[%s16053_s14 + $0xb0] sm:$0xff] }
 0xdec   :  { %4877 = vst [vmem:[#allocation2 + $0x8] sm:$0x3] %v15069_v13 }
 0xdef   :  { %v11673_v60 = vpop.eup %11672 }
 0xdf0   :  { %v11675_v21 = vpop.eup %11674  ;;  %v5091_v7 = vadd.f32 1.0, %v11673_v60  ;;  %v15202_v60 = vpack.c.bf16 %v5569_v19, %v5566_v45  ;;  %v5599_v45 = vld [vmem:[%s16053_s14 + $0x168] sm:$0xff]  ;;  %v5598_v19 = vld [vmem:[%s16053_s14 + $0x160] sm:$0xff] }
 0xdf1   :  { %v5101_v49 = vadd.f32 1.0, %v11675_v21  ;;  %v15204_v21 = vpack.c.bf16 %v5571_v48, %v5568_v62  ;;  %v5601_v62 = vld [vmem:[%s16053_s14 + $0x178] sm:$0xff]  ;;  %v15336_v48 = vpack.c.bf16 %v5599_v45, %v5596_v38 }
 0xdf2   :  { %11676 = vrcp.f32 %v5091_v7  ;;  %v5572_v7 = vld [vmem:[%s16053_s14 + $0x90] sm:$0xff]  ;;  %v7704_v45 = vld [vmem:[%s16052_s13 + $0x218] sm:$0xff] }
 0xdf3   :  { %11678 = vrcp.f32 %v5101_v49  ;;  %v15211_v49 = vpack.c.bf16 %v5576_v54, %v5573_v58  ;;  %v15338_v58 = vpack.c.bf16 %v5601_v62, %v5598_v19  ;;  %v7686_v54 = vld [vmem:[%s16052_s13 + $0x188] sm:$0xff]  ;;  %v7707_v19 = vld [vmem:[%s16052_s13 + $0x230] sm:$0xff] }
 0xdf4   :  { %v15439_v62 = vpack.c.bf16 %v7707_v19, %v7704_v45  ;;  %v7718_v19 = vld [vmem:[%s16052_s13 + $0x288] sm:$0xff] }
 0xdf6   :  { %16334 = vst [vmem:[#allocation6_spill] sm:$0xff] %v15439_v62 }
 0xdfc   :  { %v11677_v42 = vpop.eup %11676 }
 0xdfd   :  { %v11679_v46 = vpop.eup %11678  ;;  %v5107_v31 = vmul.f32 %v11677_v42, %v5105_v43  ;;  %v5577_v43 = vld [vmem:[%s16053_s14 + $0xb8] sm:$0xff]  ;;  %v5579_v42 = vld [vmem:[%s16053_s14 + $0xc8] sm:$0xff] }
 0xdfe   :  { %v5115_v0 = vmul.f32 %v11679_v46, %v5113_v40  ;;  %v5110_v29 = vsub.f32 1.0, %v11679_v46  ;;  %v5582_v40 = vld [vmem:[%s16053_s14 + $0xe0] sm:$0xff]  ;;  %v15230_v46 = vpack.c.bf16 %v5575_v32, %v5572_v7 }
 0xdff   :  { %v5108_v36 = vadd.f32 %v5107_v31, %v16298_v55  ;;  %v15232_v31 = vpack.c.bf16 %v5577_v43, %v5574_v35  ;;  %v7689_v7 = vld [vmem:[%s16052_s13 + $0x1a0] sm:$0xff]  ;;  %v7687_v43 = vld [vmem:[%s16052_s13 + $0x190] sm:$0xff] }
 0xe00   :  { %v15356_v32 = vpack.c.bf16 %v7689_v7, %v7686_v54  ;;  %v7685_v35 = vld [vmem:[%s16052_s13 + $0x180] sm:$0xff]  ;;  %v7703_v54 = vld [vmem:[%s16052_s13 + $0x210] sm:$0xff]  ;;  %v7706_v7 = vld [vmem:[%s16052_s13 + $0x228] sm:$0xff] }
 0xe01   :  { %11680 = vtanh.f32 %v5108_v36  ;;  %v15239_v36 = vpack.c.bf16 %v5582_v40, %v5579_v42  ;;  %v7690_v40 = vld [vmem:[%s16052_s13 + $0x1a8] sm:$0xff] }
 0xe0b   :  { %v11681_v33 = vpop.eup %11680 }
 0xe0c   :  { %v5111_v51 = vmul.f32 %v11681_v33, %v5110_v29  ;;  %v5581_v29 = vld [vmem:[%s16053_s14 + $0xd8] sm:$0xff]  ;;  %v5580_v33 = vld [vmem:[%s16053_s14 + $0xd0] sm:$0xff] }
 0xe0e   :  { %v15075_v9 = vadd.f32 %v5115_v0, %v5111_v51  ;;  %v5578_v0 = vld [vmem:[%s16053_s14 + $0xc0] sm:$0xff]  ;;  %v5583_v51 = vld [vmem:[%s16053_s14 + $0xe8] sm:$0xff] }
 0xe10   :  { %v15078_v50 = vrot.slane %v15075_v9, 2 }
 0xe12   :  { %5250 = vmatmul.mubr.f32.vlgmr.msra.gmra.mrb[36].mxu1 %v15078_v50  ;;  %9490 = vmatmul.mubr.f32.vlgmr.msra.gmra.mrb[44].mxu0 %v15078_v50 }
 0xe13   :  { %11090 = vmatpush1.bf16.msra.mxu1 %v14770_v37  ;;  %11121 = vmatpush3.bf16.msra.mxu0 %v14772_v12  ;;  %v16323_v37 = vld [vmem:[#allocation20_spill] sm:$0xff]  ;;  %v16324_v12 = vld [vmem:[#allocation21_spill] sm:$0xff] }
 0xe14   :  { %11092 = vmatprep.subr.bf16.mxu1 %v14779_v20  ;;  %11122 = vmatprep.subr.bf16.mxu0 %v16192_v1  ;;  %v16326_v20 = vld [vmem:[#allocation23_spill] sm:$0xff] }
 0xe15   :  { %5455 = vmatprep.mubr.f32.mxu1 %v16197_v5  ;;  %9524 = vmatprep.mubr.msk.f32.mxu0 %vm11733_vm1, %v16197_v5 }
 0xe17   :  { %11094 = vmatpush1.bf16.msra.mxu1 %v14800_v17  ;;  %11124 = vmatpush3.bf16.msra.mxu0 %v14802_v47  ;;  %v16329_v17 = vld [vmem:[#allocation26_spill] sm:$0xff]  ;;  %v16330_v47 = vld [vmem:[#allocation27_spill] sm:$0xff] }
 0xe18   :  { %11096 = vmatprep.subr.bf16.mxu1 %v14809_v27  ;;  %11125 = vmatprep.subr.bf16.mxu0 %v16192_v1  ;;  %v16331_v27 = vld [vmem:[#allocation28_spill] sm:$0xff] }
 0xe1b   :  { %11098 = vmatpush1.bf16.msra.mxu1 %v16323_v37  ;;  %11127 = vmatpush3.bf16.msra.mxu0 %v16324_v12  ;;  %v5585_v37 = vld [vmem:[%s16053_s14 + $0xf8] sm:$0xff]  ;;  %v5588_v12 = vld [vmem:[%s16053_s14 + $0x110] sm:$0xff] }
 0xe1c   :  { %11100 = vmatprep.subr.bf16.mxu1 %v16325_v23  ;;  %11128 = vmatprep.subr.bf16.mxu0 %v16192_v1  ;;  %v15258_v23 = vpack.c.bf16 %v5581_v29, %v5578_v0  ;;  %v15373_v0 = vpack.c.bf16 %v7690_v40, %v7687_v43  ;;  %v7692_v29 = vld [vmem:[%s16052_s13 + $0x1b8] sm:$0xff] }
 0xe1d   :  { %v7708_v43 = vld [vmem:[%s16052_s13 + $0x238] sm:$0xff] }
 0xe1f   :  { %11102 = vmatpush1.bf16.msra.mxu1 %v16326_v20  ;;  %11130 = vmatpush3.bf16.msra.mxu0 %v16327_v57  ;;  %v15260_v20 = vpack.c.bf16 %v5583_v51, %v5580_v33  ;;  %v5584_v57 = vld [vmem:[%s16053_s14 + $0xf0] sm:$0xff] }
 0xe20   :  { %11104 = vmatprep.subr.bf16.mxu1 %v16328_v24  ;;  %11131 = vmatprep.subr.bf16.mxu0 %v16192_v1  ;;  %v15267_v24 = vpack.c.bf16 %v5588_v12, %v5585_v37  ;;  %v7695_v33 = vld [vmem:[%s16052_s13 + $0x1d0] sm:$0xff]  ;;  %v7694_v12 = vld [vmem:[%s16052_s13 + $0x1c8] sm:$0xff] }
 0xe21   :  { %v15383_v51 = vpack.c.bf16 %v7695_v33, %v7692_v29  ;;  %v7691_v37 = vld [vmem:[%s16052_s13 + $0x1b0] sm:$0xff]  ;;  %v7710_v29 = vld [vmem:[%s16052_s13 + $0x248] sm:$0xff]  ;;  %v7713_v33 = vld [vmem:[%s16052_s13 + $0x260] sm:$0xff] }
 0xe23   :  { %11106 = vmatpush1.bf16.msra.mxu1 %v16329_v17  ;;  %11133 = vmatpush3.bf16.msra.mxu0 %v16330_v47  ;;  %v5587_v17 = vld [vmem:[%s16053_s14 + $0x108] sm:$0xff]  ;;  %v5586_v47 = vld [vmem:[%s16053_s14 + $0x100] sm:$0xff] }
 0xe24   :  { %11108 = vmatprep.subr.bf16.mxu1 %v16331_v27  ;;  %11134 = vmatprep.subr.bf16.mxu0 %v16192_v1  ;;  %v5589_v27 = vld [vmem:[%s16053_s14 + $0x118] sm:$0xff] }
 0xe27   :  { %11110 = vmatpush1.bf16.msra.mxu1 %v16332_v63  ;;  %11136 = vmatpush3.bf16.msra.mxu0 %v14917_v28  ;;  %v5554_v28 = vld [vmem:[%s16053_s14] sm:$0xff]  ;;  %v5591_v63 = vld [vmem:[%s16053_s14 + $0x128] sm:$0xff] }
 0xe28   :  { %11112 = vmatprep.subr.bf16.mxu1 %v14924_v61  ;;  %11137 = vmatprep.subr.bf16.mxu0 %v16192_v1  ;;  %v15122_v61 = vpack.c.bf16 %v5558_v15, %v5555_v30  ;;  %v15141_v34 = vpack.c.bf16 %v5557_v25, %v5554_v28  ;;  %v5594_v30 = vld [vmem:[%s16053_s14 + $0x140] sm:$0xff]  ;;  %v15286_v15 = vpack.c.bf16 %v5587_v17, %v5584_v57 }
 0xe29   :  { %v15288_v28 = vpack.c.bf16 %v5589_v27, %v5586_v47  ;;  %v5590_v25 = vld [vmem:[%s16053_s14 + $0x120] sm:$0xff]  ;;  %v15395_v17 = vpack.c.bf16 %v7694_v12, %v7691_v37  ;;  %v7696_v47 = vld [vmem:[%s16052_s13 + $0x1d8] sm:$0xff]  ;;  %v15467_v37 = vpack.c.bf16 %v7713_v33, %v7710_v29  ;;  %v7722_v29 = vld [vmem:[%s16052_s13 + $0x2a8] sm:$0xff] }
 0xe2a   :  { %v7693_v57 = vld [vmem:[%s16052_s13 + $0x1c0] sm:$0xff] }
 0xe2b   :  { %11114 = vmatpush1.bf16.msra.mxu1 %v14943_v26  ;;  %11139 = vmatpush3.bf16.msra.mxu0 %v14945_v56  ;;  %v5556_v26 = vld [vmem:[%s16053_s14 + $0x10] sm:$0xff]  ;;  %v5559_v56 = vld [vmem:[%s16053_s14 + $0x28] sm:$0xff]  ;;  %v15401_v27 = vpack.c.bf16 %v7696_v47, %v7693_v57  ;;  %16337 = vst [vmem:[#allocation8_spill] sm:$0xff] %v15467_v37  ;;  %v7709_v12 = vld [vmem:[%s16052_s13 + $0x240] sm:$0xff] }
 0xe2c   :  { %11116 = vmatprep.subr.bf16.mxu1 %v14952_v16  ;;  %11140 = vmatprep.subr.bf16.mxu0 %v16192_v1  ;;  %v5561_v16 = vld [vmem:[%s16053_s14 + $0x38] sm:$0xff]  ;;  %v15143_v10 = vpack.c.bf16 %v5559_v56, %v5556_v26  ;;  %v15295_v26 = vpack.c.bf16 %v5594_v30, %v5591_v63  ;;  %v7698_v63 = vld [vmem:[%s16052_s13 + $0x1e8] sm:$0xff]  ;;  %v7701_v30 = vld [vmem:[%s16052_s13 + $0x200] sm:$0xff] }
 0xe2d   :  { %v15150_v39 = vpack.c.bf16 %v5564_v6, %v5561_v16  ;;  %v5593_v56 = vld [vmem:[%s16053_s14 + $0x138] sm:$0xff]  ;;  %v5592_v16 = vld [vmem:[%s16053_s14 + $0x130] sm:$0xff]  ;;  %v5595_v6 = vld [vmem:[%s16053_s14 + $0x148] sm:$0xff] }
 0xe2e   :  { %v7712_v57 = vld [vmem:[%s16052_s13 + $0x258] sm:$0xff]  ;;  %v7711_v47 = vld [vmem:[%s16052_s13 + $0x250] sm:$0xff]  ;;  %v7725_v33 = vld [vmem:[%s16052_s13 + $0x2c0] sm:$0xff] }
 0xe2f   :  { %11118 = vmatpush1.bf16.msra.mxu1 %v14965_v53  ;;  %11142 = vmatpush3.bf16.msra.mxu0 %v14967_v22  ;;  %v5563_v53 = vld [vmem:[%s16053_s14 + $0x48] sm:$0xff]  ;;  %v5562_v22 = vld [vmem:[%s16053_s14 + $0x40] sm:$0xff] }
 0xe30   :  { %11144 = vmatprep.subr.bf16.mxu1 %v15122_v61  ;;  %11175 = vmatprep.subr.bf16.mxu0 %v16192_v1  ;;  %v15171_v44 = vpack.c.bf16 %v5563_v53, %v5560_v18  ;;  %v15173_v11 = vpack.c.bf16 %v5565_v2, %v5562_v22  ;;  %v5597_v18 = vld [vmem:[%s16053_s14 + $0x158] sm:$0xff]  ;;  %v5600_v53 = vld [vmem:[%s16053_s14 + $0x170] sm:$0xff]  ;;  %v15314_v22 = vpack.c.bf16 %v5593_v56, %v5590_v25  ;;  %v7697_v56 = vld [vmem:[%s16052_s13 + $0x1e0] sm:$0xff] }
 0xe31   :  { %v15316_v2 = vpack.c.bf16 %v5595_v6, %v5592_v16  ;;  %v15323_v52 = vpack.c.bf16 %v5600_v53, %v5597_v18  ;;  %v15411_v25 = vpack.c.bf16 %v7701_v30, %v7698_v63  ;;  %v7700_v16 = vld [vmem:[%s16052_s13 + $0x1f8] sm:$0xff]  ;;  %v7699_v6 = vld [vmem:[%s16052_s13 + $0x1f0] sm:$0xff]  ;;  %v7702_v53 = vld [vmem:[%s16052_s13 + $0x208] sm:$0xff]  ;;  %v15479_v63 = vpack.c.bf16 %v7712_v57, %v7709_v12 }
 0xe32   :  { %5456 = vmatmul.mubr.f32.vlgmr.msra.gmra.mrb[36].mxu1 %v15069_v13  ;;  %9525 = vmatmul.mubr.f32.vlgmr.msra.gmra.mrb[46].mxu0 %v15069_v13  ;;  %v15423_v18 = vpack.c.bf16 %v7700_v16, %v7697_v56  ;;  %v15429_v38 = vpack.c.bf16 %v7702_v53, %v7699_v6  ;;  %v7714_v30 = vld [vmem:[%s16052_s13 + $0x268] sm:$0xff]  ;;  %v7716_v16 = vld [vmem:[%s16052_s13 + $0x278] sm:$0xff]  ;;  %v7719_v6 = vld [vmem:[%s16052_s13 + $0x290] sm:$0xff]  ;;  %v15524_v57 = vpack.c.bf16 %v7725_v33, %v7722_v29 }
 0xe33   :  { %11146 = vmatpush1.bf16.msra.mxu1 %v15141_v34  ;;  %11177 = vmatpush3.bf16.msra.mxu0 %v15143_v10  ;;  %16338 = vst [vmem:[#allocation9_spill] sm:$0xff] %v15479_v63  ;;  %v15485_v56 = vpack.c.bf16 %v7714_v30, %v7711_v47  ;;  %v7715_v53 = vld [vmem:[%s16052_s13 + $0x270] sm:$0xff]  ;;  %v15497_v45 = vpack.c.bf16 %v7719_v6, %v7716_v16  ;;  %v7721_v12 = vld [vmem:[%s16052_s13 + $0x2a0] sm:$0xff]  ;;  %v7724_v47 = vld [vmem:[%s16052_s13 + $0x2b8] sm:$0xff] }
 0xe34   :  { %11148 = vmatprep.subr.bf16.mxu1 %v15150_v39  ;;  %11178 = vmatprep.subr.bf16.mxu0 %v16192_v1  ;;  %16333 = vst [vmem:[#allocation30_spill] sm:$0xff] %v15429_v38  ;;  %16343 = vst [vmem:[#allocation14_spill] sm:$0xff] %v15524_v57  ;;  %v7723_v30 = vld [vmem:[%s16052_s13 + $0x2b0] sm:$0xff]  ;;  %v7726_v16 = vld [vmem:[%s16052_s13 + $0x2c8] sm:$0xff] }
 0xe35   :  { %5683 = vmatprep.mubr.f32.mxu1 %v16197_v5  ;;  %9559 = vmatprep.mubr.msk.f32.mxu0 %vm11733_vm1, %v16197_v5  ;;  %16339 = vst [vmem:[#allocation10_spill] sm:$0xff] %v15485_v56  ;;  %16340 = vst [vmem:[#allocation11_spill] sm:$0xff] %v15497_v45  ;;  %v7728_v6 = vld [vmem:[%s16052_s13 + $0x2d8] sm:$0xff]  ;;  %v7727_v29 = vld [vmem:[%s16052_s13 + $0x2d0] sm:$0xff] }
 0xe36   :  { %v7730_v33 = vld [vmem:[%s16052_s13 + $0x2e8] sm:$0xff] }
 0xe37   :  { %11150 = vmatpush1.bf16.msra.mxu1 %v15171_v44  ;;  %11180 = vmatpush3.bf16.msra.mxu0 %v15173_v11 }
 0xe38   :  { %11152 = vmatprep.subr.bf16.mxu1 %v15180_v8  ;;  %11181 = vmatprep.subr.bf16.mxu0 %v16192_v1 }
 0xe3b   :  { %11154 = vmatpush1.bf16.msra.mxu1 %v15202_v60  ;;  %11183 = vmatpush3.bf16.msra.mxu0 %v15204_v21 }
 0xe3c   :  { %11156 = vmatprep.subr.bf16.mxu1 %v15211_v49  ;;  %11184 = vmatprep.subr.bf16.mxu0 %v16192_v1 }
 0xe3f   :  { %11158 = vmatpush1.bf16.msra.mxu1 %v15230_v46  ;;  %11186 = vmatpush3.bf16.msra.mxu0 %v15232_v31 }
 0xe40   :  { %11160 = vmatprep.subr.bf16.mxu1 %v15239_v36  ;;  %11187 = vmatprep.subr.bf16.mxu0 %v16192_v1 }
 0xe43   :  { %11162 = vmatpush1.bf16.msra.mxu1 %v15258_v23  ;;  %11189 = vmatpush3.bf16.msra.mxu0 %v15260_v20 }
 0xe44   :  { %11164 = vmatprep.subr.bf16.mxu1 %v15267_v24  ;;  %11190 = vmatprep.subr.bf16.mxu0 %v16192_v1 }
 0xe47   :  { %11166 = vmatpush1.bf16.msra.mxu1 %v15286_v15  ;;  %11192 = vmatpush3.bf16.msra.mxu0 %v15288_v28 }
 0xe48   :  { %11168 = vmatprep.subr.bf16.mxu1 %v15295_v26  ;;  %11193 = vmatprep.subr.bf16.mxu0 %v16192_v1 }
 0xe4b   :  { %11170 = vmatpush1.bf16.msra.mxu1 %v15314_v22  ;;  %11195 = vmatpush3.bf16.msra.mxu0 %v15316_v2 }
 0xe4c   :  { %11172 = vmatprep.subr.bf16.mxu1 %v15323_v52  ;;  %11196 = vmatprep.subr.bf16.mxu0 %v16192_v1 }
 0xe4f   :  { %11174 = vmatpush1.bf16.msra.mxu1 %v15336_v48  ;;  %11198 = vmatpush3.bf16.msra.mxu0 %v15338_v58 }
 0xe50   :  { %11231 = vmatprep.subr.bf16.mxu0 %v16192_v1  ;;  %11200 = vmatprep.subr.bf16.mxu1 %v15356_v32 }
 0xe52   :  { %5684 = vmatmul.mubr.f32.vlgmr.msra.gmra.mrb[38].mxu1 %v15078_v50  ;;  %9560 = vmatmul.mubr.f32.vlgmr.msra.gmra.mrb[48].mxu0 %v15078_v50  ;;  %v7688_v50 = vld [vmem:[%s16052_s13 + $0x198] sm:$0xff] }
 0xe53   :  { %5924 = vmatprep.mubr.f32.mxu1 %v16197_v5  ;;  %9594 = vmatprep.mubr.msk.f32.mxu0 %vm11733_vm1, %v16197_v5  ;;  %v15367_v42 = vpack.c.bf16 %v7688_v50, %v7685_v35  ;;  %v7705_v35 = vld [vmem:[%s16052_s13 + $0x220] sm:$0xff]  ;;  %v15451_v50 = vpack.c.bf16 %v7706_v7, %v7703_v54  ;;  %v7720_v7 = vld [vmem:[%s16052_s13 + $0x298] sm:$0xff] }
 0xe54   :  { %11233 = vmatpush3.bf16.msra.mxu0 %v15373_v0  ;;  %v15457_v40 = vpack.c.bf16 %v7708_v43, %v7705_v35  ;;  %v7717_v54 = vld [vmem:[%s16052_s13 + $0x280] sm:$0xff]  ;;  %v15509_v35 = vpack.c.bf16 %v7718_v19, %v7715_v53  ;;  %v7731_v53 = vld [vmem:[%s16052_s13 + $0x2f0] sm:$0xff]  ;;  %v15542_v19 = vpack.c.bf16 %v7724_v47, %v7721_v12  ;;  %v7732_v47 = vld [vmem:[%s16052_s13 + $0x2f8] sm:$0xff] }
 0xe55   :  { %11202 = vmatpush1.bf16.msra.mxu1 %v15367_v42  ;;  %11234 = vmatprep.subr.bf16.mxu0 %v16192_v1  ;;  %16335 = vst [vmem:[#allocation7_spill] sm:$0xff] %v15451_v50  ;;  %v15511_v43 = vpack.c.bf16 %v7720_v7, %v7717_v54  ;;  %v15546_v54 = vpack.c.bf16 %v7726_v16, %v7723_v30  ;;  %v7729_v12 = vld [vmem:[%s16052_s13 + $0x2e0] sm:$0xff]  ;;  %v7735_v30 = vld [vmem:[%s16053_s14 + $0x188] sm:$0xff] }
 0xe56   :  { %11204 = vmatprep.subr.bf16.mxu1 %v15383_v51  ;;  %16336 = vst [vmem:[#allocation3_spill] sm:$0xff] %v15457_v40  ;;  %16341 = vst [vmem:[#allocation12_spill] sm:$0xff] %v15509_v35  ;;  %v15548_v7 = vpack.c.bf16 %v7731_v53, %v7728_v6  ;;  %v7738_v16 = vld [vmem:[%s16053_s14 + $0x1a0] sm:$0xff]  ;;  %v15570_v6 = vpack.c.bf16 %v7730_v33, %v7727_v29  ;;  %v15574_v53 = vpack.c.bf16 %v7732_v47, %v7729_v12 }
 0xe57   :  { %16342 = vst [vmem:[#allocation13_spill] sm:$0xff] %v15511_v43  ;;  %16344 = vst [vmem:[#allocation15_spill] sm:$0xff] %v15542_v19  ;;  %v7631_v12 = vld [vmem:[%s16054_s15 + $0x3] sm:$0x7] }
 0xe58   :  { %11236 = vmatpush3.bf16.msra.mxu0 %v15401_v27  ;;  %16345 = vst [vmem:[#allocation16_spill] sm:$0xff] %v15546_v54  ;;  %16346 = vst [vmem:[#allocation17_spill] sm:$0xff] %v15548_v7  ;;  %v5170_v47 = vrot.slane %v7631_v12, %v16219_v4 }
 0xe59   :  { %11206 = vmatpush1.bf16.msra.mxu1 %v15395_v17  ;;  %11237 = vmatprep.subr.bf16.mxu0 %v16192_v1  ;;  %16347 = vst [vmem:[#allocation18_spill] sm:$0xff] %v15570_v6  ;;  %16348 = vst [vmem:[#allocation4_spill] sm:$0xff] %v15574_v53 }
 0xe5a   :  { %11208 = vmatprep.subr.bf16.mxu1 %v15411_v25 }
 0xe5c   :  { %11239 = vmatpush3.bf16.msra.mxu0 %v15429_v38  ;;  %v5178_v38 = vrot.slane %v7631_v12, %v12743_v41 }
 0xe5d   :  { %11210 = vmatpush1.bf16.msra.mxu1 %v15423_v18  ;;  %11240 = vmatprep.subr.bf16.mxu0 %v16192_v1 }
 0xe5e   :  { %11212 = vmatprep.subr.bf16.mxu1 %v15439_v62 }
 0xe60   :  { %11242 = vmatpush3.bf16.msra.mxu0 %v15457_v40 }
 0xe61   :  { %11214 = vmatpush1.bf16.msra.mxu1 %v15451_v50  ;;  %11243 = vmatprep.subr.bf16.mxu0 %v16192_v1 }
 0xe62   :  { %11216 = vmatprep.subr.bf16.mxu1 %v15467_v37 }
 0xe64   :  { %11245 = vmatpush3.bf16.msra.mxu0 %v15485_v56 }
 0xe65   :  { %11218 = vmatpush1.bf16.msra.mxu1 %v15479_v63  ;;  %11246 = vmatprep.subr.bf16.mxu0 %v16192_v1 }
 0xe66   :  { %11220 = vmatprep.subr.bf16.mxu1 %v15497_v45 }
 0xe68   :  { %11248 = vmatpush3.bf16.msra.mxu0 %v15511_v43 }
 0xe69   :  { %11222 = vmatpush1.bf16.msra.mxu1 %v15509_v35  ;;  %11249 = vmatprep.subr.bf16.mxu0 %v16192_v1 }
 0xe6a   :  { %11224 = vmatprep.subr.bf16.mxu1 %v15524_v57  ;;  %v15576_v57 = vpack.c.bf16 %v7738_v16, %v7735_v30  ;;  %v5174_v16 = vrot.slane %v7631_v12, %v16220_v14 }
 0xe6c   :  { %11251 = vmatpush3.bf16.msra.mxu0 %v15546_v54  ;;  %16349 = vst [vmem:[#allocation5_spill] sm:$0xff] %v15576_v57 }
 0xe6d   :  { %11226 = vmatpush1.bf16.msra.mxu1 %v15542_v19  ;;  %11252 = vmatprep.subr.bf16.mxu0 %v16192_v1 }
 0xe6e   :  { %11228 = vmatprep.subr.bf16.mxu1 %v15548_v7  ;;  %v7680_v7 = vld [vmem:[%s16056_s16 + $0x3] sm:$0x7] }
 0xe6f   :  { %v5379_v30 = vrot.slane %v7680_v7, %v16219_v4  ;;  %v5387_v62 = vrot.slane %v7680_v7, %v12743_v41 }
 0xe70   :  { %11254 = vmatpush3.bf16.msra.mxu0 %v15574_v53 }
 0xe71   :  { %11230 = vmatpush1.bf16.msra.mxu1 %v15570_v6  ;;  %11287 = vmatprep.subr.bf16.mxu0 %v16192_v1  ;;  %v11531_v53 = vadd.f32 %v5379_v30, %v5170_v47 }
 0xe72   :  { %11256 = vmatprep.subr.bf16.mxu1 %v15576_v57  ;;  %v5383_v57 = vrot.slane %v7680_v7, %v16220_v14 }
 0xee5   :  { %v5322_v29 = vpop.f32.mrb[44].mxu0 }
 0xee6   :  { %v9491_v33 = vpop.f32.mrb[45].mxu0 }
 0xee7   :  { %v11533_v33 = vadd.f32 %v5383_v57, %v5174_v16  ;;  %v5602_v57 = vld [vmem:[%s16056_s16] sm:$0x7] }
 0xf05   :  { %v5457_v6 = vpop.f32.mrb[36].mxu1  ;;  %v5528_v54 = vpop.f32.mrb[46].mxu0 }
 0xf06   :  { %v11532_v19 = vadd.f32 %v11531_v53, %v5457_v6  ;;  %v5459_v43 = vpop.f32.mrb[37].mxu1  ;;  %v9526_v35 = vpop.f32.mrb[47].mxu0  ;;  %v5529_v6 = vadd.f32 %v5528_v54, %v5387_v62 }
 0xf07   :  { %v11534_v56 = vadd.f32 %v11533_v33, %v5459_v43 }
 0xf08   :  { %v7681_v45 = vmul.f32 -1.442695, %v11532_v19  ;;  %v5323_v19 = vadd.f32 %v5322_v29, %v5178_v38 }
 0xf09   :  { %v7682_v63 = vmul.f32 -1.442695, %v11534_v56 }
 0xf0a   :  { %11682 = vpow2.f32 %v7681_v45 }
 0xf0b   :  { %11684 = vpow2.f32 %v7682_v63  ;;  %v5607_v63 = vrot.slane %v5602_v57, %v16219_v4 }
 0xf14   :  { %v11683_v37 = vpop.eup %11682 }
 0xf15   :  { %v5536_v40 = vadd.f32 1.0, %v11683_v37  ;;  %v11685_v50 = vpop.eup %11684  ;;  %v5611_v37 = vrot.slane %v5602_v57, %v16220_v14 }
 0xf16   :  { %v5543_v47 = vadd.f32 1.0, %v11685_v50 }
 0xf17   :  { %11686 = vrcp.f32 %v5536_v40 }
 0xf18   :  { %11688 = vrcp.f32 %v5543_v47 }
 0xf21   :  { %v11687_v35 = vpop.eup %11686 }
 0xf22   :  { %v5546_v43 = vmul.f32 %v11687_v35, %v5529_v6  ;;  %v11689_v54 = vpop.eup %11688 }
 0xf23   :  { %v5549_v47 = vsub.f32 1.0, %v11689_v54 }
 0xf24   :  { %v5547_v40 = vadd.f32 %v5546_v43, %v5323_v19  ;;  %v5551_v19 = vmul.f32 %v11689_v54, %v15069_v13 }
 0xf25   :  { %v5685_v56 = vpop.f32.mrb[38].mxu1  ;;  %v5756_v45 = vpop.f32.mrb[48].mxu0 }
 0xf26   :  { %11690 = vtanh.f32 %v5547_v40  ;;  %v5686_v7 = vadd.f32 %v5685_v56, %v5607_v63  ;;  %v5687_v53 = vpop.f32.mrb[39].mxu1  ;;  %v9561_v50 = vpop.f32.mrb[49].mxu0 }
 0xf27   :  { %v5688_v12 = vadd.f32 %v5687_v53, %v5611_v37 }
 0xf28   :  { %v5761_v30 = vrot.slane %v5686_v7, 4  ;;  %v5615_v7 = vrot.slane %v5602_v57, %v12743_v41  ;;  %v7737_v57 = vld [vmem:[%s16053_s14 + $0x198] sm:$0xff] }
 0xf29   :  { %v5771_v16 = vrot.slane %v5688_v12, 4 }
 0xf2a   :  { %v5763_v62 = vadd.f32 %v5761_v30, %v16296_v3  ;;  %v5757_v53 = vadd.f32 %v5756_v45, %v5615_v7  ;;  %v5788_v30 = vrot.slane %v15075_v9, 6  ;;  %v7736_v9 = vld [vmem:[%s16053_s14 + $0x190] sm:$0xff]  ;;  %v7739_v45 = vld [vmem:[%s16053_s14 + $0x1a8] sm:$0xff] }
 0xf2b   :  { %v5773_v38 = vadd.f32 %v5771_v16, %v16297_v59 }
 0xf2c   :  { %v7683_v29 = vmul.f32 -1.442695, %v5763_v62  ;;  %v5781_v50 = vrot.slane %v5757_v53, 4  ;;  %v7743_v53 = vld [vmem:[%s16053_s14 + $0x1c8] sm:$0xff] }
 0xf2d   :  { %v7684_v33 = vmul.f32 -1.442695, %v5773_v38 }
 0xf2e   :  { %11692 = vpow2.f32 %v7683_v29 }
 0xf2f   :  { %11694 = vpow2.f32 %v7684_v33  ;;  %v7734_v33 = vld [vmem:[%s16053_s14 + $0x180] sm:$0xff] }
 0xf30   :  { %v11691_v6 = vpop.eup %11690 }
 0xf31   :  { %v5550_v35 = vmul.f32 %v11691_v6, %v5549_v47  ;;  %v7741_v6 = vld [vmem:[%s16053_s14 + $0x1b8] sm:$0xff] }
 0xf33   :  { %v15603_v43 = vadd.f32 %v5551_v19, %v5550_v35  ;;  %v7744_v35 = vld [vmem:[%s16053_s14 + $0x1d0] sm:$0xff] }
 0xf34   :  { %v15639_v7 = vpack.c.bf16 %v7744_v35, %v7741_v6  ;;  %v7752_v35 = vld [vmem:[%s16053_s14 + $0x210] sm:$0xff] }
 0xf35   :  { %5553 = vst [vmem:[#allocation2 + $0xa] sm:$0x3] %v15603_v43 }
 0xf38   :  { %v11693_v63 = vpop.eup %11692 }
 0xf39   :  { %v11695_v37 = vpop.eup %11694  ;;  %v5767_v40 = vadd.f32 1.0, %v11693_v63  ;;  %v15629_v63 = vpack.c.bf16 %v7737_v57, %v7734_v33  ;;  %v7748_v33 = vld [vmem:[%s16053_s14 + $0x1f0] sm:$0xff]  ;;  %v7753_v57 = vld [vmem:[%s16053_s14 + $0x218] sm:$0xff] }
 0xf3a   :  { %v5777_v56 = vadd.f32 1.0, %v11695_v37  ;;  %v15631_v37 = vpack.c.bf16 %v7739_v45, %v7736_v9  ;;  %v7756_v9 = vld [vmem:[%s16053_s14 + $0x230] sm:$0xff] }
 0xf3b   :  { %11696 = vrcp.f32 %v5767_v40  ;;  %v7740_v40 = vld [vmem:[%s16053_s14 + $0x1b0] sm:$0xff] }
 0xf3c   :  { %11698 = vrcp.f32 %v5777_v56 }
 0xf45   :  { %v11697_v12 = vpop.eup %11696 }
 0xf46   :  { %v11699_v16 = vpop.eup %11698  ;;  %v5783_v62 = vmul.f32 %v11697_v12, %v5781_v50  ;;  %v7742_v50 = vld [vmem:[%s16053_s14 + $0x1c0] sm:$0xff]  ;;  %v7745_v12 = vld [vmem:[%s16053_s14 + $0x1d8] sm:$0xff] }
 0xf47   :  { %v5790_v13 = vmul.f32 %v11699_v16, %v5788_v30  ;;  %v5786_v54 = vsub.f32 1.0, %v11699_v16  ;;  %v7747_v30 = vld [vmem:[%s16053_s14 + $0x1e8] sm:$0xff]  ;;  %v7750_v16 = vld [vmem:[%s16053_s14 + $0x200] sm:$0xff] }
 0xf48   :  { %v5784_v38 = vadd.f32 %v5783_v62, %v16298_v55  ;;  %v15660_v62 = vpack.c.bf16 %v7743_v53, %v7740_v40  ;;  %v15700_v40 = vpack.c.bf16 %v7756_v9, %v7753_v57  ;;  %v7755_v53 = vld [vmem:[%s16053_s14 + $0x228] sm:$0xff]  ;;  %v7761_v57 = vld [vmem:[%s16053_s14 + $0x258] sm:$0xff]  ;;  %v7760_v9 = vld [vmem:[%s16053_s14 + $0x250] sm:$0xff] }
 0xf4a   :  { %11700 = vtanh.f32 %v5784_v38  ;;  %v7746_v38 = vld [vmem:[%s16053_s14 + $0x1e0] sm:$0xff]  ;;  %16350 = vst [vmem:[#allocation19_spill] sm:$0xff] %v15700_v40 }
 0xf54   :  { %v11701_v29 = vpop.eup %11700 }
 0xf55   :  { %v5787_v47 = vmul.f32 %v11701_v29, %v5786_v54  ;;  %v15669_v54 = vpack.c.bf16 %v7750_v16, %v7747_v30  ;;  %v7749_v29 = vld [vmem:[%s16053_s14 + $0x1f8] sm:$0xff]  ;;  %v7759_v30 = vld [vmem:[%s16053_s14 + $0x248] sm:$0xff]  ;;  %v7762_v16 = vld [vmem:[%s16053_s14 + $0x260] sm:$0xff] }
 0xf56   :  { %v15691_v45 = vpack.c.bf16 %v7749_v29, %v7746_v38  ;;  %v15719_v38 = vpack.c.bf16 %v7755_v53, %v7752_v35  ;;  %v7763_v35 = vld [vmem:[%s16053_s14 + $0x268] sm:$0xff]  ;;  %v7765_v53 = vld [vmem:[%s16053_s14 + $0x278] sm:$0xff] }
 0xf57   :  { %v15627_v19 = vadd.f32 %v5790_v13, %v5787_v47  ;;  %v15662_v13 = vpack.c.bf16 %v7745_v12, %v7742_v50  ;;  %v7751_v47 = vld [vmem:[%s16053_s14 + $0x208] sm:$0xff]  ;;  %v7754_v50 = vld [vmem:[%s16053_s14 + $0x220] sm:$0xff]  ;;  %v7757_v12 = vld [vmem:[%s16053_s14 + $0x238] sm:$0xff] }
 0xf58   :  { %v15693_v6 = vpack.c.bf16 %v7751_v47, %v7748_v33  ;;  %16351 = vst [vmem:[#allocation20_spill] sm:$0xff] %v15719_v38  ;;  %v15721_v29 = vpack.c.bf16 %v7757_v12, %v7754_v50  ;;  %v7758_v33 = vld [vmem:[%s16053_s14 + $0x240] sm:$0xff]  ;;  %v15728_v47 = vpack.c.bf16 %v7762_v16, %v7759_v30  ;;  %v7768_v50 = vld [vmem:[%s16053_s14 + $0x290] sm:$0xff]  ;;  %v15749_v30 = vpack.c.bf16 %v7763_v35, %v7760_v9  ;;  %v7771_v9 = vld [vmem:[%s16053_s14 + $0x2a8] sm:$0xff] }
 0xf59   :  { %v15637_v56 = vrot.slane %v15627_v19, 4  ;;  %v15747_v12 = vpack.c.bf16 %v7761_v57, %v7758_v33  ;;  %v7764_v16 = vld [vmem:[%s16053_s14 + $0x270] sm:$0xff]  ;;  %v7766_v33 = vld [vmem:[%s16053_s14 + $0x280] sm:$0xff]  ;;  %v7769_v57 = vld [vmem:[%s16053_s14 + $0x298] sm:$0xff] }
 0xf5a   :  { %16352 = vst [vmem:[#allocation21_spill] sm:$0xff] %v15721_v29  ;;  %16353 = vst [vmem:[#allocation22_spill] sm:$0xff] %v15728_v47  ;;  %v7774_v35 = vld [vmem:[%s16053_s14 + $0x2c0] sm:$0xff] }
 0xf5b   :  { %5925 = vmatmul.mubr.f32.vlgmr.msra.gmra.mrb[40].mxu1 %v15637_v56  ;;  %9595 = vmatmul.mubr.f32.vlgmr.msra.gmra.mrb[50].mxu0 %v15637_v56  ;;  %16354 = vst [vmem:[#allocation23_spill] sm:$0xff] %v15747_v12  ;;  %16355 = vst [vmem:[#allocation24_spill] sm:$0xff] %v15749_v30 }
 0xf5c   :  { %11258 = vmatpush1.bf16.msra.mxu1 %v15629_v63  ;;  %11289 = vmatpush3.bf16.msra.mxu0 %v15631_v37 }
 0xf5d   :  { %11260 = vmatprep.subr.bf16.mxu1 %v15639_v7  ;;  %11290 = vmatprep.subr.bf16.mxu0 %v16192_v1 }
 0xf5e   :  { %6130 = vmatprep.mubr.f32.mxu1 %v16197_v5  ;;  %9629 = vmatprep.mubr.msk.f32.mxu0 %vm11733_vm1, %v16197_v5 }
 0xf60   :  { %11262 = vmatpush1.bf16.msra.mxu1 %v15660_v62  ;;  %11292 = vmatpush3.bf16.msra.mxu0 %v15662_v13 }
 0xf61   :  { %11264 = vmatprep.subr.bf16.mxu1 %v15669_v54  ;;  %11293 = vmatprep.subr.bf16.mxu0 %v16192_v1 }
 0xf64   :  { %11266 = vmatpush1.bf16.msra.mxu1 %v15691_v45  ;;  %11295 = vmatpush3.bf16.msra.mxu0 %v15693_v6 }
 0xf65   :  { %11268 = vmatprep.subr.bf16.mxu1 %v15700_v40  ;;  %11296 = vmatprep.subr.bf16.mxu0 %v16192_v1  ;;  %v15756_v40 = vpack.c.bf16 %v7768_v50, %v7765_v53  ;;  %v15777_v50 = vpack.c.bf16 %v7769_v57, %v7766_v33  ;;  %v7777_v33 = vld [vmem:[%s16053_s14 + $0x2d8] sm:$0xff]  ;;  %v7780_v57 = vld [vmem:[%s16053_s14 + $0x2f0] sm:$0xff] }
 0xf67   :  { %16356 = vst [vmem:[#allocation25_spill] sm:$0xff] %v15756_v40 }
 0xf68   :  { %11270 = vmatpush1.bf16.msra.mxu1 %v15719_v38  ;;  %11298 = vmatpush3.bf16.msra.mxu0 %v15721_v29  ;;  %v7767_v38 = vld [vmem:[%s16053_s14 + $0x288] sm:$0xff]  ;;  %v15784_v29 = vpack.c.bf16 %v7774_v35, %v7771_v9 }
 0xf69   :  { %11272 = vmatprep.subr.bf16.mxu1 %v15728_v47  ;;  %11299 = vmatprep.subr.bf16.mxu0 %v16192_v1  ;;  %v15775_v53 = vpack.c.bf16 %v7767_v38, %v7764_v16  ;;  %v7770_v47 = vld [vmem:[%s16053_s14 + $0x2a0] sm:$0xff]  ;;  %v7772_v38 = vld [vmem:[%s16053_s14 + $0x2b0] sm:$0xff]  ;;  %v7775_v16 = vld [vmem:[%s16053_s14 + $0x2c8] sm:$0xff] }
 0xf6a   :  { %v15805_v35 = vpack.c.bf16 %v7775_v16, %v7772_v38 }
 0xf6b   :  { %16357 = vst [vmem:[#allocation26_spill] sm:$0xff] %v15775_v53 }
 0xf6c   :  { %11274 = vmatpush1.bf16.msra.mxu1 %v15747_v12  ;;  %11301 = vmatpush3.bf16.msra.mxu0 %v15749_v30  ;;  %v7773_v12 = vld [vmem:[%s16053_s14 + $0x2b8] sm:$0xff]  ;;  %v15812_v30 = vpack.c.bf16 %v7780_v57, %v7777_v33 }
 0xf6d   :  { %11276 = vmatprep.subr.bf16.mxu1 %v15756_v40  ;;  %11302 = vmatprep.subr.bf16.mxu0 %v16192_v1  ;;  %v15803_v9 = vpack.c.bf16 %v7773_v12, %v7770_v47  ;;  %v7776_v40 = vld [vmem:[%s16053_s14 + $0x2d0] sm:$0xff]  ;;  %v7778_v47 = vld [vmem:[%s16053_s14 + $0x2e0] sm:$0xff]  ;;  %v7781_v12 = vld [vmem:[%s16053_s14 + $0x2f8] sm:$0xff] }
 0xf6e   :  { %v15827_v16 = vpack.c.bf16 %v7781_v12, %v7778_v47 }
 0xf70   :  { %11278 = vmatpush1.bf16.msra.mxu1 %v15775_v53  ;;  %11304 = vmatpush3.bf16.msra.mxu0 %v15777_v50  ;;  %v7779_v53 = vld [vmem:[%s16053_s14 + $0x2e8] sm:$0xff] }
 0xf71   :  { %11280 = vmatprep.subr.bf16.mxu1 %v15784_v29  ;;  %11305 = vmatprep.subr.bf16.mxu0 %v16192_v1  ;;  %v15825_v38 = vpack.c.bf16 %v7779_v53, %v7776_v40 }
 0xf74   :  { %11282 = vmatpush1.bf16.msra.mxu1 %v15803_v9  ;;  %11307 = vmatpush3.bf16.msra.mxu0 %v15805_v35 }
 0xf75   :  { %11284 = vmatprep.subr.bf16.mxu1 %v15812_v30  ;;  %11308 = vmatprep.subr.bf16.mxu0 %v16192_v1 }
 0xf78   :  { %11286 = vmatpush1.bf16.msra.mxu1 %v15825_v38  ;;  %11310 = vmatpush3.bf16.msra.mxu0 %v15827_v16 }
 0xf79   :  { %11312 = vmatprep.subr.bf16.mxu1 %v15122_v61  ;;  %11343 = vmatprep.subr.bf16.mxu0 %v16192_v1  ;;  %v16358_v61 = vld [vmem:[#allocation30_spill] sm:$0xff] }
 0xf7b   :  { %6131 = vmatmul.mubr.f32.vlgmr.msra.gmra.mrb[40].mxu1 %v15603_v43  ;;  %9630 = vmatmul.mubr.f32.vlgmr.msra.gmra.mrb[52].mxu0 %v15603_v43 }
 0xf7c   :  { %11314 = vmatpush1.bf16.msra.mxu1 %v15141_v34  ;;  %11345 = vmatpush3.bf16.msra.mxu0 %v15143_v10  ;;  %v16359_v34 = vld [vmem:[#allocation6_spill] sm:$0xff]  ;;  %v16360_v10 = vld [vmem:[#allocation7_spill] sm:$0xff] }
 0xf7d   :  { %11316 = vmatprep.subr.bf16.mxu1 %v15150_v39  ;;  %11346 = vmatprep.subr.bf16.mxu0 %v16192_v1  ;;  %v16361_v39 = vld [vmem:[#allocation3_spill] sm:$0xff] }
 0xf7e   :  { %6358 = vmatprep.mubr.f32.mxu1 %v16197_v5  ;;  %9664 = vmatprep.mubr.msk.f32.mxu0 %vm11733_vm1, %v16197_v5 }
 0xf80   :  { %11318 = vmatpush1.bf16.msra.mxu1 %v15171_v44  ;;  %11348 = vmatpush3.bf16.msra.mxu0 %v15173_v11  ;;  %v16362_v44 = vld [vmem:[#allocation8_spill] sm:$0xff]  ;;  %v16363_v11 = vld [vmem:[#allocation9_spill] sm:$0xff] }
 0xf81   :  { %11320 = vmatprep.subr.bf16.mxu1 %v15180_v8  ;;  %11349 = vmatprep.subr.bf16.mxu0 %v16192_v1  ;;  %v16364_v8 = vld [vmem:[#allocation10_spill] sm:$0xff] }
 0xf84   :  { %11322 = vmatpush1.bf16.msra.mxu1 %v15202_v60  ;;  %11351 = vmatpush3.bf16.msra.mxu0 %v15204_v21  ;;  %v16365_v60 = vld [vmem:[#allocation11_spill] sm:$0xff]  ;;  %v16366_v21 = vld [vmem:[#allocation12_spill] sm:$0xff] }
 0xf85   :  { %11324 = vmatprep.subr.bf16.mxu1 %v15211_v49  ;;  %11352 = vmatprep.subr.bf16.mxu0 %v16192_v1  ;;  %v16367_v49 = vld [vmem:[#allocation13_spill] sm:$0xff] }
 0xf88   :  { %11326 = vmatpush1.bf16.msra.mxu1 %v15230_v46  ;;  %11354 = vmatpush3.bf16.msra.mxu0 %v15232_v31  ;;  %v16368_v46 = vld [vmem:[#allocation14_spill] sm:$0xff]  ;;  %v16369_v31 = vld [vmem:[#allocation15_spill] sm:$0xff] }
 0xf89   :  { %11328 = vmatprep.subr.bf16.mxu1 %v15239_v36  ;;  %11355 = vmatprep.subr.bf16.mxu0 %v16192_v1  ;;  %v16370_v36 = vld [vmem:[#allocation16_spill] sm:$0xff] }
 0xf8c   :  { %11330 = vmatpush1.bf16.msra.mxu1 %v15258_v23  ;;  %11357 = vmatpush3.bf16.msra.mxu0 %v15260_v20  ;;  %v16371_v23 = vld [vmem:[#allocation17_spill] sm:$0xff]  ;;  %v16372_v20 = vld [vmem:[#allocation18_spill] sm:$0xff] }
 0xf8d   :  { %11332 = vmatprep.subr.bf16.mxu1 %v15267_v24  ;;  %11358 = vmatprep.subr.bf16.mxu0 %v16192_v1  ;;  %v16373_v24 = vld [vmem:[#allocation4_spill] sm:$0xff] }
 0xf90   :  { %11334 = vmatpush1.bf16.msra.mxu1 %v15286_v15  ;;  %11360 = vmatpush3.bf16.msra.mxu0 %v15288_v28  ;;  %v16374_v15 = vld [vmem:[#allocation5_spill] sm:$0xff] }
 0xf91   :  { %11336 = vmatprep.subr.bf16.mxu1 %v15295_v26  ;;  %11361 = vmatprep.subr.bf16.mxu0 %v16192_v1 }
 0xf94   :  { %11338 = vmatpush1.bf16.msra.mxu1 %v15314_v22  ;;  %11363 = vmatpush3.bf16.msra.mxu0 %v15316_v2  ;;  %v7782_v22 = vld [vmem:[%s16056_s16 + $0x3] sm:$0x7] }
 0xf95   :  { %11340 = vmatprep.subr.bf16.mxu1 %v15323_v52  ;;  %11364 = vmatprep.subr.bf16.mxu0 %v16192_v1  ;;  %v7733_v2 = vld [vmem:[%s16054_s15 + $0x3] sm:$0x7]  ;;  %v6062_v12 = vrot.slane %v7782_v22, %v12743_v41 }
 0xf96   :  { %v5845_v52 = vrot.slane %v7733_v2, %v16219_v4 }
 0xf98   :  { %11342 = vmatpush1.bf16.msra.mxu1 %v15336_v48  ;;  %11366 = vmatpush3.bf16.msra.mxu0 %v15338_v58  ;;  %v6054_v48 = vrot.slane %v7782_v22, %v16219_v4  ;;  %v5849_v58 = vrot.slane %v7733_v2, %v16220_v14 }
 0xf99   :  { %11368 = vmatprep.subr.bf16.mxu1 %v15356_v32  ;;  %11399 = vmatprep.subr.bf16.mxu0 %v16192_v1  ;;  %v6058_v32 = vrot.slane %v7782_v22, %v16220_v14 }
 0xf9b   :  { %6359 = vmatmul.mubr.f32.vlgmr.msra.gmra.mrb[42].mxu1 %v15637_v56  ;;  %9665 = vmatmul.mubr.f32.vlgmr.msra.gmra.mrb[54].mxu0 %v15637_v56 }
 0xf9c   :  { %11370 = vmatpush1.bf16.msra.mxu1 %v15367_v42  ;;  %11401 = vmatpush3.bf16.msra.mxu0 %v15373_v0  ;;  %v11535_v42 = vadd.f32 %v6054_v48, %v5845_v52 }
 0xf9d   :  { %11372 = vmatprep.subr.bf16.mxu1 %v15383_v51  ;;  %11402 = vmatprep.subr.bf16.mxu0 %v16192_v1 }
 0xf9e   :  { %6599 = vmatprep.mubr.f32.mxu1 %v16197_v5  ;;  %9699 = vmatprep.mubr.msk.f32.mxu0 %vm11733_vm1, %v16197_v5 }
 0xfa0   :  { %11374 = vmatpush1.bf16.msra.mxu1 %v15395_v17  ;;  %11404 = vmatpush3.bf16.msra.mxu0 %v15401_v27  ;;  %v11537_v17 = vadd.f32 %v6058_v32, %v5849_v58 }
 0xfa1   :  { %11376 = vmatprep.subr.bf16.mxu1 %v15411_v25  ;;  %11405 = vmatprep.subr.bf16.mxu0 %v16192_v1 }
 0xfa4   :  { %11378 = vmatpush1.bf16.msra.mxu1 %v15423_v18  ;;  %11407 = vmatpush3.bf16.msra.mxu0 %v16358_v61  ;;  %v5853_v61 = vrot.slane %v7733_v2, %v12743_v41 }
 0xfa5   :  { %11380 = vmatprep.subr.bf16.mxu1 %v16359_v34  ;;  %11408 = vmatprep.subr.bf16.mxu0 %v16192_v1 }
 0xfa8   :  { %11382 = vmatpush1.bf16.msra.mxu1 %v16360_v10  ;;  %11410 = vmatpush3.bf16.msra.mxu0 %v16361_v39  ;;  %v6277_v10 = vld [vmem:[%s16056_s16] sm:$0x7] }
 0xfa9   :  { %11384 = vmatprep.subr.bf16.mxu1 %v16362_v44  ;;  %11411 = vmatprep.subr.bf16.mxu0 %v16192_v1 }
 0xfac   :  { %11386 = vmatpush1.bf16.msra.mxu1 %v16363_v11  ;;  %11413 = vmatpush3.bf16.msra.mxu0 %v16364_v8 }
 0xfad   :  { %11388 = vmatprep.subr.bf16.mxu1 %v16365_v60  ;;  %11414 = vmatprep.subr.bf16.mxu0 %v16192_v1  ;;  %v6282_v60 = vrot.slane %v6277_v10, %v16219_v4 }
 0xfb0   :  { %11390 = vmatpush1.bf16.msra.mxu1 %v16366_v21  ;;  %11416 = vmatpush3.bf16.msra.mxu0 %v16367_v49  ;;  %v6286_v21 = vrot.slane %v6277_v10, %v16220_v14 }
 0xfb1   :  { %11392 = vmatprep.subr.bf16.mxu1 %v16368_v46  ;;  %11417 = vmatprep.subr.bf16.mxu0 %v16192_v1 }
 0xfb4   :  { %11394 = vmatpush1.bf16.msra.mxu1 %v16369_v31  ;;  %11419 = vmatpush3.bf16.msra.mxu0 %v16370_v36 }
 0xfb5   :  { %11396 = vmatprep.subr.bf16.mxu1 %v16371_v23  ;;  %11420 = vmatprep.subr.bf16.mxu0 %v16192_v1 }
 0xfb8   :  { %11398 = vmatpush1.bf16.msra.mxu1 %v16372_v20  ;;  %11422 = vmatpush3.bf16.msra.mxu0 %v16373_v24 }
 0xfb9   :  { %11424 = vmatprep.subr.bf16.mxu1 %v16374_v15  ;;  %11455 = vmatprep.subr.bf16.mxu0 %v16192_v1 }
0x102e   :  { %v5997_v28 = vpop.f32.mrb[50].mxu0 }
0x102f   :  { %v9596_v26 = vpop.f32.mrb[51].mxu0  ;;  %v5998_v11 = vadd.f32 %v5997_v28, %v5853_v61 }
0x104e   :  { %v6132_v0 = vpop.f32.mrb[40].mxu1  ;;  %v6203_v51 = vpop.f32.mrb[52].mxu0 }
0x104f   :  { %v11536_v27 = vadd.f32 %v11535_v42, %v6132_v0  ;;  %v6134_v25 = vpop.f32.mrb[41].mxu1  ;;  %v9631_v18 = vpop.f32.mrb[53].mxu0  ;;  %v6204_v39 = vadd.f32 %v6203_v51, %v6062_v12 }
0x1050   :  { %v11538_v40 = vadd.f32 %v11537_v17, %v6134_v25 }
0x1051   :  { %v7783_v56 = vmul.f32 -1.442695, %v11536_v27 }
0x1052   :  { %v7784_v53 = vmul.f32 -1.442695, %v11538_v40 }
0x1053   :  { %11702 = vpow2.f32 %v7783_v56 }
0x1054   :  { %11704 = vpow2.f32 %v7784_v53  ;;  %v6463_v53 = vrot.slane %v15627_v19, 6  ;;  %v16376_v19 = vld [vmem:[#allocation20_spill] sm:$0xff] }
0x105d   :  { %v11703_v33 = vpop.eup %11702 }
0x105e   :  { %v6211_v57 = vadd.f32 1.0, %v11703_v33  ;;  %v11705_v47 = vpop.eup %11704 }
0x105f   :  { %v6218_v34 = vadd.f32 1.0, %v11705_v47 }
0x1060   :  { %11706 = vrcp.f32 %v6211_v57 }
0x1061   :  { %11708 = vrcp.f32 %v6218_v34 }
0x106a   :  { %v11707_v44 = vpop.eup %11706 }
0x106b   :  { %v6221_v8 = vmul.f32 %v11707_v44, %v6204_v39  ;;  %v11709_v2 = vpop.eup %11708 }
0x106c   :  { %v6224_v58 = vsub.f32 1.0, %v11709_v2  ;;  %v6226_v0 = vmul.f32 %v11709_v2, %v15603_v43  ;;  %v7884_v2 = vld [vmem:[%s16056_s16 + $0x3] sm:$0x7] }
0x106d   :  { %v6222_v49 = vadd.f32 %v6221_v8, %v5998_v11  ;;  %v6914_v8 = vld [vmem:[%s16057_s17 + $0x40] sm:$0xff] }
0x106e   :  { %v6360_v46 = vpop.f32.mrb[42].mxu1  ;;  %v6431_v31 = vpop.f32.mrb[54].mxu0 }
0x106f   :  { %11710 = vtanh.f32 %v6222_v49  ;;  %v6361_v36 = vadd.f32 %v6360_v46, %v6282_v60  ;;  %v6362_v23 = vpop.f32.mrb[43].mxu1  ;;  %v9666_v20 = vpop.f32.mrb[55].mxu0  ;;  %v6915_v60 = vld [vmem:[%s16057_s17 + $0x48] sm:$0xff]  ;;  %v6916_v49 = vld [vmem:[%s16057_s17 + $0x50] sm:$0xff]  ;;  %v6917_v46 = vld [vmem:[%s16057_s17 + $0x58] sm:$0xff] }
0x1070   :  { %v6363_v24 = vadd.f32 %v6362_v23, %v6286_v21  ;;  %v11495_v21 = vpack.c.bf16 %v6915_v60, %v6914_v8  ;;  %v6919_v23 = vld [vmem:[%s16057_s17 + $0x68] sm:$0xff] }
0x1071   :  { %v6436_v15 = vrot.slane %v6361_v36, 2  ;;  %v6918_v36 = vld [vmem:[%s16057_s17 + $0x60] sm:$0xff] }
0x1072   :  { %v6446_v26 = vrot.slane %v6363_v24, 2  ;;  %v11503_v20 = vpack.c.bf16 %v6919_v23, %v6918_v36  ;;  %v6920_v24 = vld [vmem:[%s16057_s17 + $0x70] sm:$0xff] }
0x1073   :  { %v6438_v22 = vadd.f32 %v6436_v15, %v16296_v3  ;;  %v6921_v15 = vld [vmem:[%s16057_s17 + $0x78] sm:$0xff] }
0x1074   :  { %v6448_v28 = vadd.f32 %v6446_v26, %v16297_v59  ;;  %v6290_v59 = vrot.slane %v6277_v10, %v12743_v41  ;;  %v6913_v10 = vld [vmem:[%s16057_s17 + $0x38] sm:$0xff]  ;;  %v11507_v26 = vpack.c.bf16 %v6921_v15, %v6920_v24 }
0x1075   :  { %v7785_v52 = vmul.f32 -1.442695, %v6438_v22 }
0x1076   :  { %v7786_v48 = vmul.f32 -1.442695, %v6448_v28  ;;  %v6432_v18 = vadd.f32 %v6431_v31, %v6290_v59  ;;  %v11499_v31 = vpack.c.bf16 %v6917_v46, %v6916_v49 }
0x1077   :  { %11712 = vpow2.f32 %v7785_v52  ;;  %v7835_v52 = vld [vmem:[%s16054_s15 + $0x3] sm:$0x7] }
0x1078   :  { %11714 = vpow2.f32 %v7786_v48  ;;  %v6456_v56 = vrot.slane %v6432_v18, 2  ;;  %v6520_v48 = vrot.slane %v7835_v52, %v16219_v4 }
0x1079   :  { %v11711_v32 = vpop.eup %11710 }
0x107a   :  { %v6225_v42 = vmul.f32 %v11711_v32, %v6224_v58  ;;  %v6729_v58 = vrot.slane %v7884_v2, %v16219_v4  ;;  %v6524_v32 = vrot.slane %v7835_v52, %v16220_v14 }
0x107c   :  { %v15929_v51 = vadd.f32 %v6226_v0, %v6225_v42  ;;  %v6733_v42 = vrot.slane %v7884_v2, %v16220_v14  ;;  %v11539_v0 = vadd.f32 %v6729_v58, %v6520_v48  ;;  %v6528_v14 = vrot.slane %v7835_v52, %v12743_v41 }
0x107e   :  { %6228 = vst [vmem:[#allocation2 + $0xc] sm:$0x3] %v15929_v51 }
0x1081   :  { %v11713_v17 = vpop.eup %11712 }
0x1082   :  { %v11715_v27 = vpop.eup %11714  ;;  %v6442_v25 = vadd.f32 1.0, %v11713_v17 }
0x1083   :  { %v6452_v3 = vadd.f32 1.0, %v11715_v27 }
0x1084   :  { %11716 = vrcp.f32 %v6442_v25  ;;  %v11541_v25 = vadd.f32 %v6733_v42, %v6524_v32 }
0x1085   :  { %11718 = vrcp.f32 %v6452_v3 }
0x108e   :  { %v11717_v40 = vpop.eup %11716 }
0x108f   :  { %v11719_v33 = vpop.eup %11718  ;;  %v6458_v57 = vmul.f32 %v11717_v40, %v6456_v56 }
0x1090   :  { %v6465_v43 = vmul.f32 %v11719_v33, %v6463_v53  ;;  %v6461_v12 = vsub.f32 1.0, %v11719_v33 }
0x1091   :  { %v6459_v47 = vadd.f32 %v6458_v57, %v16298_v55  ;;  %v16375_v55 = vld [vmem:[#allocation19_spill] sm:$0xff] }
0x1093   :  { %11720 = vtanh.f32 %v6459_v47 }
0x109d   :  { %v11721_v61 = vpop.eup %11720 }
0x109e   :  { %v6462_v34 = vmul.f32 %v11721_v61, %v6461_v12 }
0x10a0   :  { %v6466_v39 = vadd.f32 %v6465_v43, %v6462_v34  ;;  %v6737_v43 = vrot.slane %v7884_v2, %v12743_v41  ;;  %v7887_v41 = vld [vmem:[%s16058_s18] ss:$0 sm:$0xff] }
0x10a2   :  { %v6533_v44 = vrot.slane %v6466_v39, 6 }
0x10a4   :  { %6600 = vmatmul.mubr.f32.vlgmr.msra.gmra.mrb[44].mxu1 %v6533_v44  ;;  %9700 = vmatmul.mubr.f32.vlgmr.msra.gmra.mrb[56].mxu0 %v6533_v44 }
0x10a5   :  { %11426 = vmatpush1.bf16.msra.mxu1 %v15629_v63  ;;  %11457 = vmatpush3.bf16.msra.mxu0 %v15631_v37  ;;  %v16377_v63 = vld [vmem:[#allocation21_spill] sm:$0xff]  ;;  %v16379_v37 = vld [vmem:[#allocation23_spill] sm:$0xff] }
0x10a6   :  { %11428 = vmatprep.subr.bf16.mxu1 %v15639_v7  ;;  %11458 = vmatprep.subr.bf16.mxu0 %v16192_v1  ;;  %v16380_v7 = vld [vmem:[#allocation24_spill] sm:$0xff] }
0x10a7   :  { %6805 = vmatprep.mubr.f32.mxu1 %v16197_v5  ;;  %9734 = vmatprep.mubr.msk.f32.mxu0 %vm11733_vm1, %v16197_v5  ;;  %v16378_v5 = vld [vmem:[#allocation22_spill] sm:$0xff] }
0x10a9   :  { %11430 = vmatpush1.bf16.msra.mxu1 %v15660_v62  ;;  %11460 = vmatpush3.bf16.msra.mxu0 %v15662_v13  ;;  %v16381_v62 = vld [vmem:[#allocation25_spill] sm:$0xff]  ;;  %v16382_v13 = vld [vmem:[#allocation26_spill] sm:$0xff] }
0x10aa   :  { %11432 = vmatprep.subr.bf16.mxu1 %v15669_v54  ;;  %11461 = vmatprep.subr.bf16.mxu0 %v16192_v1  ;;  %v6904_v54 = vld [vmem:[#allocation2] sm:$0xff] }
0x10ad   :  { %11434 = vmatpush1.bf16.msra.mxu1 %v15691_v45  ;;  %11463 = vmatpush3.bf16.msra.mxu0 %v15693_v6  ;;  %v6906_v45 = vld [vmem:[%s16057_s17] sm:$0xff]  ;;  %v6907_v6 = vld [vmem:[%s16057_s17 + $0x8] sm:$0xff] }
0x10ae   :  { %11436 = vmatprep.subr.bf16.mxu1 %v16375_v55  ;;  %11464 = vmatprep.subr.bf16.mxu0 %v16192_v1 }
0x10b1   :  { %11438 = vmatpush1.bf16.msra.mxu1 %v16376_v19  ;;  %11466 = vmatpush3.bf16.msra.mxu0 %v16377_v63 }
0x10b2   :  { %11440 = vmatprep.subr.bf16.mxu1 %v16378_v5  ;;  %11467 = vmatprep.subr.bf16.mxu0 %v16192_v1 }
0x10b5   :  { %11442 = vmatpush1.bf16.msra.mxu1 %v16379_v37  ;;  %11469 = vmatpush3.bf16.msra.mxu0 %v16380_v7 }
0x10b6   :  { %11444 = vmatprep.subr.bf16.mxu1 %v16381_v62  ;;  %11470 = vmatprep.subr.bf16.mxu0 %v16192_v1 }
0x10b9   :  { %11446 = vmatpush1.bf16.msra.mxu1 %v16382_v13  ;;  %11472 = vmatpush3.bf16.msra.mxu0 %v15777_v50 }
0x10ba   :  { %11448 = vmatprep.subr.bf16.mxu1 %v15784_v29  ;;  %11473 = vmatprep.subr.bf16.mxu0 %v16192_v1  ;;  %v11479_v29 = vpack.c.bf16 %v6907_v6, %v6906_v45 }
0x10bd   :  { %11450 = vmatpush1.bf16.msra.mxu1 %v15803_v9  ;;  %11475 = vmatpush3.bf16.msra.mxu0 %v15805_v35  ;;  %v6910_v9 = vld [vmem:[%s16057_s17 + $0x20] sm:$0xff]  ;;  %v6911_v35 = vld [vmem:[%s16057_s17 + $0x28] sm:$0xff] }
0x10be   :  { %11452 = vmatprep.subr.bf16.mxu1 %v15812_v30  ;;  %11476 = vmatprep.subr.bf16.mxu0 %v16192_v1  ;;  %v6908_v1 = vld [vmem:[%s16057_s17 + $0x10] sm:$0xff]  ;;  %v6909_v30 = vld [vmem:[%s16057_s17 + $0x18] sm:$0xff] }
0x10bf   :  { %v11483_v50 = vpack.c.bf16 %v6909_v30, %v6908_v1 }
0x10c1   :  { %11454 = vmatpush1.bf16.msra.mxu1 %v15825_v38  ;;  %11478 = vmatpush3.bf16.msra.mxu0 %v15827_v16  ;;  %v11487_v38 = vpack.c.bf16 %v6911_v35, %v6910_v9  ;;  %v6912_v16 = vld [vmem:[%s16057_s17 + $0x30] sm:$0xff] }
0x10c2   :  { %11480 = vmatprep.subr.bf16.mxu1 %v11479_v29  ;;  %v11491_v11 = vpack.c.bf16 %v6913_v10, %v6912_v16 }
0x10c4   :  { %6806 = vmatmul.mubr.f32.vlgmr.msra.gmra.mrb[44].mxu1 %v15929_v51  ;;  %9735 = vmatmul.mubr.f32.vlgmr.msra.gmra.mrb[58].mxu0 %v15929_v51 }
0x10c5   :  { %9769 = vmatprep.mubr.f32.mxu1 %v6904_v54  ;;  %11482 = vmatpush3.bf16.msra.mxu1 %v11479_v29 }
0x10c6   :  { %11484 = vmatprep.subr.bf16.mxu1 %v11483_v50 }
0x10c9   :  { %11486 = vmatpush3.bf16.msra.mxu1 %v11483_v50 }
0x10ca   :  { %11488 = vmatprep.subr.bf16.mxu1 %v11487_v38 }
0x10cd   :  { %11490 = vmatpush3.bf16.msra.mxu1 %v11487_v38 }
0x10ce   :  { %11492 = vmatprep.subr.bf16.mxu1 %v11491_v11 }
0x10d1   :  { %11494 = vmatpush3.bf16.msra.mxu1 %v11491_v11 }
0x10d2   :  { %11496 = vmatprep.subr.bf16.mxu1 %v11495_v21 }
0x10d5   :  { %11498 = vmatpush3.bf16.msra.mxu1 %v11495_v21 }
0x10d6   :  { %11500 = vmatprep.subr.bf16.mxu1 %v11499_v31 }
0x10d9   :  { %11502 = vmatpush3.bf16.msra.mxu1 %v11499_v31 }
0x10da   :  { %11504 = vmatprep.subr.bf16.mxu1 %v11503_v20 }
0x10dd   :  { %11506 = vmatpush3.bf16.msra.mxu1 %v11503_v20 }
0x10de   :  { %11508 = vmatprep.subr.bf16.mxu1 %v11507_v26 }
0x10e1   :  { %11510 = vmatpush3.bf16.msra.mxu1 %v11507_v26 }
0x1177   :  { %v6672_v22 = vpop.f32.mrb[56].mxu0 }
0x1178   :  { %v9701_v28 = vpop.f32.mrb[57].mxu0  ;;  %v6673_v34 = vadd.f32 %v6672_v22, %v6528_v14 }
0x1197   :  { %v6807_v17 = vpop.f32.mrb[44].mxu1  ;;  %v6878_v27 = vpop.f32.mrb[58].mxu0 }
0x1198   :  { %v11540_v3 = vadd.f32 %v11539_v0, %v6807_v17  ;;  %v6809_v59 = vpop.f32.mrb[45].mxu1  ;;  %v9736_v18 = vpop.f32.mrb[59].mxu0  ;;  %v6879_v12 = vadd.f32 %v6878_v27, %v6737_v43 }
0x1199   :  { %v11542_v40 = vadd.f32 %v11541_v25, %v6809_v59 }
0x119a   :  { %v7885_v56 = vmul.f32 -1.442695, %v11540_v3 }
0x119b   :  { %v7886_v53 = vmul.f32 -1.442695, %v11542_v40 }
0x119c   :  { %11722 = vpow2.f32 %v7885_v56 }
0x119d   :  { %11724 = vpow2.f32 %v7886_v53 }
0x11a6   :  { %v11723_v33 = vpop.eup %11722 }
0x11a7   :  { %v6886_v57 = vadd.f32 1.0, %v11723_v33  ;;  %v11725_v4 = vpop.eup %11724 }
0x11a8   :  { %v6893_v47 = vadd.f32 1.0, %v11725_v4 }
0x11a9   :  { %11726 = vrcp.f32 %v6886_v57 }
0x11aa   :  { %11728 = vrcp.f32 %v6893_v47 }
0x11b3   :  { %v11727_v61 = vpop.eup %11726 }
0x11b4   :  { %v6896_v39 = vmul.f32 %v11727_v61, %v6879_v12  ;;  %v11729_v55 = vpop.eup %11728 }
0x11b5   :  { %v6899_v19 = vsub.f32 1.0, %v11729_v55  ;;  %v6901_v37 = vmul.f32 %v11729_v55, %v15929_v51 }
0x11b6   :  { %v6897_v44 = vadd.f32 %v6896_v39, %v6673_v34 }
0x11b8   :  { %11730 = vtanh.f32 %v6897_v44 }
0x11c2   :  { %v11731_v63 = vpop.eup %11730 }
0x11c3   :  { %v6900_v5 = vmul.f32 %v11731_v63, %v6899_v19 }
0x11c5   :  { %v6902_v7 = vadd.f32 %v6901_v37, %v6900_v5 }
0x11c7   :  { %6903 = vst [vmem:[#allocation2 + $0xe] sm:$0x3] %v6902_v7 }
0x11ce   :  { %v6905_v62 = vld [vmem:[#allocation2 + $0x8] sm:$0xff] }
0x11cf   :  { %9770 = vmatmul.mubr.f32.vlgmr.msra.gmra.mrb[46].mxu1 %v6905_v62 }
0x12a2   :  { %v9771_v13 = vpop.f32.mrb[46].mxu1 }
0x12a3   :  { %v7001_v54 = vadd.f32 %v9771_v13, %v7887_v41  ;;  %v6995_v45 = vpop.f32.mrb[47].mxu1 }
0x12a4   :  { %v6996_v6 = vadd.f32 %v7887_v41, %v6995_v45 }
0x12a5   :  { %7005 = vst [vmem:[%s16059_s19 + $0x8] sm:$0xff] %v7001_v54 }
0x12a6   :  { %7004 = vst [vmem:[%s16059_s19] sm:$0xff] %v6996_v6 }

</bundles_post_ra>
